<compile_context>
chip_gen: v5e
topology: v5e:2x2
jax: 0.10.0
libtpu: 0.0.40
codegen_flags: <defaults>
</compile_context>

<pallas_src>
import jax
import jax.numpy as jnp
from jax.experimental import pallas as pl
from jax.experimental.pallas import tpu as pltpu


def _round_up(x, m):
    return (x + m - 1) // m * m


def _pick_row_tile(h2, w2, target_rows=512):
    """Largest even divisor of h2 whose tile has at most ~target_rows matmul rows."""
    best = 2
    for cand in range(2, h2 + 1, 2):
        if h2 % cand == 0 and cand * w2 <= max(target_rows, 2 * w2):
            best = cand
    return best


def _make_kernels(th2, w2, c_in_p, c_out_p):
    """th2: output rows (upsampled space) per grid step; w2: full upsampled width."""
    half = th2 // 2
    nrows = half + 2          # original-resolution rows needed per tile (incl. 1-row halo)
    wq = w2 + 2               # padded, column-upsampled width

    def conv_tile(x_ref, w_ref):
        """Fused upsample + pad + im2col + 3x3 conv for one (th2, w2) tile of output rows.

        x_ref : (1, H+2, w2+2, c_in_p) bf16  column-upsampled, zero-padded input (one image)
        w_ref : (9, c_in_p, c_out_p)  bf16   conv weights, one (C_in,C_out) slice per tap
        returns (th2*w2, c_out_p) f32 conv output (no bias -- bias cancels in train-mode BN).
        """
        t = pl.program_id(1)
        row0 = pl.multiple_of(t * half, half)
        xin = x_ref[0, pl.ds(row0, nrows), :, :]               # (nrows, wq, c_in_p)
        # nearest-neighbour x2 row upsample, done in VMEM: up[s] = xin[s // 2]
        up = jnp.broadcast_to(xin[:, None], (nrows, 2, wq, c_in_p))
        up = up.reshape(2 * nrows, wq, c_in_p)                 # (th2 + 4, wq, c_in_p)

        acc = jnp.zeros((th2 * w2, c_out_p), jnp.float32)
        k = 0
        for ky in range(3):
            for kx in range(3):
                patch = up[ky + 1:ky + 1 + th2, kx:kx + w2, :]  # (th2, w2, c_in_p)
                patch = patch.reshape(th2 * w2, c_in_p)
                acc = acc + jnp.dot(patch, w_ref[k],
                                    preferred_element_type=jnp.float32)
                k += 1
        return acc

    def stats_kernel(x_ref, w_ref, sum_ref, ssq_ref):
        """Pass 1: per-channel sum / sum-of-squares of the conv output (train-mode BN stats)."""
        @pl.when(pl.program_id(1) == 0)
        def _():
            sum_ref[...] = jnp.zeros_like(sum_ref)
            ssq_ref[...] = jnp.zeros_like(ssq_ref)

        acc = conv_tile(x_ref, w_ref)                          # (th2*w2, c_out_p) f32
        sum_ref[...] += jnp.sum(acc, axis=0, keepdims=True)[None]
        ssq_ref[...] += jnp.sum(acc * acc, axis=0, keepdims=True)[None]

    def bn_relu_kernel(x_ref, w_ref, scale_ref, shift_ref, o_ref):
        """Pass 2: recompute conv, fuse normalize + affine + ReLU; final output written once."""
        acc = conv_tile(x_ref, w_ref)                          # (th2*w2, c_out_p) f32
        y = jnp.maximum(acc * scale_ref[...] + shift_ref[...], 0.0)
        o_ref[0] = y.reshape(th2, w2, c_out_p).astype(o_ref.dtype)

    return stats_kernel, bn_relu_kernel


@jax.jit
def up_conv_forward(x, conv_w, conv_b, gamma, beta, eps=1e-5):
    """x: (N, C_in, H, W) f32 (NCHW, like PyTorch). Returns (N, C_out, 2H, 2W) f32."""
    del conv_b  # cancels exactly in training-mode BatchNorm (see header comment)
    N, C_in, H, W = x.shape
    C_out = conv_w.shape[0]
    H2, W2 = 2 * H, 2 * W
    C_in_p = _round_up(C_in, 128)      # lane-dense input channels / MXU K alignment
    C_out_p = _round_up(C_out, 128)    # lane-dense output channels / MXU N dim

    # --- tiny O(|x|) XLA glue: NHWC, duplicate columns x2, zero-pad H/W by 1, pad channels,
    #     cast to bf16.  Row duplication + im2col happen inside the kernel.
    x_nhwc = jnp.transpose(x, (0, 2, 3, 1))                          # (N, H, W, C_in)
    xw = jnp.repeat(x_nhwc, 2, axis=2)                               # (N, H, W2, C_in)
    xq = jnp.pad(xw, ((0, 0), (1, 1), (1, 1), (0, C_in_p - C_in)))   # (N, H+2, W2+2, C_in_p)
    xq = xq.astype(jnp.bfloat16)

    # conv weight (O, I, 3, 3) -> (3, 3, I, O) -> zero-padded (9, C_in_p, C_out_p) bf16
    w_taps = jnp.transpose(conv_w, (2, 3, 1, 0))
    w_taps = jnp.pad(w_taps, ((0, 0), (0, 0), (0, C_in_p - C_in), (0, C_out_p - C_out)))
    w_taps = w_taps.reshape(9, C_in_p, C_out_p).astype(jnp.bfloat16)

    th2 = _pick_row_tile(H2, W2)                 # ~512 matmul rows per grid step
    grid = (N, H2 // th2)
    stats_kernel, bn_relu_kernel = _make_kernels(th2, W2, C_in_p, C_out_p)

    x_spec = pl.BlockSpec((1, H + 2, W2 + 2, C_in_p), lambda n, t: (n, 0, 0, 0))
    w_spec = pl.BlockSpec((9, C_in_p, C_out_p), lambda n, t: (0, 0, 0))

    # ---- pass 1: fused conv -> per-channel sum / sum-of-squares (per batch index) ----
    sums, ssqs = pl.pallas_call(
        stats_kernel,
        out_shape=(jax.ShapeDtypeStruct((N, 1, C_out_p), jnp.float32),
                   jax.ShapeDtypeStruct((N, 1, C_out_p), jnp.float32)),
        grid=grid,
        in_specs=[x_spec, w_spec],
        out_specs=(pl.BlockSpec((1, 1, C_out_p), lambda n, t: (n, 0, 0)),
                   pl.BlockSpec((1, 1, C_out_p), lambda n, t: (n, 0, 0))),
        compiler_params=pltpu.CompilerParams(
            dimension_semantics=("parallel", "arbitrary"),
            vmem_limit_bytes=32 * 1024 * 1024),
    )(xq, w_taps)

    # ---- training-mode BN statistics (biased variance); conv bias folded away exactly ----
    m_count = N * H2 * W2
    mean = jnp.sum(sums, axis=(0, 1)) / m_count                      # (C_out_p,)
    var = jnp.maximum(jnp.sum(ssqs, axis=(0, 1)) / m_count - mean * mean, 0.0)
    gamma_p = jnp.pad(gamma.astype(jnp.float32), (0, C_out_p - C_out))
    beta_p = jnp.pad(beta.astype(jnp.float32), (0, C_out_p - C_out))
    scale = gamma_p * jax.lax.rsqrt(var + eps)
    shift = beta_p - mean * scale
    scale2d = scale.reshape(1, C_out_p)
    shift2d = shift.reshape(1, C_out_p)

    # ---- pass 2: fused conv + BN + ReLU; output hits HBM exactly once ----
    out_p = pl.pallas_call(
        bn_relu_kernel,
        out_shape=jax.ShapeDtypeStruct((N, H2, W2, C_out_p), jnp.float32),
        grid=grid,
        in_specs=[x_spec, w_spec,
                  pl.BlockSpec((1, C_out_p), lambda n, t: (0, 0)),
                  pl.BlockSpec((1, C_out_p), lambda n, t: (0, 0))],
        out_specs=pl.BlockSpec((1, th2, W2, C_out_p), lambda n, t: (n, t, 0, 0)),
        compiler_params=pltpu.CompilerParams(
            dimension_semantics=("parallel", "parallel"),
            vmem_limit_bytes=32 * 1024 * 1024),
    )(xq, w_taps, scale2d, shift2d)

    out = out_p[..., :C_out]                                         # drop channel padding
    return jnp.transpose(out, (0, 3, 1, 2))                          # back to NCHW


def _reference_forward(x, conv_w, conv_b, gamma, beta, eps=1e-5):
    """Pure-JAX f32 reference of the PyTorch forward (training-mode BN)."""
    xu = jnp.repeat(jnp.repeat(x, 2, axis=2), 2, axis=3)
    y = jax.lax.conv_general_dilated(
        xu, conv_w, window_strides=(1, 1), padding=((1, 1), (1, 1)),
        dimension_numbers=("NCHW", "OIHW", "NCHW"))
    y = y + conv_b[None, :, None, None]
    mean = y.mean(axis=(0, 2, 3), keepdims=True)
    var = y.var(axis=(0, 2, 3), keepdims=True)   # biased, as in PyTorch BN training
    yn = (y - mean) * jax.lax.rsqrt(var + eps)
    yn = yn * gamma[None, :, None, None] + beta[None, :, None, None]
    return jnp.maximum(yn, 0.0)


if __name__ == "__main__":
    key = jax.random.PRNGKey(0)
    k_x, k_w, k_b, k_g, k_be = jax.random.split(key, 5)

    N, in_ch, out_ch, H, W = 2, 4, 8, 16, 16
    x = jax.random.normal(k_x, (N, in_ch, H, W), dtype=jnp.float32)
    conv_w = 0.1 * jax.random.normal(k_w, (out_ch, in_ch, 3, 3), dtype=jnp.float32)
    conv_b = 0.1 * jax.random.normal(k_b, (out_ch,), dtype=jnp.float32)
    gamma = 1.0 + 0.1 * jax.random.normal(k_g, (out_ch,), dtype=jnp.float32)
    beta = 0.1 * jax.random.normal(k_be, (out_ch,), dtype=jnp.float32)

    out = up_conv_forward(x, conv_w, conv_b, gamma, beta)
    out = jax.block_until_ready(out)

    ref = _reference_forward(x, conv_w, conv_b, gamma, beta)
    assert out.shape == (N, out_ch, 2 * H, 2 * W), out.shape
    err = float(jnp.max(jnp.abs(out - ref)))
    # bf16 MXU operands vs. f32 reference: worst-case error after BN normalization ~1e-2.
    assert jnp.allclose(out, ref, atol=3e-2, rtol=3e-2), err

    print("KERNEL_OK")
</pallas_src>

<mosaic_0001>
module attributes {stable_mosaic.version = 11 : i64} {
  func.func @stats_kernel(%arg0: i32, %arg1: i32, %arg2: memref<1x18x34x128xbf16, #tpu.memory_space<vmem>>, %arg3: memref<9x128x128xbf16, #tpu.memory_space<vmem>>, %arg4: memref<1x1x128xf32, #tpu.memory_space<vmem>>, %arg5: memref<1x1x128xf32, #tpu.memory_space<vmem>>) attributes {dimension_semantics = [#tpu.dimension_semantics<parallel>, #tpu.dimension_semantics<arbitrary>], iteration_bounds = array<i64: 2, 2>, scalar_prefetch = 0 : i64, scratch_operands = 0 : i64, tpu.core_type = #tpu.core_type<tc>, window_params = [{transform_indices = @transform_0, window_bounds = array<i64: 1, 18, 34, 128>}, {pipeline_mode = #tpu.pipeline_mode<synchronous>, transform_indices = @transform_1, window_bounds = array<i64: 9, 128, 128>}, {transform_indices = @transform_2, window_bounds = array<i64: 1, 1, 128>}, {transform_indices = @transform_3, window_bounds = array<i64: 1, 1, 128>}]} {
    %c0_i32 = arith.constant 0 : i32
    %0 = arith.cmpi eq, %arg1, %c0_i32 : i32
    %1 = arith.extui %0 : i1 to i32
    %c0_i32_0 = arith.constant 0 : i32
    %2 = arith.cmpi ne, %1, %c0_i32_0 : i32
    scf.if %2 {
      %cst_45 = arith.constant 0.000000e+00 : f32
      %80 = vector.broadcast %cst_45 : f32 to vector<1x1x128xf32>
      %c0_46 = arith.constant 0 : index
      %c0_47 = arith.constant 0 : index
      %c0_48 = arith.constant 0 : index
      %81 = vector.load %arg4[%c0_46, %c0_47, %c0_48] : memref<1x1x128xf32, #tpu.memory_space<vmem>>, vector<1x1x128xf32>
      tpu.vector_store %arg4[%c0_46, %c0_47, %c0_48], %80 {strides = array<i32>} : memref<1x1x128xf32, #tpu.memory_space<vmem>>, vector<1x1x128xf32>,
      %cst_49 = arith.constant 0.000000e+00 : f32
      %82 = vector.broadcast %cst_49 : f32 to vector<1x1x128xf32>
      %c0_50 = arith.constant 0 : index
      %c0_51 = arith.constant 0 : index
      %c0_52 = arith.constant 0 : index
      %83 = vector.load %arg5[%c0_50, %c0_51, %c0_52] : memref<1x1x128xf32, #tpu.memory_space<vmem>>, vector<1x1x128xf32>
      tpu.vector_store %arg5[%c0_50, %c0_51, %c0_52], %82 {strides = array<i32>} : memref<1x1x128xf32, #tpu.memory_space<vmem>>, vector<1x1x128xf32>,
    } else {
    }
    %c8_i32 = arith.constant 8 : i32
    %3 = arith.muli %arg1, %c8_i32 : i32
    %4 = tpu.assume_multiple %3, 8 : i32
    %c0 = arith.constant 0 : index
    %5 = arith.index_cast %4 : i32 to index
    %c0_1 = arith.constant 0 : index
    %c0_2 = arith.constant 0 : index
    %6 = vector.load %arg2[%c0, %5, %c0_1, %c0_2] : memref<1x18x34x128xbf16, #tpu.memory_space<vmem>>, vector<1x10x34x128xbf16>
    %7 = vector.shape_cast %6 : vector<1x10x34x128xbf16> to vector<10x34x128xbf16>
    %8 = vector.shape_cast %7 : vector<10x34x128xbf16> to vector<10x1x34x128xbf16>
    %9 = vector.shape_cast %8 : vector<10x1x34x128xbf16> to vector<10x1x34x128xbf16>
    %10 = vector.broadcast %9 : vector<10x1x34x128xbf16> to vector<10x2x34x128xbf16>
    %11 = vector.shape_cast %10 : vector<10x2x34x128xbf16> to vector<20x34x128xbf16>
    %cst = arith.constant 0.000000e+00 : f32
    %12 = vector.broadcast %cst : f32 to vector<512x128xf32>
    %13 = vector.extract_strided_slice %11 {offsets = [1, 0, 0], sizes = [16, 32, 128], strides = [1, 1, 1]} : vector<20x34x128xbf16> to vector<16x32x128xbf16>
    %14 = vector.shape_cast %13 : vector<16x32x128xbf16> to vector<512x128xbf16>
    %c0_3 = arith.constant 0 : index
    %c0_4 = arith.constant 0 : index
    %c0_5 = arith.constant 0 : index
    %15 = vector.load %arg3[%c0_3, %c0_4, %c0_5] : memref<9x128x128xbf16, #tpu.memory_space<vmem>>, vector<1x128x128xbf16>
    %16 = vector.shape_cast %15 : vector<1x128x128xbf16> to vector<128x128xbf16>
    %cst_6 = arith.constant dense<0.000000e+00> : vector<512x128xf32>
    %17 = tpu.matmul %14, %16, %cst_6 {dimension_numbers = #tpu.dot_dimension_numbers<[1], [0], [0], [1], [0, 0, 1, 1], [], []>} : vector<512x128xbf16>, vector<128x128xbf16>, vector<512x128xf32> -> vector<512x128xf32>
    %18 = arith.addf %12, %17 : vector<512x128xf32>
    %19 = vector.extract_strided_slice %11 {offsets = [1, 1, 0], sizes = [16, 32, 128], strides = [1, 1, 1]} : vector<20x34x128xbf16> to vector<16x32x128xbf16>
    %20 = vector.shape_cast %19 : vector<16x32x128xbf16> to vector<512x128xbf16>
    %c1 = arith.constant 1 : index
    %c0_7 = arith.constant 0 : index
    %c0_8 = arith.constant 0 : index
    %21 = vector.load %arg3[%c1, %c0_7, %c0_8] : memref<9x128x128xbf16, #tpu.memory_space<vmem>>, vector<1x128x128xbf16>
    %22 = vector.shape_cast %21 : vector<1x128x128xbf16> to vector<128x128xbf16>
    %cst_9 = arith.constant dense<0.000000e+00> : vector<512x128xf32>
    %23 = tpu.matmul %20, %22, %cst_9 {dimension_numbers = #tpu.dot_dimension_numbers<[1], [0], [0], [1], [0, 0, 1, 1], [], []>} : vector<512x128xbf16>, vector<128x128xbf16>, vector<512x128xf32> -> vector<512x128xf32>
    %24 = arith.addf %18, %23 : vector<512x128xf32>
    %25 = vector.extract_strided_slice %11 {offsets = [1, 2, 0], sizes = [16, 32, 128], strides = [1, 1, 1]} : vector<20x34x128xbf16> to vector<16x32x128xbf16>
    %26 = vector.shape_cast %25 : vector<16x32x128xbf16> to vector<512x128xbf16>
    %c2 = arith.constant 2 : index
    %c0_10 = arith.constant 0 : index
    %c0_11 = arith.constant 0 : index
    %27 = vector.load %arg3[%c2, %c0_10, %c0_11] : memref<9x128x128xbf16, #tpu.memory_space<vmem>>, vector<1x128x128xbf16>
    %28 = vector.shape_cast %27 : vector<1x128x128xbf16> to vector<128x128xbf16>
    %cst_12 = arith.constant dense<0.000000e+00> : vector<512x128xf32>
    %29 = tpu.matmul %26, %28, %cst_12 {dimension_numbers = #tpu.dot_dimension_numbers<[1], [0], [0], [1], [0, 0, 1, 1], [], []>} : vector<512x128xbf16>, vector<128x128xbf16>, vector<512x128xf32> -> vector<512x128xf32>
    %30 = arith.addf %24, %29 : vector<512x128xf32>
    %31 = vector.extract_strided_slice %11 {offsets = [2, 0, 0], sizes = [16, 32, 128], strides = [1, 1, 1]} : vector<20x34x128xbf16> to vector<16x32x128xbf16>
    %32 = vector.shape_cast %31 : vector<16x32x128xbf16> to vector<512x128xbf16>
    %c3 = arith.constant 3 : index
    %c0_13 = arith.constant 0 : index
    %c0_14 = arith.constant 0 : index
    %33 = vector.load %arg3[%c3, %c0_13, %c0_14] : memref<9x128x128xbf16, #tpu.memory_space<vmem>>, vector<1x128x128xbf16>
    %34 = vector.shape_cast %33 : vector<1x128x128xbf16> to vector<128x128xbf16>
    %cst_15 = arith.constant dense<0.000000e+00> : vector<512x128xf32>
    %35 = tpu.matmul %32, %34, %cst_15 {dimension_numbers = #tpu.dot_dimension_numbers<[1], [0], [0], [1], [0, 0, 1, 1], [], []>} : vector<512x128xbf16>, vector<128x128xbf16>, vector<512x128xf32> -> vector<512x128xf32>
    %36 = arith.addf %30, %35 : vector<512x128xf32>
    %37 = vector.extract_strided_slice %11 {offsets = [2, 1, 0], sizes = [16, 32, 128], strides = [1, 1, 1]} : vector<20x34x128xbf16> to vector<16x32x128xbf16>
    %38 = vector.shape_cast %37 : vector<16x32x128xbf16> to vector<512x128xbf16>
    %c4 = arith.constant 4 : index
    %c0_16 = arith.constant 0 : index
    %c0_17 = arith.constant 0 : index
    %39 = vector.load %arg3[%c4, %c0_16, %c0_17] : memref<9x128x128xbf16, #tpu.memory_space<vmem>>, vector<1x128x128xbf16>
    %40 = vector.shape_cast %39 : vector<1x128x128xbf16> to vector<128x128xbf16>
    %cst_18 = arith.constant dense<0.000000e+00> : vector<512x128xf32>
    %41 = tpu.matmul %38, %40, %cst_18 {dimension_numbers = #tpu.dot_dimension_numbers<[1], [0], [0], [1], [0, 0, 1, 1], [], []>} : vector<512x128xbf16>, vector<128x128xbf16>, vector<512x128xf32> -> vector<512x128xf32>
    %42 = arith.addf %36, %41 : vector<512x128xf32>
    %43 = vector.extract_strided_slice %11 {offsets = [2, 2, 0], sizes = [16, 32, 128], strides = [1, 1, 1]} : vector<20x34x128xbf16> to vector<16x32x128xbf16>
    %44 = vector.shape_cast %43 : vector<16x32x128xbf16> to vector<512x128xbf16>
    %c5 = arith.constant 5 : index
    %c0_19 = arith.constant 0 : index
    %c0_20 = arith.constant 0 : index
    %45 = vector.load %arg3[%c5, %c0_19, %c0_20] : memref<9x128x128xbf16, #tpu.memory_space<vmem>>, vector<1x128x128xbf16>
    %46 = vector.shape_cast %45 : vector<1x128x128xbf16> to vector<128x128xbf16>
    %cst_21 = arith.constant dense<0.000000e+00> : vector<512x128xf32>
    %47 = tpu.matmul %44, %46, %cst_21 {dimension_numbers = #tpu.dot_dimension_numbers<[1], [0], [0], [1], [0, 0, 1, 1], [], []>} : vector<512x128xbf16>, vector<128x128xbf16>, vector<512x128xf32> -> vector<512x128xf32>
    %48 = arith.addf %42, %47 : vector<512x128xf32>
    %49 = vector.extract_strided_slice %11 {offsets = [3, 0, 0], sizes = [16, 32, 128], strides = [1, 1, 1]} : vector<20x34x128xbf16> to vector<16x32x128xbf16>
    %50 = vector.shape_cast %49 : vector<16x32x128xbf16> to vector<512x128xbf16>
    %c6 = arith.constant 6 : index
    %c0_22 = arith.constant 0 : index
    %c0_23 = arith.constant 0 : index
    %51 = vector.load %arg3[%c6, %c0_22, %c0_23] : memref<9x128x128xbf16, #tpu.memory_space<vmem>>, vector<1x128x128xbf16>
    %52 = vector.shape_cast %51 : vector<1x128x128xbf16> to vector<128x128xbf16>
    %cst_24 = arith.constant dense<0.000000e+00> : vector<512x128xf32>
    %53 = tpu.matmul %50, %52, %cst_24 {dimension_numbers = #tpu.dot_dimension_numbers<[1], [0], [0], [1], [0, 0, 1, 1], [], []>} : vector<512x128xbf16>, vector<128x128xbf16>, vector<512x128xf32> -> vector<512x128xf32>
    %54 = arith.addf %48, %53 : vector<512x128xf32>
    %55 = vector.extract_strided_slice %11 {offsets = [3, 1, 0], sizes = [16, 32, 128], strides = [1, 1, 1]} : vector<20x34x128xbf16> to vector<16x32x128xbf16>
    %56 = vector.shape_cast %55 : vector<16x32x128xbf16> to vector<512x128xbf16>
    %c7 = arith.constant 7 : index
    %c0_25 = arith.constant 0 : index
    %c0_26 = arith.constant 0 : index
    %57 = vector.load %arg3[%c7, %c0_25, %c0_26] : memref<9x128x128xbf16, #tpu.memory_space<vmem>>, vector<1x128x128xbf16>
    %58 = vector.shape_cast %57 : vector<1x128x128xbf16> to vector<128x128xbf16>
    %cst_27 = arith.constant dense<0.000000e+00> : vector<512x128xf32>
    %59 = tpu.matmul %56, %58, %cst_27 {dimension_numbers = #tpu.dot_dimension_numbers<[1], [0], [0], [1], [0, 0, 1, 1], [], []>} : vector<512x128xbf16>, vector<128x128xbf16>, vector<512x128xf32> -> vector<512x128xf32>
    %60 = arith.addf %54, %59 : vector<512x128xf32>
    %61 = vector.extract_strided_slice %11 {offsets = [3, 2, 0], sizes = [16, 32, 128], strides = [1, 1, 1]} : vector<20x34x128xbf16> to vector<16x32x128xbf16>
    %62 = vector.shape_cast %61 : vector<16x32x128xbf16> to vector<512x128xbf16>
    %c8 = arith.constant 8 : index
    %c0_28 = arith.constant 0 : index
    %c0_29 = arith.constant 0 : index
    %63 = vector.load %arg3[%c8, %c0_28, %c0_29] : memref<9x128x128xbf16, #tpu.memory_space<vmem>>, vector<1x128x128xbf16>
    %64 = vector.shape_cast %63 : vector<1x128x128xbf16> to vector<128x128xbf16>
    %cst_30 = arith.constant dense<0.000000e+00> : vector<512x128xf32>
    %65 = tpu.matmul %62, %64, %cst_30 {dimension_numbers = #tpu.dot_dimension_numbers<[1], [0], [0], [1], [0, 0, 1, 1], [], []>} : vector<512x128xbf16>, vector<128x128xbf16>, vector<512x128xf32> -> vector<512x128xf32>
    %66 = arith.addf %60, %65 : vector<512x128xf32>
    %c0_31 = arith.constant 0 : index
    %c0_32 = arith.constant 0 : index
    %c0_33 = arith.constant 0 : index
    %67 = vector.load %arg4[%c0_31, %c0_32, %c0_33] : memref<1x1x128xf32, #tpu.memory_space<vmem>>, vector<1x1x128xf32>
    %cst_34 = arith.constant dense<0.000000e+00> : vector<128xf32>
    %68 = vector.multi_reduction <add>, %66, %cst_34 [0] : vector<512x128xf32> to vector<128xf32>
    %69 = vector.shape_cast %68 : vector<128xf32> to vector<1x128xf32>
    %70 = vector.shape_cast %69 : vector<1x128xf32> to vector<1x1x128xf32>
    %71 = arith.addf %67, %70 : vector<1x1x128xf32>
    %c0_35 = arith.constant 0 : index
    %c0_36 = arith.constant 0 : index
    %c0_37 = arith.constant 0 : index
    %72 = vector.load %arg4[%c0_35, %c0_36, %c0_37] : memref<1x1x128xf32, #tpu.memory_space<vmem>>, vector<1x1x128xf32>
    tpu.vector_store %arg4[%c0_35, %c0_36, %c0_37], %71 {strides = array<i32>} : memref<1x1x128xf32, #tpu.memory_space<vmem>>, vector<1x1x128xf32>,
    %c0_38 = arith.constant 0 : index
    %c0_39 = arith.constant 0 : index
    %c0_40 = arith.constant 0 : index
    %73 = vector.load %arg5[%c0_38, %c0_39, %c0_40] : memref<1x1x128xf32, #tpu.memory_space<vmem>>, vector<1x1x128xf32>
    %74 = arith.mulf %66, %66 : vector<512x128xf32>
    %cst_41 = arith.constant dense<0.000000e+00> : vector<128xf32>
    %75 = vector.multi_reduction <add>, %74, %cst_41 [0] : vector<512x128xf32> to vector<128xf32>
    %76 = vector.shape_cast %75 : vector<128xf32> to vector<1x128xf32>
    %77 = vector.shape_cast %76 : vector<1x128xf32> to vector<1x1x128xf32>
    %78 = arith.addf %73, %77 : vector<1x1x128xf32>
    %c0_42 = arith.constant 0 : index
    %c0_43 = arith.constant 0 : index
    %c0_44 = arith.constant 0 : index
    %79 = vector.load %arg5[%c0_42, %c0_43, %c0_44] : memref<1x1x128xf32, #tpu.memory_space<vmem>>, vector<1x1x128xf32>
    tpu.vector_store %arg5[%c0_42, %c0_43, %c0_44], %78 {strides = array<i32>} : memref<1x1x128xf32, #tpu.memory_space<vmem>>, vector<1x1x128xf32>,
    return
  }
  func.func @transform_0(%arg0: i32, %arg1: i32) -> (i32, i32, i32, i32) {
    %c0_i32 = arith.constant 0 : i32
    %c0_i32_0 = arith.constant 0 : i32
    %c0_i32_1 = arith.constant 0 : i32
    %c0_i32_2 = arith.constant 0 : i32
    return %arg0, %c0_i32, %c0_i32_0, %c0_i32_1 : i32, i32, i32, i32
  }
  func.func @transform_1(%arg0: i32, %arg1: i32) -> (i32, i32, i32) {
    %c0_i32 = arith.constant 0 : i32
    %c0_i32_0 = arith.constant 0 : i32
    %c0_i32_1 = arith.constant 0 : i32
    %c0_i32_2 = arith.constant 0 : i32
    return %c0_i32, %c0_i32_0, %c0_i32_1 : i32, i32, i32
  }
  func.func @transform_2(%arg0: i32, %arg1: i32) -> (i32, i32, i32) {
    %c0_i32 = arith.constant 0 : i32
    %c0_i32_0 = arith.constant 0 : i32
    %c0_i32_1 = arith.constant 0 : i32
    return %arg0, %c0_i32, %c0_i32_0 : i32, i32, i32
  }
  func.func @transform_3(%arg0: i32, %arg1: i32) -> (i32, i32, i32) {
    %c0_i32 = arith.constant 0 : i32
    %c0_i32_0 = arith.constant 0 : i32
    %c0_i32_1 = arith.constant 0 : i32
    return %arg0, %c0_i32, %c0_i32_0 : i32, i32, i32
  }
}

module attributes {stable_mosaic.version = 11 : i64} {
  func.func @bn_relu_kernel(%arg0: i32, %arg1: i32, %arg2: memref<1x18x34x128xbf16, #tpu.memory_space<vmem>>, %arg3: memref<9x128x128xbf16, #tpu.memory_space<vmem>>, %arg4: memref<1x128xf32, #tpu.memory_space<vmem>>, %arg5: memref<1x128xf32, #tpu.memory_space<vmem>>, %arg6: memref<1x16x32x128xf32, #tpu.memory_space<vmem>>) attributes {dimension_semantics = [#tpu.dimension_semantics<parallel>, #tpu.dimension_semantics<parallel>], iteration_bounds = array<i64: 2, 2>, scalar_prefetch = 0 : i64, scratch_operands = 0 : i64, tpu.core_type = #tpu.core_type<tc>, window_params = [{transform_indices = @transform_0, window_bounds = array<i64: 1, 18, 34, 128>}, {pipeline_mode = #tpu.pipeline_mode<synchronous>, transform_indices = @transform_1, window_bounds = array<i64: 9, 128, 128>}, {pipeline_mode = #tpu.pipeline_mode<synchronous>, transform_indices = @transform_2, window_bounds = array<i64: 1, 128>}, {pipeline_mode = #tpu.pipeline_mode<synchronous>, transform_indices = @transform_3, window_bounds = array<i64: 1, 128>}, {transform_indices = @transform_4, window_bounds = array<i64: 1, 16, 32, 128>}]} {
    %c8_i32 = arith.constant 8 : i32
    %0 = arith.muli %arg1, %c8_i32 : i32
    %1 = tpu.assume_multiple %0, 8 : i32
    %c0 = arith.constant 0 : index
    %2 = arith.index_cast %1 : i32 to index
    %c0_0 = arith.constant 0 : index
    %c0_1 = arith.constant 0 : index
    %3 = vector.load %arg2[%c0, %2, %c0_0, %c0_1] : memref<1x18x34x128xbf16, #tpu.memory_space<vmem>>, vector<1x10x34x128xbf16>
    %4 = vector.shape_cast %3 : vector<1x10x34x128xbf16> to vector<10x34x128xbf16>
    %5 = vector.shape_cast %4 : vector<10x34x128xbf16> to vector<10x1x34x128xbf16>
    %6 = vector.shape_cast %5 : vector<10x1x34x128xbf16> to vector<10x1x34x128xbf16>
    %7 = vector.broadcast %6 : vector<10x1x34x128xbf16> to vector<10x2x34x128xbf16>
    %8 = vector.shape_cast %7 : vector<10x2x34x128xbf16> to vector<20x34x128xbf16>
    %cst = arith.constant 0.000000e+00 : f32
    %9 = vector.broadcast %cst : f32 to vector<512x128xf32>
    %10 = vector.extract_strided_slice %8 {offsets = [1, 0, 0], sizes = [16, 32, 128], strides = [1, 1, 1]} : vector<20x34x128xbf16> to vector<16x32x128xbf16>
    %11 = vector.shape_cast %10 : vector<16x32x128xbf16> to vector<512x128xbf16>
    %c0_2 = arith.constant 0 : index
    %c0_3 = arith.constant 0 : index
    %c0_4 = arith.constant 0 : index
    %12 = vector.load %arg3[%c0_2, %c0_3, %c0_4] : memref<9x128x128xbf16, #tpu.memory_space<vmem>>, vector<1x128x128xbf16>
    %13 = vector.shape_cast %12 : vector<1x128x128xbf16> to vector<128x128xbf16>
    %cst_5 = arith.constant dense<0.000000e+00> : vector<512x128xf32>
    %14 = tpu.matmul %11, %13, %cst_5 {dimension_numbers = #tpu.dot_dimension_numbers<[1], [0], [0], [1], [0, 0, 1, 1], [], []>} : vector<512x128xbf16>, vector<128x128xbf16>, vector<512x128xf32> -> vector<512x128xf32>
    %15 = arith.addf %9, %14 : vector<512x128xf32>
    %16 = vector.extract_strided_slice %8 {offsets = [1, 1, 0], sizes = [16, 32, 128], strides = [1, 1, 1]} : vector<20x34x128xbf16> to vector<16x32x128xbf16>
    %17 = vector.shape_cast %16 : vector<16x32x128xbf16> to vector<512x128xbf16>
    %c1 = arith.constant 1 : index
    %c0_6 = arith.constant 0 : index
    %c0_7 = arith.constant 0 : index
    %18 = vector.load %arg3[%c1, %c0_6, %c0_7] : memref<9x128x128xbf16, #tpu.memory_space<vmem>>, vector<1x128x128xbf16>
    %19 = vector.shape_cast %18 : vector<1x128x128xbf16> to vector<128x128xbf16>
    %cst_8 = arith.constant dense<0.000000e+00> : vector<512x128xf32>
    %20 = tpu.matmul %17, %19, %cst_8 {dimension_numbers = #tpu.dot_dimension_numbers<[1], [0], [0], [1], [0, 0, 1, 1], [], []>} : vector<512x128xbf16>, vector<128x128xbf16>, vector<512x128xf32> -> vector<512x128xf32>
    %21 = arith.addf %15, %20 : vector<512x128xf32>
    %22 = vector.extract_strided_slice %8 {offsets = [1, 2, 0], sizes = [16, 32, 128], strides = [1, 1, 1]} : vector<20x34x128xbf16> to vector<16x32x128xbf16>
    %23 = vector.shape_cast %22 : vector<16x32x128xbf16> to vector<512x128xbf16>
    %c2 = arith.constant 2 : index
    %c0_9 = arith.constant 0 : index
    %c0_10 = arith.constant 0 : index
    %24 = vector.load %arg3[%c2, %c0_9, %c0_10] : memref<9x128x128xbf16, #tpu.memory_space<vmem>>, vector<1x128x128xbf16>
    %25 = vector.shape_cast %24 : vector<1x128x128xbf16> to vector<128x128xbf16>
    %cst_11 = arith.constant dense<0.000000e+00> : vector<512x128xf32>
    %26 = tpu.matmul %23, %25, %cst_11 {dimension_numbers = #tpu.dot_dimension_numbers<[1], [0], [0], [1], [0, 0, 1, 1], [], []>} : vector<512x128xbf16>, vector<128x128xbf16>, vector<512x128xf32> -> vector<512x128xf32>
    %27 = arith.addf %21, %26 : vector<512x128xf32>
    %28 = vector.extract_strided_slice %8 {offsets = [2, 0, 0], sizes = [16, 32, 128], strides = [1, 1, 1]} : vector<20x34x128xbf16> to vector<16x32x128xbf16>
    %29 = vector.shape_cast %28 : vector<16x32x128xbf16> to vector<512x128xbf16>
    %c3 = arith.constant 3 : index
    %c0_12 = arith.constant 0 : index
    %c0_13 = arith.constant 0 : index
    %30 = vector.load %arg3[%c3, %c0_12, %c0_13] : memref<9x128x128xbf16, #tpu.memory_space<vmem>>, vector<1x128x128xbf16>
    %31 = vector.shape_cast %30 : vector<1x128x128xbf16> to vector<128x128xbf16>
    %cst_14 = arith.constant dense<0.000000e+00> : vector<512x128xf32>
    %32 = tpu.matmul %29, %31, %cst_14 {dimension_numbers = #tpu.dot_dimension_numbers<[1], [0], [0], [1], [0, 0, 1, 1], [], []>} : vector<512x128xbf16>, vector<128x128xbf16>, vector<512x128xf32> -> vector<512x128xf32>
    %33 = arith.addf %27, %32 : vector<512x128xf32>
    %34 = vector.extract_strided_slice %8 {offsets = [2, 1, 0], sizes = [16, 32, 128], strides = [1, 1, 1]} : vector<20x34x128xbf16> to vector<16x32x128xbf16>
    %35 = vector.shape_cast %34 : vector<16x32x128xbf16> to vector<512x128xbf16>
    %c4 = arith.constant 4 : index
    %c0_15 = arith.constant 0 : index
    %c0_16 = arith.constant 0 : index
    %36 = vector.load %arg3[%c4, %c0_15, %c0_16] : memref<9x128x128xbf16, #tpu.memory_space<vmem>>, vector<1x128x128xbf16>
    %37 = vector.shape_cast %36 : vector<1x128x128xbf16> to vector<128x128xbf16>
    %cst_17 = arith.constant dense<0.000000e+00> : vector<512x128xf32>
    %38 = tpu.matmul %35, %37, %cst_17 {dimension_numbers = #tpu.dot_dimension_numbers<[1], [0], [0], [1], [0, 0, 1, 1], [], []>} : vector<512x128xbf16>, vector<128x128xbf16>, vector<512x128xf32> -> vector<512x128xf32>
    %39 = arith.addf %33, %38 : vector<512x128xf32>
    %40 = vector.extract_strided_slice %8 {offsets = [2, 2, 0], sizes = [16, 32, 128], strides = [1, 1, 1]} : vector<20x34x128xbf16> to vector<16x32x128xbf16>
    %41 = vector.shape_cast %40 : vector<16x32x128xbf16> to vector<512x128xbf16>
    %c5 = arith.constant 5 : index
    %c0_18 = arith.constant 0 : index
    %c0_19 = arith.constant 0 : index
    %42 = vector.load %arg3[%c5, %c0_18, %c0_19] : memref<9x128x128xbf16, #tpu.memory_space<vmem>>, vector<1x128x128xbf16>
    %43 = vector.shape_cast %42 : vector<1x128x128xbf16> to vector<128x128xbf16>
    %cst_20 = arith.constant dense<0.000000e+00> : vector<512x128xf32>
    %44 = tpu.matmul %41, %43, %cst_20 {dimension_numbers = #tpu.dot_dimension_numbers<[1], [0], [0], [1], [0, 0, 1, 1], [], []>} : vector<512x128xbf16>, vector<128x128xbf16>, vector<512x128xf32> -> vector<512x128xf32>
    %45 = arith.addf %39, %44 : vector<512x128xf32>
    %46 = vector.extract_strided_slice %8 {offsets = [3, 0, 0], sizes = [16, 32, 128], strides = [1, 1, 1]} : vector<20x34x128xbf16> to vector<16x32x128xbf16>
    %47 = vector.shape_cast %46 : vector<16x32x128xbf16> to vector<512x128xbf16>
    %c6 = arith.constant 6 : index
    %c0_21 = arith.constant 0 : index
    %c0_22 = arith.constant 0 : index
    %48 = vector.load %arg3[%c6, %c0_21, %c0_22] : memref<9x128x128xbf16, #tpu.memory_space<vmem>>, vector<1x128x128xbf16>
    %49 = vector.shape_cast %48 : vector<1x128x128xbf16> to vector<128x128xbf16>
    %cst_23 = arith.constant dense<0.000000e+00> : vector<512x128xf32>
    %50 = tpu.matmul %47, %49, %cst_23 {dimension_numbers = #tpu.dot_dimension_numbers<[1], [0], [0], [1], [0, 0, 1, 1], [], []>} : vector<512x128xbf16>, vector<128x128xbf16>, vector<512x128xf32> -> vector<512x128xf32>
    %51 = arith.addf %45, %50 : vector<512x128xf32>
    %52 = vector.extract_strided_slice %8 {offsets = [3, 1, 0], sizes = [16, 32, 128], strides = [1, 1, 1]} : vector<20x34x128xbf16> to vector<16x32x128xbf16>
    %53 = vector.shape_cast %52 : vector<16x32x128xbf16> to vector<512x128xbf16>
    %c7 = arith.constant 7 : index
    %c0_24 = arith.constant 0 : index
    %c0_25 = arith.constant 0 : index
    %54 = vector.load %arg3[%c7, %c0_24, %c0_25] : memref<9x128x128xbf16, #tpu.memory_space<vmem>>, vector<1x128x128xbf16>
    %55 = vector.shape_cast %54 : vector<1x128x128xbf16> to vector<128x128xbf16>
    %cst_26 = arith.constant dense<0.000000e+00> : vector<512x128xf32>
    %56 = tpu.matmul %53, %55, %cst_26 {dimension_numbers = #tpu.dot_dimension_numbers<[1], [0], [0], [1], [0, 0, 1, 1], [], []>} : vector<512x128xbf16>, vector<128x128xbf16>, vector<512x128xf32> -> vector<512x128xf32>
    %57 = arith.addf %51, %56 : vector<512x128xf32>
    %58 = vector.extract_strided_slice %8 {offsets = [3, 2, 0], sizes = [16, 32, 128], strides = [1, 1, 1]} : vector<20x34x128xbf16> to vector<16x32x128xbf16>
    %59 = vector.shape_cast %58 : vector<16x32x128xbf16> to vector<512x128xbf16>
    %c8 = arith.constant 8 : index
    %c0_27 = arith.constant 0 : index
    %c0_28 = arith.constant 0 : index
    %60 = vector.load %arg3[%c8, %c0_27, %c0_28] : memref<9x128x128xbf16, #tpu.memory_space<vmem>>, vector<1x128x128xbf16>
    %61 = vector.shape_cast %60 : vector<1x128x128xbf16> to vector<128x128xbf16>
    %cst_29 = arith.constant dense<0.000000e+00> : vector<512x128xf32>
    %62 = tpu.matmul %59, %61, %cst_29 {dimension_numbers = #tpu.dot_dimension_numbers<[1], [0], [0], [1], [0, 0, 1, 1], [], []>} : vector<512x128xbf16>, vector<128x128xbf16>, vector<512x128xf32> -> vector<512x128xf32>
    %63 = arith.addf %57, %62 : vector<512x128xf32>
    %c0_30 = arith.constant 0 : index
    %c0_31 = arith.constant 0 : index
    %64 = vector.load %arg4[%c0_30, %c0_31] : memref<1x128xf32, #tpu.memory_space<vmem>>, vector<1x128xf32>
    %65 = vector.broadcast %64 : vector<1x128xf32> to vector<512x128xf32>
    %66 = arith.mulf %63, %65 : vector<512x128xf32>
    %c0_32 = arith.constant 0 : index
    %c0_33 = arith.constant 0 : index
    %67 = vector.load %arg5[%c0_32, %c0_33] : memref<1x128xf32, #tpu.memory_space<vmem>>, vector<1x128xf32>
    %68 = vector.broadcast %67 : vector<1x128xf32> to vector<512x128xf32>
    %69 = arith.addf %66, %68 : vector<512x128xf32>
    %cst_34 = arith.constant 0.000000e+00 : f32
    %70 = vector.broadcast %cst_34 : f32 to vector<512x128xf32>
    %71 = arith.maximumf %69, %70 : vector<512x128xf32>
    %72 = vector.shape_cast %71 : vector<512x128xf32> to vector<16x32x128xf32>
    %c0_35 = arith.constant 0 : index
    %c0_36 = arith.constant 0 : index
    %c0_37 = arith.constant 0 : index
    %c0_38 = arith.constant 0 : index
    %73 = vector.load %arg6[%c0_35, %c0_36, %c0_37, %c0_38] : memref<1x16x32x128xf32, #tpu.memory_space<vmem>>, vector<1x16x32x128xf32>
    %74 = vector.shape_cast %73 : vector<1x16x32x128xf32> to vector<16x32x128xf32>
    %75 = vector.shape_cast %72 : vector<16x32x128xf32> to vector<1x16x32x128xf32>
    tpu.vector_store %arg6[%c0_35, %c0_36, %c0_37, %c0_38], %75 {strides = array<i32>} : memref<1x16x32x128xf32, #tpu.memory_space<vmem>>, vector<1x16x32x128xf32>,
    return
  }
  func.func @transform_0(%arg0: i32, %arg1: i32) -> (i32, i32, i32, i32) {
    %c0_i32 = arith.constant 0 : i32
    %c0_i32_0 = arith.constant 0 : i32
    %c0_i32_1 = arith.constant 0 : i32
    %c0_i32_2 = arith.constant 0 : i32
    return %arg0, %c0_i32, %c0_i32_0, %c0_i32_1 : i32, i32, i32, i32
  }
  func.func @transform_1(%arg0: i32, %arg1: i32) -> (i32, i32, i32) {
    %c0_i32 = arith.constant 0 : i32
    %c0_i32_0 = arith.constant 0 : i32
    %c0_i32_1 = arith.constant 0 : i32
    %c0_i32_2 = arith.constant 0 : i32
    return %c0_i32, %c0_i32_0, %c0_i32_1 : i32, i32, i32
  }
  func.func @transform_2(%arg0: i32, %arg1: i32) -> (i32, i32) {
    %c0_i32 = arith.constant 0 : i32
    %c0_i32_0 = arith.constant 0 : i32
    %c0_i32_1 = arith.constant 0 : i32
    return %c0_i32, %c0_i32_0 : i32, i32
  }
  func.func @transform_3(%arg0: i32, %arg1: i32) -> (i32, i32) {
    %c0_i32 = arith.constant 0 : i32
    %c0_i32_0 = arith.constant 0 : i32
    %c0_i32_1 = arith.constant 0 : i32
    return %c0_i32, %c0_i32_0 : i32, i32
  }
  func.func @transform_4(%arg0: i32, %arg1: i32) -> (i32, i32, i32, i32) {
    %c0_i32 = arith.constant 0 : i32
    %c0_i32_0 = arith.constant 0 : i32
    %c0_i32_1 = arith.constant 0 : i32
    return %arg0, %arg1, %c0_i32, %c0_i32_0 : i32, i32, i32, i32
  }
}

</mosaic_0001>

<bundles_post_ra>
// kernel: up_conv_forward.2
= control target key start
LH: loop header
LB: loop body
LE: loop exit
PB: predicated region body
PF: predicated region fallthrough
CT: control target
= control target key end

     0   :  { %s4745_s12 = smov 0   ;;  %s4747_s13 = smov 0   ;;  %s6176_s0 = inlined_call_operand.vmem [shape: bf16[2,18,34,128], index: 0, kind: input, shape index: {}]   ;;  %s6177_s1 = inlined_call_operand.vmem [shape: bf16[9,128,128], index: 1, kind: input, shape index: {}]   ;;  %s6178_s2 = inlined_call_operand.vmem [shape: f32[2,1,128], index: 2, kind: output, shape index: {0}]   ;;  %s6179_s3 = inlined_call_operand.vmem [shape: f32[2,1,128], index: 3, kind: output, shape index: {1}]  }
   0x1   :  { %s4749_s14 = smov 0   ;;  %s4751_s15 = smov 0  }
   0x2   :  { %s4753_s16 = smov 0  }
   0x3 LB: > { %s23_s17 = sadd.s32 1, %s4714_s14  ;;  %s26_s18 = sadd.s32 1, %s4718_s15  ;;  %s4722_s16 = sphi %s4753_s16, %s14_s16   ;;  %s4718_s15 = sphi %s4751_s15, %s6393_s15   ;;  %s4714_s14 = sphi %s4749_s14, %s6392_s14   ;;  %s4710_s13 = sphi %s4747_s13, %s6391_s13   ;;  %s4706_s12 = sphi %s4745_s12, %s6390_s12  }
   0x4   : > { %p24_p0 = scmp.ge.s32.totalorder %s23_s17, 2  ;;  %p3964_p1 = scmp.ge.s32.totalorder %s4722_s16, 1 }
   0x5   : > { %p152_p2 = scmp.lt.s32.totalorder %s4722_s16, 5 }
   0x6   : > { %s6395_s17 = smov (%p24_p0, %s23_s17), 0  ;;  %s6397_s18 = smov (!%p24_p0, %s26_s18), %s4718_s15 }
   0x7   : > { %p153_p3 = pnand %p3964_p1, %p152_p2  ;;  %p28_p4 = scmp.ge.s32.totalorder %s6397_s18, 2 }
   0x9   : > { %s6399_s18 = smov (%p28_p4, %s6397_s18), 0  ;;  %156 = sbr.rel (%p153_p3) target bundleno = 1357 (0x54d), region = 28 }
   0xe   : > { %p177_p5 = scmp.lt.s32.totalorder %s4710_s13, 1  ;;  %p3966_p6 = scmp.ne.s32.totalorder %s4706_s12, 0 }
  0x10   : > { %s6401_s13 = smov (!%p177_p5, %s4710_s13), 1  ;;  %191 = sbr.rel (%p3966_p6) target bundleno = 24 (0x18), region = 32 }
  0x11   : > { %s4595_s19 = smul.u32 360, %s6401_s13  ;;  %s4780_s22 = scalar_lea.vmem %s6178_s2, %s6401_s13 }
  0x12   : > { %s4785_s25 = scalar_lea.vmem %s6179_s3, %s6401_s13 }
  0x13   : > { %s181_s28 = scalar_lea.vmem %s6176_s0, %s4595_s19 }
  0x15   : > { %v4724_v0 = vmov 0.0  }
  0x16   : > { %192 = vst [vmem:[%s4780_s22] sm:$0x1] %v4724_v0 }
  0x17   : > { %193 = vst [vmem:[%s4785_s25] sm:$0x1] %v4724_v0 }
  0x18 PF: > { %v4514_v1 = vld [vmem:[%s6177_s1 + $0x78] sm:$0xff]  ;;  %s4478_s4 = smul.u32 160, %s4706_s12  ;;  %v4513_v2 = vld [vmem:[%s6177_s1 + $0x70] sm:$0xff]  ;;  %vm264_vm0 = vsmask.f32 3328  ;;  %v4512_v6 = vld [vmem:[%s6177_s1 + $0x68] sm:$0xff] }
  0x19   : > { %4571 = vmatpush.bf16.msra.mxu1 %v4514_v1  ;;  %4572 = vmatpush.bf16.msra.mxu2 %v4514_v1  ;;  %vm265_vm1 = vsmask.f32 7440  ;;  %v6208_v30 = vmov 0  ;;  %v4511_v35 = vld [vmem:[%s6177_s1 + $0x60] sm:$0xff]  ;;  %v4510_v54 = vld [vmem:[%s6177_s1 + $0x58] sm:$0xff]  ;;  %vm1303_vm3 = vcmask 1042432  }
  0x1a   : > { %s4800_s7 = scalar_lea.vmem %s181_s28, %s4478_s4  ;;  %4573 = vmatpush.bf16.msra.mxu3 %v4514_v1  ;;  %800 = vmatpush.bf16.msra.mxu0 %v4514_v1  ;;  %vm4823_vm2 = vmor %vm264_vm0, %vm265_vm1  ;;  %vm1304_vm4 = vcmask 1046532  }
  0x1b   : > { %v208_v3 = vld [vmem:[%s4800_s7 + $0x28] sm:$0xf]  ;;  %v209_v4 = vld [vmem:[%s4800_s7 + $0x2c] sm:$0xf]  ;;  %v4805_v5 = vld [vmem:[%s4800_s7 + $0x30] sm:$0xf] }
  0x1c   : > { %v356_v7 = vshrl.u32 %v208_v3, 16  ;;  %v359_v8 = vshll.u32 %v208_v3, 16  ;;  %v365_v9 = vshll.u32 %v209_v4, 16  ;;  %v369_v10 = vshrl.u32 %v209_v4, 16  ;;  %v218_v11 = vld [vmem:[%s4800_s7 + $0x50] sm:$0xf]  ;;  %vm5225_vm5 = vmor %vm1303_vm3, %vm1304_vm4 }
  0x1d   : > { %v375_v12 = vshll.u32 %v4805_v5, 16  ;;  %v219_v13 = vld [vmem:[%s4800_s7 + $0x54] sm:$0xf]  ;;  %v4814_v14 = vld [vmem:[%s4800_s7 + $0x58] sm:$0xf]  ;;  %v444_v15 = vshrl.u32 %v218_v11, 16  ;;  %4574 = vmatpush.bf16.msra.mxu1 %v4513_v2  ;;  %4575 = vmatpush.bf16.msra.mxu2 %v4513_v2 }
  0x1e   : > { %v358_v16 = vrot.slane %v356_v7, 4  ;;  %v361_v17 = vrot.slane %v359_v8, 5  ;;  %v367_v18 = vrot.slane %v365_v9, 5  ;;  %v371_v19 = vrot.slane %v369_v10, 4  ;;  %v228_v20 = vld [vmem:[%s4800_s7 + $0x78] sm:$0xf]  ;;  %4576 = vmatpush.bf16.msra.mxu3 %v4513_v2  ;;  %801 = vmatpush.bf16.msra.mxu0 %v4513_v2 }
  0x1f   : > { %v4817_v21 = vrot.slane %v375_v12, 5  ;;  %v446_v22 = vrot.slane %v444_v15, 4  ;;  %v447_v23 = vshll.u32 %v218_v11, 16  ;;  %v453_v24 = vshll.u32 %v219_v13, 16  ;;  %v229_v29 = vld [vmem:[%s4800_s7 + $0x7c] sm:$0xf] }
  0x20   : > { %v362_v25 = vor.u32 %v361_v17, %v358_v16  ;;  %v372_v26 = vor.u32 %v371_v19, %v367_v18  ;;  %v457_v27 = vshrl.u32 %v219_v13, 16  ;;  %v463_v28 = vshll.u32 %v4814_v14, 16  ;;  %v4833_v41 = vld [vmem:[%s4800_s7 + $0x80] sm:$0xf]  ;;  %v4850_v61 = vld [vmem:[%s4800_s7 + $0x4] sm:$0xf] }
  0x21   : > { %v6209_v30 = vsel %vm4823_vm2, 4294967295, %v6208_v30  ;;  %v449_v31 = vrot.slane %v447_v23, 5  ;;  %v455_v32 = vrot.slane %v453_v24, 5  ;;  %v532_v33 = vshrl.u32 %v228_v20, 16  ;;  %4577 = vmatpush.bf16.msra.mxu1 %v4512_v6  ;;  %4578 = vmatpush.bf16.msra.mxu2 %v4512_v6  ;;  %v4841_v49 = vld [vmem:[%s4800_s7] sm:$0xf] }
  0x22   : > { %6210 = vst [vmem:[#allocation2_spill] sm:$0xff] %v6209_v30  ;;  %v535_v34 = vshll.u32 %v228_v20, 16  ;;  %v363_v36 = vrot.slane %v362_v25, 4  ;;  %v373_v37 = vrot.slane %v372_v26, 4  ;;  %v459_v38 = vrot.slane %v457_v27, 4  ;;  %4579 = vmatpush.bf16.msra.mxu3 %v4512_v6  ;;  %802 = vmatpush.bf16.msra.mxu0 %v4512_v6  ;;  %v4509_v10 = vld [vmem:[%s6177_s1 + $0x50] sm:$0xff] }
  0x23   : > { %v4830_v39 = vrot.slane %v463_v28, 5  ;;  %v450_v40 = vor.u32 %v449_v31, %v446_v22  ;;  %v534_v42 = vrot.slane %v532_v33, 4  ;;  %v541_v44 = vshll.u32 %v229_v29, 16  ;;  %v4859_v3 = vld [vmem:[%s4800_s7 + $0x8] sm:$0xf] }
  0x24   : > { %v537_v43 = vrot.slane %v535_v34, 5  ;;  %v368_v45 = vsel %vm4823_vm2, %v363_v36, %v367_v18  ;;  %v378_v46 = vsel %vm4823_vm2, %v373_v37, %v4817_v21  ;;  %v460_v47 = vor.u32 %v459_v38, %v455_v32  ;;  %v211_v9 = vld [vmem:[%s4800_s7 + $0x34] sm:$0xf]  ;;  %v212_v19 = vld [vmem:[%s4800_s7 + $0x38] sm:$0x1] }
  0x25   : > { %v545_v48 = vshrl.u32 %v229_v29, 16  ;;  %v688_v50 = vunpack.c.l.b16 %v368_v45  ;;  %v689_v51 = vunpack.c.l.b16 %v378_v46  ;;  %v451_v52 = vrot.slane %v450_v40, 4  ;;  %4580 = vmatpush.bf16.msra.mxu1 %v4511_v35  ;;  %4581 = vmatpush.bf16.msra.mxu2 %v4511_v35  ;;  %v221_v31 = vld [vmem:[%s4800_s7 + $0x5c] sm:$0xf] }
  0x26   : > { %v538_v53 = vor.u32 %v537_v43, %v534_v42  ;;  %v461_v55 = vrot.slane %v460_v47, 4  ;;  %v543_v56 = vrot.slane %v541_v44, 5  ;;  %v551_v58 = vshll.u32 %v4833_v41, 16  ;;  %4582 = vmatpush.bf16.msra.mxu3 %v4511_v35  ;;  %803 = vmatpush.bf16.msra.mxu0 %v4511_v35 }
  0x27   : > { %v547_v57 = vrot.slane %v545_v48, 4  ;;  %v456_v59 = vsel %vm4823_vm2, %v451_v52, %v455_v32  ;;  %v268_v62 = vshrl.u32 %v4841_v49, 16  ;;  %v271_v8 = vshll.u32 %v4841_v49, 16  ;;  %v222_v48 = vld [vmem:[%s4800_s7 + $0x60] sm:$0x1] }
  0x28   : > { %v539_v60 = vrot.slane %v538_v53, 4  ;;  %v466_v63 = vsel %vm4823_vm2, %v461_v55, %v4830_v39  ;;  %v696_v0 = vunpack.c.l.b16 %v456_v59  ;;  %v4856_v2 = vrot.slane %v551_v58, 5  ;;  %v231_v55 = vld [vmem:[%s4800_s7 + $0x84] sm:$0xf] }
  0x29   : > { %v548_v1 = vor.u32 %v547_v57, %v543_v56  ;;  %v697_v4 = vunpack.c.l.b16 %v466_v63  ;;  %v270_v7 = vrot.slane %v268_v62, 4  ;;  %4583 = vmatpush.bf16.msra.mxu1 %v4510_v54  ;;  %4584 = vmatpush.bf16.msra.mxu2 %v4510_v54  ;;  %v4868_v11 = vpack.c.b16 %v689_v51, %v688_v50  ;;  %v4530_v62 = vld [vmem:[%s6177_s1 + $0xf8] sm:$0xff] }
  0x2a   : > { %v544_v6 = vsel %vm4823_vm2, %v539_v60, %v543_v56  ;;  %v277_v13 = vshll.u32 %v4850_v61, 16  ;;  %v281_v15 = vshrl.u32 %v4850_v61, 16  ;;  %4585 = vmatpush.bf16.msra.mxu3 %v4510_v54  ;;  %804 = vmatpush.bf16.msra.mxu0 %v4510_v54  ;;  %v273_v17 = vrot.slane %v271_v8, 5  ;;  %v4522_v60 = vld [vmem:[%s6177_s1 + $0xb8] sm:$0xff]  ;;  %v232_v8 = vld [vmem:[%s4800_s7 + $0x88] sm:$0x1] }
  0x2b   : > { %6211 = vst [vmem:[#allocation3_spill] sm:$0xff] %v4868_v11  ;;  %v549_v12 = vrot.slane %v548_v1, 4  ;;  %v704_v16 = vunpack.c.l.b16 %v544_v6  ;;  %v287_v18 = vshll.u32 %v4859_v3, 16  ;;  %v379_v20 = vshrl.u32 %v4805_v5, 16  ;;  %v4508_v5 = vld [vmem:[%s6177_s1 + $0x48] sm:$0xff] }
  0x2c   : > { %v279_v23 = vrot.slane %v277_v13, 5  ;;  %v283_v24 = vrot.slane %v281_v15, 4  ;;  %v385_v25 = vshll.u32 %v211_v9, 16  ;;  %v4878_v26 = vpack.c.b16 %v697_v4, %v696_v0 }
  0x2d   : > { %v554_v22 = vsel %vm4823_vm2, %v549_v12, %v4856_v2  ;;  %v274_v27 = vor.u32 %v273_v17, %v270_v7  ;;  %v4880_v28 = vrot.slane %v287_v18, 5  ;;  %v381_v29 = vrot.slane %v379_v20, 4  ;;  %4586 = vmatpush.bf16.msra.mxu1 %v4509_v10  ;;  %4587 = vmatpush.bf16.msra.mxu2 %v4509_v10  ;;  %v4538_v17 = vld [vmem:[%s6177_s1 + $0x138] sm:$0xff] }
  0x2e   : > { %v284_v32 = vor.u32 %v283_v24, %v279_v23  ;;  %v387_v33 = vrot.slane %v385_v25, 5  ;;  %v389_v34 = vshrl.u32 %v211_v9, 16  ;;  %v395_v35 = vshll.u32 %v212_v19, 16  ;;  %4588 = vmatpush.bf16.msra.mxu3 %v4509_v10  ;;  %805 = vmatpush.bf16.msra.mxu0 %v4509_v10 }
  0x2f   : > { %v705_v36 = vunpack.c.l.b16 %v554_v22  ;;  %v275_v37 = vrot.slane %v274_v27, 4  ;;  %v382_v38 = vor.u32 %v381_v29, %v4817_v21  ;;  %v467_v40 = vshrl.u32 %v4814_v14, 16  ;;  %v4507_v21 = vld [vmem:[%s6177_s1 + $0x40] sm:$0xff]  ;;  %v4521_v29 = vld [vmem:[%s6177_s1 + $0xb0] sm:$0xff] }
  0x30   : > { %v285_v42 = vrot.slane %v284_v32, 4  ;;  %v391_v43 = vrot.slane %v389_v34, 4  ;;  %v397_v44 = vrot.slane %v395_v35, 5  ;;  %v473_v45 = vshll.u32 %v221_v31, 16  ;;  %v213_v35 = vld [vmem:[%s4800_s7 + $0x3c] sm:$0xf] }
  0x31   : > { %v280_v46 = vsel %vm4823_vm2, %v275_v37, %v279_v23  ;;  %v383_v47 = vrot.slane %v382_v38, 4  ;;  %v469_v50 = vrot.slane %v467_v40, 4  ;;  %v477_v51 = vshrl.u32 %v221_v31, 16  ;;  %4589 = vmatpush.bf16.msra.mxu1 %v4508_v5  ;;  %4590 = vmatpush.bf16.msra.mxu2 %v4508_v5  ;;  %v4929_v31 = vld [vmem:[%s4800_s7 + $0x10] sm:$0x1] }
  0x32   : > { %v290_v14 = vsel %vm4823_vm2, %v285_v42, %v4880_v28  ;;  %v680_v52 = vunpack.c.l.b16 %v280_v46  ;;  %v392_v53 = vor.u32 %v391_v43, %v387_v33  ;;  %v475_v54 = vrot.slane %v473_v45, 5  ;;  %4591 = vmatpush.bf16.msra.mxu3 %v4508_v5  ;;  %806 = vmatpush.bf16.msra.mxu0 %v4508_v5  ;;  %v4529_v5 = vld [vmem:[%s6177_s1 + $0xf0] sm:$0xff] }
  0x33   : > { %v4898_v56 = vpack.c.b16 %v705_v36, %v704_v16  ;;  %v681_v57 = vunpack.c.l.b16 %v290_v14  ;;  %v470_v58 = vor.u32 %v469_v50, %v4830_v39  ;;  %v479_v59 = vrot.slane %v477_v51, 4  ;;  %v4914_v16 = vld [vmem:[%s4800_s7 + $0xc] sm:$0xf]  ;;  %v4505_v42 = vld [vmem:[%s6177_s1 + $0x30] sm:$0xff] }
  0x34   : > { %v388_v63 = vsel %vm4823_vm2, %v383_v47, %v387_v33  ;;  %v393_v0 = vrot.slane %v392_v53, 4  ;;  %v483_v1 = vshll.u32 %v222_v48, 16  ;;  %v555_v4 = vshrl.u32 %v4833_v41, 16  ;;  %v4506_v41 = vld [vmem:[%s6177_s1 + $0x38] sm:$0xff]  ;;  %v4537_v43 = vld [vmem:[%s6177_s1 + $0x130] sm:$0xff]  ;;  %v4528_v53 = vld [vmem:[%s6177_s1 + $0xe8] sm:$0xff] }
  0x35   : > { %v716_v6 = vpack.c.b16 %v681_v57, %v680_v52  ;;  %v471_v7 = vrot.slane %v470_v58, 4  ;;  %v480_v39 = vor.u32 %v479_v59, %v475_v54  ;;  %v561_v9 = vshll.u32 %v231_v55, 16  ;;  %4592 = vmatpush.bf16.msra.mxu1 %v4507_v21  ;;  %4593 = vmatpush.bf16.msra.mxu2 %v4507_v21  ;;  %v4951_v48 = vld [vmem:[%s4800_s7 + $0x40] sm:$0xf]  ;;  %v4520_v52 = vld [vmem:[%s6177_s1 + $0xa8] sm:$0xff] }
  0x36   : > { %v398_v10 = vsel %vm4823_vm2, %v393_v0, %v397_v44  ;;  %v485_v12 = vrot.slane %v483_v1, 5  ;;  %v557_v13 = vrot.slane %v555_v4, 4  ;;  %v565_v15 = vshrl.u32 %v231_v55, 16  ;;  %4594 = vmatpush.bf16.msra.mxu3 %v4507_v21  ;;  %807 = vmatpush.bf16.msra.mxu0 %v4507_v21  ;;  %v4967_v59 = vld [vmem:[%s4800_s7 + $0x44] sm:$0xf] }
  0x37   : > { %v690_v18 = vunpack.c.l.b16 %v388_v63  ;;  %v476_v19 = vsel %vm4823_vm2, %v471_v7, %v475_v54  ;;  %v481_v20 = vrot.slane %v480_v39, 4  ;;  %v563_v22 = vrot.slane %v561_v9, 5  ;;  %v4504_v39 = vld [vmem:[%s6177_s1 + $0x28] sm:$0xff] }
  0x38   : > { %v691_v23 = vunpack.c.l.b16 %v398_v10  ;;  %v558_v24 = vor.u32 %v557_v13, %v4856_v2  ;;  %v567_v25 = vrot.slane %v565_v15, 4  ;;  %v571_v27 = vshll.u32 %v232_v8, 16  ;;  %848 = vmatmul.bf16.vlgmr.msra.gmra.mxu1 %v4868_v11  ;;  %888 = vmatmul.bf16.vlgmr.msra.gmra.mxu2 %v4878_v26  ;;  %v4536_v8 = vld [vmem:[%s6177_s1 + $0x128] sm:$0xff] }
  0x39   : > { %1560 = vmatpush.bf16.msrb.mxu2 %v4522_v60  ;;  %v486_v32 = vsel %vm4823_vm2, %v481_v20, %v485_v12  ;;  %v698_v2 = vunpack.c.l.b16 %v476_v19  ;;  %v291_v33 = vshrl.u32 %v4859_v3, 16  ;;  %v297_v34 = vshll.u32 %v4914_v16, 16  ;;  %928 = vmatmul.bf16.vlgmr.msra.gmra.mxu3 %v4898_v56  ;;  %v223_v60 = vld [vmem:[%s4800_s7 + $0x64] sm:$0xf]  ;;  %v224_v13 = vld [vmem:[%s4800_s7 + $0x68] sm:$0xf] }
  0x3a   : > { %1858 = vmatpush.bf16.msrb.mxu3 %v4530_v62  ;;  %808 = vmatmul.bf16.vlgmr.msra.gmra.mxu0 %v716_v6  ;;  %v699_v36 = vunpack.c.l.b16 %v486_v32  ;;  %v559_v37 = vrot.slane %v558_v24, 4  ;;  %v568_v38 = vor.u32 %v567_v25, %v563_v22  ;;  %v573_v40 = vrot.slane %v571_v27, 5  ;;  %v4985_v20 = vld [vmem:[%s4800_s7 + $0x6c] sm:$0xf] }
  0x3b   : > { %1125 = vmatpush.bf16.msrb.mxu1 %v4506_v41  ;;  %2156 = vmatpush.bf16.msrb.mxu0 %v4538_v17  ;;  %v293_v44 = vrot.slane %v291_v33, 4  ;;  %v299_v45 = vrot.slane %v297_v34, 5  ;;  %v301_v46 = vshrl.u32 %v4914_v16, 16  ;;  %v307_v47 = vshll.u32 %v4929_v31, 16  ;;  %v233_v27 = vld [vmem:[%s4800_s7 + $0x8c] sm:$0xf] }
  0x3c   : > { %v4953_v50 = vpack.c.b16 %v691_v23, %v690_v18  ;;  %v564_v51 = vsel %vm4823_vm2, %v559_v37, %v563_v22  ;;  %v569_v21 = vrot.slane %v568_v38, 4  ;;  %v400_v14 = vshrl.u32 %v213_v35, 16 }
  0x3d   : > { %1561 = vmatpush.bf16.msrb.mxu2 %v4521_v29  ;;  %v4963_v54 = vpack.c.b16 %v699_v36, %v698_v2  ;;  %v706_v55 = vunpack.c.l.b16 %v564_v51  ;;  %v294_v57 = vor.u32 %v293_v44, %v4880_v28  ;;  %v303_v58 = vrot.slane %v301_v46, 4  ;;  %v5000_v51 = vld [vmem:[%s4800_s7 + $0x14] sm:$0xf] }
  0x3e   : > { %6212 = vst [vmem:[#allocation4_spill] sm:$0xff] %v4953_v50  ;;  %1859 = vmatpush.bf16.msrb.mxu3 %v4529_v5  ;;  %v574_v62 = vsel %vm4823_vm2, %v569_v21, %v573_v40  ;;  %v402_v63 = vrot.slane %v400_v14, 4  ;;  %v403_v0 = vshll.u32 %v213_v35, 16  ;;  %v409_v1 = vshll.u32 %v4951_v48, 16 }
  0x3f   : > { %v295_v4 = vrot.slane %v294_v57, 4  ;;  %v304_v6 = vor.u32 %v303_v58, %v299_v45  ;;  %v309_v7 = vrot.slane %v307_v47, 5  ;;  %1126 = vmatpush.bf16.msrb.mxu1 %v4505_v42  ;;  %2157 = vmatpush.bf16.msrb.mxu0 %v4537_v43  ;;  %v413_v28 = vshrl.u32 %v4951_v48, 16  ;;  %v234_v42 = vld [vmem:[%s4800_s7 + $0x90] sm:$0xf] }
  0x40   : > { %v405_v9 = vrot.slane %v403_v0, 5  ;;  %v411_v10 = vrot.slane %v409_v1, 5  ;;  %v419_v12 = vshll.u32 %v4967_v59, 16  ;;  %v488_v15 = vshrl.u32 %v223_v60, 16  ;;  %v4997_v47 = vld [vmem:[%s4800_s7 + $0x94] sm:$0xf] }
  0x41   : > { %1562 = vmatpush.bf16.msrb.mxu2 %v4520_v52  ;;  %v707_v41 = vunpack.c.l.b16 %v574_v62  ;;  %v300_v17 = vsel %vm4823_vm2, %v295_v4, %v299_v45  ;;  %v305_v18 = vrot.slane %v304_v6, 4  ;;  %v415_v19 = vrot.slane %v413_v28, 4  ;;  %v5013_v1 = vld [vmem:[%s4800_s7 + $0x18] sm:$0xf] }
  0x42   : > { %1860 = vmatpush.bf16.msrb.mxu3 %v4528_v53  ;;  %v682_v22 = vunpack.c.l.b16 %v300_v17  ;;  %v406_v23 = vor.u32 %v405_v9, %v402_v63  ;;  %v4987_v24 = vrot.slane %v419_v12, 5  ;;  %v490_v25 = vrot.slane %v488_v15, 4  ;;  %v4519_v9 = vld [vmem:[%s6177_s1 + $0xa0] sm:$0xff] }
  0x43   : > { %v310_v29 = vsel %vm4823_vm2, %v305_v18, %v309_v7  ;;  %v416_v5 = vor.u32 %v415_v19, %v411_v10  ;;  %v491_v32 = vshll.u32 %v223_v60, 16  ;;  %v497_v2 = vshll.u32 %v224_v13, 16  ;;  %1127 = vmatpush.bf16.msrb.mxu1 %v4504_v39  ;;  %2158 = vmatpush.bf16.msrb.mxu0 %v4536_v8  ;;  %v5018_v8 = vld [vmem:[%s4800_s7 + $0x1c] sm:$0xf]  ;;  %v4503_v17 = vld [vmem:[%s6177_s1 + $0x20] sm:$0xff] }
  0x44   : > { %v683_v33 = vunpack.c.l.b16 %v310_v29  ;;  %v407_v34 = vrot.slane %v406_v23, 4  ;;  %v501_v35 = vshrl.u32 %v224_v13, 16  ;;  %v507_v36 = vshll.u32 %v4985_v20, 16  ;;  %v4535_v18 = vld [vmem:[%s6177_s1 + $0x120] sm:$0xff] }
  0x45   : > { %v417_v37 = vrot.slane %v416_v5, 4  ;;  %v493_v38 = vrot.slane %v491_v32, 5  ;;  %v499_v40 = vrot.slane %v497_v2, 5  ;;  %v576_v43 = vshrl.u32 %v233_v27, 16  ;;  %1563 = vmatpush.bf16.msrb.mxu2 %v4519_v9 }
  0x46   : > { %v4994_v44 = vpack.c.b16 %v707_v41, %v706_v55  ;;  %v717_v45 = vpack.c.b16 %v683_v33, %v682_v22  ;;  %v503_v46 = vrot.slane %v501_v35, 4  ;;  %v412_v21 = vsel %vm4823_vm2, %v407_v34, %v411_v10  ;;  %v4527_v41 = vld [vmem:[%s6177_s1 + $0xe0] sm:$0xff]  ;;  %v5044_v35 = vld [vmem:[%s4800_s7 + $0x48] sm:$0xf] }
  0x47   : > { %v422_v14 = vsel %vm4823_vm2, %v417_v37, %v4987_v24  ;;  %v494_v52 = vor.u32 %v493_v38, %v490_v25  ;;  %v5007_v53 = vrot.slane %v507_v36, 5  ;;  %v578_v55 = vrot.slane %v576_v43, 4  ;;  %1861 = vmatpush.bf16.msrb.mxu3 %v4527_v41  ;;  %1128 = vmatpush.bf16.msrb.mxu1 %v4503_v17  ;;  %v227_v17 = vld [vmem:[%s4800_s7 + $0x74] sm:$0x1] }
  0x48   : > { %v504_v57 = vor.u32 %v503_v46, %v499_v40  ;;  %v579_v58 = vshll.u32 %v233_v27, 16  ;;  %v585_v60 = vshll.u32 %v234_v42, 16  ;;  %853 = vmatmul.bf16.gmra.mxu1 %v4953_v50  ;;  %893 = vmatmul.bf16.gmra.mxu2 %v4963_v54  ;;  %v589_v63 = vshrl.u32 %v234_v42, 16 }
  0x49   : > { %v495_v62 = vrot.slane %v494_v52, 4  ;;  %v595_v0 = vshll.u32 %v4997_v47, 16  ;;  %v312_v4 = vshrl.u32 %v5000_v51, 16  ;;  %933 = vmatmul.bf16.gmra.mxu3 %v4994_v44  ;;  %v692_v6 = vunpack.c.l.b16 %v412_v21  ;;  %2159 = vmatpush.bf16.msrb.mxu0 %v4535_v18  ;;  %v5052_v21 = vld [vmem:[%s4800_s7 + $0x4c] sm:$0x1] }
  0x4a   : > { %813 = vmatmul.bf16.gmra.mxu0 %v717_v45  ;;  %v505_v7 = vrot.slane %v504_v57, 4  ;;  %v581_v28 = vrot.slane %v579_v58, 5  ;;  %v587_v39 = vrot.slane %v585_v60, 5  ;;  %v693_v10 = vunpack.c.l.b16 %v422_v14 }
  0x4b   : > { %v500_v12 = vsel %vm4823_vm2, %v495_v62, %v499_v40  ;;  %v591_v13 = vrot.slane %v589_v63, 4  ;;  %v5025_v15 = vrot.slane %v595_v0, 5  ;;  %v314_v23 = vrot.slane %v312_v4, 4 }
  0x4c   : > { %v510_v19 = vsel %vm4823_vm2, %v505_v7, %v5007_v53  ;;  %v582_v22 = vor.u32 %v581_v28, %v578_v55  ;;  %v315_v25 = vshll.u32 %v5000_v51, 16  ;;  %v700_v27 = vunpack.c.l.b16 %v500_v12 }
  0x4d   : > { %v592_v29 = vor.u32 %v591_v13, %v587_v39  ;;  %v321_v5 = vshll.u32 %v5013_v1, 16  ;;  %v325_v32 = vshrl.u32 %v5013_v1, 16  ;;  %v331_v34 = vshll.u32 %v5018_v8, 16 }
  0x4e   : > { %v583_v2 = vrot.slane %v582_v22, 4  ;;  %v317_v33 = vrot.slane %v315_v25, 5  ;;  %v423_v36 = vshrl.u32 %v4967_v59, 16  ;;  %v701_v37 = vunpack.c.l.b16 %v510_v19 }
  0x4f   : > { %v593_v38 = vrot.slane %v592_v29, 4  ;;  %v323_v40 = vrot.slane %v321_v5, 5  ;;  %v327_v42 = vrot.slane %v325_v32, 4  ;;  %v5049_v46 = vrot.slane %v331_v34, 5 }
  0x50   : > { %v588_v43 = vsel %vm4823_vm2, %v583_v2, %v587_v39  ;;  %v318_v45 = vor.u32 %v317_v33, %v314_v23  ;;  %v425_v14 = vrot.slane %v423_v36, 4  ;;  %v429_v58 = vshll.u32 %v5044_v35, 16  ;;  %v226_v39 = vld [vmem:[%s4800_s7 + $0x70] sm:$0xf]  ;;  %v237_v33 = vld [vmem:[%s4800_s7 + $0x9c] sm:$0x1] }
  0x51   : > { %v598_v52 = vsel %vm4823_vm2, %v593_v38, %v5025_v15  ;;  %v708_v57 = vunpack.c.l.b16 %v588_v43  ;;  %v328_v55 = vor.u32 %v327_v42, %v323_v40  ;;  %v433_v0 = vshrl.u32 %v5044_v35, 16 }
  0x52   : > { %v709_v60 = vunpack.c.l.b16 %v598_v52  ;;  %v319_v62 = vrot.slane %v318_v45, 4  ;;  %v426_v63 = vor.u32 %v425_v14, %v4987_v24  ;;  %v5060_v7 = vrot.slane %v429_v58, 5  ;;  %v5087_v45 = vld [vmem:[%s4800_s7 + $0x20] sm:$0xf] }
  0x53   : > { %v329_v4 = vrot.slane %v328_v55, 4  ;;  %v439_v28 = vshll.u32 %v5052_v21, 16  ;;  %v511_v9 = vshrl.u32 %v4985_v20, 16  ;;  %v5065_v12 = vpack.c.b16 %v693_v10, %v692_v6 }
  0x54   : > { %v5067_v13 = vpack.c.b16 %v701_v37, %v700_v27  ;;  %v324_v41 = vsel %vm4823_vm2, %v319_v62, %v323_v40  ;;  %v435_v24 = vrot.slane %v433_v0, 4  ;;  %v5072_v18 = vpack.c.b16 %v709_v60, %v708_v57  ;;  %v236_v27 = vld [vmem:[%s4800_s7 + $0x98] sm:$0xf]  ;;  %v5092_v57 = vld [vmem:[%s4800_s7 + $0x24] sm:$0x1] }
  0x55   : > { %v334_v19 = vsel %vm4823_vm2, %v329_v4, %v5049_v46  ;;  %v684_v22 = vunpack.c.l.b16 %v324_v41  ;;  %v513_v23 = vrot.slane %v511_v9, 4  ;;  %v427_v20 = vrot.slane %v426_v63, 4  ;;  %v4526_v63 = vld [vmem:[%s6177_s1 + $0xd8] sm:$0xff] }
  0x56   : > { %6213 = vst [vmem:[#allocation5_spill] sm:$0xff] %v5072_v18  ;;  %v685_v25 = vunpack.c.l.b16 %v334_v19  ;;  %v436_v6 = vor.u32 %v435_v24, %v5060_v7  ;;  %v517_v10 = vshll.u32 %v226_v39, 16  ;;  %v441_v29 = vrot.slane %v439_v28, 5  ;;  %v4502_v0 = vld [vmem:[%s6177_s1 + $0x18] sm:$0xff]  ;;  %1862 = vmatpush.bf16.msrb.mxu3 %v4526_v63 }
  0x57   : > { %v514_v5 = vor.u32 %v513_v23, %v5007_v53  ;;  %v521_v32 = vshrl.u32 %v226_v39, 16  ;;  %v527_v2 = vshll.u32 %v227_v17, 16  ;;  %v599_v38 = vshrl.u32 %v4997_v47, 16  ;;  %v4518_v47 = vld [vmem:[%s6177_s1 + $0x98] sm:$0xff]  ;;  %1129 = vmatpush.bf16.msrb.mxu1 %v4502_v0 }
  0x58   : > { %v5081_v34 = vpack.c.b16 %v685_v25, %v684_v22  ;;  %v437_v36 = vrot.slane %v436_v6, 4  ;;  %v519_v37 = vrot.slane %v517_v10, 5  ;;  %858 = vmatmul.bf16.gmra.mxu1 %v5065_v12  ;;  %898 = vmatmul.bf16.gmra.mxu2 %v5067_v13  ;;  %v605_v43 = vshll.u32 %v236_v27, 16  ;;  %v4534_v4 = vld [vmem:[%s6177_s1 + $0x118] sm:$0xff] }
  0x59   : > { %v515_v40 = vrot.slane %v514_v5, 4  ;;  %v523_v42 = vrot.slane %v521_v32, 4  ;;  %938 = vmatmul.bf16.gmra.mxu3 %v5072_v18  ;;  %v601_v53 = vrot.slane %v599_v38, 4  ;;  %v609_v14 = vshrl.u32 %v236_v27, 16  ;;  %1564 = vmatpush.bf16.msrb.mxu2 %v4518_v47 }
  0x5a   : > { %6214 = vst [vmem:[#allocation6_spill] sm:$0xff] %v5081_v34  ;;  %818 = vmatmul.bf16.gmra.mxu0 %v5081_v34  ;;  %v615_v52 = vshll.u32 %v237_v33, 16  ;;  %v432_v55 = vsel %vm4823_vm2, %v427_v20, %v5060_v7  ;;  %v529_v60 = vrot.slane %v527_v2, 5  ;;  %v607_v62 = vrot.slane %v605_v43, 5 }
  0x5b   : > { %v524_v58 = vor.u32 %v523_v42, %v519_v37  ;;  %v442_v28 = vsel %vm4823_vm2, %v437_v36, %v441_v29  ;;  %v520_v7 = vsel %vm4823_vm2, %v515_v40, %v519_v37  ;;  %v602_v39 = vor.u32 %v601_v53, %v5025_v15  ;;  %2160 = vmatpush.bf16.msrb.mxu0 %v4534_v4  ;;  %v4517_v4 = vld [vmem:[%s6177_s1 + $0x90] sm:$0xff] }
  0x5c   : > { %v611_v9 = vrot.slane %v609_v14, 4  ;;  %v617_v24 = vrot.slane %v615_v52, 5  ;;  %v335_v17 = vshrl.u32 %v5018_v8, 16  ;;  %v341_v19 = vshll.u32 %v5087_v45, 16 }
  0x5d   : > { %v525_v41 = vrot.slane %v524_v58, 4  ;;  %v603_v22 = vrot.slane %v602_v39, 4  ;;  %v345_v25 = vshrl.u32 %v5087_v45, 16  ;;  %v351_v20 = vshll.u32 %v5092_v57, 16  ;;  %v4533_v39 = vld [vmem:[%s6177_s1 + $0x110] sm:$0xff]  ;;  %1565 = vmatpush.bf16.msrb.mxu2 %v4517_v4 }
  0x5e   : > { %v612_v23 = vor.u32 %v611_v9, %v607_v62  ;;  %v337_v6 = vrot.slane %v335_v17, 4  ;;  %v343_v10 = vrot.slane %v341_v19, 5  ;;  %v694_v27 = vunpack.c.l.b16 %v432_v55  ;;  %v238_v9 = vld [vmem:[%s4800_s7 + $0xa0] sm:$0xf]  ;;  %v4500_v17 = vld [vmem:[%s6177_s1 + $0x8] sm:$0xff] }
  0x5f   : > { %v530_v15 = vsel %vm4823_vm2, %v525_v41, %v529_v60  ;;  %v608_v29 = vsel %vm4823_vm2, %v603_v22, %v607_v62  ;;  %v347_v32 = vrot.slane %v345_v25, 4  ;;  %v695_v2 = vunpack.c.l.b16 %v442_v28  ;;  %v4525_v28 = vld [vmem:[%s6177_s1 + $0xd0] sm:$0xff]  ;;  %2161 = vmatpush.bf16.msrb.mxu0 %v4533_v39  ;;  %v4516_v41 = vld [vmem:[%s6177_s1 + $0x88] sm:$0xff]  ;;  %v239_v22 = vld [vmem:[%s4800_s7 + $0xa4] sm:$0xf] }
  0x60   : > { %v613_v5 = vrot.slane %v612_v23, 4  ;;  %v702_v33 = vunpack.c.l.b16 %v520_v7  ;;  %v703_v36 = vunpack.c.l.b16 %v530_v15  ;;  %v338_v37 = vor.u32 %v337_v6, %v5049_v46  ;;  %v4501_v7 = vld [vmem:[%s6177_s1 + $0x10] sm:$0xff]  ;;  %1863 = vmatpush.bf16.msrb.mxu3 %v4525_v28  ;;  %v4532_v19 = vld [vmem:[%s6177_s1 + $0x108] sm:$0xff] }
  0x61   : > { %v710_v40 = vunpack.c.l.b16 %v608_v29  ;;  %v348_v42 = vor.u32 %v347_v32, %v343_v10  ;;  %v353_v43 = vrot.slane %v351_v20, 5  ;;  %v5125_v47 = vpack.c.b16 %v695_v2, %v694_v27  ;;  %1130 = vmatpush.bf16.msrb.mxu1 %v4501_v7  ;;  %1566 = vmatpush.bf16.msrb.mxu2 %v4516_v41  ;;  %v242_v41 = vld [vmem:[%s4800_s7 + $0xb0] sm:$0x1] }
  0x62   : > { %v618_v38 = vsel %vm4823_vm2, %v613_v5, %v617_v24  ;;  %v339_v14 = vrot.slane %v338_v37, 4  ;;  %v5127_v55 = vpack.c.b16 %v703_v36, %v702_v33  ;;  %v4524_v24 = vld [vmem:[%s6177_s1 + $0xc8] sm:$0xff]  ;;  %v620_v23 = vshrl.u32 %v238_v9, 16  ;;  %v4515_v37 = vld [vmem:[%s6177_s1 + $0x80] sm:$0xff] }
  0x63   : > { %v711_v53 = vunpack.c.l.b16 %v618_v38  ;;  %v349_v52 = vrot.slane %v348_v42, 4  ;;  %v623_v25 = vshll.u32 %v238_v9, 16  ;;  %2162 = vmatpush.bf16.msrb.mxu0 %v4532_v19  ;;  %v629_v20 = vshll.u32 %v239_v22, 16  ;;  %v240_v5 = vld [vmem:[%s4800_s7 + $0xa8] sm:$0xf]  ;;  %v4523_v42 = vld [vmem:[%s6177_s1 + $0xc0] sm:$0xff] }
  0x64   : > { %v344_v58 = vsel %vm4823_vm2, %v339_v14, %v343_v10  ;;  %1864 = vmatpush.bf16.msrb.mxu3 %v4524_v24  ;;  %v633_v15 = vshrl.u32 %v239_v22, 16  ;;  %v622_v6 = vrot.slane %v620_v23, 4  ;;  %v639_v33 = vshll.u32 %v240_v5, 16  ;;  %v241_v14 = vld [vmem:[%s4800_s7 + $0xac] sm:$0xf]  ;;  %v4554_v23 = vld [vmem:[%s6177_s1 + $0x1b8] sm:$0xff] }
  0x65   : > { %v5131_v60 = vpack.c.b16 %v711_v53, %v710_v40  ;;  %v354_v46 = vsel %vm4823_vm2, %v349_v52, %v353_v43  ;;  %v686_v62 = vunpack.c.l.b16 %v344_v58  ;;  %1131 = vmatpush.bf16.msrb.mxu1 %v4500_v17  ;;  %v625_v10 = vrot.slane %v623_v25, 5  ;;  %v4499_v43 = vld [vmem:[%s6177_s1] sm:$0xff]  ;;  %1567 = vmatpush.bf16.msrb.mxu2 %v4515_v37 }
  0x66   : > { %v687_v63 = vunpack.c.l.b16 %v354_v46  ;;  %v631_v27 = vrot.slane %v629_v20, 5  ;;  %v635_v29 = vrot.slane %v633_v15, 4  ;;  %v641_v40 = vrot.slane %v639_v33, 5  ;;  %v4531_v53 = vld [vmem:[%s6177_s1 + $0x100] sm:$0xff] }
  0x67   : > { %6215 = vst [vmem:[#allocation7_spill] sm:$0xff] %v5131_v60  ;;  %v626_v32 = vor.u32 %v625_v10, %v622_v6  ;;  %2163 = vmatpush.bf16.msrb.mxu0 %v4531_v53  ;;  %v643_v46 = vshrl.u32 %v240_v5, 16  ;;  %v659_v22 = vshll.u32 %v242_v41, 16  ;;  %v4562_v6 = vld [vmem:[%s6177_s1 + $0x1f8] sm:$0xff]  ;;  %v4122_v37 = vrot.slane %v4841_v49, 9 }
  0x68   : > { %863 = vmatmul.bf16.gmra.mxu1 %v5125_v47  ;;  %903 = vmatmul.bf16.gmra.mxu2 %v5127_v55  ;;  %v5137_v0 = vpack.c.b16 %v687_v63, %v686_v62  ;;  %v636_v2 = vor.u32 %v635_v29, %v631_v27  ;;  %v649_v62 = vshll.u32 %v241_v14, 16  ;;  %v653_v63 = vshrl.u32 %v241_v14, 16  ;;  %v4546_v10 = vld [vmem:[%s6177_s1 + $0x178] sm:$0xff] }
  0x69   : > { %943 = vmatmul.bf16.gmra.mxu3 %v5131_v60  ;;  %v627_v36 = vrot.slane %v626_v32, 4  ;;  %1132 = vmatpush.bf16.msrb.mxu1 %v4499_v43  ;;  %v645_v7 = vrot.slane %v643_v46, 4  ;;  %v661_v15 = vrot.slane %v659_v22, 5  ;;  %v4570_v5 = vld [vmem:[%s6177_s1 + $0x238] sm:$0xff] }
  0x6a   : > { %6216 = vst [vmem:[#allocation8_spill] sm:$0xff] %v5137_v0  ;;  %823 = vmatmul.bf16.gmra.mxu0 %v5137_v0  ;;  %v637_v38 = vrot.slane %v636_v2, 4  ;;  %1865 = vmatpush.bf16.msrb.mxu3 %v4523_v42  ;;  %v651_v39 = vrot.slane %v649_v62, 5  ;;  %v655_v9 = vrot.slane %v653_v63, 4  ;;  %v5237_v46 = vld [vmem:[%s4800_s7 + $0x14] sm:$0xff] }
  0x6b   : > { %v632_v52 = vsel %vm4823_vm2, %v627_v36, %v631_v27  ;;  %v646_v17 = vor.u32 %v645_v7, %v641_v40  ;;  %2764 = vmatpush.bf16.msra.mxu2 %v4554_v23  ;;  %3434 = vmatpush.bf16.msra.mxu0 %v4570_v5  ;;  %v1308_v36 = vrot.slane %v4850_v61, 5 }
  0x6c   : > { %v642_v58 = vsel %vm4823_vm2, %v637_v38, %v641_v40  ;;  %v712_v4 = vunpack.c.l.b16 %v632_v52  ;;  %v656_v19 = vor.u32 %v655_v9, %v651_v39  ;;  %v1311_v40 = vrot.slane %v4859_v3, 5  ;;  %v4479_v52 = vld [vmem:[%s4800_s7] sm:$0xff] }
  0x6d   : > { %v713_v28 = vunpack.c.l.b16 %v642_v58  ;;  %v647_v25 = vrot.slane %v646_v17, 4  ;;  %2454 = vmatpush.bf16.msra.mxu1 %v4546_v10  ;;  %v1310_v38 = vrot.slane %v1308_v36, 4  ;;  %v1309_v61 = vsel %vm5225_vm5, %v4122_v37, %v1308_v36 }
  0x6e   : > { %v657_v20 = vrot.slane %v656_v19, 4  ;;  %3114 = vmatpush.bf16.msra.mxu3 %v4562_v6  ;;  %v1440_v53 = vunpack.c.l.b16 %v1309_v61  ;;  %v1314_v3 = vrot.slane %v4914_v16, 5  ;;  %v1313_v63 = vrot.slane %v1311_v40, 4  ;;  %v5265_v6 = vld [vmem:[%s4800_s7 + $0x1c] sm:$0xff] }
  0x6f   : > { %v5194_v24 = vpack.c.b16 %v713_v28, %v712_v4  ;;  %v652_v27 = vsel %vm4823_vm2, %v647_v25, %v651_v39  ;;  %v1312_v43 = vsel %vm5225_vm5, %v1310_v38, %v1311_v40  ;;  %v1317_v28 = vrot.slane %v4929_v31, 5  ;;  %v4480_v25 = vld [vmem:[%s4800_s7 + $0x8] sm:$0xff] }
  0x70   : > { %v662_v29 = vsel %vm4823_vm2, %v657_v20, %v661_v15  ;;  %v714_v32 = vunpack.c.l.b16 %v652_v27  ;;  %v1441_v14 = vunpack.c.l.b16 %v1312_v43  ;;  %v1316_v4 = vrot.slane %v1314_v3, 4 }
  0x71   : > { %6217 = vst [vmem:[#allocation9_spill] sm:$0xff] %v5194_v24  ;;  %v715_v2 = vunpack.c.l.b16 %v662_v29  ;;  %v1315_v16 = vsel %vm5225_vm5, %v1313_v63, %v1314_v3  ;;  %v1321_v10 = vrot.slane %v5013_v1, 5  ;;  %v4123_v29 = vrot.slane %v5000_v51, 9 }
  0x72   : > { %v1476_v58 = vpack.c.b16 %v1441_v14, %v1440_v53  ;;  %v1318_v41 = vsel %vm5225_vm5, %v1316_v4, %v1317_v28  ;;  %v1442_v19 = vunpack.c.l.b16 %v1315_v16  ;;  %v1330_v4 = vrot.slane %v5092_v57, 5  ;;  %v4553_v28 = vld [vmem:[%s6177_s1 + $0x1b0] sm:$0xff] }
  0x73   : > { %v5216_v33 = vpack.c.b16 %v715_v2, %v714_v32  ;;  %v1443_v22 = vunpack.c.l.b16 %v1318_v41  ;;  %v1323_v5 = vrot.slane %v1321_v10, 4  ;;  %v1324_v32 = vrot.slane %v5018_v8, 5  ;;  %2765 = vmatpush.bf16.msra.mxu2 %v4553_v28  ;;  %v4545_v57 = vld [vmem:[%s6177_s1 + $0x170] sm:$0xff] }
  0x74   : > { %v1322_v1 = vsel %vm5225_vm5, %v4123_v29, %v1321_v10  ;;  %2455 = vmatpush.bf16.msra.mxu1 %v4545_v57  ;;  %v4569_v10 = vld [vmem:[%s6177_s1 + $0x230] sm:$0xff] }
  0x75   : > { %6218 = vst [vmem:[#allocation10_spill] sm:$0xff] %v5216_v33  ;;  %v1477_v20 = vpack.c.b16 %v1443_v22, %v1442_v19  ;;  %v1325_v38 = vsel %vm5225_vm5, %v1323_v5, %v1324_v32  ;;  %v1444_v51 = vunpack.c.l.b16 %v1322_v1  ;;  %v1326_v3 = vrot.slane %v1324_v32, 4  ;;  %3435 = vmatpush.bf16.msra.mxu0 %v4569_v10 }
  0x76   : > { %v1445_v61 = vunpack.c.l.b16 %v1325_v38 }
  0x78   : > { %868 = vmatmul.bf16.gmra.mxu1 %v5065_v12  ;;  %908 = vmatmul.bf16.gmra.mxu2 %v5067_v13  ;;  %v5290_v53 = vpack.c.b16 %v1445_v61, %v1444_v51 }
  0x79   : > { %948 = vmatmul.bf16.gmra.mxu3 %v5072_v18 }
  0x7a   : > { %828 = vmatmul.bf16.gmra.mxu0 %v5081_v34  ;;  %6229 = vst [vmem:[#allocation19_spill] sm:$0xff] %v5290_v53 }
  0x88   : > { %873 = vmatmul.bf16.gmra.mxu1 %v5125_v47  ;;  %913 = vmatmul.bf16.gmra.mxu2 %v5127_v55 }
  0x89   : > { %953 = vmatmul.bf16.gmra.mxu3 %v5131_v60 }
  0x8a   : > { %833 = vmatmul.bf16.gmra.mxu0 %v5137_v0 }
  0x98   : > { %878 = vmatmul.bf16.gmra.mxu1 %v4878_v26  ;;  %918 = vmatmul.bf16.gmra.mxu2 %v4898_v56 }
  0x99   : > { %958 = vmatmul.bf16.gmra.mxu3 %v5194_v24 }
  0x9a   : > { %838 = vmatmul.bf16.gmra.mxu0 %v4868_v11 }
  0xa8   : > { %883 = vmatmul.bf16.gmra.mxu1 %v4963_v54  ;;  %923 = vmatmul.bf16.gmra.mxu2 %v4994_v44 }
  0xa9   : > { %963 = vmatmul.bf16.gmra.mxu3 %v5216_v33 }
  0xaa   : > { %843 = vmatmul.bf16.gmra.mxu0 %v4953_v50 }
  0xb5   : > { %v5234_v49 = vpop.f32.mrf.mxu1 }
  0xb7   : > { %v5240_v62 = vpop.f32.mrf.mxu0 }
  0xb8   : > { %1133 = vmatmul.bf16.vlgmr.msrb.gmra.mxu1 %v4479_v52  ;;  %1568 = vmatmul.bf16.vlgmr.msrb.gmra.mxu2 %v1476_v58  ;;  %v1327_v52 = vrot.slane %v5087_v45, 5  ;;  %v4561_v45 = vld [vmem:[%s6177_s1 + $0x1f0] sm:$0xff] }
  0xb9   : > { %1866 = vmatmul.bf16.vlgmr.msrb.gmra.mxu3 %v5237_v46 }
  0xba   : > { %2164 = vmatmul.bf16.vlgmr.msrb.gmra.mxu0 %v5081_v34  ;;  %v1329_v63 = vrot.slane %v1327_v52, 4  ;;  %3115 = vmatpush.bf16.msra.mxu3 %v4561_v45  ;;  %v1328_v22 = vsel %vm5225_vm5, %v1326_v3, %v1327_v52 }
  0xbb   : > { %v5245_v7 = vpop.f32.mrf.mxu2  ;;  %v1446_v29 = vunpack.c.l.b16 %v1328_v22  ;;  %v5355_v22 = vld [vmem:[%s4800_s7 + $0x28] sm:$0xff] }
  0xbc   : > { %6221 = vst [vmem:[#allocation11_spill] sm:$0xff] %v5245_v7  ;;  %v5247_v39 = vpop.f32.mrf.mxu3  ;;  %v5479_v7 = vld [vmem:[%s4800_s7 + $0x44] sm:$0xff] }
  0xbd   : > { %6222 = vst [vmem:[#allocation12_spill] sm:$0xff] %v5247_v39  ;;  %v5249_v9 = vpop.f32.mrf.mxu1  ;;  %v4639_v39 = vld [vmem:[%s4800_s7 + $0x30] sm:$0xf] }
  0xbf   : > { %v5255_v17 = vpop.f32.mrf.mxu0 }
  0xc3   : > { %v5257_v23 = vpop.f32.mrf.mxu2 }
  0xc4   : > { %6223 = vst [vmem:[#allocation13_spill] sm:$0xff] %v5257_v23  ;;  %v5259_v31 = vpop.f32.mrf.mxu3 }
  0xc5   : > { %6224 = vst [vmem:[#allocation14_spill] sm:$0xff] %v5259_v31  ;;  %v5262_v15 = vpop.f32.mrf.mxu1 }
  0xc7   : > { %v5268_v27 = vpop.f32.mrf.mxu0 }
  0xc8   : > { %1138 = vmatmul.bf16.gmra.mxu1 %v4480_v25  ;;  %1573 = vmatmul.bf16.gmra.mxu2 %v1477_v20  ;;  %v1331_v25 = vsel %vm5225_vm5, %v1329_v63, %v1330_v4 }
  0xc9   : > { %1871 = vmatmul.bf16.gmra.mxu3 %v5265_v6  ;;  %v1447_v5 = vunpack.c.l.b16 %v1331_v25 }
  0xca   : > { %2169 = vmatmul.bf16.gmra.mxu0 %v5137_v0 }
  0xcb   : > { %v5274_v2 = vpop.f32.mrf.mxu2  ;;  %v5330_v38 = vpack.c.b16 %v1447_v5, %v1446_v29 }
  0xcc   : > { %6225 = vst [vmem:[#allocation15_spill] sm:$0xff] %v5274_v2  ;;  %v5276_v36 = vpop.f32.mrf.mxu3 }
  0xcd   : > { %6226 = vst [vmem:[#allocation16_spill] sm:$0xff] %v5276_v36  ;;  %v5278_v37 = vpop.f32.mrf.mxu1 }
  0xce   : > { %6234 = vst [vmem:[#allocation24_spill] sm:$0xff] %v5330_v38 }
  0xcf   : > { %v5284_v40 = vpop.f32.mrf.mxu0 }
  0xd3   : > { %v5286_v43 = vpop.f32.mrf.mxu2 }
  0xd4   : > { %6227 = vst [vmem:[#allocation17_spill] sm:$0xff] %v5286_v43  ;;  %v5288_v8 = vpop.f32.mrf.mxu3 }
  0xd5   : > { %6228 = vst [vmem:[#allocation18_spill] sm:$0xff] %v5288_v8  ;;  %v5292_v14 = vpop.f32.mrf.mxu1 }
  0xd7   : > { %v5295_v58 = vpop.f32.mrf.mxu0 }
  0xd8   : > { %1143 = vmatmul.bf16.gmra.mxu1 %v5237_v46  ;;  %1578 = vmatmul.bf16.gmra.mxu2 %v5290_v53 }
  0xd9   : > { %1876 = vmatmul.bf16.gmra.mxu3 %v5237_v46 }
  0xda   : > { %2174 = vmatmul.bf16.gmra.mxu0 %v5081_v34 }
  0xdb   : > { %v5308_v16 = vpop.f32.mrf.mxu2 }
  0xdc   : > { %6230 = vst [vmem:[#allocation20_spill] sm:$0xff] %v5308_v16  ;;  %v5310_v41 = vpop.f32.mrf.mxu3 }
  0xdd   : > { %6231 = vst [vmem:[#allocation21_spill] sm:$0xff] %v5310_v41  ;;  %v5315_v19 = vpop.f32.mrf.mxu1  ;;  %v4637_v41 = vld [vmem:[%s4800_s7 + $0x2c] sm:$0xf] }
  0xde   : > { %v1334_v8 = vrot.slane %v4637_v41, 5 }
  0xdf   : > { %v5321_v20 = vpop.f32.mrf.mxu0 }
  0xe0   : > { %v1336_v31 = vrot.slane %v1334_v8, 4 }
  0xe3   : > { %v5326_v32 = vpop.f32.mrf.mxu2 }
  0xe4   : > { %6232 = vst [vmem:[#allocation22_spill] sm:$0xff] %v5326_v32  ;;  %v5328_v1 = vpop.f32.mrf.mxu3 }
  0xe5   : > { %6233 = vst [vmem:[#allocation23_spill] sm:$0xff] %v5328_v1  ;;  %v5332_v51 = vpop.f32.mrf.mxu1  ;;  %v5378_v1 = vld [vmem:[%s4800_s7 + $0x30] sm:$0xff] }
  0xe7   : > { %v5334_v61 = vpop.f32.mrf.mxu0 }
  0xe8   : > { %1148 = vmatmul.bf16.gmra.mxu1 %v5265_v6  ;;  %1583 = vmatmul.bf16.gmra.mxu2 %v5330_v38 }
  0xe9   : > { %1881 = vmatmul.bf16.gmra.mxu3 %v5265_v6 }
  0xea   : > { %2179 = vmatmul.bf16.gmra.mxu0 %v5137_v0 }
  0xeb   : > { %v5340_v52 = vpop.f32.mrf.mxu2 }
  0xec   : > { %6235 = vst [vmem:[#allocation25_spill] sm:$0xff] %v5340_v52  ;;  %v5342_v3 = vpop.f32.mrf.mxu3 }
  0xed   : > { %6236 = vst [vmem:[#allocation26_spill] sm:$0xff] %v5342_v3  ;;  %v5344_v63 = vpop.f32.mrf.mxu1 }
  0xef   : > { %v5346_v4 = vpop.f32.mrf.mxu0 }
  0xf3   : > { %v5348_v28 = vpop.f32.mrf.mxu2 }
  0xf4   : > { %6237 = vst [vmem:[#allocation27_spill] sm:$0xff] %v5348_v28  ;;  %v5350_v45 = vpop.f32.mrf.mxu3 }
  0xf5   : > { %6238 = vst [vmem:[#allocation28_spill] sm:$0xff] %v5350_v45  ;;  %v5352_v57 = vpop.f32.mrf.mxu1 }
  0xf7   : > { %v5357_v25 = vpop.f32.mrf.mxu0 }
  0xf8   : > { %1153 = vmatmul.bf16.gmra.mxu1 %v5237_v46  ;;  %1588 = vmatmul.bf16.gmra.mxu2 %v5290_v53 }
  0xf9   : > { %1886 = vmatmul.bf16.gmra.mxu3 %v5355_v22 }
  0xfa   : > { %2184 = vmatmul.bf16.gmra.mxu0 %v4868_v11 }
  0xfb   : > { %v5363_v10 = vpop.f32.mrf.mxu2 }
  0xfc   : > { %6239 = vst [vmem:[#allocation29_spill] sm:$0xff] %v5363_v10  ;;  %v5365_v29 = vpop.f32.mrf.mxu3  ;;  %v4640_v10 = vld [vmem:[%s4800_s7 + $0x34] sm:$0xf] }
  0xfd   : > { %6240 = vst [vmem:[#allocation30_spill] sm:$0xff] %v5365_v29  ;;  %v5367_v5 = vpop.f32.mrf.mxu1  ;;  %v4638_v29 = vld [vmem:[%s4800_s7 + $0x28] sm:$0xf]  ;;  %v1340_v28 = vrot.slane %v4640_v10, 5 }
  0xfe   : > { %v4124_v0 = vrot.slane %v4638_v29, 9 }
  0xff   : > { %v5369_v30 = vpop.f32.mrf.mxu0 }
 0x103   : > { %v5371_v45 = vpop.f32.mrf.mxu2 }
 0x104   : > { %6241 = vst [vmem:[#allocation31_spill] sm:$0xff] %v5371_v45  ;;  %v5373_v3 = vpop.f32.mrf.mxu3 }
 0x105   : > { %6242 = vst [vmem:[#allocation32_spill] sm:$0xff] %v5373_v3  ;;  %v5375_v46 = vpop.f32.mrf.mxu1  ;;  %v1337_v3 = vrot.slane %v4639_v39, 5 }
 0x107   : > { %v5381_v36 = vpop.f32.mrf.mxu0 }
 0x108   : > { %1158 = vmatmul.bf16.gmra.mxu1 %v5265_v6  ;;  %1593 = vmatmul.bf16.gmra.mxu2 %v5330_v38  ;;  %v1335_v6 = vsel %vm5225_vm5, %v4124_v0, %v1334_v8  ;;  %v1338_v38 = vsel %vm5225_vm5, %v1336_v31, %v1337_v3  ;;  %v1339_v0 = vrot.slane %v1337_v3, 4  ;;  %v1342_v31 = vrot.slane %v1340_v28, 4  ;;  %v4641_v8 = vld [vmem:[%s4800_s7 + $0x38] sm:$0x1] }
 0x109   : > { %1891 = vmatmul.bf16.gmra.mxu3 %v5378_v1  ;;  %v1448_v33 = vunpack.c.l.b16 %v1335_v6  ;;  %v1449_v45 = vunpack.c.l.b16 %v1338_v38  ;;  %v1343_v38 = vrot.slane %v4641_v8, 5 }
 0x10a   : > { %2189 = vmatmul.bf16.gmra.mxu0 %v4953_v50  ;;  %v1341_v8 = vsel %vm5225_vm5, %v1339_v0, %v1340_v28 }
 0x10b   : > { %v5389_v34 = vpop.f32.mrf.mxu2 }
 0x10c   : > { %6243 = vst [vmem:[#allocation33_spill] sm:$0xff] %v5389_v34  ;;  %v5391_v53 = vpop.f32.mrf.mxu3  ;;  %v5405_v34 = vpack.c.b16 %v1449_v45, %v1448_v33  ;;  %v4552_v33 = vld [vmem:[%s6177_s1 + $0x1a8] sm:$0xff] }
 0x10d   : > { %6244 = vst [vmem:[#allocation34_spill] sm:$0xff] %v5391_v53  ;;  %v5393_v41 = vpop.f32.mrf.mxu1  ;;  %v4560_v45 = vld [vmem:[%s6177_s1 + $0x1e8] sm:$0xff]  ;;  %2766 = vmatpush.bf16.msra.mxu2 %v4552_v33 }
 0x10e   : > { %6247 = vst [vmem:[#allocation37_spill] sm:$0xff] %v5405_v34  ;;  %3116 = vmatpush.bf16.msra.mxu3 %v4560_v45  ;;  %v4568_v33 = vld [vmem:[%s6177_s1 + $0x228] sm:$0xff] }
 0x10f   : > { %v5399_v29 = vpop.f32.mrf.mxu0  ;;  %3436 = vmatpush.bf16.msra.mxu0 %v4568_v33 }
 0x113   : > { %v5401_v39 = vpop.f32.mrf.mxu2 }
 0x114   : > { %6245 = vst [vmem:[#allocation35_spill] sm:$0xff] %v5401_v39  ;;  %v5403_v24 = vpop.f32.mrf.mxu3 }
 0x115   : > { %6246 = vst [vmem:[#allocation36_spill] sm:$0xff] %v5403_v24  ;;  %v5407_v53 = vpop.f32.mrf.mxu1  ;;  %v1344_v24 = vsel %vm5225_vm5, %v1342_v31, %v1343_v38 }
 0x116   : > { %v1451_v45 = vunpack.c.l.b16 %v1344_v24 }
 0x117   : > { %v5410_v52 = vpop.f32.mrf.mxu0 }
 0x118   : > { %1163 = vmatmul.bf16.gmra.mxu1 %v5355_v22  ;;  %1598 = vmatmul.bf16.gmra.mxu2 %v5405_v34 }
 0x119   : > { %1896 = vmatmul.bf16.gmra.mxu3 %v5355_v22 }
 0x11a   : > { %2194 = vmatmul.bf16.gmra.mxu0 %v4868_v11  ;;  %v4544_v11 = vld [vmem:[%s6177_s1 + $0x168] sm:$0xff] }
 0x11b   : > { %v5423_v10 = vpop.f32.mrf.mxu2  ;;  %2456 = vmatpush.bf16.msra.mxu1 %v4544_v11 }
 0x11c   : > { %6248 = vst [vmem:[#allocation38_spill] sm:$0xff] %v5423_v10  ;;  %v5425_v6 = vpop.f32.mrf.mxu3 }
 0x11d   : > { %6249 = vst [vmem:[#allocation39_spill] sm:$0xff] %v5425_v6  ;;  %v5427_v3 = vpop.f32.mrf.mxu1  ;;  %v1450_v6 = vunpack.c.l.b16 %v1341_v8 }
 0x11f   : > { %v5436_v39 = vpop.f32.mrf.mxu0  ;;  %v5445_v0 = vpack.c.b16 %v1451_v45, %v1450_v6 }
 0x123   : > { %v5441_v10 = vpop.f32.mrf.mxu2 }
 0x124   : > { %6250 = vst [vmem:[#allocation40_spill] sm:$0xff] %v5441_v10  ;;  %v5443_v28 = vpop.f32.mrf.mxu3  ;;  %v5468_v10 = vld [vmem:[%s4800_s7 + $0x3c] sm:$0xff] }
 0x125   : > { %6251 = vst [vmem:[#allocation41_spill] sm:$0xff] %v5443_v28  ;;  %v5447_v31 = vpop.f32.mrf.mxu1 }
 0x127   : > { %v5449_v38 = vpop.f32.mrf.mxu0 }
 0x128   : > { %1168 = vmatmul.bf16.gmra.mxu1 %v5378_v1  ;;  %1603 = vmatmul.bf16.gmra.mxu2 %v5445_v0 }
 0x129   : > { %1901 = vmatmul.bf16.gmra.mxu3 %v5378_v1 }
 0x12a   : > { %2199 = vmatmul.bf16.gmra.mxu0 %v4953_v50 }
 0x12b   : > { %v5455_v11 = vpop.f32.mrf.mxu2 }
 0x12c   : > { %6252 = vst [vmem:[#allocation42_spill] sm:$0xff] %v5455_v11  ;;  %v5457_v24 = vpop.f32.mrf.mxu3 }
 0x12d   : > { %6253 = vst [vmem:[#allocation43_spill] sm:$0xff] %v5457_v24  ;;  %v5459_v8 = vpop.f32.mrf.mxu1 }
 0x12e   : > { %6254 = vst [vmem:[#allocation44_spill] sm:$0xff] %v5459_v8 }
 0x12f   : > { %v5461_v6 = vpop.f32.mrf.mxu0 }
 0x133   : > { %v5463_v33 = vpop.f32.mrf.mxu2 }
 0x134   : > { %6255 = vst [vmem:[#allocation45_spill] sm:$0xff] %v5463_v33  ;;  %v5465_v45 = vpop.f32.mrf.mxu3 }
 0x135   : > { %6256 = vst [vmem:[#allocation46_spill] sm:$0xff] %v5465_v45  ;;  %v1134_v28 = vpop.f32.mrf.mxu1 }
 0x136   : > { %v1135_v24 = vadd.f32 %v1134_v28, %v5240_v62  ;;  %v1347_v62 = vrot.slane %v4951_v48, 5 }
 0x137   : > { %v2165_v32 = vpop.f32.mrf.mxu0 }
 0x138   : > { %1173 = vmatmul.bf16.gmra.mxu1 %v5355_v22  ;;  %1608 = vmatmul.bf16.gmra.mxu2 %v5405_v34 }
 0x139   : > { %1906 = vmatmul.bf16.gmra.mxu3 %v5468_v10 }
 0x13a   : > { %2204 = vmatmul.bf16.gmra.mxu0 %v5065_v12 }
 0x13b   : > { %v1569_v50 = vpop.f32.mrf.mxu2 }
 0x13c   : > { %v1729_v11 = vadd.f32 %v1569_v50, %v1135_v24  ;;  %v1867_v33 = vpop.f32.mrf.mxu3 }
 0x13d   : > { %v1136_v16 = vpop.f32.mrf.mxu1 }
 0x13e   : > { %v2027_v45 = vadd.f32 %v1867_v33, %v1729_v11  ;;  %v1137_v22 = vadd.f32 %v1136_v16, %v5255_v17  ;;  %v1349_v16 = vrot.slane %v1347_v62, 4 }
 0x13f   : > { %v2167_v43 = vpop.f32.mrf.mxu0 }
 0x140   : > { %v5475_v60 = vadd.f32 %v2165_v32, %v2027_v45  ;;  %v4642_v32 = vld [vmem:[%s4800_s7 + $0x3c] sm:$0xf] }
 0x141   : > { %v4125_v17 = vrot.slane %v4642_v32, 9 }
 0x142   : > { %6257 = vst [vmem:[#allocation47_spill] sm:$0xff] %v5475_v60  ;;  %v1353_v60 = vrot.slane %v5044_v35, 5 }
 0x143   : > { %v1571_v2 = vpop.f32.mrf.mxu2 }
 0x144   : > { %v1730_v34 = vadd.f32 %v1571_v2, %v1137_v22  ;;  %v1869_v23 = vpop.f32.mrf.mxu3  ;;  %v1350_v2 = vrot.slane %v4967_v59, 5 }
 0x145   : > { %v1139_v18 = vpop.f32.mrf.mxu1 }
 0x146   : > { %v2028_v28 = vadd.f32 %v1869_v23, %v1730_v34  ;;  %v1140_v11 = vadd.f32 %v1139_v18, %v5268_v27 }
 0x147   : > { %v2170_v8 = vpop.f32.mrf.mxu0 }
 0x148   : > { %1178 = vmatmul.bf16.gmra.mxu1 %v5378_v1  ;;  %1613 = vmatmul.bf16.gmra.mxu2 %v5445_v0  ;;  %v5484_v50 = vadd.f32 %v2167_v43, %v2028_v28  ;;  %v1348_v1 = vsel %vm5225_vm5, %v4125_v17, %v1347_v62  ;;  %v1351_v43 = vsel %vm5225_vm5, %v1349_v16, %v1350_v2 }
 0x149   : > { %1911 = vmatmul.bf16.gmra.mxu3 %v5479_v7  ;;  %v1452_v22 = vunpack.c.l.b16 %v1348_v1  ;;  %v1453_v28 = vunpack.c.l.b16 %v1351_v43 }
 0x14a   : > { %6258 = vst [vmem:[#allocation48_spill] sm:$0xff] %v5484_v50  ;;  %2209 = vmatmul.bf16.gmra.mxu0 %v5125_v47 }
 0x14b   : > { %v1574_v48 = vpop.f32.mrf.mxu2 }
 0x14c   : > { %v1731_v34 = vadd.f32 %v1574_v48, %v1140_v11  ;;  %v1872_v23 = vpop.f32.mrf.mxu3  ;;  %v5498_v11 = vpack.c.b16 %v1453_v28, %v1452_v22  ;;  %v4567_v28 = vld [vmem:[%s6177_s1 + $0x220] sm:$0xff] }
 0x14d   : > { %v1141_v24 = vpop.f32.mrf.mxu1  ;;  %3437 = vmatpush.bf16.msra.mxu0 %v4567_v28 }
 0x14e   : > { %v2029_v33 = vadd.f32 %v1872_v23, %v1731_v34  ;;  %v1142_v59 = vadd.f32 %v1141_v24, %v5284_v40  ;;  %v1355_v40 = vrot.slane %v1353_v60, 4  ;;  %v1356_v34 = vrot.slane %v5052_v21, 5  ;;  %v4551_v23 = vld [vmem:[%s6177_s1 + $0x1a0] sm:$0xff] }
 0x14f   : > { %v2172_v45 = vpop.f32.mrf.mxu0  ;;  %2767 = vmatpush.bf16.msra.mxu2 %v4551_v23 }
 0x150   : > { %v5495_v32 = vadd.f32 %v2170_v8, %v2029_v33  ;;  %v1352_v8 = vrot.slane %v1350_v2, 4  ;;  %v1357_v33 = vsel %vm5225_vm5, %v1355_v40, %v1356_v34 }
 0x152   : > { %v1354_v21 = vsel %vm5225_vm5, %v1352_v8, %v1353_v60 }
 0x153   : > { %v1576_v18 = vpop.f32.mrf.mxu2 }
 0x154   : > { %v1732_v27 = vadd.f32 %v1576_v18, %v1142_v59  ;;  %v1874_v50 = vpop.f32.mrf.mxu3  ;;  %v1454_v59 = vunpack.c.l.b16 %v1354_v21  ;;  %v1455_v18 = vunpack.c.l.b16 %v1357_v33 }
 0x155   : > { %v1144_v48 = vpop.f32.mrf.mxu1 }
 0x156   : > { %v2030_v62 = vadd.f32 %v1874_v50, %v1732_v27  ;;  %v1145_v35 = vadd.f32 %v1144_v48, %v5295_v58  ;;  %v4559_v50 = vld [vmem:[%s6177_s1 + $0x1e0] sm:$0xff]  ;;  %v5528_v40 = vpack.c.b16 %v1455_v18, %v1454_v59  ;;  %v5541_v18 = vld [vmem:[%s4800_s7 + $0x50] sm:$0xff] }
 0x157   : > { %v2175_v17 = vpop.f32.mrf.mxu0  ;;  %3117 = vmatpush.bf16.msra.mxu3 %v4559_v50  ;;  %v4543_v58 = vld [vmem:[%s6177_s1 + $0x160] sm:$0xff] }
 0x158   : > { %1183 = vmatmul.bf16.gmra.mxu1 %v5468_v10  ;;  %1618 = vmatmul.bf16.gmra.mxu2 %v5498_v11  ;;  %v5503_v16 = vadd.f32 %v2172_v45, %v2030_v62 }
 0x159   : > { %1916 = vmatmul.bf16.gmra.mxu3 %v5468_v10  ;;  %2457 = vmatpush.bf16.msra.mxu1 %v4543_v58 }
 0x15a   : > { %2214 = vmatmul.bf16.gmra.mxu0 %v5065_v12 }
 0x15b   : > { %v1579_v24 = vpop.f32.mrf.mxu2 }
 0x15c   : > { %v1733_v1 = vadd.f32 %v1579_v24, %v1145_v35  ;;  %v1877_v43 = vpop.f32.mrf.mxu3 }
 0x15d   : > { %v1146_v2 = vpop.f32.mrf.mxu1 }
 0x15e   : > { %v2031_v45 = vadd.f32 %v1877_v43, %v1733_v1  ;;  %v1147_v60 = vadd.f32 %v1146_v2, %v5321_v20 }
 0x15f   : > { %v2177_v22 = vpop.f32.mrf.mxu0 }
 0x160   : > { %v5525_v27 = vadd.f32 %v2175_v17, %v2031_v45 }
 0x163   : > { %v1581_v48 = vpop.f32.mrf.mxu2 }
 0x164   : > { %v1734_v62 = vadd.f32 %v1581_v48, %v1147_v60  ;;  %v1879_v8 = vpop.f32.mrf.mxu3 }
 0x165   : > { %v1149_v34 = vpop.f32.mrf.mxu1 }
 0x166   : > { %v2032_v23 = vadd.f32 %v1879_v8, %v1734_v62  ;;  %v1150_v17 = vadd.f32 %v1149_v34, %v5334_v61 }
 0x167   : > { %v2180_v35 = vpop.f32.mrf.mxu0 }
 0x168   : > { %1188 = vmatmul.bf16.gmra.mxu1 %v5479_v7  ;;  %1623 = vmatmul.bf16.gmra.mxu2 %v5528_v40  ;;  %v5532_v50 = vadd.f32 %v2177_v22, %v2032_v23 }
 0x169   : > { %1921 = vmatmul.bf16.gmra.mxu3 %v5479_v7 }
 0x16a   : > { %2219 = vmatmul.bf16.gmra.mxu0 %v5125_v47 }
 0x16b   : > { %v1584_v20 = vpop.f32.mrf.mxu2 }
 0x16c   : > { %v1735_v24 = vadd.f32 %v1584_v20, %v1150_v17  ;;  %v1882_v1 = vpop.f32.mrf.mxu3 }
 0x16d   : > { %v1151_v43 = vpop.f32.mrf.mxu1 }
 0x16e   : > { %v2033_v2 = vadd.f32 %v1882_v1, %v1735_v24  ;;  %v1152_v45 = vadd.f32 %v1151_v43, %v5346_v4 }
 0x16f   : > { %v2182_v21 = vpop.f32.mrf.mxu0 }
 0x170   : > { %v5537_v33 = vadd.f32 %v2180_v35, %v2033_v2 }
 0x173   : > { %v1586_v58 = vpop.f32.mrf.mxu2 }
 0x174   : > { %v1736_v22 = vadd.f32 %v1586_v58, %v1152_v45  ;;  %v1884_v28 = vpop.f32.mrf.mxu3 }
 0x175   : > { %v1154_v59 = vpop.f32.mrf.mxu1 }
 0x176   : > { %v2034_v60 = vadd.f32 %v1884_v28, %v1736_v22  ;;  %v1155_v4 = vadd.f32 %v1154_v59, %v5357_v25  ;;  %v4643_v25 = vld [vmem:[%s4800_s7 + $0x54] sm:$0xf] }
 0x177   : > { %v2185_v61 = vpop.f32.mrf.mxu0  ;;  %v1360_v45 = vrot.slane %v4643_v25, 5 }
 0x178   : > { %1193 = vmatmul.bf16.gmra.mxu1 %v5468_v10  ;;  %1628 = vmatmul.bf16.gmra.mxu2 %v5498_v11  ;;  %v5545_v48 = vadd.f32 %v2182_v21, %v2034_v60  ;;  %v5554_v21 = vld [vmem:[%s4800_s7 + $0x58] sm:$0xff] }
 0x179   : > { %1926 = vmatmul.bf16.gmra.mxu3 %v5541_v18  ;;  %v1362_v60 = vrot.slane %v1360_v45, 4 }
 0x17a   : > { %2224 = vmatmul.bf16.gmra.mxu0 %v4878_v26 }
 0x17b   : > { %v1589_v62 = vpop.f32.mrf.mxu2 }
 0x17c   : > { %v1737_v8 = vadd.f32 %v1589_v62, %v1155_v4  ;;  %v1887_v34 = vpop.f32.mrf.mxu3 }
 0x17d   : > { %v1156_v23 = vpop.f32.mrf.mxu1 }
 0x17e   : > { %v2035_v35 = vadd.f32 %v1887_v34, %v1737_v8  ;;  %v1157_v20 = vadd.f32 %v1156_v23, %v5369_v30  ;;  %v4644_v30 = vld [vmem:[%s4800_s7 + $0x50] sm:$0xf] }
 0x17f   : > { %v2187_v17 = vpop.f32.mrf.mxu0  ;;  %v4126_v59 = vrot.slane %v4644_v30, 9 }
 0x180   : > { %v5550_v10 = vadd.f32 %v2185_v61, %v2035_v35  ;;  %v4645_v61 = vld [vmem:[%s4800_s7 + $0x58] sm:$0xf] }
 0x181   : > { %v1363_v4 = vrot.slane %v4645_v61, 5  ;;  %v1361_v35 = vsel %vm5225_vm5, %v4126_v59, %v1360_v45 }
 0x183   : > { %v1591_v24 = vpop.f32.mrf.mxu2 }
 0x184   : > { %v1738_v1 = vadd.f32 %v1591_v24, %v1157_v20  ;;  %v1889_v43 = vpop.f32.mrf.mxu3 }
 0x185   : > { %v1159_v2 = vpop.f32.mrf.mxu1 }
 0x186   : > { %v2036_v58 = vadd.f32 %v1889_v43, %v1738_v1  ;;  %v1160_v62 = vadd.f32 %v1159_v2, %v5381_v36  ;;  %v1456_v1 = vunpack.c.l.b16 %v1361_v35 }
 0x187   : > { %v2190_v22 = vpop.f32.mrf.mxu0 }
 0x188   : > { %1198 = vmatmul.bf16.gmra.mxu1 %v5479_v7  ;;  %1633 = vmatmul.bf16.gmra.mxu2 %v5528_v40  ;;  %v5559_v28 = vadd.f32 %v2187_v17, %v2036_v58  ;;  %v1364_v17 = vsel %vm5225_vm5, %v1362_v60, %v1363_v4 }
 0x189   : > { %1931 = vmatmul.bf16.gmra.mxu3 %v5554_v21  ;;  %v1457_v43 = vunpack.c.l.b16 %v1364_v17  ;;  %v4558_v17 = vld [vmem:[%s6177_s1 + $0x1d8] sm:$0xff] }
 0x18a   : > { %6259 = vst [vmem:[#allocation49_spill] sm:$0xff] %v5559_v28  ;;  %2229 = vmatmul.bf16.gmra.mxu0 %v4963_v54  ;;  %3118 = vmatpush.bf16.msra.mxu3 %v4558_v17 }
 0x18b   : > { %v1594_v8 = vpop.f32.mrf.mxu2  ;;  %v5573_v61 = vpack.c.b16 %v1457_v43, %v1456_v1 }
 0x18c   : > { %v1739_v34 = vadd.f32 %v1594_v8, %v1160_v62  ;;  %v1892_v23 = vpop.f32.mrf.mxu3  ;;  %v4646_v8 = vld [vmem:[%s4800_s7 + $0x5c] sm:$0xf] }
 0x18d   : > { %v1161_v7 = vpop.f32.mrf.mxu1  ;;  %v1366_v45 = vrot.slane %v4646_v8, 5 }
 0x18e   : > { %v2037_v20 = vadd.f32 %v1892_v23, %v1739_v34  ;;  %v1162_v36 = vadd.f32 %v1161_v7, %v5399_v29  ;;  %v1365_v29 = vrot.slane %v1363_v4, 4  ;;  %v4647_v34 = vld [vmem:[%s4800_s7 + $0x60] sm:$0x1]  ;;  %v4550_v7 = vld [vmem:[%s6177_s1 + $0x198] sm:$0xff] }
 0x18f   : > { %v2192_v24 = vpop.f32.mrf.mxu0  ;;  %v1369_v23 = vrot.slane %v4647_v34, 5  ;;  %2768 = vmatpush.bf16.msra.mxu2 %v4550_v7 }
 0x190   : > { %v5570_v25 = vadd.f32 %v2190_v22, %v2037_v20  ;;  %v1368_v22 = vrot.slane %v1366_v45, 4  ;;  %v1367_v43 = vsel %vm5225_vm5, %v1365_v29, %v1366_v45 }
 0x193   : > { %v1596_v2 = vpop.f32.mrf.mxu2 }
 0x194   : > { %v1740_v58 = vadd.f32 %v1596_v2, %v1162_v36  ;;  %v1894_v30 = vpop.f32.mrf.mxu3  ;;  %v1370_v36 = vsel %vm5225_vm5, %v1368_v22, %v1369_v23 }
 0x195   : > { %v1164_v62 = vpop.f32.mrf.mxu1  ;;  %v1459_v8 = vunpack.c.l.b16 %v1370_v36 }
 0x196   : > { %v2038_v59 = vadd.f32 %v1894_v30, %v1740_v58  ;;  %v1165_v35 = vadd.f32 %v1164_v62, %v5410_v52  ;;  %v4542_v52 = vld [vmem:[%s6177_s1 + $0x158] sm:$0xff]  ;;  %v1458_v62 = vunpack.c.l.b16 %v1367_v43 }
 0x197   : > { %v2195_v28 = vpop.f32.mrf.mxu0  ;;  %v4566_v30 = vld [vmem:[%s6177_s1 + $0x218] sm:$0xff]  ;;  %2458 = vmatpush.bf16.msra.mxu1 %v4542_v52 }
 0x198   : > { %1203 = vmatmul.bf16.gmra.mxu1 %v5541_v18  ;;  %1638 = vmatmul.bf16.gmra.mxu2 %v5573_v61  ;;  %v5578_v60 = vadd.f32 %v2192_v24, %v2038_v59  ;;  %v5603_v23 = vpack.c.b16 %v1459_v8, %v1458_v62 }
 0x199   : > { %1936 = vmatmul.bf16.gmra.mxu3 %v5541_v18  ;;  %3438 = vmatpush.bf16.msra.mxu0 %v4566_v30 }
 0x19a   : > { %2234 = vmatmul.bf16.gmra.mxu0 %v4878_v26 }
 0x19b   : > { %v1599_v20 = vpop.f32.mrf.mxu2 }
 0x19c   : > { %v1741_v24 = vadd.f32 %v1599_v20, %v1165_v35  ;;  %v1897_v1 = vpop.f32.mrf.mxu3 }
 0x19d   : > { %v1166_v4 = vpop.f32.mrf.mxu1 }
 0x19e   : > { %v2039_v2 = vadd.f32 %v1897_v1, %v1741_v24  ;;  %v1167_v45 = vadd.f32 %v1166_v4, %v5436_v39 }
 0x19f   : > { %v2197_v58 = vpop.f32.mrf.mxu0 }
 0x1a0   : > { %v5600_v59 = vadd.f32 %v2195_v28, %v2039_v2 }
 0x1a3   : > { %v1601_v29 = vpop.f32.mrf.mxu2 }
 0x1a4   : > { %v1742_v22 = vadd.f32 %v1601_v29, %v1167_v45  ;;  %v1899_v34 = vpop.f32.mrf.mxu3  ;;  %v5616_v45 = vld [vmem:[%s4800_s7 + $0x64] sm:$0xff] }
 0x1a5   : > { %v1169_v7 = vpop.f32.mrf.mxu1 }
 0x1a6   : > { %v2040_v35 = vadd.f32 %v1899_v34, %v1742_v22  ;;  %v1170_v28 = vadd.f32 %v1169_v7, %v5449_v38 }
 0x1a7   : > { %v2200_v17 = vpop.f32.mrf.mxu0 }
 0x1a8   : > { %1208 = vmatmul.bf16.gmra.mxu1 %v5554_v21  ;;  %1643 = vmatmul.bf16.gmra.mxu2 %v5603_v23  ;;  %v5607_v20 = vadd.f32 %v2197_v58, %v2040_v35 }
 0x1a9   : > { %1941 = vmatmul.bf16.gmra.mxu3 %v5554_v21 }
 0x1aa   : > { %2239 = vmatmul.bf16.gmra.mxu0 %v4963_v54 }
 0x1ab   : > { %v1604_v39 = vpop.f32.mrf.mxu2 }
 0x1ac   : > { %v1743_v24 = vadd.f32 %v1604_v39, %v1170_v28  ;;  %v1902_v1 = vpop.f32.mrf.mxu3 }
 0x1ad   : > { %v1171_v4 = vpop.f32.mrf.mxu1 }
 0x1ae   : > { %v2041_v43 = vadd.f32 %v1902_v1, %v1743_v24  ;;  %v1172_v52 = vadd.f32 %v1171_v4, %v5461_v6 }
 0x1af   : > { %v2202_v36 = vpop.f32.mrf.mxu0 }
 0x1b0   : > { %v5612_v2 = vadd.f32 %v2200_v17, %v2041_v43 }
 0x1b3   : > { %v1606_v30 = vpop.f32.mrf.mxu2 }
 0x1b4   : > { %v1744_v58 = vadd.f32 %v1606_v30, %v1172_v52  ;;  %v1904_v62 = vpop.f32.mrf.mxu3  ;;  %v5629_v52 = vld [vmem:[%s4800_s7 + $0x6c] sm:$0xff] }
 0x1b5   : > { %v1174_v8 = vpop.f32.mrf.mxu1 }
 0x1b6   : > { %v2042_v29 = vadd.f32 %v1904_v62, %v1744_v58  ;;  %v1175_v6 = vadd.f32 %v1174_v8, %v5234_v49  ;;  %v4648_v49 = vld [vmem:[%s4800_s7 + $0x68] sm:$0xf] }
 0x1b7   : > { %v2205_v38 = vpop.f32.mrf.mxu0  ;;  %v1373_v30 = vrot.slane %v4648_v49, 5 }
 0x1b8   : > { %1213 = vmatmul.bf16.gmra.mxu1 %v5541_v18  ;;  %1648 = vmatmul.bf16.gmra.mxu2 %v5573_v61  ;;  %v5620_v22 = vadd.f32 %v2202_v36, %v2042_v29 }
 0x1b9   : > { %1946 = vmatmul.bf16.gmra.mxu3 %v5616_v45 }
 0x1ba   : > { %2244 = vmatmul.bf16.gmra.mxu0 %v5067_v13 }
 0x1bb   : > { %v1609_v34 = vpop.f32.mrf.mxu2 }
 0x1bc   : > { %v1745_v7 = vadd.f32 %v1609_v34, %v1175_v6  ;;  %v1907_v35 = vpop.f32.mrf.mxu3  ;;  %v4650_v6 = vld [vmem:[%s4800_s7 + $0x6c] sm:$0xf] }
 0x1bd   : > { %v1176_v17 = vpop.f32.mrf.mxu1  ;;  %v1376_v34 = vrot.slane %v4650_v6, 5 }
 0x1be   : > { %v2043_v28 = vadd.f32 %v1907_v35, %v1745_v7  ;;  %v1177_v24 = vadd.f32 %v1176_v17, %v5249_v9  ;;  %v4649_v9 = vld [vmem:[%s4800_s7 + $0x64] sm:$0xf] }
 0x1bf   : > { %v2207_v39 = vpop.f32.mrf.mxu0  ;;  %v4127_v29 = vrot.slane %v4649_v9, 9 }
 0x1c0   : > { %v5625_v18 = vadd.f32 %v2205_v38, %v2043_v28  ;;  %v1375_v38 = vrot.slane %v1373_v30, 4 }
 0x1c2   : > { %6260 = vst [vmem:[#allocation50_spill] sm:$0xff] %v5625_v18 }
 0x1c3   : > { %v1611_v1 = vpop.f32.mrf.mxu2 }
 0x1c4   : > { %v1746_v4 = vadd.f32 %v1611_v1, %v1177_v24  ;;  %v1909_v43 = vpop.f32.mrf.mxu3  ;;  %v1377_v24 = vsel %vm5225_vm5, %v1375_v38, %v1376_v34 }
 0x1c5   : > { %v1179_v36 = vpop.f32.mrf.mxu1  ;;  %v1461_v49 = vunpack.c.l.b16 %v1377_v24 }
 0x1c6   : > { %v2044_v58 = vadd.f32 %v1909_v43, %v1746_v4  ;;  %v1180_v7 = vadd.f32 %v1179_v36, %v5262_v15 }
 0x1c7   : > { %v2210_v62 = vpop.f32.mrf.mxu0 }
 0x1c8   : > { %1218 = vmatmul.bf16.gmra.mxu1 %v5554_v21  ;;  %1653 = vmatmul.bf16.gmra.mxu2 %v5603_v23  ;;  %v5634_v8 = vadd.f32 %v2207_v39, %v2044_v58  ;;  %v1374_v39 = vsel %vm5225_vm5, %v4127_v29, %v1373_v30 }
 0x1c9   : > { %1951 = vmatmul.bf16.gmra.mxu3 %v5629_v52  ;;  %v1460_v43 = vunpack.c.l.b16 %v1374_v39  ;;  %v4557_v39 = vld [vmem:[%s6177_s1 + $0x1d0] sm:$0xff] }
 0x1ca   : > { %6261 = vst [vmem:[#allocation51_spill] sm:$0xff] %v5634_v8  ;;  %2249 = vmatmul.bf16.gmra.mxu0 %v5127_v55  ;;  %v4651_v8 = vld [vmem:[%s4800_s7 + $0x70] sm:$0xf]  ;;  %3119 = vmatpush.bf16.msra.mxu3 %v4557_v39 }
 0x1cb   : > { %v1614_v35 = vpop.f32.mrf.mxu2  ;;  %v1379_v30 = vrot.slane %v4651_v8, 5 }
 0x1cc   : > { %v1747_v17 = vadd.f32 %v1614_v35, %v1180_v7  ;;  %v1912_v28 = vpop.f32.mrf.mxu3  ;;  %v5648_v7 = vpack.c.b16 %v1461_v49, %v1460_v43 }
 0x1cd   : > { %v1181_v21 = vpop.f32.mrf.mxu1 }
 0x1ce   : > { %v2045_v1 = vadd.f32 %v1912_v28, %v1747_v17  ;;  %v1182_v15 = vadd.f32 %v1181_v21, %v5278_v37  ;;  %v1378_v37 = vrot.slane %v1376_v34, 4  ;;  %v4652_v17 = vld [vmem:[%s4800_s7 + $0x74] sm:$0x1] }
 0x1cf   : > { %v2212_v4 = vpop.f32.mrf.mxu0  ;;  %v1382_v28 = vrot.slane %v4652_v17, 5  ;;  %v4549_v21 = vld [vmem:[%s6177_s1 + $0x190] sm:$0xff] }
 0x1d0   : > { %v5645_v58 = vadd.f32 %v2210_v62, %v2045_v1  ;;  %v1381_v62 = vrot.slane %v1379_v30, 4  ;;  %2769 = vmatpush.bf16.msra.mxu2 %v4549_v21  ;;  %v1380_v43 = vsel %vm5225_vm5, %v1378_v37, %v1379_v30 }
 0x1d2   : > { %v1383_v49 = vsel %vm5225_vm5, %v1381_v62, %v1382_v28 }
 0x1d3   : > { %v1616_v36 = vpop.f32.mrf.mxu2 }
 0x1d4   : > { %v1748_v9 = vadd.f32 %v1616_v36, %v1182_v15  ;;  %v1914_v6 = vpop.f32.mrf.mxu3 }
 0x1d5   : > { %v1184_v35 = vpop.f32.mrf.mxu1 }
 0x1d6   : > { %v2046_v29 = vadd.f32 %v1914_v6, %v1748_v9  ;;  %v1185_v8 = vadd.f32 %v1184_v35, %v5292_v14  ;;  %v4541_v14 = vld [vmem:[%s6177_s1 + $0x150] sm:$0xff]  ;;  %v1462_v6 = vunpack.c.l.b16 %v1380_v43  ;;  %v1463_v35 = vunpack.c.l.b16 %v1383_v49 }
 0x1d7   : > { %v2215_v18 = vpop.f32.mrf.mxu0  ;;  %v4565_v9 = vld [vmem:[%s6177_s1 + $0x210] sm:$0xff]  ;;  %2459 = vmatpush.bf16.msra.mxu1 %v4541_v14 }
 0x1d8   : > { %1223 = vmatmul.bf16.gmra.mxu1 %v5616_v45  ;;  %1658 = vmatmul.bf16.gmra.mxu2 %v5648_v7  ;;  %v5653_v38 = vadd.f32 %v2212_v4, %v2046_v29  ;;  %v5678_v28 = vpack.c.b16 %v1463_v35, %v1462_v6 }
 0x1d9   : > { %1956 = vmatmul.bf16.gmra.mxu3 %v5616_v45  ;;  %3439 = vmatpush.bf16.msra.mxu0 %v4565_v9 }
 0x1da   : > { %2254 = vmatmul.bf16.gmra.mxu0 %v5067_v13 }
 0x1db   : > { %v1619_v24 = vpop.f32.mrf.mxu2 }
 0x1dc   : > { %v1749_v1 = vadd.f32 %v1619_v24, %v1185_v8  ;;  %v1917_v4 = vpop.f32.mrf.mxu3 }
 0x1dd   : > { %v1186_v34 = vpop.f32.mrf.mxu1 }
 0x1de   : > { %v2047_v15 = vadd.f32 %v1917_v4, %v1749_v1  ;;  %v1187_v30 = vadd.f32 %v1186_v34, %v5315_v19 }
 0x1df   : > { %v2217_v36 = vpop.f32.mrf.mxu0 }
 0x1e0   : > { %v5675_v29 = vadd.f32 %v2215_v18, %v2047_v15 }
 0x1e3   : > { %v1621_v37 = vpop.f32.mrf.mxu2 }
 0x1e4   : > { %v1750_v62 = vadd.f32 %v1621_v37, %v1187_v30  ;;  %v1919_v17 = vpop.f32.mrf.mxu3  ;;  %v5691_v30 = vld [vmem:[%s4800_s7 + $0x78] sm:$0xff] }
 0x1e5   : > { %v1189_v21 = vpop.f32.mrf.mxu1 }
 0x1e6   : > { %v2048_v8 = vadd.f32 %v1919_v17, %v1750_v62  ;;  %v1190_v18 = vadd.f32 %v1189_v21, %v5332_v51 }
 0x1e7   : > { %v2220_v39 = vpop.f32.mrf.mxu0 }
 0x1e8   : > { %1228 = vmatmul.bf16.gmra.mxu1 %v5629_v52  ;;  %1663 = vmatmul.bf16.gmra.mxu2 %v5678_v28  ;;  %v5682_v24 = vadd.f32 %v2217_v36, %v2048_v8 }
 0x1e9   : > { %1961 = vmatmul.bf16.gmra.mxu3 %v5629_v52 }
 0x1ea   : > { %2259 = vmatmul.bf16.gmra.mxu0 %v5127_v55 }
 0x1eb   : > { %v1624_v19 = vpop.f32.mrf.mxu2 }
 0x1ec   : > { %v1751_v1 = vadd.f32 %v1624_v19, %v1190_v18  ;;  %v1922_v4 = vpop.f32.mrf.mxu3 }
 0x1ed   : > { %v1191_v34 = vpop.f32.mrf.mxu1 }
 0x1ee   : > { %v2049_v43 = vadd.f32 %v1922_v4, %v1751_v1  ;;  %v1192_v14 = vadd.f32 %v1191_v34, %v5344_v63 }
 0x1ef   : > { %v2222_v49 = vpop.f32.mrf.mxu0 }
 0x1f0   : > { %v5687_v15 = vadd.f32 %v2220_v39, %v2049_v43 }
 0x1f3   : > { %v1626_v9 = vpop.f32.mrf.mxu2 }
 0x1f4   : > { %v1752_v36 = vadd.f32 %v1626_v9, %v1192_v14  ;;  %v1924_v6 = vpop.f32.mrf.mxu3  ;;  %v5704_v14 = vld [vmem:[%s4800_s7 + $0x80] sm:$0xff] }
 0x1f5   : > { %v1194_v35 = vpop.f32.mrf.mxu1 }
 0x1f6   : > { %v2050_v37 = vadd.f32 %v1924_v6, %v1752_v36  ;;  %v1195_v63 = vadd.f32 %v1194_v35, %v5352_v57  ;;  %v4653_v57 = vld [vmem:[%s4800_s7 + $0x7c] sm:$0xf] }
 0x1f7   : > { %v2225_v51 = vpop.f32.mrf.mxu0  ;;  %v1386_v9 = vrot.slane %v4653_v57, 5 }
 0x1f8   : > { %1233 = vmatmul.bf16.gmra.mxu1 %v5616_v45  ;;  %1668 = vmatmul.bf16.gmra.mxu2 %v5648_v7  ;;  %v5695_v62 = vadd.f32 %v2222_v49, %v2050_v37 }
 0x1f9   : > { %1966 = vmatmul.bf16.gmra.mxu3 %v5691_v30 }
 0x1fa   : > { %6262 = vst [vmem:[#allocation52_spill] sm:$0xff] %v5695_v62  ;;  %2264 = vmatmul.bf16.gmra.mxu0 %v4898_v56 }
 0x1fb   : > { %v1629_v17 = vpop.f32.mrf.mxu2 }
 0x1fc   : > { %v1753_v21 = vadd.f32 %v1629_v17, %v1195_v63  ;;  %v1927_v8 = vpop.f32.mrf.mxu3  ;;  %v4655_v63 = vld [vmem:[%s4800_s7 + $0x80] sm:$0xf] }
 0x1fd   : > { %v1196_v39 = vpop.f32.mrf.mxu1  ;;  %v1389_v17 = vrot.slane %v4655_v63, 5 }
 0x1fe   : > { %v2051_v18 = vadd.f32 %v1927_v8, %v1753_v21  ;;  %v1197_v1 = vadd.f32 %v1196_v39, %v5367_v5  ;;  %v4654_v5 = vld [vmem:[%s4800_s7 + $0x78] sm:$0xf] }
 0x1ff   : > { %v2227_v19 = vpop.f32.mrf.mxu0  ;;  %v4128_v37 = vrot.slane %v4654_v5, 9 }
 0x200   : > { %v5700_v45 = vadd.f32 %v2225_v51, %v2051_v18  ;;  %v1388_v51 = vrot.slane %v1386_v9, 4 }
 0x202   : > { %6263 = vst [vmem:[#allocation53_spill] sm:$0xff] %v5700_v45 }
 0x203   : > { %v1631_v4 = vpop.f32.mrf.mxu2 }
 0x204   : > { %v1754_v34 = vadd.f32 %v1631_v4, %v1197_v1  ;;  %v1929_v43 = vpop.f32.mrf.mxu3  ;;  %v1390_v1 = vsel %vm5225_vm5, %v1388_v51, %v1389_v17 }
 0x205   : > { %v1199_v49 = vpop.f32.mrf.mxu1  ;;  %v1465_v57 = vunpack.c.l.b16 %v1390_v1 }
 0x206   : > { %v2052_v36 = vadd.f32 %v1929_v43, %v1754_v34  ;;  %v1200_v21 = vadd.f32 %v1199_v49, %v5375_v46 }
 0x207   : > { %v2230_v6 = vpop.f32.mrf.mxu0 }
 0x208   : > { %1238 = vmatmul.bf16.gmra.mxu1 %v5629_v52  ;;  %1673 = vmatmul.bf16.gmra.mxu2 %v5678_v28  ;;  %v5709_v35 = vadd.f32 %v2227_v19, %v2052_v36  ;;  %v1387_v19 = vsel %vm5225_vm5, %v4128_v37, %v1386_v9 }
 0x209   : > { %1971 = vmatmul.bf16.gmra.mxu3 %v5704_v14  ;;  %v1464_v43 = vunpack.c.l.b16 %v1387_v19  ;;  %v4556_v19 = vld [vmem:[%s6177_s1 + $0x1c8] sm:$0xff] }
 0x20a   : > { %6264 = vst [vmem:[#allocation54_spill] sm:$0xff] %v5709_v35  ;;  %2269 = vmatmul.bf16.gmra.mxu0 %v4994_v44  ;;  %v4656_v35 = vld [vmem:[%s4800_s7 + $0x84] sm:$0xf]  ;;  %3120 = vmatpush.bf16.msra.mxu3 %v4556_v19 }
 0x20b   : > { %v1634_v8 = vpop.f32.mrf.mxu2  ;;  %v1392_v9 = vrot.slane %v4656_v35, 5 }
 0x20c   : > { %v1755_v39 = vadd.f32 %v1634_v8, %v1200_v21  ;;  %v1932_v18 = vpop.f32.mrf.mxu3  ;;  %v5723_v21 = vpack.c.b16 %v1465_v57, %v1464_v43 }
 0x20d   : > { %v1201_v52 = vpop.f32.mrf.mxu1 }
 0x20e   : > { %v2053_v4 = vadd.f32 %v1932_v18, %v1755_v39  ;;  %v1202_v46 = vadd.f32 %v1201_v52, %v5393_v41  ;;  %v1391_v41 = vrot.slane %v1389_v17, 4  ;;  %v4657_v39 = vld [vmem:[%s4800_s7 + $0x88] sm:$0x1] }
 0x20f   : > { %v2232_v34 = vpop.f32.mrf.mxu0  ;;  %v1395_v18 = vrot.slane %v4657_v39, 5  ;;  %v4548_v52 = vld [vmem:[%s6177_s1 + $0x188] sm:$0xff] }
 0x210   : > { %v5720_v36 = vadd.f32 %v2230_v6, %v2053_v4  ;;  %v1394_v6 = vrot.slane %v1392_v9, 4  ;;  %2770 = vmatpush.bf16.msra.mxu2 %v4548_v52  ;;  %v1393_v43 = vsel %vm5225_vm5, %v1391_v41, %v1392_v9 }
 0x212   : > { %6265 = vst [vmem:[#allocation55_spill] sm:$0xff] %v5720_v36  ;;  %v1396_v57 = vsel %vm5225_vm5, %v1394_v6, %v1395_v18  ;;  %v4661_v36 = vld [vmem:[%s4800_s7 + $0x98] sm:$0xf] }
 0x213   : > { %v1636_v49 = vpop.f32.mrf.mxu2 }
 0x214   : > { %v1756_v5 = vadd.f32 %v1636_v49, %v1202_v46  ;;  %v1934_v63 = vpop.f32.mrf.mxu3 }
 0x215   : > { %v1204_v8 = vpop.f32.mrf.mxu1 }
 0x216   : > { %v2054_v37 = vadd.f32 %v1934_v63, %v1756_v5  ;;  %v1205_v35 = vadd.f32 %v1204_v8, %v5407_v53  ;;  %v4540_v53 = vld [vmem:[%s6177_s1 + $0x148] sm:$0xff]  ;;  %v1466_v63 = vunpack.c.l.b16 %v1393_v43  ;;  %v1467_v8 = vunpack.c.l.b16 %v1396_v57 }
 0x217   : > { %v2235_v45 = vpop.f32.mrf.mxu0  ;;  %v4564_v5 = vld [vmem:[%s6177_s1 + $0x208] sm:$0xff]  ;;  %2460 = vmatpush.bf16.msra.mxu1 %v4540_v53  ;;  %v6270_v53 = vld [vmem:[#allocation44_spill] sm:$0xff] }
 0x218   : > { %1243 = vmatmul.bf16.gmra.mxu1 %v5691_v30  ;;  %1678 = vmatmul.bf16.gmra.mxu2 %v5723_v21  ;;  %v5728_v51 = vadd.f32 %v2232_v34, %v2054_v37  ;;  %v5753_v18 = vpack.c.b16 %v1467_v8, %v1466_v63 }
 0x219   : > { %1976 = vmatmul.bf16.gmra.mxu3 %v5691_v30  ;;  %3440 = vmatpush.bf16.msra.mxu0 %v4564_v5 }
 0x21a   : > { %6266 = vst [vmem:[#allocation56_spill] sm:$0xff] %v5728_v51  ;;  %2274 = vmatmul.bf16.gmra.mxu0 %v4898_v56 }
 0x21b   : > { %v1639_v1 = vpop.f32.mrf.mxu2 }
 0x21c   : > { %v1757_v4 = vadd.f32 %v1639_v1, %v1205_v35  ;;  %v1937_v34 = vpop.f32.mrf.mxu3 }
 0x21d   : > { %v1206_v17 = vpop.f32.mrf.mxu1 }
 0x21e   : > { %v2055_v46 = vadd.f32 %v1937_v34, %v1757_v4  ;;  %v1207_v9 = vadd.f32 %v1206_v17, %v5427_v3 }
 0x21f   : > { %v2237_v49 = vpop.f32.mrf.mxu0 }
 0x220   : > { %v5750_v37 = vadd.f32 %v2235_v45, %v2055_v46 }
 0x222   : > { %6267 = vst [vmem:[#allocation57_spill] sm:$0xff] %v5750_v37 }
 0x223   : > { %v1641_v41 = vpop.f32.mrf.mxu2 }
 0x224   : > { %v1758_v6 = vadd.f32 %v1641_v41, %v1207_v9  ;;  %v1939_v39 = vpop.f32.mrf.mxu3  ;;  %v5766_v41 = vld [vmem:[%s4800_s7 + $0x8c] sm:$0xff] }
 0x225   : > { %v1209_v52 = vpop.f32.mrf.mxu1 }
 0x226   : > { %v2056_v35 = vadd.f32 %v1939_v39, %v1758_v6  ;;  %v1210_v45 = vadd.f32 %v1209_v52, %v5447_v31  ;;  %v6272_v52 = vld [vmem:[#allocation11_spill] sm:$0xff] }
 0x227   : > { %v2240_v19 = vpop.f32.mrf.mxu0 }
 0x228   : > { %1248 = vmatmul.bf16.gmra.mxu1 %v5704_v14  ;;  %1683 = vmatmul.bf16.gmra.mxu2 %v5753_v18  ;;  %v5757_v1 = vadd.f32 %v2237_v49, %v2056_v35 }
 0x229   : > { %1981 = vmatmul.bf16.gmra.mxu3 %v5704_v14 }
 0x22a   : > { %6268 = vst [vmem:[#allocation58_spill] sm:$0xff] %v5757_v1  ;;  %2279 = vmatmul.bf16.gmra.mxu0 %v4994_v44 }
 0x22b   : > { %v1644_v3 = vpop.f32.mrf.mxu2 }
 0x22c   : > { %v1759_v4 = vadd.f32 %v1644_v3, %v1210_v45  ;;  %v1942_v34 = vpop.f32.mrf.mxu3 }
 0x22d   : > { %v1211_v17 = vpop.f32.mrf.mxu1 }
 0x22e   : > { %v2057_v43 = vadd.f32 %v1942_v34, %v1759_v4  ;;  %v1212_v5 = vadd.f32 %v1211_v17, %v6270_v53  ;;  %v6275_v53 = vld [vmem:[#allocation13_spill] sm:$0xff] }
 0x22f   : > { %v2242_v57 = vpop.f32.mrf.mxu0 }
 0x230   : > { %v5762_v46 = vadd.f32 %v2240_v19, %v2057_v43  ;;  %v6273_v19 = vld [vmem:[#allocation5_spill] sm:$0xff] }
 0x232   : > { %6269 = vst [vmem:[#allocation59_spill] sm:$0xff] %v5762_v46 }
 0x233   : > { %v1646_v63 = vpop.f32.mrf.mxu2 }
 0x234   : > { %v1760_v49 = vadd.f32 %v1646_v63, %v1212_v5  ;;  %v1944_v8 = vpop.f32.mrf.mxu3 }
 0x235   : > { %v1214_v9 = vpop.f32.mrf.mxu1 }
 0x236   : > { %v2058_v6 = vadd.f32 %v1944_v8, %v1760_v49  ;;  %v1215_v35 = vadd.f32 %v1214_v9, %v6272_v52  ;;  %v4658_v9 = vld [vmem:[%s4800_s7 + $0x90] sm:$0xf] }
 0x237   : > { %v2245_v31 = vpop.f32.mrf.mxu0  ;;  %v1399_v52 = vrot.slane %v4658_v9, 5 }
 0x238   : > { %1253 = vmatmul.bf16.gmra.mxu1 %v5691_v30  ;;  %1688 = vmatmul.bf16.gmra.mxu2 %v5723_v21  ;;  %v5770_v39 = vadd.f32 %v2242_v57, %v2058_v6  ;;  %v5779_v6 = vld [vmem:[%s4800_s7 + $0x94] sm:$0xff] }
 0x239   : > { %1986 = vmatmul.bf16.gmra.mxu3 %v5766_v41 }
 0x23a   : > { %6271 = vst [vmem:[#allocation44_spill] sm:$0xff] %v5770_v39  ;;  %2284 = vmatmul.bf16.gmra.mxu0 %v6273_v19 }
 0x23b   : > { %v1649_v45 = vpop.f32.mrf.mxu2 }
 0x23c   : > { %v1761_v3 = vadd.f32 %v1649_v45, %v1215_v35  ;;  %v1947_v4 = vpop.f32.mrf.mxu3 }
 0x23d   : > { %v1216_v34 = vpop.f32.mrf.mxu1 }
 0x23e   : > { %v2059_v17 = vadd.f32 %v1947_v4, %v1761_v3  ;;  %v1217_v57 = vadd.f32 %v1216_v34, %v6275_v53  ;;  %v1401_v4 = vrot.slane %v1399_v52, 4  ;;  %v4660_v34 = vld [vmem:[%s4800_s7 + $0x94] sm:$0xf]  ;;  %v6277_v53 = vld [vmem:[#allocation15_spill] sm:$0xff] }
 0x23f   : > { %v2247_v43 = vpop.f32.mrf.mxu0 }
 0x240   : > { %v5775_v30 = vadd.f32 %v2245_v31, %v2059_v17  ;;  %v4659_v31 = vld [vmem:[%s4800_s7 + $0x8c] sm:$0xf]  ;;  %v1402_v17 = vrot.slane %v4660_v34, 5 }
 0x241   : > { %v4129_v3 = vrot.slane %v4659_v31, 9 }
 0x242   : > { %6274 = vst [vmem:[#allocation11_spill] sm:$0xff] %v5775_v30 }
 0x243   : > { %v1651_v5 = vpop.f32.mrf.mxu2 }
 0x244   : > { %v1762_v63 = vadd.f32 %v1651_v5, %v1217_v57  ;;  %v1949_v49 = vpop.f32.mrf.mxu3  ;;  %v6278_v5 = vld [vmem:[#allocation7_spill] sm:$0xff] }
 0x245   : > { %v1219_v8 = vpop.f32.mrf.mxu1 }
 0x246   : > { %v2060_v39 = vadd.f32 %v1949_v49, %v1762_v63  ;;  %v1220_v57 = vadd.f32 %v1219_v8, %v6277_v53  ;;  %v6280_v8 = vld [vmem:[#allocation17_spill] sm:$0xff] }
 0x247   : > { %v2250_v35 = vpop.f32.mrf.mxu0 }
 0x248   : > { %1258 = vmatmul.bf16.gmra.mxu1 %v5704_v14  ;;  %1693 = vmatmul.bf16.gmra.mxu2 %v5753_v18  ;;  %v5784_v45 = vadd.f32 %v2247_v43, %v2060_v39  ;;  %v1400_v39 = vsel %vm5225_vm5, %v4129_v3, %v1399_v52  ;;  %v1403_v43 = vsel %vm5225_vm5, %v1401_v4, %v1402_v17  ;;  %v1405_v52 = vrot.slane %v4661_v36, 5 }
 0x249   : > { %1991 = vmatmul.bf16.gmra.mxu3 %v5779_v6  ;;  %v1468_v30 = vunpack.c.l.b16 %v1400_v39  ;;  %v1469_v46 = vunpack.c.l.b16 %v1403_v43 }
 0x24a   : > { %6276 = vst [vmem:[#allocation13_spill] sm:$0xff] %v5784_v45  ;;  %2289 = vmatmul.bf16.gmra.mxu0 %v6278_v5 }
 0x24b   : > { %v1654_v9 = vpop.f32.mrf.mxu2  ;;  %v5798_v37 = vpack.c.b16 %v1469_v46, %v1468_v30  ;;  %v4547_v46 = vld [vmem:[%s6177_s1 + $0x180] sm:$0xff]  ;;  %v6283_v30 = vld [vmem:[#allocation20_spill] sm:$0xff] }
 0x24c   : > { %v1763_v63 = vadd.f32 %v1654_v9, %v1220_v57  ;;  %v1952_v49 = vpop.f32.mrf.mxu3  ;;  %2771 = vmatpush.bf16.msra.mxu2 %v4547_v46 }
 0x24d   : > { %v1221_v14 = vpop.f32.mrf.mxu1  ;;  %6281 = vst [vmem:[#allocation17_spill] sm:$0xff] %v5798_v37 }
 0x24e   : > { %v2061_v45 = vadd.f32 %v1952_v49, %v1763_v63  ;;  %v1222_v53 = vadd.f32 %v1221_v14, %v6280_v8  ;;  %v4662_v63 = vld [vmem:[%s4800_s7 + $0x9c] sm:$0x1]  ;;  %v4555_v49 = vld [vmem:[%s6177_s1 + $0x1c0] sm:$0xff] }
 0x24f   : > { %v2252_v31 = vpop.f32.mrf.mxu0  ;;  %3121 = vmatpush.bf16.msra.mxu3 %v4555_v49 }
 0x250   : > { %v5795_v34 = vadd.f32 %v2250_v35, %v2061_v45  ;;  %v1404_v35 = vrot.slane %v1402_v17, 4  ;;  %v1407_v45 = vrot.slane %v1405_v52, 4 }
 0x252   : > { %6279 = vst [vmem:[#allocation15_spill] sm:$0xff] %v5795_v34 }
 0x253   : > { %v1656_v1 = vpop.f32.mrf.mxu2 }
 0x254   : > { %v1764_v57 = vadd.f32 %v1656_v1, %v1222_v53  ;;  %v1954_v9 = vpop.f32.mrf.mxu3  ;;  %v1408_v1 = vrot.slane %v4662_v63, 5 }
 0x255   : > { %v1224_v51 = vpop.f32.mrf.mxu1 }
 0x256   : > { %v2062_v3 = vadd.f32 %v1954_v9, %v1764_v57  ;;  %v1225_v36 = vadd.f32 %v1224_v51, %v6283_v30  ;;  %v1409_v8 = vsel %vm5225_vm5, %v1407_v45, %v1408_v1  ;;  %v4539_v51 = vld [vmem:[%s6177_s1 + $0x140] sm:$0xff] }
 0x257   : > { %v2255_v62 = vpop.f32.mrf.mxu0  ;;  %v4563_v9 = vld [vmem:[%s6177_s1 + $0x200] sm:$0xff]  ;;  %v1471_v63 = vunpack.c.l.b16 %v1409_v8  ;;  %2461 = vmatpush.bf16.msra.mxu1 %v4539_v51 }
 0x258   : > { %1263 = vmatmul.bf16.gmra.mxu1 %v5766_v41  ;;  %1698 = vmatmul.bf16.gmra.mxu2 %v5798_v37  ;;  %v5803_v4 = vadd.f32 %v2252_v31, %v2062_v3  ;;  %v1406_v31 = vsel %vm5225_vm5, %v1404_v35, %v1405_v52  ;;  %v6285_v52 = vld [vmem:[#allocation22_spill] sm:$0xff] }
 0x259   : > { %1996 = vmatmul.bf16.gmra.mxu3 %v5766_v41  ;;  %v1470_v3 = vunpack.c.l.b16 %v1406_v31  ;;  %3441 = vmatpush.bf16.msra.mxu0 %v4563_v9 }
 0x25a   : > { %6282 = vst [vmem:[#allocation60_spill] sm:$0xff] %v5803_v4  ;;  %2294 = vmatmul.bf16.gmra.mxu0 %v6273_v19 }
 0x25b   : > { %v1659_v14 = vpop.f32.mrf.mxu2 }
 0x25c   : > { %v1765_v39 = vadd.f32 %v1659_v14, %v1225_v36  ;;  %v1957_v43 = vpop.f32.mrf.mxu3  ;;  %v5828_v36 = vpack.c.b16 %v1471_v63, %v1470_v3 }
 0x25d   : > { %v1226_v17 = vpop.f32.mrf.mxu1 }
 0x25e   : > { %v2063_v53 = vadd.f32 %v1957_v43, %v1765_v39  ;;  %v1227_v35 = vadd.f32 %v1226_v17, %v6285_v52  ;;  %6286 = vst [vmem:[#allocation22_spill] sm:$0xff] %v5828_v36  ;;  %v6290_v52 = vld [vmem:[#allocation27_spill] sm:$0xff] }
 0x25f   : > { %v2257_v57 = vpop.f32.mrf.mxu0 }
 0x260   : > { %v5825_v46 = vadd.f32 %v2255_v62, %v2063_v53  ;;  %v6288_v62 = vld [vmem:[#allocation25_spill] sm:$0xff] }
 0x262   : > { %6284 = vst [vmem:[#allocation20_spill] sm:$0xff] %v5825_v46 }
 0x263   : > { %v1661_v30 = vpop.f32.mrf.mxu2 }
 0x264   : > { %v1766_v45 = vadd.f32 %v1661_v30, %v1227_v35  ;;  %v1959_v1 = vpop.f32.mrf.mxu3 }
 0x265   : > { %v1229_v49 = vpop.f32.mrf.mxu1 }
 0x266   : > { %v2064_v14 = vadd.f32 %v1959_v1, %v1766_v45  ;;  %v1230_v31 = vadd.f32 %v1229_v49, %v6288_v62  ;;  %v6292_v62 = vld [vmem:[#allocation29_spill] sm:$0xff] }
 0x267   : > { %v2260_v39 = vpop.f32.mrf.mxu0 }
 0x268   : > { %1268 = vmatmul.bf16.gmra.mxu1 %v5779_v6  ;;  %1703 = vmatmul.bf16.gmra.mxu2 %v5828_v36  ;;  %v5832_v43 = vadd.f32 %v2257_v57, %v2064_v14  ;;  %v4495_v14 = vld [vmem:[%s4800_s7 + $0xa0] sm:$0xff] }
 0x269   : > { %2001 = vmatmul.bf16.gmra.mxu3 %v5779_v6 }
 0x26a   : > { %6287 = vst [vmem:[#allocation61_spill] sm:$0xff] %v5832_v43  ;;  %2299 = vmatmul.bf16.gmra.mxu0 %v6278_v5 }
 0x26b   : > { %v1664_v17 = vpop.f32.mrf.mxu2 }
 0x26c   : > { %v1767_v8 = vadd.f32 %v1664_v17, %v1230_v31  ;;  %v1962_v53 = vpop.f32.mrf.mxu3  ;;  %v6293_v31 = vld [vmem:[#allocation9_spill] sm:$0xff] }
 0x26d   : > { %v1231_v51 = vpop.f32.mrf.mxu1 }
 0x26e   : > { %v2065_v9 = vadd.f32 %v1962_v53, %v1767_v8  ;;  %v1232_v35 = vadd.f32 %v1231_v51, %v6290_v52 }
 0x26f   : > { %v2262_v3 = vpop.f32.mrf.mxu0 }
 0x270   : > { %v5837_v63 = vadd.f32 %v2260_v39, %v2065_v9 }
 0x272   : > { %6289 = vst [vmem:[#allocation25_spill] sm:$0xff] %v5837_v63 }
 0x273   : > { %v1666_v30 = vpop.f32.mrf.mxu2 }
 0x274   : > { %v1768_v57 = vadd.f32 %v1666_v30, %v1232_v35  ;;  %v1964_v45 = vpop.f32.mrf.mxu3 }
 0x275   : > { %v1234_v1 = vpop.f32.mrf.mxu1 }
 0x276   : > { %v2066_v43 = vadd.f32 %v1964_v45, %v1768_v57  ;;  %v1235_v39 = vadd.f32 %v1234_v1, %v6292_v62  ;;  %v4663_v1 = vld [vmem:[%s4800_s7 + $0xa4] sm:$0xf] }
 0x277   : > { %v2265_v46 = vpop.f32.mrf.mxu0  ;;  %v1412_v62 = vrot.slane %v4663_v1, 5 }
 0x278   : > { %1273 = vmatmul.bf16.gmra.mxu1 %v5766_v41  ;;  %1708 = vmatmul.bf16.gmra.mxu2 %v5798_v37  ;;  %v5843_v49 = vadd.f32 %v2262_v3, %v2066_v43  ;;  %v6295_v41 = vld [vmem:[#allocation31_spill] sm:$0xff] }
 0x279   : > { %2006 = vmatmul.bf16.gmra.mxu3 %v4495_v14  ;;  %v4666_v37 = vld [vmem:[%s4800_s7 + $0xac] sm:$0xf] }
 0x27a   : > { %6291 = vst [vmem:[#allocation27_spill] sm:$0xff] %v5843_v49  ;;  %2304 = vmatmul.bf16.gmra.mxu0 %v6293_v31  ;;  %v5851_v49 = vld [vmem:[%s4800_s7 + $0xa8] sm:$0xff] }
 0x27b   : > { %v1669_v17 = vpop.f32.mrf.mxu2 }
 0x27c   : > { %v1769_v8 = vadd.f32 %v1669_v17, %v1235_v39  ;;  %v1967_v53 = vpop.f32.mrf.mxu3 }
 0x27d   : > { %v1236_v51 = vpop.f32.mrf.mxu1 }
 0x27e   : > { %v2067_v9 = vadd.f32 %v1967_v53, %v1769_v8  ;;  %v1237_v30 = vadd.f32 %v1236_v51, %v6295_v41  ;;  %v1414_v53 = vrot.slane %v1412_v62, 4  ;;  %v4665_v51 = vld [vmem:[%s4800_s7 + $0xa8] sm:$0xf]  ;;  %v6297_v41 = vld [vmem:[#allocation33_spill] sm:$0xff] }
 0x27f   : > { %v2267_v52 = vpop.f32.mrf.mxu0 }
 0x280   : > { %v5847_v35 = vadd.f32 %v2265_v46, %v2067_v9  ;;  %v4664_v46 = vld [vmem:[%s4800_s7 + $0xa0] sm:$0xf]  ;;  %v1415_v9 = vrot.slane %v4665_v51, 5 }
 0x281   : > { %v4130_v8 = vrot.slane %v4664_v46, 9 }
 0x282   : > { %6294 = vst [vmem:[#allocation29_spill] sm:$0xff] %v5847_v35 }
 0x283   : > { %v1671_v43 = vpop.f32.mrf.mxu2 }
 0x284   : > { %v1770_v3 = vadd.f32 %v1671_v43, %v1237_v30  ;;  %v1969_v57 = vpop.f32.mrf.mxu3  ;;  %v6298_v43 = vld [vmem:[#allocation10_spill] sm:$0xff] }
 0x285   : > { %v1239_v45 = vpop.f32.mrf.mxu1 }
 0x286   : > { %v2068_v63 = vadd.f32 %v1969_v57, %v1770_v3  ;;  %v1240_v30 = vadd.f32 %v1239_v45, %v6297_v41  ;;  %v6300_v45 = vld [vmem:[#allocation35_spill] sm:$0xff] }
 0x287   : > { %v2270_v39 = vpop.f32.mrf.mxu0 }
 0x288   : > { %1278 = vmatmul.bf16.gmra.mxu1 %v5779_v6  ;;  %1713 = vmatmul.bf16.gmra.mxu2 %v5828_v36  ;;  %v5856_v17 = vadd.f32 %v2267_v52, %v2068_v63  ;;  %v1413_v63 = vsel %vm5225_vm5, %v4130_v8, %v1412_v62  ;;  %v1416_v52 = vsel %vm5225_vm5, %v1414_v53, %v1415_v9  ;;  %v1418_v62 = vrot.slane %v4666_v37, 5 }
 0x289   : > { %2011 = vmatmul.bf16.gmra.mxu3 %v5851_v49  ;;  %v1472_v35 = vunpack.c.l.b16 %v1413_v63  ;;  %v1473_v4 = vunpack.c.l.b16 %v1416_v52 }
 0x28a   : > { %6296 = vst [vmem:[#allocation9_spill] sm:$0xff] %v5856_v17  ;;  %2309 = vmatmul.bf16.gmra.mxu0 %v6298_v43 }
 0x28b   : > { %v1674_v1 = vpop.f32.mrf.mxu2  ;;  %v5870_v36 = vpack.c.b16 %v1473_v4, %v1472_v35 }
 0x28c   : > { %v1771_v3 = vadd.f32 %v1674_v1, %v1240_v30  ;;  %v1972_v57 = vpop.f32.mrf.mxu3 }
 0x28d   : > { %v1241_v6 = vpop.f32.mrf.mxu1 }
 0x28e   : > { %v2069_v17 = vadd.f32 %v1972_v57, %v1771_v3  ;;  %v1242_v41 = vadd.f32 %v1241_v6, %v6300_v45  ;;  %v4667_v3 = vld [vmem:[%s4800_s7 + $0xb0] sm:$0x1]  ;;  %v6302_v6 = vld [vmem:[#allocation38_spill] sm:$0xff] }
 0x28f   : > { %v2272_v46 = vpop.f32.mrf.mxu0  ;;  %v1421_v57 = vrot.slane %v4667_v3, 5 }
 0x290   : > { %v5867_v51 = vadd.f32 %v2270_v39, %v2069_v17  ;;  %v1417_v39 = vrot.slane %v1415_v9, 4  ;;  %v1420_v17 = vrot.slane %v1418_v62, 4 }
 0x292   : > { %6299 = vst [vmem:[#allocation31_spill] sm:$0xff] %v5867_v51  ;;  %v1419_v52 = vsel %vm5225_vm5, %v1417_v39, %v1418_v62 }
 0x293   : > { %v1676_v34 = vpop.f32.mrf.mxu2  ;;  %v1474_v9 = vunpack.c.l.b16 %v1419_v52 }
 0x294   : > { %v1772_v30 = vadd.f32 %v1676_v34, %v1242_v41  ;;  %v1974_v1 = vpop.f32.mrf.mxu3 }
 0x295   : > { %v1244_v5 = vpop.f32.mrf.mxu1 }
 0x296   : > { %v2070_v8 = vadd.f32 %v1974_v1, %v1772_v30  ;;  %v1245_v34 = vadd.f32 %v1244_v5, %v6302_v6  ;;  %v6304_v1 = vld [vmem:[#allocation40_spill] sm:$0xff] }
 0x297   : > { %v2275_v19 = vpop.f32.mrf.mxu0 }
 0x298   : > { %1283 = vmatmul.bf16.gmra.mxu1 %v4495_v14  ;;  %1718 = vmatmul.bf16.gmra.mxu2 %v5870_v36  ;;  %v5874_v53 = vadd.f32 %v2272_v46, %v2070_v8  ;;  %v1422_v46 = vsel %vm5225_vm5, %v1420_v17, %v1421_v57 }
 0x299   : > { %2016 = vmatmul.bf16.gmra.mxu3 %v4495_v14  ;;  %v1475_v41 = vunpack.c.l.b16 %v1422_v46 }
 0x29a   : > { %6301 = vst [vmem:[#allocation33_spill] sm:$0xff] %v5874_v53  ;;  %2314 = vmatmul.bf16.gmra.mxu0 %v6293_v31 }
 0x29b   : > { %v1679_v4 = vpop.f32.mrf.mxu2 }
 0x29c   : > { %v1773_v35 = vadd.f32 %v1679_v4, %v1245_v34  ;;  %v1977_v63 = vpop.f32.mrf.mxu3  ;;  %v5886_v34 = vpack.c.b16 %v1475_v41, %v1474_v9 }
 0x29d   : > { %v1246_v37 = vpop.f32.mrf.mxu1 }
 0x29e   : > { %v2071_v45 = vadd.f32 %v1977_v63, %v1773_v35  ;;  %v1247_v5 = vadd.f32 %v1246_v37, %v6304_v1 }
 0x29f   : > { %v2277_v14 = vpop.f32.mrf.mxu0 }
 0x2a0   : > { %v5883_v30 = vadd.f32 %v2275_v19, %v2071_v45  ;;  %v6306_v19 = vld [vmem:[#allocation42_spill] sm:$0xff]  ;;  %v6308_v45 = vld [vmem:[#allocation45_spill] sm:$0xff] }
 0x2a2   : > { %6303 = vst [vmem:[#allocation10_spill] sm:$0xff] %v5883_v30 }
 0x2a3   : > { %v1681_v8 = vpop.f32.mrf.mxu2 }
 0x2a4   : > { %v1774_v3 = vadd.f32 %v1681_v8, %v1247_v5  ;;  %v1979_v6 = vpop.f32.mrf.mxu3  ;;  %v6309_v8 = vld [vmem:[#allocation19_spill] sm:$0xff] }
 0x2a5   : > { %v1249_v4 = vpop.f32.mrf.mxu1 }
 0x2a6   : > { %v2072_v53 = vadd.f32 %v1979_v6, %v1774_v3  ;;  %v1250_v39 = vadd.f32 %v1249_v4, %v6306_v19  ;;  %v4668_v3 = vld [vmem:[%s4800_s7 + $0x14] sm:$0xff]  ;;  %v6311_v4 = vld [vmem:[#allocation6_spill] sm:$0xff] }
 0x2a7   : > { %v2280_v51 = vpop.f32.mrf.mxu0  ;;  %v6312_v19 = vld [vmem:[#allocation12_spill] sm:$0xff] }
 0x2a8   : > { %1288 = vmatmul.bf16.gmra.mxu1 %v5851_v49  ;;  %1723 = vmatmul.bf16.gmra.mxu2 %v5886_v34  ;;  %v5890_v62 = vadd.f32 %v2277_v14, %v2072_v53 }
 0x2a9   : > { %2021 = vmatmul.bf16.gmra.mxu3 %v5851_v49 }
 0x2aa   : > { %6305 = vst [vmem:[#allocation35_spill] sm:$0xff] %v5890_v62  ;;  %2319 = vmatmul.bf16.gmra.mxu0 %v6298_v43 }
 0x2ab   : > { %v1684_v17 = vpop.f32.mrf.mxu2 }
 0x2ac   : > { %v1775_v57 = vadd.f32 %v1684_v17, %v1250_v39  ;;  %v1982_v35 = vpop.f32.mrf.mxu3 }
 0x2ad   : > { %v1251_v63 = vpop.f32.mrf.mxu1 }
 0x2ae   : > { %v2073_v37 = vadd.f32 %v1982_v35, %v1775_v57  ;;  %v1252_v9 = vadd.f32 %v1251_v63, %v6308_v45 }
 0x2af   : > { %v2282_v52 = vpop.f32.mrf.mxu0 }
 0x2b0   : > { %v5895_v46 = vadd.f32 %v2280_v51, %v2073_v37 }
 0x2b2   : > { %6307 = vst [vmem:[#allocation38_spill] sm:$0xff] %v5895_v46 }
 0x2b3   : > { %v1686_v41 = vpop.f32.mrf.mxu2 }
 0x2b4   : > { %v1776_v53 = vadd.f32 %v1686_v41, %v1252_v9  ;;  %v1984_v14 = vpop.f32.mrf.mxu3  ;;  %v6314_v9 = vld [vmem:[#allocation14_spill] sm:$0xff] }
 0x2b5   : > { %v1254_v1 = vpop.f32.mrf.mxu1 }
 0x2b6   : > { %v2074_v49 = vadd.f32 %v1984_v14, %v1776_v53  ;;  %v1255_v39 = vadd.f32 %v1254_v1, %v6312_v19  ;;  %v6315_v1 = vld [vmem:[#allocation24_spill] sm:$0xff]  ;;  %v4669_v19 = vld [vmem:[%s4800_s7 + $0x1c] sm:$0xff] }
 0x2b7   : > { %v2285_v5 = vpop.f32.mrf.mxu0 }
 0x2b8   : > { %2462 = vmatmul.bf16.vlgmr.msra.gmra.mxu1 %v6309_v8  ;;  %2772 = vmatmul.bf16.vlgmr.msra.gmra.mxu2 %v4668_v3  ;;  %v5900_v6 = vadd.f32 %v2282_v52, %v2074_v49 }
 0x2b9   : > { %3122 = vmatmul.bf16.vlgmr.msra.gmra.mxu3 %v6311_v4 }
 0x2ba   : > { %6310 = vst [vmem:[#allocation40_spill] sm:$0xff] %v5900_v6  ;;  %3442 = vmatmul.bf16.vlgmr.msra.gmra.mxu0 %v6309_v8 }
 0x2bb   : > { %v1689_v51 = vpop.f32.mrf.mxu2 }
 0x2bc   : > { %v1777_v17 = vadd.f32 %v1689_v51, %v1255_v39  ;;  %v1987_v57 = vpop.f32.mrf.mxu3  ;;  %v6317_v39 = vld [vmem:[#allocation8_spill] sm:$0xff] }
 0x2bd   : > { %v1256_v35 = vpop.f32.mrf.mxu1  ;;  %v6318_v51 = vld [vmem:[#allocation16_spill] sm:$0xff] }
 0x2be   : > { %v2075_v63 = vadd.f32 %v1987_v57, %v1777_v17  ;;  %v1257_v41 = vadd.f32 %v1256_v35, %v6314_v9 }
 0x2bf   : > { %v2287_v37 = vpop.f32.mrf.mxu0 }
 0x2c0   : > { %v5905_v45 = vadd.f32 %v2285_v5, %v2075_v63 }
 0x2c2   : > { %6313 = vst [vmem:[#allocation42_spill] sm:$0xff] %v5905_v45 }
 0x2c3   : > { %v1691_v53 = vpop.f32.mrf.mxu2 }
 0x2c4   : > { %v1778_v52 = vadd.f32 %v1691_v53, %v1257_v41  ;;  %v1989_v14 = vpop.f32.mrf.mxu3 }
 0x2c5   : > { %v1259_v49 = vpop.f32.mrf.mxu1 }
 0x2c6   : > { %v2076_v3 = vadd.f32 %v1989_v14, %v1778_v52  ;;  %v1260_v17 = vadd.f32 %v1259_v49, %v6318_v51  ;;  %v6320_v52 = vld [vmem:[#allocation18_spill] sm:$0xff]  ;;  %v4670_v49 = vld [vmem:[%s4800_s7 + $0x28] sm:$0xff] }
 0x2c7   : > { %v2290_v4 = vpop.f32.mrf.mxu0 }
 0x2c8   : > { %2467 = vmatmul.bf16.gmra.mxu1 %v6315_v1  ;;  %2777 = vmatmul.bf16.gmra.mxu2 %v4669_v19  ;;  %v5910_v6 = vadd.f32 %v2287_v37, %v2076_v3 }
 0x2c9   : > { %3127 = vmatmul.bf16.gmra.mxu3 %v6317_v39 }
 0x2ca   : > { %6316 = vst [vmem:[#allocation45_spill] sm:$0xff] %v5910_v6  ;;  %3447 = vmatmul.bf16.gmra.mxu0 %v6315_v1 }
 0x2cb   : > { %v1694_v5 = vpop.f32.mrf.mxu2 }
 0x2cc   : > { %v1779_v57 = vadd.f32 %v1694_v5, %v1260_v17  ;;  %v1992_v35 = vpop.f32.mrf.mxu3  ;;  %v6322_v17 = vld [vmem:[#allocation3_spill] sm:$0xff]  ;;  %v6323_v5 = vld [vmem:[#allocation21_spill] sm:$0xff] }
 0x2cd   : > { %v1261_v63 = vpop.f32.mrf.mxu1 }
 0x2ce   : > { %v2077_v9 = vadd.f32 %v1992_v35, %v1779_v57  ;;  %v1262_v14 = vadd.f32 %v1261_v63, %v6320_v52 }
 0x2cf   : > { %v2292_v41 = vpop.f32.mrf.mxu0 }
 0x2d0   : > { %v5915_v53 = vadd.f32 %v2290_v4, %v2077_v9  ;;  %v6324_v4 = vld [vmem:[#allocation37_spill] sm:$0xff] }
 0x2d2   : > { %6319 = vst [vmem:[#allocation19_spill] sm:$0xff] %v5915_v53 }
 0x2d3   : > { %v1696_v19 = vpop.f32.mrf.mxu2 }
 0x2d4   : > { %v1780_v37 = vadd.f32 %v1696_v19, %v1262_v14  ;;  %v1994_v3 = vpop.f32.mrf.mxu3 }
 0x2d5   : > { %v1264_v6 = vpop.f32.mrf.mxu1 }
 0x2d6   : > { %v2078_v39 = vadd.f32 %v1994_v3, %v1780_v37  ;;  %v1265_v57 = vadd.f32 %v1264_v6, %v6323_v5  ;;  %v4671_v6 = vld [vmem:[%s4800_s7 + $0x30] sm:$0xff] }
 0x2d7   : > { %v2295_v45 = vpop.f32.mrf.mxu0 }
 0x2d8   : > { %2472 = vmatmul.bf16.gmra.mxu1 %v6309_v8  ;;  %2782 = vmatmul.bf16.gmra.mxu2 %v4670_v49  ;;  %v5920_v51 = vadd.f32 %v2292_v41, %v2078_v39  ;;  %v6326_v8 = vld [vmem:[#allocation23_spill] sm:$0xff] }
 0x2d9   : > { %3132 = vmatmul.bf16.gmra.mxu3 %v6322_v17 }
 0x2da   : > { %6321 = vst [vmem:[#allocation6_spill] sm:$0xff] %v5920_v51  ;;  %3452 = vmatmul.bf16.gmra.mxu0 %v6324_v4 }
 0x2db   : > { %v1699_v35 = vpop.f32.mrf.mxu2 }
 0x2dc   : > { %v1781_v63 = vadd.f32 %v1699_v35, %v1265_v57  ;;  %v1997_v9 = vpop.f32.mrf.mxu3  ;;  %v6328_v57 = vld [vmem:[#allocation4_spill] sm:$0xff]  ;;  %v6329_v35 = vld [vmem:[#allocation26_spill] sm:$0xff] }
 0x2dd   : > { %v1266_v52 = vpop.f32.mrf.mxu1 }
 0x2de   : > { %v2079_v14 = vadd.f32 %v1997_v9, %v1781_v63  ;;  %v1267_v3 = vadd.f32 %v1266_v52, %v6326_v8 }
 0x2df   : > { %v2297_v19 = vpop.f32.mrf.mxu0 }
 0x2e0   : > { %v5925_v37 = vadd.f32 %v2295_v45, %v2079_v14 }
 0x2e2   : > { %6325 = vst [vmem:[#allocation12_spill] sm:$0xff] %v5925_v37 }
 0x2e3   : > { %v1701_v53 = vpop.f32.mrf.mxu2 }
 0x2e4   : > { %v1782_v41 = vadd.f32 %v1701_v53, %v1267_v3  ;;  %v1999_v39 = vpop.f32.mrf.mxu3 }
 0x2e5   : > { %v1269_v51 = vpop.f32.mrf.mxu1 }
 0x2e6   : > { %v2080_v46 = vadd.f32 %v1999_v39, %v1782_v41  ;;  %v1270_v63 = vadd.f32 %v1269_v51, %v6329_v35  ;;  %v6330_v41 = vld [vmem:[#allocation28_spill] sm:$0xff]  ;;  %v6331_v35 = vld [vmem:[#allocation30_spill] sm:$0xff] }
 0x2e7   : > { %v2300_v62 = vpop.f32.mrf.mxu0 }
 0x2e8   : > { %2477 = vmatmul.bf16.gmra.mxu1 %v6315_v1  ;;  %2787 = vmatmul.bf16.gmra.mxu2 %v4671_v6  ;;  %v5930_v5 = vadd.f32 %v2297_v19, %v2080_v46 }
 0x2e9   : > { %3137 = vmatmul.bf16.gmra.mxu3 %v6328_v57 }
 0x2ea   : > { %6327 = vst [vmem:[#allocation14_spill] sm:$0xff] %v5930_v5  ;;  %3457 = vmatmul.bf16.gmra.mxu0 %v5445_v0 }
 0x2eb   : > { %v1704_v45 = vpop.f32.mrf.mxu2 }
 0x2ec   : > { %v1783_v9 = vadd.f32 %v1704_v45, %v1270_v63  ;;  %v2002_v52 = vpop.f32.mrf.mxu3 }
 0x2ed   : > { %v1271_v53 = vpop.f32.mrf.mxu1 }
 0x2ee   : > { %v2081_v14 = vadd.f32 %v2002_v52, %v1783_v9  ;;  %v1272_v1 = vadd.f32 %v1271_v53, %v6330_v41 }
 0x2ef   : > { %v2302_v8 = vpop.f32.mrf.mxu0 }
 0x2f0   : > { %v5935_v3 = vadd.f32 %v2300_v62, %v2081_v14 }
 0x2f3   : > { %v1706_v39 = vpop.f32.mrf.mxu2 }
 0x2f4   : > { %v1784_v37 = vadd.f32 %v1706_v39, %v1272_v1  ;;  %v2004_v46 = vpop.f32.mrf.mxu3 }
 0x2f5   : > { %v1274_v19 = vpop.f32.mrf.mxu1 }
 0x2f6   : > { %v2082_v5 = vadd.f32 %v2004_v46, %v1784_v37  ;;  %v1275_v63 = vadd.f32 %v1274_v19, %v6331_v35  ;;  %v6332_v37 = vld [vmem:[#allocation32_spill] sm:$0xff]  ;;  %v6334_v35 = vld [vmem:[#allocation34_spill] sm:$0xff] }
 0x2f7   : > { %v2305_v30 = vpop.f32.mrf.mxu0 }
 0x2f8   : > { %2482 = vmatmul.bf16.gmra.mxu1 %v6324_v4  ;;  %2792 = vmatmul.bf16.gmra.mxu2 %v4670_v49  ;;  %v5939_v51 = vadd.f32 %v2302_v8, %v2082_v5 }
 0x2f9   : > { %3142 = vmatmul.bf16.gmra.mxu3 %v6322_v17 }
 0x2fa   : > { %3462 = vmatmul.bf16.gmra.mxu0 %v6324_v4 }
 0x2fb   : > { %v1709_v62 = vpop.f32.mrf.mxu2 }
 0x2fc   : > { %v1785_v45 = vadd.f32 %v1709_v62, %v1275_v63  ;;  %v2007_v9 = vpop.f32.mrf.mxu3 }
 0x2fd   : > { %v1276_v52 = vpop.f32.mrf.mxu1 }
 0x2fe   : > { %v2083_v53 = vadd.f32 %v2007_v9, %v1785_v45  ;;  %v1277_v1 = vadd.f32 %v1276_v52, %v6332_v37 }
 0x2ff   : > { %v2307_v14 = vpop.f32.mrf.mxu0 }
 0x300   : > { %v5944_v41 = vadd.f32 %v2305_v30, %v2083_v53 }
 0x303   : > { %v1711_v39 = vpop.f32.mrf.mxu2 }
 0x304   : > { %v1786_v49 = vadd.f32 %v1711_v39, %v1277_v1  ;;  %v2009_v5 = vpop.f32.mrf.mxu3  ;;  %v6336_v1 = vld [vmem:[#allocation36_spill] sm:$0xff] }
 0x305   : > { %v1279_v8 = vpop.f32.mrf.mxu1 }
 0x306   : > { %v2084_v46 = vadd.f32 %v2009_v5, %v1786_v49  ;;  %v1280_v63 = vadd.f32 %v1279_v8, %v6334_v35  ;;  %v4672_v8 = vld [vmem:[%s4800_s7 + $0x3c] sm:$0xff] }
 0x307   : > { %v2310_v17 = vpop.f32.mrf.mxu0 }
 0x308   : > { %2487 = vmatmul.bf16.gmra.mxu1 %v5445_v0  ;;  %2797 = vmatmul.bf16.gmra.mxu2 %v4671_v6  ;;  %v5948_v19 = vadd.f32 %v2307_v14, %v2084_v46 }
 0x309   : > { %3147 = vmatmul.bf16.gmra.mxu3 %v6328_v57 }
 0x30a   : > { %6333 = vst [vmem:[#allocation24_spill] sm:$0xff] %v5948_v19  ;;  %3467 = vmatmul.bf16.gmra.mxu0 %v5445_v0 }
 0x30b   : > { %v1714_v30 = vpop.f32.mrf.mxu2 }
 0x30c   : > { %v1787_v62 = vadd.f32 %v1714_v30, %v1280_v63  ;;  %v2012_v45 = vpop.f32.mrf.mxu3  ;;  %v6338_v63 = vld [vmem:[#allocation39_spill] sm:$0xff] }
 0x30d   : > { %v1281_v9 = vpop.f32.mrf.mxu1 }
 0x30e   : > { %v2085_v52 = vadd.f32 %v2012_v45, %v1787_v62  ;;  %v1282_v39 = vadd.f32 %v1281_v9, %v6336_v1 }
 0x30f   : > { %v2312_v53 = vpop.f32.mrf.mxu0 }
 0x310   : > { %v5953_v37 = vadd.f32 %v2310_v17, %v2085_v52 }
 0x312   : > { %6335 = vst [vmem:[#allocation8_spill] sm:$0xff] %v5953_v37 }
 0x313   : > { %v1716_v6 = vpop.f32.mrf.mxu2 }
 0x314   : > { %v1788_v14 = vadd.f32 %v1716_v6, %v1282_v39  ;;  %v2014_v49 = vpop.f32.mrf.mxu3 }
 0x315   : > { %v1284_v5 = vpop.f32.mrf.mxu1 }
 0x316   : > { %v2086_v57 = vadd.f32 %v2014_v49, %v1788_v14  ;;  %v1285_v30 = vadd.f32 %v1284_v5, %v6338_v63  ;;  %v4673_v5 = vld [vmem:[%s4800_s7 + $0x44] sm:$0xff] }
 0x317   : > { %v2315_v46 = vpop.f32.mrf.mxu0 }
 0x318   : > { %2492 = vmatmul.bf16.gmra.mxu1 %v6324_v4  ;;  %2802 = vmatmul.bf16.gmra.mxu2 %v4672_v8  ;;  %v5958_v35 = vadd.f32 %v2312_v53, %v2086_v57  ;;  %v6340_v4 = vld [vmem:[#allocation41_spill] sm:$0xff] }
 0x319   : > { %3152 = vmatmul.bf16.gmra.mxu3 %v5065_v12 }
 0x31a   : > { %6337 = vst [vmem:[#allocation16_spill] sm:$0xff] %v5958_v35  ;;  %3472 = vmatmul.bf16.gmra.mxu0 %v5498_v11 }
 0x31b   : > { %v1719_v17 = vpop.f32.mrf.mxu2 }
 0x31c   : > { %v1789_v62 = vadd.f32 %v1719_v17, %v1285_v30  ;;  %v2017_v45 = vpop.f32.mrf.mxu3  ;;  %v6342_v30 = vld [vmem:[#allocation43_spill] sm:$0xff] }
 0x31d   : > { %v1286_v9 = vpop.f32.mrf.mxu1 }
 0x31e   : > { %v2087_v52 = vadd.f32 %v2017_v45, %v1789_v62  ;;  %v1287_v6 = vadd.f32 %v1286_v9, %v6340_v4 }
 0x31f   : > { %v2317_v1 = vpop.f32.mrf.mxu0 }
 0x320   : > { %v5963_v39 = vadd.f32 %v2315_v46, %v2087_v52 }
 0x322   : > { %6339 = vst [vmem:[#allocation18_spill] sm:$0xff] %v5963_v39  ;;  %v6344_v39 = vld [vmem:[#allocation47_spill] sm:$0xff] }
 0x323   : > { %v1721_v14 = vpop.f32.mrf.mxu2 }
 0x324   : > { %v1790_v53 = vadd.f32 %v1721_v14, %v1287_v6  ;;  %v2019_v49 = vpop.f32.mrf.mxu3  ;;  %v6343_v14 = vld [vmem:[#allocation46_spill] sm:$0xff] }
 0x325   : > { %v1289_v57 = vpop.f32.mrf.mxu1 }
 0x326   : > { %v2088_v35 = vadd.f32 %v2019_v49, %v1790_v53  ;;  %v1290_v17 = vadd.f32 %v1289_v57, %v6342_v30 }
 0x327   : > { %v2320_v37 = vpop.f32.mrf.mxu0 }
 0x328   : > { %2497 = vmatmul.bf16.gmra.mxu1 %v5445_v0  ;;  %2807 = vmatmul.bf16.gmra.mxu2 %v4673_v5  ;;  %v5968_v63 = vadd.f32 %v2317_v1, %v2088_v35 }
 0x329   : > { %3157 = vmatmul.bf16.gmra.mxu3 %v5125_v47 }
 0x32a   : > { %6341 = vst [vmem:[#allocation3_spill] sm:$0xff] %v5968_v63  ;;  %3477 = vmatmul.bf16.gmra.mxu0 %v5528_v40 }
 0x32b   : > { %v1724_v46 = vpop.f32.mrf.mxu2 }
 0x32c   : > { %v1791_v62 = vadd.f32 %v1724_v46, %v1290_v17  ;;  %v2022_v45 = vpop.f32.mrf.mxu3 }
 0x32d   : > { %v1291_v9 = vpop.f32.mrf.mxu1 }
 0x32e   : > { %v2089_v52 = vadd.f32 %v2022_v45, %v1791_v62  ;;  %v1292_v0 = vadd.f32 %v1291_v9, %v6343_v14  ;;  %v6345_v9 = vld [vmem:[#allocation48_spill] sm:$0xff] }
 0x32f   : > { %v2322_v4 = vpop.f32.mrf.mxu0 }
 0x330   : > { %v5973_v6 = vadd.f32 %v2320_v37, %v2089_v52 }
 0x333   : > { %v1726_v53 = vpop.f32.mrf.mxu2 }
 0x334   : > { %v1792_v49 = vadd.f32 %v1726_v53, %v1292_v0  ;;  %v2024_v35 = vpop.f32.mrf.mxu3 }
 0x335   : > { %v2463_v1 = vpop.f32.mrf.mxu1 }
 0x336   : > { %v2090_v63 = vadd.f32 %v2024_v35, %v1792_v49  ;;  %v2623_v19 = vadd.f32 %v2463_v1, %v6344_v39 }
 0x337   : > { %v3443_v57 = vpop.f32.mrf.mxu0 }
 0x338   : > { %2502 = vmatmul.bf16.gmra.mxu1 %v5498_v11  ;;  %2812 = vmatmul.bf16.gmra.mxu2 %v4672_v8  ;;  %v5978_v30 = vadd.f32 %v2322_v4, %v2090_v63 }
 0x339   : > { %3162 = vmatmul.bf16.gmra.mxu3 %v5065_v12 }
 0x33a   : > { %3482 = vmatmul.bf16.gmra.mxu0 %v5498_v11 }
 0x33b   : > { %v2773_v37 = vpop.f32.mrf.mxu2 }
 0x33c   : > { %v2933_v17 = vadd.f32 %v2773_v37, %v2623_v19  ;;  %v3123_v46 = vpop.f32.mrf.mxu3 }
 0x33d   : > { %v2465_v62 = vpop.f32.mrf.mxu1 }
 0x33e   : > { %v3283_v45 = vadd.f32 %v3123_v46, %v2933_v17  ;;  %v2624_v52 = vadd.f32 %v2465_v62, %v6345_v9 }
 0x33f   : > { %v3445_v14 = vpop.f32.mrf.mxu0 }
 0x340   : > { %v3603_v0 = vadd.f32 %v3443_v57, %v3283_v45 }
 0x342   : > { %v3740_v19 = vmul.f32 %v3603_v0, %v3603_v0 }
 0x343   : > { %v2775_v39 = vpop.f32.mrf.mxu2 }
 0x344   : > { %v2934_v53 = vadd.f32 %v2775_v39, %v2624_v52  ;;  %v3125_v49 = vpop.f32.mrf.mxu3 }
 0x345   : > { %v2468_v35 = vpop.f32.mrf.mxu1 }
 0x346   : > { %v3284_v8 = vadd.f32 %v3125_v49, %v2934_v53  ;;  %v2625_v63 = vadd.f32 %v2468_v35, %v5495_v32 }
 0x347   : > { %v3448_v4 = vpop.f32.mrf.mxu0 }
 0x348   : > { %v3604_v12 = vadd.f32 %v3445_v14, %v3284_v8  ;;  %2507 = vmatmul.bf16.gmra.mxu1 %v5528_v40  ;;  %2817 = vmatmul.bf16.gmra.mxu2 %v4673_v5 }
 0x349   : > { %3167 = vmatmul.bf16.gmra.mxu3 %v5125_v47 }
 0x34a   : > { %v3668_v1 = vadd.f32 %v3604_v12, %v3603_v0  ;;  %v3741_v37 = vmul.f32 %v3604_v12, %v3604_v12  ;;  %3487 = vmatmul.bf16.gmra.mxu0 %v5528_v40 }
 0x34b   : > { %v2778_v57 = vpop.f32.mrf.mxu2 }
 0x34c   : > { %v3804_v17 = vadd.f32 %v3741_v37, %v3740_v19  ;;  %v2935_v46 = vadd.f32 %v2778_v57, %v2625_v63  ;;  %v3128_v62 = vpop.f32.mrf.mxu3  ;;  %v4674_v37 = vld [vmem:[%s4800_s7 + $0x50] sm:$0xff] }
 0x34d   : > { %v2470_v45 = vpop.f32.mrf.mxu1 }
 0x34e   : > { %v3285_v9 = vadd.f32 %v3128_v62, %v2935_v46  ;;  %v2626_v32 = vadd.f32 %v2470_v45, %v5503_v16 }
 0x34f   : > { %v3450_v52 = vpop.f32.mrf.mxu0 }
 0x350   : > { %v3605_v14 = vadd.f32 %v3448_v4, %v3285_v9 }
 0x352   : > { %v3669_v39 = vadd.f32 %v3668_v1, %v3605_v14  ;;  %v3742_v5 = vmul.f32 %v3605_v14, %v3605_v14 }
 0x353   : > { %v2780_v53 = vpop.f32.mrf.mxu2 }
 0x354   : > { %v3805_v47 = vadd.f32 %v3804_v17, %v3742_v5  ;;  %v2936_v49 = vadd.f32 %v2780_v53, %v2626_v32  ;;  %v3130_v0 = vpop.f32.mrf.mxu3 }
 0x355   : > { %v2473_v35 = vpop.f32.mrf.mxu1 }
 0x356   : > { %v3286_v8 = vadd.f32 %v3130_v0, %v2936_v49  ;;  %v2627_v12 = vadd.f32 %v2473_v35, %v5525_v27 }
 0x357   : > { %v3453_v19 = vpop.f32.mrf.mxu0 }
 0x358   : > { %v3606_v63 = vadd.f32 %v3450_v52, %v3286_v8  ;;  %2512 = vmatmul.bf16.gmra.mxu1 %v5498_v11  ;;  %2822 = vmatmul.bf16.gmra.mxu2 %v4674_v37 }
 0x359   : > { %3172 = vmatmul.bf16.gmra.mxu3 %v4878_v26 }
 0x35a   : > { %v3670_v16 = vadd.f32 %v3669_v39, %v3606_v63  ;;  %v3743_v4 = vmul.f32 %v3606_v63, %v3606_v63  ;;  %3492 = vmatmul.bf16.gmra.mxu0 %v5573_v61 }
 0x35b   : > { %v2783_v1 = vpop.f32.mrf.mxu2 }
 0x35c   : > { %v3806_v57 = vadd.f32 %v3805_v47, %v3743_v4  ;;  %v2937_v17 = vadd.f32 %v2783_v1, %v2627_v12  ;;  %v3133_v46 = vpop.f32.mrf.mxu3  ;;  %v4675_v12 = vld [vmem:[%s4800_s7 + $0x58] sm:$0xff] }
 0x35d   : > { %v2475_v62 = vpop.f32.mrf.mxu1 }
 0x35e   : > { %v3287_v45 = vadd.f32 %v3133_v46, %v2937_v17  ;;  %v2628_v27 = vadd.f32 %v2475_v62, %v5532_v50 }
 0x35f   : > { %v3455_v9 = vpop.f32.mrf.mxu0 }
 0x360   : > { %v3607_v32 = vadd.f32 %v3453_v19, %v3287_v45 }
 0x362   : > { %v3671_v11 = vadd.f32 %v3670_v16, %v3607_v32  ;;  %v3744_v52 = vmul.f32 %v3607_v32, %v3607_v32 }
 0x363   : > { %v2785_v14 = vpop.f32.mrf.mxu2 }
 0x364   : > { %v3807_v5 = vadd.f32 %v3806_v57, %v3744_v52  ;;  %v2938_v53 = vadd.f32 %v2785_v14, %v2628_v27  ;;  %v3135_v39 = vpop.f32.mrf.mxu3 }
 0x365   : > { %v2478_v49 = vpop.f32.mrf.mxu1 }
 0x366   : > { %v3288_v0 = vadd.f32 %v3135_v39, %v2938_v53  ;;  %v2629_v35 = vadd.f32 %v2478_v49, %v5537_v33 }
 0x367   : > { %v3458_v47 = vpop.f32.mrf.mxu0 }
 0x368   : > { %v3608_v8 = vadd.f32 %v3455_v9, %v3288_v0  ;;  %2517 = vmatmul.bf16.gmra.mxu1 %v5528_v40  ;;  %2827 = vmatmul.bf16.gmra.mxu2 %v4675_v12 }
 0x369   : > { %3177 = vmatmul.bf16.gmra.mxu3 %v4963_v54 }
 0x36a   : > { %v3672_v50 = vadd.f32 %v3671_v11, %v3608_v8  ;;  %v3745_v19 = vmul.f32 %v3608_v8, %v3608_v8  ;;  %3497 = vmatmul.bf16.gmra.mxu0 %v5603_v23 }
 0x36b   : > { %v2788_v63 = vpop.f32.mrf.mxu2 }
 0x36c   : > { %v3808_v16 = vadd.f32 %v3807_v5, %v3745_v19  ;;  %v2939_v4 = vadd.f32 %v2788_v63, %v2629_v35  ;;  %v3138_v1 = vpop.f32.mrf.mxu3  ;;  %v6346_v63 = vld [vmem:[#allocation49_spill] sm:$0xff] }
 0x36d   : > { %v2480_v57 = vpop.f32.mrf.mxu1 }
 0x36e   : > { %v3289_v17 = vadd.f32 %v3138_v1, %v2939_v4  ;;  %v2630_v33 = vadd.f32 %v2480_v57, %v5545_v48 }
 0x36f   : > { %v3460_v46 = vpop.f32.mrf.mxu0 }
 0x370   : > { %v3609_v62 = vadd.f32 %v3458_v47, %v3289_v17 }
 0x372   : > { %v3673_v45 = vadd.f32 %v3672_v50, %v3609_v62  ;;  %v3746_v40 = vmul.f32 %v3609_v62, %v3609_v62 }
 0x373   : > { %v2790_v27 = vpop.f32.mrf.mxu2 }
 0x374   : > { %v3809_v9 = vadd.f32 %v3808_v16, %v3746_v40  ;;  %v2940_v32 = vadd.f32 %v2790_v27, %v2630_v33  ;;  %v3140_v52 = vpop.f32.mrf.mxu3 }
 0x375   : > { %v2483_v11 = vpop.f32.mrf.mxu1 }
 0x376   : > { %v3290_v14 = vadd.f32 %v3140_v52, %v2940_v32  ;;  %v2631_v53 = vadd.f32 %v2483_v11, %v5550_v10 }
 0x377   : > { %v3463_v39 = vpop.f32.mrf.mxu0 }
 0x378   : > { %v3610_v5 = vadd.f32 %v3460_v46, %v3290_v14  ;;  %2522 = vmatmul.bf16.gmra.mxu1 %v5573_v61  ;;  %2832 = vmatmul.bf16.gmra.mxu2 %v4674_v37 }
 0x379   : > { %3182 = vmatmul.bf16.gmra.mxu3 %v4878_v26 }
 0x37a   : > { %v3674_v48 = vadd.f32 %v3673_v45, %v3610_v5  ;;  %v3747_v49 = vmul.f32 %v3610_v5, %v3610_v5  ;;  %3502 = vmatmul.bf16.gmra.mxu0 %v5573_v61 }
 0x37b   : > { %v2793_v0 = vpop.f32.mrf.mxu2 }
 0x37c   : > { %v3810_v35 = vadd.f32 %v3809_v9, %v3747_v49  ;;  %v2941_v47 = vadd.f32 %v2793_v0, %v2631_v53  ;;  %v3143_v8 = vpop.f32.mrf.mxu3 }
 0x37d   : > { %v2485_v50 = vpop.f32.mrf.mxu1 }
 0x37e   : > { %v3291_v19 = vadd.f32 %v3143_v8, %v2941_v47  ;;  %v2632_v16 = vadd.f32 %v2485_v50, %v6346_v63 }
 0x37f   : > { %v3465_v10 = vpop.f32.mrf.mxu0 }
 0x380   : > { %v3611_v4 = vadd.f32 %v3463_v39, %v3291_v19 }
 0x382   : > { %v3675_v1 = vadd.f32 %v3674_v48, %v3611_v4  ;;  %v3748_v57 = vmul.f32 %v3611_v4, %v3611_v4  ;;  %v4676_v4 = vld [vmem:[%s4800_s7 + $0x64] sm:$0xff] }
 0x383   : > { %v2795_v17 = vpop.f32.mrf.mxu2 }
 0x384   : > { %v3811_v37 = vadd.f32 %v3810_v35, %v3748_v57  ;;  %v2942_v33 = vadd.f32 %v2795_v17, %v2632_v16  ;;  %v3145_v26 = vpop.f32.mrf.mxu3 }
 0x385   : > { %v2488_v46 = vpop.f32.mrf.mxu1 }
 0x386   : > { %v3292_v62 = vadd.f32 %v3145_v26, %v2942_v33  ;;  %v2633_v45 = vadd.f32 %v2488_v46, %v5570_v25 }
 0x387   : > { %v3468_v40 = vpop.f32.mrf.mxu0 }
 0x388   : > { %v3612_v27 = vadd.f32 %v3465_v10, %v3292_v62  ;;  %2527 = vmatmul.bf16.gmra.mxu1 %v5603_v23  ;;  %2837 = vmatmul.bf16.gmra.mxu2 %v4675_v12 }
 0x389   : > { %3187 = vmatmul.bf16.gmra.mxu3 %v4963_v54 }
 0x38a   : > { %v3676_v9 = vadd.f32 %v3675_v1, %v3612_v27  ;;  %v3749_v32 = vmul.f32 %v3612_v27, %v3612_v27  ;;  %3507 = vmatmul.bf16.gmra.mxu0 %v5603_v23 }
 0x38b   : > { %v2798_v52 = vpop.f32.mrf.mxu2 }
 0x38c   : > { %v3812_v11 = vadd.f32 %v3811_v37, %v3749_v32  ;;  %v2943_v14 = vadd.f32 %v2798_v52, %v2633_v45  ;;  %v3148_v53 = vpop.f32.mrf.mxu3 }
 0x38d   : > { %v2490_v39 = vpop.f32.mrf.mxu1 }
 0x38e   : > { %v3293_v5 = vadd.f32 %v3148_v53, %v2943_v14  ;;  %v2634_v25 = vadd.f32 %v2490_v39, %v5578_v60 }
 0x38f   : > { %v3470_v48 = vpop.f32.mrf.mxu0 }
 0x390   : > { %v3613_v49 = vadd.f32 %v3468_v40, %v3293_v5 }
 0x392   : > { %v3677_v0 = vadd.f32 %v3676_v9, %v3613_v49  ;;  %v3750_v35 = vmul.f32 %v3613_v49, %v3613_v49 }
 0x393   : > { %v2800_v12 = vpop.f32.mrf.mxu2 }
 0x394   : > { %v3813_v47 = vadd.f32 %v3812_v11, %v3750_v35  ;;  %v2944_v54 = vadd.f32 %v2800_v12, %v2634_v25  ;;  %v3150_v8 = vpop.f32.mrf.mxu3  ;;  %v4677_v25 = vld [vmem:[%s4800_s7 + $0x6c] sm:$0xff] }
 0x395   : > { %v2493_v50 = vpop.f32.mrf.mxu1 }
 0x396   : > { %v3294_v19 = vadd.f32 %v3150_v8, %v2944_v54  ;;  %v2635_v63 = vadd.f32 %v2493_v50, %v5600_v59 }
 0x397   : > { %v3473_v16 = vpop.f32.mrf.mxu0 }
 0x398   : > { %v3614_v10 = vadd.f32 %v3470_v48, %v3294_v19  ;;  %2532 = vmatmul.bf16.gmra.mxu1 %v5573_v61  ;;  %2842 = vmatmul.bf16.gmra.mxu2 %v4676_v4 }
 0x399   : > { %3192 = vmatmul.bf16.gmra.mxu3 %v5067_v13 }
 0x39a   : > { %v3678_v60 = vadd.f32 %v3677_v0, %v3614_v10  ;;  %v3751_v1 = vmul.f32 %v3614_v10, %v3614_v10  ;;  %3512 = vmatmul.bf16.gmra.mxu0 %v5648_v7 }
 0x39b   : > { %v2803_v57 = vpop.f32.mrf.mxu2 }
 0x39c   : > { %v3814_v17 = vadd.f32 %v3813_v47, %v3751_v1  ;;  %v2945_v37 = vadd.f32 %v2803_v57, %v2635_v63  ;;  %v3153_v33 = vpop.f32.mrf.mxu3 }
 0x39d   : > { %v2495_v26 = vpop.f32.mrf.mxu1 }
 0x39e   : > { %v3295_v46 = vadd.f32 %v3153_v33, %v2945_v37  ;;  %v2636_v59 = vadd.f32 %v2495_v26, %v5607_v20 }
 0x39f   : > { %v3475_v62 = vpop.f32.mrf.mxu0 }
 0x3a0   : > { %v3615_v45 = vadd.f32 %v3473_v16, %v3295_v46 }
 0x3a2   : > { %v3679_v61 = vadd.f32 %v3678_v60, %v3615_v45  ;;  %v3752_v40 = vmul.f32 %v3615_v45, %v3615_v45 }
 0x3a3   : > { %v2805_v27 = vpop.f32.mrf.mxu2 }
 0x3a4   : > { %v3815_v9 = vadd.f32 %v3814_v17, %v3752_v40  ;;  %v2946_v32 = vadd.f32 %v2805_v27, %v2636_v59  ;;  %v3155_v52 = vpop.f32.mrf.mxu3  ;;  %v6347_v17 = vld [vmem:[#allocation50_spill] sm:$0xff] }
 0x3a5   : > { %v2498_v11 = vpop.f32.mrf.mxu1 }
 0x3a6   : > { %v3296_v14 = vadd.f32 %v3155_v52, %v2946_v32  ;;  %v2637_v53 = vadd.f32 %v2498_v11, %v5612_v2 }
 0x3a7   : > { %v3478_v39 = vpop.f32.mrf.mxu0 }
 0x3a8   : > { %v3616_v5 = vadd.f32 %v3475_v62, %v3296_v14  ;;  %2537 = vmatmul.bf16.gmra.mxu1 %v5603_v23  ;;  %2847 = vmatmul.bf16.gmra.mxu2 %v4677_v25 }
 0x3a9   : > { %3197 = vmatmul.bf16.gmra.mxu3 %v5127_v55 }
 0x3aa   : > { %v3680_v20 = vadd.f32 %v3679_v61, %v3616_v5  ;;  %v3753_v48 = vmul.f32 %v3616_v5, %v3616_v5  ;;  %3517 = vmatmul.bf16.gmra.mxu0 %v5678_v28 }
 0x3ab   : > { %v2808_v49 = vpop.f32.mrf.mxu2 }
 0x3ac   : > { %v3816_v0 = vadd.f32 %v3815_v9, %v3753_v48  ;;  %v2947_v35 = vadd.f32 %v2808_v49, %v2637_v53  ;;  %v3158_v12 = vpop.f32.mrf.mxu3  ;;  %v6348_v9 = vld [vmem:[#allocation51_spill] sm:$0xff] }
 0x3ad   : > { %v2500_v47 = vpop.f32.mrf.mxu1 }
 0x3ae   : > { %v3297_v54 = vadd.f32 %v3158_v12, %v2947_v35  ;;  %v2638_v2 = vadd.f32 %v2500_v47, %v5620_v22 }
 0x3af   : > { %v3480_v8 = vpop.f32.mrf.mxu0 }
 0x3b0   : > { %v3617_v50 = vadd.f32 %v3478_v39, %v3297_v54 }
 0x3b2   : > { %v3681_v19 = vadd.f32 %v3680_v20, %v3617_v50  ;;  %v3754_v23 = vmul.f32 %v3617_v50, %v3617_v50 }
 0x3b3   : > { %v2810_v63 = vpop.f32.mrf.mxu2 }
 0x3b4   : > { %v3817_v16 = vadd.f32 %v3816_v0, %v3754_v23  ;;  %v2948_v10 = vadd.f32 %v2810_v63, %v2638_v2  ;;  %v3160_v60 = vpop.f32.mrf.mxu3 }
 0x3b5   : > { %v2503_v1 = vpop.f32.mrf.mxu1 }
 0x3b6   : > { %v3298_v57 = vadd.f32 %v3160_v60, %v2948_v10  ;;  %v2639_v37 = vadd.f32 %v2503_v1, %v6347_v17 }
 0x3b7   : > { %v3483_v33 = vpop.f32.mrf.mxu0 }
 0x3b8   : > { %v3618_v26 = vadd.f32 %v3480_v8, %v3298_v57  ;;  %2542 = vmatmul.bf16.gmra.mxu1 %v5648_v7  ;;  %2852 = vmatmul.bf16.gmra.mxu2 %v4676_v4 }
 0x3b9   : > { %3202 = vmatmul.bf16.gmra.mxu3 %v5067_v13 }
 0x3ba   : > { %v3682_v22 = vadd.f32 %v3681_v19, %v3618_v26  ;;  %v3755_v46 = vmul.f32 %v3618_v26, %v3618_v26  ;;  %3522 = vmatmul.bf16.gmra.mxu0 %v5648_v7 }
 0x3bb   : > { %v2813_v59 = vpop.f32.mrf.mxu2 }
 0x3bc   : > { %v3818_v62 = vadd.f32 %v3817_v16, %v3755_v46  ;;  %v2949_v45 = vadd.f32 %v2813_v59, %v2639_v37  ;;  %v3163_v61 = vpop.f32.mrf.mxu3  ;;  %v4678_v46 = vld [vmem:[%s4800_s7 + $0x78] sm:$0xff] }
 0x3bd   : > { %v2505_v40 = vpop.f32.mrf.mxu1 }
 0x3be   : > { %v3299_v27 = vadd.f32 %v3163_v61, %v2949_v45  ;;  %v2640_v32 = vadd.f32 %v2505_v40, %v6348_v9 }
 0x3bf   : > { %v3485_v52 = vpop.f32.mrf.mxu0 }
 0x3c0   : > { %v3619_v11 = vadd.f32 %v3483_v33, %v3299_v27 }
 0x3c2   : > { %v3683_v14 = vadd.f32 %v3682_v22, %v3619_v11  ;;  %v3756_v53 = vmul.f32 %v3619_v11, %v3619_v11 }
 0x3c3   : > { %v2815_v39 = vpop.f32.mrf.mxu2 }
 0x3c4   : > { %v3819_v4 = vadd.f32 %v3818_v62, %v3756_v53  ;;  %v2950_v5 = vadd.f32 %v2815_v39, %v2640_v32  ;;  %v3165_v13 = vpop.f32.mrf.mxu3 }
 0x3c5   : > { %v2508_v20 = vpop.f32.mrf.mxu1 }
 0x3c6   : > { %v3300_v48 = vadd.f32 %v3165_v13, %v2950_v5  ;;  %v2641_v49 = vadd.f32 %v2508_v20, %v5645_v58 }
 0x3c7   : > { %v3488_v0 = vpop.f32.mrf.mxu0 }
 0x3c8   : > { %v3620_v35 = vadd.f32 %v3485_v52, %v3300_v48  ;;  %2547 = vmatmul.bf16.gmra.mxu1 %v5678_v28  ;;  %2857 = vmatmul.bf16.gmra.mxu2 %v4677_v25 }
 0x3c9   : > { %3207 = vmatmul.bf16.gmra.mxu3 %v5127_v55 }
 0x3ca   : > { %v3684_v12 = vadd.f32 %v3683_v14, %v3620_v35  ;;  %v3757_v47 = vmul.f32 %v3620_v35, %v3620_v35  ;;  %3527 = vmatmul.bf16.gmra.mxu0 %v5678_v28 }
 0x3cb   : > { %v2818_v54 = vpop.f32.mrf.mxu2 }
 0x3cc   : > { %v3820_v2 = vadd.f32 %v3819_v4, %v3757_v47  ;;  %v2951_v8 = vadd.f32 %v2818_v54, %v2641_v49  ;;  %v3168_v50 = vpop.f32.mrf.mxu3 }
 0x3cd   : > { %v2510_v19 = vpop.f32.mrf.mxu1 }
 0x3ce   : > { %v3301_v23 = vadd.f32 %v3168_v50, %v2951_v8  ;;  %v2642_v58 = vadd.f32 %v2510_v19, %v5653_v38  ;;  %v6349_v19 = vld [vmem:[#allocation52_spill] sm:$0xff] }
 0x3cf   : > { %v3490_v63 = vpop.f32.mrf.mxu0 }
 0x3d0   : > { %v3621_v16 = vadd.f32 %v3488_v0, %v3301_v23  ;;  %v4679_v0 = vld [vmem:[%s4800_s7 + $0x80] sm:$0xff] }
 0x3d2   : > { %v3685_v10 = vadd.f32 %v3684_v12, %v3621_v16  ;;  %v3758_v60 = vmul.f32 %v3621_v16, %v3621_v16 }
 0x3d3   : > { %v2820_v25 = vpop.f32.mrf.mxu2 }
 0x3d4   : > { %v3821_v1 = vadd.f32 %v3820_v2, %v3758_v60  ;;  %v2952_v55 = vadd.f32 %v2820_v25, %v2642_v58  ;;  %v3170_v57 = vpop.f32.mrf.mxu3 }
 0x3d5   : > { %v2513_v17 = vpop.f32.mrf.mxu1 }
 0x3d6   : > { %v3302_v37 = vadd.f32 %v3170_v57, %v2952_v55  ;;  %v2643_v33 = vadd.f32 %v2513_v17, %v5675_v29  ;;  %v6350_v57 = vld [vmem:[#allocation53_spill] sm:$0xff] }
 0x3d7   : > { %v3493_v26 = vpop.f32.mrf.mxu0 }
 0x3d8   : > { %v3622_v22 = vadd.f32 %v3490_v63, %v3302_v37  ;;  %2552 = vmatmul.bf16.gmra.mxu1 %v5648_v7  ;;  %2862 = vmatmul.bf16.gmra.mxu2 %v4678_v46 }
 0x3d9   : > { %3212 = vmatmul.bf16.gmra.mxu3 %v4898_v56 }
 0x3da   : > { %v3686_v38 = vadd.f32 %v3685_v10, %v3622_v22  ;;  %v3759_v59 = vmul.f32 %v3622_v22, %v3622_v22  ;;  %3532 = vmatmul.bf16.gmra.mxu0 %v5723_v21 }
 0x3db   : > { %v2823_v62 = vpop.f32.mrf.mxu2 }
 0x3dc   : > { %v3822_v45 = vadd.f32 %v3821_v1, %v3759_v59  ;;  %v2953_v61 = vadd.f32 %v2823_v62, %v2643_v33  ;;  %v3173_v40 = vpop.f32.mrf.mxu3 }
 0x3dd   : > { %v2515_v27 = vpop.f32.mrf.mxu1 }
 0x3de   : > { %v3303_v9 = vadd.f32 %v3173_v40, %v2953_v61  ;;  %v2644_v29 = vadd.f32 %v2515_v27, %v5682_v24  ;;  %v6351_v27 = vld [vmem:[#allocation54_spill] sm:$0xff] }
 0x3df   : > { %v3495_v32 = vpop.f32.mrf.mxu0 }
 0x3e0   : > { %v3623_v52 = vadd.f32 %v3493_v26, %v3303_v9 }
 0x3e2   : > { %v3687_v7 = vadd.f32 %v3686_v38, %v3623_v52  ;;  %v3760_v11 = vmul.f32 %v3623_v52, %v3623_v52 }
 0x3e3   : > { %v2825_v14 = vpop.f32.mrf.mxu2 }
 0x3e4   : > { %v3823_v53 = vadd.f32 %v3822_v45, %v3760_v11  ;;  %v2954_v39 = vadd.f32 %v2825_v14, %v2644_v29  ;;  %v3175_v4 = vpop.f32.mrf.mxu3 }
 0x3e5   : > { %v2518_v5 = vpop.f32.mrf.mxu1 }
 0x3e6   : > { %v3304_v13 = vadd.f32 %v3175_v4, %v2954_v39  ;;  %v2645_v20 = vadd.f32 %v2518_v5, %v5687_v15  ;;  %v6352_v4 = vld [vmem:[#allocation55_spill] sm:$0xff] }
 0x3e7   : > { %v3498_v48 = vpop.f32.mrf.mxu0 }
 0x3e8   : > { %v3624_v49 = vadd.f32 %v3495_v32, %v3304_v13  ;;  %2557 = vmatmul.bf16.gmra.mxu1 %v5678_v28  ;;  %2867 = vmatmul.bf16.gmra.mxu2 %v4679_v0 }
 0x3e9   : > { %3217 = vmatmul.bf16.gmra.mxu3 %v4994_v44 }
 0x3ea   : > { %v3688_v24 = vadd.f32 %v3687_v7, %v3624_v49  ;;  %v3761_v35 = vmul.f32 %v3624_v49, %v3624_v49  ;;  %3537 = vmatmul.bf16.gmra.mxu0 %v5753_v18 }
 0x3eb   : > { %v2828_v12 = vpop.f32.mrf.mxu2 }
 0x3ec   : > { %v3824_v47 = vadd.f32 %v3823_v53, %v3761_v35  ;;  %v2955_v54 = vadd.f32 %v2828_v12, %v2645_v20  ;;  %v3178_v2 = vpop.f32.mrf.mxu3 }
 0x3ed   : > { %v2520_v8 = vpop.f32.mrf.mxu1 }
 0x3ee   : > { %v3305_v50 = vadd.f32 %v3178_v2, %v2955_v54  ;;  %v2646_v15 = vadd.f32 %v2520_v8, %v6349_v19  ;;  %v6353_v8 = vld [vmem:[#allocation56_spill] sm:$0xff] }
 0x3ef   : > { %v3500_v23 = vpop.f32.mrf.mxu0 }
 0x3f0   : > { %v3625_v58 = vadd.f32 %v3498_v48, %v3305_v50 }
 0x3f2   : > { %v3689_v63 = vadd.f32 %v3688_v24, %v3625_v58  ;;  %v3762_v28 = vmul.f32 %v3625_v58, %v3625_v58 }
 0x3f3   : > { %v2830_v16 = vpop.f32.mrf.mxu2 }
 0x3f4   : > { %v3825_v10 = vadd.f32 %v3824_v47, %v3762_v28  ;;  %v2956_v60 = vadd.f32 %v2830_v16, %v2646_v15  ;;  %v3180_v25 = vpop.f32.mrf.mxu3 }
 0x3f5   : > { %v2523_v1 = vpop.f32.mrf.mxu1 }
 0x3f6   : > { %v3306_v55 = vadd.f32 %v3180_v25, %v2956_v60  ;;  %v2647_v17 = vadd.f32 %v2523_v1, %v6350_v57  ;;  %v6354_v60 = vld [vmem:[#allocation57_spill] sm:$0xff]  ;;  %v4680_v57 = vld [vmem:[%s4800_s7 + $0x8c] sm:$0xff] }
 0x3f7   : > { %v3503_v37 = vpop.f32.mrf.mxu0 }
 0x3f8   : > { %v3626_v33 = vadd.f32 %v3500_v23, %v3306_v55  ;;  %2562 = vmatmul.bf16.gmra.mxu1 %v5723_v21  ;;  %2872 = vmatmul.bf16.gmra.mxu2 %v4678_v46 }
 0x3f9   : > { %3222 = vmatmul.bf16.gmra.mxu3 %v4898_v56 }
 0x3fa   : > { %v3690_v26 = vadd.f32 %v3689_v63, %v3626_v33  ;;  %v3763_v22 = vmul.f32 %v3626_v33, %v3626_v33  ;;  %3542 = vmatmul.bf16.gmra.mxu0 %v5723_v21 }
 0x3fb   : > { %v2833_v38 = vpop.f32.mrf.mxu2 }
 0x3fc   : > { %v3826_v59 = vadd.f32 %v3825_v10, %v3763_v22  ;;  %v2957_v62 = vadd.f32 %v2833_v38, %v2647_v17  ;;  %v3183_v45 = vpop.f32.mrf.mxu3  ;;  %v6355_v17 = vld [vmem:[#allocation5_spill] sm:$0xff] }
 0x3fd   : > { %v2525_v61 = vpop.f32.mrf.mxu1 }
 0x3fe   : > { %v3307_v40 = vadd.f32 %v3183_v45, %v2957_v62  ;;  %v2648_v9 = vadd.f32 %v2525_v61, %v6351_v27 }
 0x3ff   : > { %v3505_v29 = vpop.f32.mrf.mxu0 }
 0x400   : > { %v3627_v32 = vadd.f32 %v3503_v37, %v3307_v40  ;;  %v6357_v40 = vld [vmem:[#allocation58_spill] sm:$0xff] }
 0x402   : > { %v3691_v52 = vadd.f32 %v3690_v26, %v3627_v32  ;;  %v3764_v7 = vmul.f32 %v3627_v32, %v3627_v32  ;;  %v6356_v26 = vld [vmem:[#allocation17_spill] sm:$0xff] }
 0x403   : > { %v2835_v11 = vpop.f32.mrf.mxu2 }
 0x404   : > { %v3827_v46 = vadd.f32 %v3826_v59, %v3764_v7  ;;  %v2958_v14 = vadd.f32 %v2835_v11, %v2648_v9  ;;  %v3185_v56 = vpop.f32.mrf.mxu3 }
 0x405   : > { %v2528_v53 = vpop.f32.mrf.mxu1 }
 0x406   : > { %v3308_v39 = vadd.f32 %v3185_v56, %v2958_v14  ;;  %v2649_v5 = vadd.f32 %v2528_v53, %v6352_v4  ;;  %v6358_v53 = vld [vmem:[#allocation59_spill] sm:$0xff] }
 0x407   : > { %v3508_v13 = vpop.f32.mrf.mxu0 }
 0x408   : > { %v3628_v20 = vadd.f32 %v3505_v29, %v3308_v39  ;;  %2567 = vmatmul.bf16.gmra.mxu1 %v5753_v18  ;;  %2877 = vmatmul.bf16.gmra.mxu2 %v4679_v0 }
 0x409   : > { %3227 = vmatmul.bf16.gmra.mxu3 %v4994_v44 }
 0x40a   : > { %v3692_v48 = vadd.f32 %v3691_v52, %v3628_v20  ;;  %v3765_v49 = vmul.f32 %v3628_v20, %v3628_v20  ;;  %3547 = vmatmul.bf16.gmra.mxu0 %v5753_v18  ;;  %v6359_v20 = vld [vmem:[#allocation7_spill] sm:$0xff] }
 0x40b   : > { %v2838_v24 = vpop.f32.mrf.mxu2 }
 0x40c   : > { %v3828_v35 = vadd.f32 %v3827_v46, %v3765_v49  ;;  %v2959_v12 = vadd.f32 %v2838_v24, %v2649_v5  ;;  %v3188_v47 = vpop.f32.mrf.mxu3  ;;  %v6360_v24 = vld [vmem:[#allocation22_spill] sm:$0xff] }
 0x40d   : > { %v2530_v54 = vpop.f32.mrf.mxu1 }
 0x40e   : > { %v3309_v2 = vadd.f32 %v3188_v47, %v2959_v12  ;;  %v2650_v50 = vadd.f32 %v2530_v54, %v6353_v8 }
 0x40f   : > { %v3510_v19 = vpop.f32.mrf.mxu0 }
 0x410   : > { %v3629_v15 = vadd.f32 %v3508_v13, %v3309_v2  ;;  %v4681_v13 = vld [vmem:[%s4800_s7 + $0x94] sm:$0xff] }
 0x412   : > { %v3693_v23 = vadd.f32 %v3692_v48, %v3629_v15  ;;  %v3766_v58 = vmul.f32 %v3629_v15, %v3629_v15 }
 0x413   : > { %v2840_v0 = vpop.f32.mrf.mxu2 }
 0x414   : > { %v3829_v63 = vadd.f32 %v3828_v35, %v3766_v58  ;;  %v2960_v44 = vadd.f32 %v2840_v0, %v2650_v50  ;;  %v3190_v28 = vpop.f32.mrf.mxu3  ;;  %v6361_v50 = vld [vmem:[#allocation44_spill] sm:$0xff] }
 0x415   : > { %v2533_v16 = vpop.f32.mrf.mxu1 }
 0x416   : > { %v3310_v10 = vadd.f32 %v3190_v28, %v2960_v44  ;;  %v2651_v25 = vadd.f32 %v2533_v16, %v6354_v60  ;;  %v6362_v60 = vld [vmem:[#allocation11_spill] sm:$0xff] }
 0x417   : > { %v3513_v1 = vpop.f32.mrf.mxu0 }
 0x418   : > { %v3630_v55 = vadd.f32 %v3510_v19, %v3310_v10  ;;  %2572 = vmatmul.bf16.gmra.mxu1 %v5723_v21  ;;  %2882 = vmatmul.bf16.gmra.mxu2 %v4680_v57 }
 0x419   : > { %3232 = vmatmul.bf16.gmra.mxu3 %v6355_v17 }
 0x41a   : > { %v3694_v37 = vadd.f32 %v3693_v23, %v3630_v55  ;;  %v3767_v33 = vmul.f32 %v3630_v55, %v3630_v55  ;;  %3552 = vmatmul.bf16.gmra.mxu0 %v6356_v26 }
 0x41b   : > { %v2843_v22 = vpop.f32.mrf.mxu2 }
 0x41c   : > { %v3830_v38 = vadd.f32 %v3829_v63, %v3767_v33  ;;  %v2961_v59 = vadd.f32 %v2843_v22, %v2651_v25  ;;  %v3193_v62 = vpop.f32.mrf.mxu3 }
 0x41d   : > { %v2535_v45 = vpop.f32.mrf.mxu1 }
 0x41e   : > { %v3311_v61 = vadd.f32 %v3193_v62, %v2961_v59  ;;  %v2652_v27 = vadd.f32 %v2535_v45, %v6357_v40  ;;  %v6363_v40 = vld [vmem:[#allocation13_spill] sm:$0xff] }
 0x41f   : > { %v3515_v9 = vpop.f32.mrf.mxu0 }
 0x420   : > { %v3631_v29 = vadd.f32 %v3513_v1, %v3311_v61 }
 0x422   : > { %v3695_v21 = vadd.f32 %v3694_v37, %v3631_v29  ;;  %v3768_v32 = vmul.f32 %v3631_v29, %v3631_v29 }
 0x423   : > { %v2845_v52 = vpop.f32.mrf.mxu2 }
 0x424   : > { %v3831_v7 = vadd.f32 %v3830_v38, %v3768_v32  ;;  %v2962_v11 = vadd.f32 %v2845_v52, %v2652_v27  ;;  %v3195_v46 = vpop.f32.mrf.mxu3 }
 0x425   : > { %v2538_v14 = vpop.f32.mrf.mxu1 }
 0x426   : > { %v3312_v56 = vadd.f32 %v3195_v46, %v2962_v11  ;;  %v2653_v39 = vadd.f32 %v2538_v14, %v6358_v53  ;;  %v6364_v14 = vld [vmem:[#allocation15_spill] sm:$0xff] }
 0x427   : > { %v3518_v4 = vpop.f32.mrf.mxu0 }
 0x428   : > { %v3632_v5 = vadd.f32 %v3515_v9, %v3312_v56  ;;  %2577 = vmatmul.bf16.gmra.mxu1 %v5753_v18  ;;  %2887 = vmatmul.bf16.gmra.mxu2 %v4681_v13 }
 0x429   : > { %3237 = vmatmul.bf16.gmra.mxu3 %v6359_v20 }
 0x42a   : > { %v3696_v48 = vadd.f32 %v3695_v21, %v3632_v5  ;;  %v3769_v49 = vmul.f32 %v3632_v5, %v3632_v5  ;;  %3557 = vmatmul.bf16.gmra.mxu0 %v6360_v24 }
 0x42b   : > { %v2848_v35 = vpop.f32.mrf.mxu2 }
 0x42c   : > { %v3832_v12 = vadd.f32 %v3831_v7, %v3769_v49  ;;  %v2963_v47 = vadd.f32 %v2848_v35, %v2653_v39  ;;  %v3198_v54 = vpop.f32.mrf.mxu3 }
 0x42d   : > { %v2540_v2 = vpop.f32.mrf.mxu1 }
 0x42e   : > { %v3313_v8 = vadd.f32 %v3198_v54, %v2963_v47  ;;  %v2654_v19 = vadd.f32 %v2540_v2, %v6361_v50  ;;  %v6365_v2 = vld [vmem:[#allocation60_spill] sm:$0xff] }
 0x42f   : > { %v3520_v15 = vpop.f32.mrf.mxu0 }
 0x430   : > { %v3633_v23 = vadd.f32 %v3518_v4, %v3313_v8 }
 0x432   : > { %v3697_v58 = vadd.f32 %v3696_v48, %v3633_v23  ;;  %v3770_v18 = vmul.f32 %v3633_v23, %v3633_v23 }
 0x433   : > { %v2850_v0 = vpop.f32.mrf.mxu2 }
 0x434   : > { %v3833_v63 = vadd.f32 %v3832_v12, %v3770_v18  ;;  %v2964_v44 = vadd.f32 %v2850_v0, %v2654_v19  ;;  %v3200_v28 = vpop.f32.mrf.mxu3 }
 0x435   : > { %v2543_v16 = vpop.f32.mrf.mxu1 }
 0x436   : > { %v3314_v10 = vadd.f32 %v3200_v28, %v2964_v44  ;;  %v2655_v25 = vadd.f32 %v2543_v16, %v6362_v60  ;;  %v6366_v44 = vld [vmem:[#allocation20_spill] sm:$0xff]  ;;  %v4682_v60 = vld [vmem:[%s4800_s7 + $0xa0] sm:$0xff] }
 0x437   : > { %v3523_v1 = vpop.f32.mrf.mxu0 }
 0x438   : > { %v3634_v55 = vadd.f32 %v3520_v15, %v3314_v10  ;;  %2582 = vmatmul.bf16.gmra.mxu1 %v6356_v26  ;;  %2892 = vmatmul.bf16.gmra.mxu2 %v4680_v57 }
 0x439   : > { %3242 = vmatmul.bf16.gmra.mxu3 %v6355_v17 }
 0x43a   : > { %v3698_v37 = vadd.f32 %v3697_v58, %v3634_v55  ;;  %v3771_v33 = vmul.f32 %v3634_v55, %v3634_v55  ;;  %3562 = vmatmul.bf16.gmra.mxu0 %v6356_v26 }
 0x43b   : > { %v2853_v22 = vpop.f32.mrf.mxu2 }
 0x43c   : > { %v3834_v38 = vadd.f32 %v3833_v63, %v3771_v33  ;;  %v2965_v59 = vadd.f32 %v2853_v22, %v2655_v25  ;;  %v3203_v62 = vpop.f32.mrf.mxu3 }
 0x43d   : > { %v2545_v45 = vpop.f32.mrf.mxu1 }
 0x43e   : > { %v3315_v61 = vadd.f32 %v3203_v62, %v2965_v59  ;;  %v2656_v27 = vadd.f32 %v2545_v45, %v6363_v40  ;;  %v6367_v62 = vld [vmem:[#allocation61_spill] sm:$0xff] }
 0x43f   : > { %v3525_v9 = vpop.f32.mrf.mxu0 }
 0x440   : > { %v3635_v29 = vadd.f32 %v3523_v1, %v3315_v61 }
 0x442   : > { %v3699_v21 = vadd.f32 %v3698_v37, %v3635_v29  ;;  %v3772_v32 = vmul.f32 %v3635_v29, %v3635_v29 }
 0x443   : > { %v2855_v52 = vpop.f32.mrf.mxu2 }
 0x444   : > { %v3835_v57 = vadd.f32 %v3834_v38, %v3772_v32  ;;  %v2966_v7 = vadd.f32 %v2855_v52, %v2656_v27  ;;  %v3205_v17 = vpop.f32.mrf.mxu3 }
 0x445   : > { %v2548_v11 = vpop.f32.mrf.mxu1 }
 0x446   : > { %v3316_v46 = vadd.f32 %v3205_v17, %v2966_v7  ;;  %v2657_v56 = vadd.f32 %v2548_v11, %v6364_v14  ;;  %v6368_v7 = vld [vmem:[#allocation25_spill] sm:$0xff]  ;;  %v6085_v14 = vld [vmem:[%s4800_s7 + $0xa8] sm:$0xff] }
 0x447   : > { %v3528_v53 = vpop.f32.mrf.mxu0 }
 0x448   : > { %v3636_v39 = vadd.f32 %v3525_v9, %v3316_v46  ;;  %2587 = vmatmul.bf16.gmra.mxu1 %v6360_v24  ;;  %2897 = vmatmul.bf16.gmra.mxu2 %v4681_v13 }
 0x449   : > { %3247 = vmatmul.bf16.gmra.mxu3 %v6359_v20 }
 0x44a   : > { %v3700_v4 = vadd.f32 %v3699_v21, %v3636_v39  ;;  %v3773_v5 = vmul.f32 %v3636_v39, %v3636_v39  ;;  %3567 = vmatmul.bf16.gmra.mxu0 %v6360_v24 }
 0x44b   : > { %v2858_v48 = vpop.f32.mrf.mxu2 }
 0x44c   : > { %v3836_v49 = vadd.f32 %v3835_v57, %v3773_v5  ;;  %v2967_v35 = vadd.f32 %v2858_v48, %v2657_v56  ;;  %v3208_v12 = vpop.f32.mrf.mxu3 }
 0x44d   : > { %v2550_v47 = vpop.f32.mrf.mxu1 }
 0x44e   : > { %v3317_v54 = vadd.f32 %v3208_v12, %v2967_v35  ;;  %v2658_v8 = vadd.f32 %v2550_v47, %v6365_v2  ;;  %v6369_v12 = vld [vmem:[#allocation27_spill] sm:$0xff] }
 0x44f   : > { %v3530_v50 = vpop.f32.mrf.mxu0 }
 0x450   : > { %v3637_v19 = vadd.f32 %v3528_v53, %v3317_v54 }
 0x452   : > { %v3701_v15 = vadd.f32 %v3700_v4, %v3637_v19  ;;  %v3774_v23 = vmul.f32 %v3637_v19, %v3637_v19 }
 0x453   : > { %v2860_v13 = vpop.f32.mrf.mxu2 }
 0x454   : > { %v3837_v58 = vadd.f32 %v3836_v49, %v3774_v23  ;;  %v2968_v20 = vadd.f32 %v2860_v13, %v2658_v8  ;;  %v3210_v18 = vpop.f32.mrf.mxu3 }
 0x455   : > { %v2553_v0 = vpop.f32.mrf.mxu1 }
 0x456   : > { %v3318_v63 = vadd.f32 %v3210_v18, %v2968_v20  ;;  %v2659_v28 = vadd.f32 %v2553_v0, %v6366_v44  ;;  %v6370_v20 = vld [vmem:[#allocation29_spill] sm:$0xff]  ;;  %v243_v44 = vld [vmem:[%s4800_s7 + $0xb4] sm:$0xf] }
 0x457   : > { %v3533_v16 = vpop.f32.mrf.mxu0 }
 0x458   : > { %v3638_v10 = vadd.f32 %v3530_v50, %v3318_v63  ;;  %2592 = vmatmul.bf16.gmra.mxu1 %v6356_v26  ;;  %2902 = vmatmul.bf16.gmra.mxu2 %v4682_v60 }
 0x459   : > { %3252 = vmatmul.bf16.gmra.mxu3 %v6293_v31 }
 0x45a   : > { %v3702_v25 = vadd.f32 %v3701_v15, %v3638_v10  ;;  %v3775_v1 = vmul.f32 %v3638_v10, %v3638_v10  ;;  %3572 = vmatmul.bf16.gmra.mxu0 %v5870_v36  ;;  %v244_v10 = vld [vmem:[%s4800_s7 + $0xb8] sm:$0xf] }
 0x45b   : > { %v2863_v55 = vpop.f32.mrf.mxu2 }
 0x45c   : > { %v3838_v37 = vadd.f32 %v3837_v58, %v3775_v1  ;;  %v2969_v33 = vadd.f32 %v2863_v55, %v2659_v28  ;;  %v3213_v22 = vpop.f32.mrf.mxu3 }
 0x45d   : > { %v2555_v38 = vpop.f32.mrf.mxu1 }
 0x45e   : > { %v3319_v59 = vadd.f32 %v3213_v22, %v2969_v33  ;;  %v2660_v45 = vadd.f32 %v2555_v38, %v6367_v62  ;;  %v2998_v33 = vshrl.u32 %v243_v44, 16  ;;  %v3001_v22 = vshll.u32 %v243_v44, 16 }
 0x45f   : > { %v3535_v61 = vpop.f32.mrf.mxu0  ;;  %v3011_v62 = vshrl.u32 %v244_v10, 16 }
 0x460   : > { %v3639_v40 = vadd.f32 %v3533_v16, %v3319_v59  ;;  %v3007_v59 = vshll.u32 %v244_v10, 16 }
 0x462   : > { %v3703_v26 = vadd.f32 %v3702_v25, %v3639_v40  ;;  %v3776_v27 = vmul.f32 %v3639_v40, %v3639_v40 }
 0x463   : > { %v2865_v9 = vpop.f32.mrf.mxu2 }
 0x464   : > { %v3839_v29 = vadd.f32 %v3838_v37, %v3776_v27  ;;  %v2970_v21 = vadd.f32 %v2865_v9, %v2660_v45  ;;  %v3215_v32 = vpop.f32.mrf.mxu3  ;;  %v3003_v27 = vrot.slane %v3001_v22, 5  ;;  %v6099_v9 = vld [vmem:[%s4800_s7 + $0xbc] sm:$0xf] }
 0x465   : > { %v2558_v52 = vpop.f32.mrf.mxu1 }
 0x466   : > { %v3320_v57 = vadd.f32 %v3215_v32, %v2970_v21  ;;  %v2661_v17 = vadd.f32 %v2558_v52, %v6368_v7  ;;  %v3013_v21 = vrot.slane %v3011_v62, 4 }
 0x467   : > { %v3538_v11 = vpop.f32.mrf.mxu0 }
 0x468   : > { %v3640_v46 = vadd.f32 %v3535_v61, %v3320_v57  ;;  %2597 = vmatmul.bf16.gmra.mxu1 %v6360_v24  ;;  %2907 = vmatmul.bf16.gmra.mxu2 %v6085_v14 }
 0x469   : > { %3257 = vmatmul.bf16.gmra.mxu3 %v6298_v43 }
 0x46a   : > { %v3704_v56 = vadd.f32 %v3703_v26, %v3640_v46  ;;  %v3777_v53 = vmul.f32 %v3640_v46, %v3640_v46  ;;  %3577 = vmatmul.bf16.gmra.mxu0 %v5886_v34  ;;  %v3000_v26 = vrot.slane %v2998_v33, 4 }
 0x46b   : > { %v2868_v39 = vpop.f32.mrf.mxu2 }
 0x46c   : > { %v3840_v4 = vadd.f32 %v3839_v29, %v3777_v53  ;;  %v2971_v5 = vadd.f32 %v2868_v39, %v2661_v17  ;;  %v3218_v48 = vpop.f32.mrf.mxu3  ;;  %v3009_v29 = vrot.slane %v3007_v59, 5  ;;  %v3004_v46 = vor.u32 %v3003_v27, %v3000_v26 }
 0x46d   : > { %v2560_v49 = vpop.f32.mrf.mxu1 }
 0x46e   : > { %v3321_v35 = vadd.f32 %v3218_v48, %v2971_v5  ;;  %v2662_v47 = vadd.f32 %v2560_v49, %v6369_v12  ;;  %v3014_v39 = vor.u32 %v3013_v21, %v3009_v29  ;;  %v6372_v48 = vld [vmem:[#allocation31_spill] sm:$0xff] }
 0x46f   : > { %v3540_v54 = vpop.f32.mrf.mxu0 }
 0x470   : > { %v3641_v24 = vadd.f32 %v3538_v11, %v3321_v35 }
 0x472   : > { %v3705_v2 = vadd.f32 %v3704_v56, %v3641_v24  ;;  %v3778_v8 = vmul.f32 %v3641_v24, %v3641_v24  ;;  %v3017_v56 = vshll.u32 %v6099_v9, 16  ;;  %v3015_v24 = vrot.slane %v3014_v39, 4 }
 0x473   : > { %v2870_v50 = vpop.f32.mrf.mxu2 }
 0x474   : > { %v3841_v19 = vadd.f32 %v3840_v4, %v3778_v8  ;;  %v2972_v15 = vadd.f32 %v2870_v50, %v2662_v47  ;;  %v3220_v23 = vpop.f32.mrf.mxu3  ;;  %v3350_v4 = vrot.slane %v244_v10, 5  ;;  %v3005_v47 = vrot.slane %v3004_v46, 4 }
 0x475   : > { %v2563_v13 = vpop.f32.mrf.mxu1  ;;  %v3353_v50 = vrot.slane %v6099_v9, 5 }
 0x476   : > { %v3322_v58 = vadd.f32 %v3220_v23, %v2972_v15  ;;  %v2663_v18 = vadd.f32 %v2563_v13, %v6370_v20  ;;  %v3352_v8 = vrot.slane %v3350_v4, 4  ;;  %v6109_v13 = vld [vmem:[%s4800_s7 + $0xc0] sm:$0xf] }
 0x477   : > { %v3543_v0 = vpop.f32.mrf.mxu0 }
 0x478   : > { %v3642_v63 = vadd.f32 %v3540_v54, %v3322_v58  ;;  %2602 = vmatmul.bf16.gmra.mxu1 %v5870_v36  ;;  %2912 = vmatmul.bf16.gmra.mxu2 %v4682_v60  ;;  %v6371_v60 = vld [vmem:[#allocation9_spill] sm:$0xff]  ;;  %v3019_v54 = vrot.slane %v3017_v56, 5  ;;  %v6375_v56 = vld [vmem:[#allocation10_spill] sm:$0xff] }
 0x479   : > { %3262 = vmatmul.bf16.gmra.mxu3 %v6293_v31 }
 0x47a   : > { %v3706_v28 = vadd.f32 %v3705_v2, %v3642_v63  ;;  %v3779_v16 = vmul.f32 %v3642_v63, %v3642_v63  ;;  %3582 = vmatmul.bf16.gmra.mxu0 %v5870_v36  ;;  %v4427_v2 = vrot.slane %v243_v44, 9 }
 0x47b   : > { %v2873_v25 = vpop.f32.mrf.mxu2 }
 0x47c   : > { %v3842_v1 = vadd.f32 %v3841_v19, %v3779_v16  ;;  %v2973_v55 = vadd.f32 %v2873_v25, %v2663_v18  ;;  %v3223_v37 = vpop.f32.mrf.mxu3  ;;  %v3351_v44 = vsel %vm5225_vm5, %v4427_v2, %v3350_v4  ;;  %v3021_v16 = vshrl.u32 %v6099_v9, 16  ;;  %v6374_v25 = vld [vmem:[#allocation33_spill] sm:$0xff]  ;;  %v247_v9 = vld [vmem:[%s4800_s7 + $0xc4] sm:$0x1] }
 0x47d   : > { %v2565_v38 = vpop.f32.mrf.mxu1  ;;  %v3378_v62 = vunpack.c.l.b16 %v3351_v44  ;;  %v3037_v4 = vshll.u32 %v247_v9, 16 }
 0x47e   : > { %v3323_v45 = vadd.f32 %v3223_v37, %v2973_v55  ;;  %v2664_v61 = vadd.f32 %v2565_v38, %v6371_v60  ;;  %v3027_v55 = vshll.u32 %v6109_v13, 16  ;;  %v3031_v37 = vshrl.u32 %v6109_v13, 16 }
 0x47f   : > { %v3545_v31 = vpop.f32.mrf.mxu0  ;;  %v3023_v60 = vrot.slane %v3021_v16, 4  ;;  %v3039_v2 = vrot.slane %v3037_v4, 5 }
 0x480   : > { %v3643_v40 = vadd.f32 %v3543_v0, %v3323_v45  ;;  %v3010_v0 = vsel %vm4823_vm2, %v3005_v47, %v3009_v29  ;;  %v3033_v26 = vrot.slane %v3031_v37, 4 }
 0x481   : > { %v3058_v38 = vunpack.c.l.b16 %v3010_v0  ;;  %v6376_v0 = vld [vmem:[#allocation35_spill] sm:$0xff] }
 0x482   : > { %v3707_v32 = vadd.f32 %v3706_v28, %v3643_v40  ;;  %v3780_v52 = vmul.f32 %v3643_v40, %v3643_v40  ;;  %v3354_v28 = vsel %vm5225_vm5, %v3352_v8, %v3353_v50  ;;  %v3029_v40 = vrot.slane %v3027_v55, 5 }
 0x483   : > { %v2875_v57 = vpop.f32.mrf.mxu2  ;;  %v3379_v45 = vunpack.c.l.b16 %v3354_v28  ;;  %v3355_v8 = vrot.slane %v3353_v50, 4 }
 0x484   : > { %v3843_v7 = vadd.f32 %v3842_v1, %v3780_v52  ;;  %v2974_v17 = vadd.f32 %v2875_v57, %v2664_v61  ;;  %v3225_v11 = vpop.f32.mrf.mxu3  ;;  %v4497_v52 = vld [vmem:[%s4800_s7 + $0xb4] sm:$0xff]  ;;  %v3034_v39 = vor.u32 %v3033_v26, %v3029_v40 }
 0x485   : > { %v2568_v53 = vpop.f32.mrf.mxu1 }
 0x486   : > { %v3324_v5 = vadd.f32 %v3225_v11, %v2974_v17  ;;  %v2665_v49 = vadd.f32 %v2568_v53, %v6372_v48  ;;  %v3382_v17 = vpack.c.b16 %v3379_v45, %v3378_v62  ;;  %v3024_v11 = vor.u32 %v3023_v60, %v3019_v54  ;;  %v4498_v62 = vld [vmem:[%s4800_s7 + $0xbc] sm:$0xff] }
 0x487   : > { %v3548_v35 = vpop.f32.mrf.mxu0  ;;  %v3356_v48 = vrot.slane %v6109_v13, 5 }
 0x488   : > { %v3644_v12 = vadd.f32 %v3545_v31, %v3324_v5  ;;  %2607 = vmatmul.bf16.gmra.mxu1 %v5886_v34  ;;  %2917 = vmatmul.bf16.gmra.mxu2 %v6085_v14 }
 0x489   : > { %3267 = vmatmul.bf16.gmra.mxu3 %v6298_v43  ;;  %v3020_v43 = vsel %vm4823_vm2, %v3015_v24, %v3019_v54  ;;  %v3035_v24 = vrot.slane %v3034_v39, 4  ;;  %v3357_v50 = vsel %vm5225_vm5, %v3355_v8, %v3356_v48 }
 0x48a   : > { %v3708_v19 = vadd.f32 %v3707_v32, %v3644_v12  ;;  %v3781_v15 = vmul.f32 %v3644_v12, %v3644_v12  ;;  %3587 = vmatmul.bf16.gmra.mxu0 %v5886_v34  ;;  %v3059_v59 = vunpack.c.l.b16 %v3020_v43  ;;  %v3380_v37 = vunpack.c.l.b16 %v3357_v50 }
 0x48b   : > { %v2878_v23 = vpop.f32.mrf.mxu2  ;;  %v3040_v43 = vsel %vm4823_vm2, %v3035_v24, %v3039_v2 }
 0x48c   : > { %v3844_v58 = vadd.f32 %v3843_v7, %v3781_v15  ;;  %v2975_v20 = vadd.f32 %v2878_v23, %v2665_v49  ;;  %v3228_v18 = vpop.f32.mrf.mxu3  ;;  %v3062_v7 = vpack.c.b16 %v3059_v59, %v3058_v38  ;;  %v3359_v15 = vrot.slane %v247_v9, 5 }
 0x48d   : > { %v2570_v63 = vpop.f32.mrf.mxu1 }
 0x48e   : > { %v3325_v10 = vadd.f32 %v3228_v18, %v2975_v20  ;;  %v2666_v1 = vadd.f32 %v2570_v63, %v6374_v25  ;;  %v3061_v25 = vunpack.c.l.b16 %v3040_v43 }
 0x48f   : > { %v3550_v33 = vpop.f32.mrf.mxu0 }
 0x490   : > { %v3645_v22 = vadd.f32 %v3548_v35, %v3325_v10  ;;  %v3025_v35 = vrot.slane %v3024_v11, 4  ;;  %v6378_v11 = vld [vmem:[#allocation40_spill] sm:$0xff] }
 0x492   : > { %v3709_v61 = vadd.f32 %v3708_v19, %v3645_v22  ;;  %v3782_v31 = vmul.f32 %v3645_v22, %v3645_v22  ;;  %v3358_v19 = vrot.slane %v3356_v48, 4 }
 0x493   : > { %v2880_v27 = vpop.f32.mrf.mxu2 }
 0x494   : > { %v3845_v29 = vadd.f32 %v3844_v58, %v3782_v31  ;;  %v2976_v21 = vadd.f32 %v2880_v27, %v2666_v1  ;;  %v3230_v32 = vpop.f32.mrf.mxu3  ;;  %v3360_v28 = vsel %vm5225_vm5, %v3358_v19, %v3359_v15  ;;  %v6377_v31 = vld [vmem:[#allocation38_spill] sm:$0xff] }
 0x495   : > { %v2573_v57 = vpop.f32.mrf.mxu1 }
 0x496   : > { %v3326_v46 = vadd.f32 %v3230_v32, %v2976_v21  ;;  %v2667_v53 = vadd.f32 %v2573_v57, %v6375_v56 }
 0x497   : > { %v3553_v5 = vpop.f32.mrf.mxu0 }
 0x498   : > { %v3646_v49 = vadd.f32 %v3550_v33, %v3326_v46  ;;  %2612 = vmatmul.bf16.gmra.mxu1 %v5870_v36  ;;  %2922 = vmatmul.bf16.gmra.mxu2 %v4497_v52  ;;  %v3030_v36 = vsel %vm4823_vm2, %v3025_v35, %v3029_v40  ;;  %v3381_v33 = vunpack.c.l.b16 %v3360_v28 }
 0x499   : > { %3272 = vmatmul.bf16.gmra.mxu3 %v3062_v7  ;;  %v3060_v10 = vunpack.c.l.b16 %v3030_v36 }
 0x49a   : > { %v3710_v12 = vadd.f32 %v3709_v61, %v3646_v49  ;;  %v3783_v47 = vmul.f32 %v3646_v49, %v3646_v49  ;;  %3592 = vmatmul.bf16.gmra.mxu0 %v3382_v17  ;;  %v3383_v26 = vpack.c.b16 %v3381_v33, %v3380_v37  ;;  %v6381_v37 = vld [vmem:[#allocation19_spill] sm:$0xff] }
 0x49b   : > { %v2883_v54 = vpop.f32.mrf.mxu2  ;;  %v3063_v60 = vpack.c.b16 %v3061_v25, %v3060_v10 }
 0x49c   : > { %v3846_v23 = vadd.f32 %v3845_v29, %v3783_v47  ;;  %v2977_v58 = vadd.f32 %v2883_v54, %v2667_v53  ;;  %v3233_v20 = vpop.f32.mrf.mxu3  ;;  %v6379_v47 = vld [vmem:[#allocation42_spill] sm:$0xff] }
 0x49d   : > { %v2575_v18 = vpop.f32.mrf.mxu1 }
 0x49e   : > { %v3327_v13 = vadd.f32 %v3233_v20, %v2977_v58  ;;  %v2668_v63 = vadd.f32 %v2575_v18, %v6376_v0  ;;  %v6380_v0 = vld [vmem:[#allocation45_spill] sm:$0xff] }
 0x49f   : > { %v3555_v44 = vpop.f32.mrf.mxu0 }
 0x4a0   : > { %v3647_v16 = vadd.f32 %v3553_v5, %v3327_v13 }
 0x4a2   : > { %v3711_v1 = vadd.f32 %v3710_v12, %v3647_v16  ;;  %v3784_v55 = vmul.f32 %v3647_v16, %v3647_v16 }
 0x4a3   : > { %v2885_v22 = vpop.f32.mrf.mxu2 }
 0x4a4   : > { %v3847_v38 = vadd.f32 %v3846_v23, %v3784_v55  ;;  %v2978_v59 = vadd.f32 %v2885_v22, %v2668_v63  ;;  %v3235_v14 = vpop.f32.mrf.mxu3 }
 0x4a5   : > { %v2578_v45 = vpop.f32.mrf.mxu1 }
 0x4a6   : > { %v3328_v61 = vadd.f32 %v3235_v14, %v2978_v59  ;;  %v2669_v40 = vadd.f32 %v2578_v45, %v6377_v31 }
 0x4a7   : > { %v3558_v42 = vpop.f32.mrf.mxu0 }
 0x4a8   : > { %v3648_v27 = vadd.f32 %v3555_v44, %v3328_v61  ;;  %2617 = vmatmul.bf16.gmra.mxu1 %v5886_v34  ;;  %2927 = vmatmul.bf16.gmra.mxu2 %v4498_v62 }
 0x4a9   : > { %3277 = vmatmul.bf16.gmra.mxu3 %v3063_v60 }
 0x4aa   : > { %v3712_v9 = vadd.f32 %v3711_v1, %v3648_v27  ;;  %v3785_v29 = vmul.f32 %v3648_v27, %v3648_v27  ;;  %3597 = vmatmul.bf16.gmra.mxu0 %v3383_v26  ;;  %v6382_v26 = vld [vmem:[#allocation6_spill] sm:$0xff] }
 0x4ab   : > { %v2888_v21 = vpop.f32.mrf.mxu2 }
 0x4ac   : > { %v3848_v32 = vadd.f32 %v3847_v38, %v3785_v29  ;;  %v2979_v52 = vadd.f32 %v2888_v21, %v2669_v40  ;;  %v3238_v57 = vpop.f32.mrf.mxu3 }
 0x4ad   : > { %v2580_v7 = vpop.f32.mrf.mxu1 }
 0x4ae   : > { %v3329_v17 = vadd.f32 %v3238_v57, %v2979_v52  ;;  %v2670_v46 = vadd.f32 %v2580_v7, %v6378_v11 }
 0x4af   : > { %v3560_v56 = vpop.f32.mrf.mxu0 }
 0x4b0   : > { %v3649_v53 = vadd.f32 %v3558_v42, %v3329_v17 }
 0x4b2   : > { %v3713_v39 = vadd.f32 %v3712_v9, %v3649_v53  ;;  %v3786_v4 = vmul.f32 %v3649_v53, %v3649_v53 }
 0x4b3   : > { %v2890_v5 = vpop.f32.mrf.mxu2 }
 0x4b4   : > { %v3849_v48 = vadd.f32 %v3848_v32, %v3786_v4  ;;  %v2980_v34 = vadd.f32 %v2890_v5, %v2670_v46  ;;  %v3240_v49 = vpop.f32.mrf.mxu3  ;;  %v6383_v46 = vld [vmem:[#allocation12_spill] sm:$0xff] }
 0x4b5   : > { %v2583_v35 = vpop.f32.mrf.mxu1 }
 0x4b6   : > { %v3330_v12 = vadd.f32 %v3240_v49, %v2980_v34  ;;  %v2671_v24 = vadd.f32 %v2583_v35, %v6379_v47 }
 0x4b7   : > { %v3563_v2 = vpop.f32.mrf.mxu0 }
 0x4b8   : > { %v3650_v54 = vadd.f32 %v3560_v56, %v3330_v12 }
 0x4ba   : > { %v3714_v8 = vadd.f32 %v3713_v39, %v3650_v54  ;;  %v3787_v19 = vmul.f32 %v3650_v54, %v3650_v54 }
 0x4bb   : > { %v2893_v15 = vpop.f32.mrf.mxu2 }
 0x4bc   : > { %v3850_v23 = vadd.f32 %v3849_v48, %v3787_v19  ;;  %v2981_v58 = vadd.f32 %v2893_v15, %v2671_v24  ;;  %v3243_v20 = vpop.f32.mrf.mxu3  ;;  %v6384_v19 = vld [vmem:[#allocation14_spill] sm:$0xff] }
 0x4bd   : > { %v2585_v18 = vpop.f32.mrf.mxu1 }
 0x4be   : > { %v3331_v13 = vadd.f32 %v3243_v20, %v2981_v58  ;;  %v2672_v63 = vadd.f32 %v2585_v18, %v6380_v0 }
 0x4bf   : > { %v3565_v36 = vpop.f32.mrf.mxu0 }
 0x4c0   : > { %v3651_v43 = vadd.f32 %v3563_v2, %v3331_v13 }
 0x4c2   : > { %v3715_v44 = vadd.f32 %v3714_v8, %v3651_v43  ;;  %v3788_v50 = vmul.f32 %v3651_v43, %v3651_v43 }
 0x4c3   : > { %v2895_v28 = vpop.f32.mrf.mxu2 }
 0x4c4   : > { %v3851_v16 = vadd.f32 %v3850_v23, %v3788_v50  ;;  %v2982_v10 = vadd.f32 %v2895_v28, %v2672_v63  ;;  %v3245_v25 = vpop.f32.mrf.mxu3 }
 0x4c5   : > { %v2588_v1 = vpop.f32.mrf.mxu1 }
 0x4c6   : > { %v3332_v55 = vadd.f32 %v3245_v25, %v2982_v10  ;;  %v2673_v33 = vadd.f32 %v2588_v1, %v6381_v37 }
 0x4c7   : > { %v3568_v22 = vpop.f32.mrf.mxu0 }
 0x4c8   : > { %v3652_v38 = vadd.f32 %v3565_v36, %v3332_v55 }
 0x4ca   : > { %v3716_v59 = vadd.f32 %v3715_v44, %v3652_v38  ;;  %v3789_v14 = vmul.f32 %v3652_v38, %v3652_v38 }
 0x4cb   : > { %v2898_v62 = vpop.f32.mrf.mxu2 }
 0x4cc   : > { %v3852_v45 = vadd.f32 %v3851_v16, %v3789_v14  ;;  %v2983_v60 = vadd.f32 %v2898_v62, %v2673_v33  ;;  %v3248_v61 = vpop.f32.mrf.mxu3 }
 0x4cd   : > { %v2590_v31 = vpop.f32.mrf.mxu1 }
 0x4ce   : > { %v3333_v40 = vadd.f32 %v3248_v61, %v2983_v60  ;;  %v2674_v42 = vadd.f32 %v2590_v31, %v6382_v26 }
 0x4cf   : > { %v3570_v27 = vpop.f32.mrf.mxu0 }
 0x4d0   : > { %v3653_v9 = vadd.f32 %v3568_v22, %v3333_v40 }
 0x4d2   : > { %v3717_v29 = vadd.f32 %v3716_v59, %v3653_v9  ;;  %v3790_v21 = vmul.f32 %v3653_v9, %v3653_v9 }
 0x4d3   : > { %v2900_v32 = vpop.f32.mrf.mxu2 }
 0x4d4   : > { %v3853_v52 = vadd.f32 %v3852_v45, %v3790_v21  ;;  %v2984_v57 = vadd.f32 %v2900_v32, %v2674_v42  ;;  %v3250_v7 = vpop.f32.mrf.mxu3 }
 0x4d5   : > { %v2593_v17 = vpop.f32.mrf.mxu1 }
 0x4d6   : > { %v3334_v11 = vadd.f32 %v3250_v7, %v2984_v57  ;;  %v2675_v56 = vadd.f32 %v2593_v17, %v6383_v46  ;;  %v6385_v46 = vld [vmem:[#allocation24_spill] sm:$0xff] }
 0x4d7   : > { %v3573_v53 = vpop.f32.mrf.mxu0 }
 0x4d8   : > { %v3654_v39 = vadd.f32 %v3570_v27, %v3334_v11 }
 0x4da   : > { %v3718_v4 = vadd.f32 %v3717_v29, %v3654_v39  ;;  %v3791_v5 = vmul.f32 %v3654_v39, %v3654_v39 }
 0x4db   : > { %v2903_v48 = vpop.f32.mrf.mxu2 }
 0x4dc   : > { %v3854_v34 = vadd.f32 %v3853_v52, %v3791_v5  ;;  %v2985_v49 = vadd.f32 %v2903_v48, %v2675_v56  ;;  %v3253_v35 = vpop.f32.mrf.mxu3 }
 0x4dd   : > { %v2595_v12 = vpop.f32.mrf.mxu1 }
 0x4de   : > { %v3335_v47 = vadd.f32 %v3253_v35, %v2985_v49  ;;  %v2676_v15 = vadd.f32 %v2595_v12, %v6384_v19 }
 0x4df   : > { %v3575_v24 = vpop.f32.mrf.mxu0 }
 0x4e0   : > { %v3655_v2 = vadd.f32 %v3573_v53, %v3335_v47  ;;  %v6386_v47 = vld [vmem:[#allocation8_spill] sm:$0xff] }
 0x4e2   : > { %v3719_v54 = vadd.f32 %v3718_v4, %v3655_v2  ;;  %v3792_v8 = vmul.f32 %v3655_v2, %v3655_v2 }
 0x4e3   : > { %v2905_v23 = vpop.f32.mrf.mxu2 }
 0x4e4   : > { %v3855_v58 = vadd.f32 %v3854_v34, %v3792_v8  ;;  %v2986_v20 = vadd.f32 %v2905_v23, %v2676_v15  ;;  %v3255_v18 = vpop.f32.mrf.mxu3 }
 0x4e5   : > { %v2598_v13 = vpop.f32.mrf.mxu1 }
 0x4e6   : > { %v3336_v0 = vadd.f32 %v3255_v18, %v2986_v20  ;;  %v2677_v50 = vadd.f32 %v2598_v13, %v5935_v3 }
 0x4e7   : > { %v3578_v63 = vpop.f32.mrf.mxu0 }
 0x4e8   : > { %v3656_v36 = vadd.f32 %v3575_v24, %v3336_v0  ;;  %v6387_v0 = vld [vmem:[#allocation16_spill] sm:$0xff] }
 0x4ea   : > { %v3720_v43 = vadd.f32 %v3719_v54, %v3656_v36  ;;  %v3793_v44 = vmul.f32 %v3656_v36, %v3656_v36 }
 0x4eb   : > { %v2908_v28 = vpop.f32.mrf.mxu2 }
 0x4ec   : > { %v3856_v16 = vadd.f32 %v3855_v58, %v3793_v44  ;;  %v2987_v10 = vadd.f32 %v2908_v28, %v2677_v50  ;;  %v3258_v25 = vpop.f32.mrf.mxu3 }
 0x4ed   : > { %v2600_v1 = vpop.f32.mrf.mxu1 }
 0x4ee   : > { %v3337_v55 = vadd.f32 %v3258_v25, %v2987_v10  ;;  %v2678_v59 = vadd.f32 %v2600_v1, %v5939_v51 }
 0x4ef   : > { %v3580_v37 = vpop.f32.mrf.mxu0 }
 0x4f0   : > { %v3657_v33 = vadd.f32 %v3578_v63, %v3337_v55 }
 0x4f2   : > { %v3721_v22 = vadd.f32 %v3720_v43, %v3657_v33  ;;  %v3794_v38 = vmul.f32 %v3657_v33, %v3657_v33 }
 0x4f3   : > { %v2910_v14 = vpop.f32.mrf.mxu2 }
 0x4f4   : > { %v3857_v62 = vadd.f32 %v3856_v16, %v3794_v38  ;;  %v2988_v45 = vadd.f32 %v2910_v14, %v2678_v59  ;;  %v3260_v60 = vpop.f32.mrf.mxu3 }
 0x4f5   : > { %v2603_v61 = vpop.f32.mrf.mxu1 }
 0x4f6   : > { %v3338_v31 = vadd.f32 %v3260_v60, %v2988_v45  ;;  %v2679_v27 = vadd.f32 %v2603_v61, %v5944_v41 }
 0x4f7   : > { %v3583_v40 = vpop.f32.mrf.mxu0 }
 0x4f8   : > { %v3658_v3 = vadd.f32 %v3580_v37, %v3338_v31  ;;  %v6388_v37 = vld [vmem:[#allocation18_spill] sm:$0xff] }
 0x4fa   : > { %v3722_v26 = vadd.f32 %v3721_v22, %v3658_v3  ;;  %v3795_v42 = vmul.f32 %v3658_v3, %v3658_v3 }
 0x4fb   : > { %v2913_v9 = vpop.f32.mrf.mxu2 }
 0x4fc   : > { %v3858_v29 = vadd.f32 %v3857_v62, %v3795_v42  ;;  %v2989_v21 = vadd.f32 %v2913_v9, %v2679_v27  ;;  %v3263_v32 = vpop.f32.mrf.mxu3 }
 0x4fd   : > { %v2605_v52 = vpop.f32.mrf.mxu1 }
 0x4fe   : > { %v3339_v57 = vadd.f32 %v3263_v32, %v2989_v21  ;;  %v2680_v56 = vadd.f32 %v2605_v52, %v6385_v46 }
 0x4ff   : > { %v3585_v7 = vpop.f32.mrf.mxu0 }
 0x500   : > { %v3659_v51 = vadd.f32 %v3583_v40, %v3339_v57  ;;  %v6389_v40 = vld [vmem:[#allocation3_spill] sm:$0xff] }
 0x502   : > { %v3723_v17 = vadd.f32 %v3722_v26, %v3659_v51  ;;  %v3796_v11 = vmul.f32 %v3659_v51, %v3659_v51 }
 0x503   : > { %v2915_v53 = vpop.f32.mrf.mxu2 }
 0x504   : > { %v3859_v39 = vadd.f32 %v3858_v29, %v3796_v11  ;;  %v2990_v4 = vadd.f32 %v2915_v53, %v2680_v56  ;;  %v3265_v5 = vpop.f32.mrf.mxu3 }
 0x505   : > { %v2608_v48 = vpop.f32.mrf.mxu1 }
 0x506   : > { %v3340_v34 = vadd.f32 %v3265_v5, %v2990_v4  ;;  %v2681_v24 = vadd.f32 %v2608_v48, %v6386_v47 }
 0x507   : > { %v3588_v49 = vpop.f32.mrf.mxu0 }
 0x508   : > { %v3660_v41 = vadd.f32 %v3585_v7, %v3340_v34 }
 0x50a   : > { %v3724_v35 = vadd.f32 %v3723_v17, %v3660_v41  ;;  %v3797_v12 = vmul.f32 %v3660_v41, %v3660_v41 }
 0x50b   : > { %v2918_v2 = vpop.f32.mrf.mxu2 }
 0x50c   : > { %v3860_v54 = vadd.f32 %v3859_v39, %v3797_v12  ;;  %v2991_v8 = vadd.f32 %v2918_v2, %v2681_v24  ;;  %v3268_v19 = vpop.f32.mrf.mxu3 }
 0x50d   : > { %v2610_v15 = vpop.f32.mrf.mxu1 }
 0x50e   : > { %v3341_v23 = vadd.f32 %v3268_v19, %v2991_v8  ;;  %v2682_v63 = vadd.f32 %v2610_v15, %v6387_v0 }
 0x50f   : > { %v3590_v58 = vpop.f32.mrf.mxu0 }
 0x510   : > { %v3661_v20 = vadd.f32 %v3588_v49, %v3341_v23 }
 0x512   : > { %v3725_v18 = vadd.f32 %v3724_v35, %v3661_v20  ;;  %v3798_v13 = vmul.f32 %v3661_v20, %v3661_v20 }
 0x513   : > { %v2920_v36 = vpop.f32.mrf.mxu2 }
 0x514   : > { %v3861_v43 = vadd.f32 %v3860_v54, %v3798_v13  ;;  %v2992_v44 = vadd.f32 %v2920_v36, %v2682_v63  ;;  %v3270_v50 = vpop.f32.mrf.mxu3  ;;  %v3667_v36 = vld [vmem:[%s4780_s22] sm:$0x1] }
 0x515   : > { %v2613_v28 = vpop.f32.mrf.mxu1 }
 0x516   : > { %v3342_v16 = vadd.f32 %v3270_v50, %v2992_v44  ;;  %v2683_v33 = vadd.f32 %v2613_v28, %v6388_v37  ;;  %v3739_v50 = vld [vmem:[%s4785_s25] sm:$0x1] }
 0x517   : > { %v3593_v25 = vpop.f32.mrf.mxu0 }
 0x518   : > { %v3662_v10 = vadd.f32 %v3590_v58, %v3342_v16 }
 0x51a   : > { %v3726_v1 = vadd.f32 %v3725_v18, %v3662_v10  ;;  %v3799_v55 = vmul.f32 %v3662_v10, %v3662_v10 }
 0x51b   : > { %v2923_v22 = vpop.f32.mrf.mxu2 }
 0x51c   : > { %v3862_v38 = vadd.f32 %v3861_v43, %v3799_v55  ;;  %v2993_v59 = vadd.f32 %v2923_v22, %v2683_v33  ;;  %v3273_v14 = vpop.f32.mrf.mxu3 }
 0x51d   : > { %v2615_v62 = vpop.f32.mrf.mxu1 }
 0x51e   : > { %v3343_v45 = vadd.f32 %v3273_v14, %v2993_v59  ;;  %v2684_v3 = vadd.f32 %v2615_v62, %v6389_v40 }
 0x51f   : > { %v3595_v26 = vpop.f32.mrf.mxu0 }
 0x520   : > { %v3663_v60 = vadd.f32 %v3593_v25, %v3343_v45 }
 0x522   : > { %v3727_v61 = vadd.f32 %v3726_v1, %v3663_v60  ;;  %v3800_v31 = vmul.f32 %v3663_v60, %v3663_v60 }
 0x523   : > { %v2925_v42 = vpop.f32.mrf.mxu2 }
 0x524   : > { %v3863_v27 = vadd.f32 %v3862_v38, %v3800_v31  ;;  %v2994_v9 = vadd.f32 %v2925_v42, %v2684_v3  ;;  %v3275_v29 = vpop.f32.mrf.mxu3 }
 0x525   : > { %v2618_v21 = vpop.f32.mrf.mxu1 }
 0x526   : > { %v3344_v32 = vadd.f32 %v3275_v29, %v2994_v9  ;;  %v2685_v51 = vadd.f32 %v2618_v21, %v5973_v6 }
 0x527   : > { %v3598_v53 = vpop.f32.mrf.mxu0 }
 0x528   : > { %v3664_v52 = vadd.f32 %v3595_v26, %v3344_v32 }
 0x52a   : > { %v3728_v57 = vadd.f32 %v3727_v61, %v3664_v52  ;;  %v3801_v7 = vmul.f32 %v3664_v52, %v3664_v52 }
 0x52b   : > { %v2928_v17 = vpop.f32.mrf.mxu2 }
 0x52c   : > { %v3864_v11 = vadd.f32 %v3863_v27, %v3801_v7  ;;  %v2995_v46 = vadd.f32 %v2928_v17, %v2685_v51  ;;  %v3278_v56 = vpop.f32.mrf.mxu3 }
 0x52d   : > { %v2620_v4 = vpop.f32.mrf.mxu1 }
 0x52e   : > { %v3345_v39 = vadd.f32 %v3278_v56, %v2995_v46  ;;  %v2686_v49 = vadd.f32 %v2620_v4, %v5978_v30 }
 0x52f   : > { %v3600_v2 = vpop.f32.mrf.mxu0 }
 0x530   : > { %v3665_v5 = vadd.f32 %v3598_v53, %v3345_v39 }
 0x532   : > { %v3729_v48 = vadd.f32 %v3728_v57, %v3665_v5  ;;  %v3802_v34 = vmul.f32 %v3665_v5, %v3665_v5 }
 0x533   : > { %v2930_v41 = vpop.f32.mrf.mxu2 }
 0x534   : > { %v3865_v35 = vadd.f32 %v3864_v11, %v3802_v34  ;;  %v2996_v12 = vadd.f32 %v2930_v41, %v2686_v49  ;;  %v3280_v47 = vpop.f32.mrf.mxu3 }
 0x536   : > { %v3346_v24 = vadd.f32 %v3280_v47, %v2996_v12 }
 0x538   : > { %v3666_v6 = vadd.f32 %v3600_v2, %v3346_v24 }
 0x53a   : > { %v3730_v54 = vadd.f32 %v3729_v48, %v3666_v6  ;;  %v3803_v8 = vmul.f32 %v3666_v6, %v3666_v6 }
 0x53c   : > { %v3731_v19 = vrot.slane %v3730_v54, 4  ;;  %v3866_v15 = vadd.f32 %v3865_v35, %v3803_v8 }
 0x53e   : > { %v3732_v23 = vadd.f32 %v3731_v19, %v3730_v54  ;;  %v3867_v58 = vrot.slane %v3866_v15, 4 }
 0x540   : > { %v3733_v20 = vrot.slane %v3732_v23, 2  ;;  %v3868_v18 = vadd.f32 %v3867_v58, %v3866_v15 }
 0x542   : > { %v3734_v30 = vadd.f32 %v3733_v20, %v3732_v23  ;;  %v3869_v13 = vrot.slane %v3868_v18, 2 }
 0x544   : > { %v3735_v0 = vrot.slane %v3734_v30, 1  ;;  %v3870_v63 = vadd.f32 %v3869_v13, %v3868_v18 }
 0x546   : > { %v3736_v43 = vadd.f32 %v3735_v0, %v3734_v30  ;;  %v3871_v44 = vrot.slane %v3870_v63, 1 }
 0x548   : > { %v3737_v28 = vadd.f32 %v3736_v43, %v3667_v36  ;;  %v3872_v16 = vadd.f32 %v3871_v44, %v3870_v63 }
 0x54a   : > { %3738 = vst [vmem:[%s4780_s22] sm:$0x1] %v3737_v28  ;;  %v3873_v10 = vadd.f32 %v3872_v16, %v3739_v50 }
 0x54c   : > { %3874 = vst [vmem:[%s4785_s25] sm:$0x1] %v3873_v10 }
 0x54d PF: > { %s14_s16 = sadd.s32 1, %s4722_s16   ;;  %s6390_s12 = smov %s4714_s14 }
 0x54e   : > { %p11_p7 = scmp.ge.s32.totalorder %s14_s16, 6   ;;  %s6391_s13 = smov %s4718_s15 }
 0x54f   : > { %s6392_s14 = smov %s6395_s17  ;;  %s6393_s15 = smov %s6399_s18 }
 0x550   :  { %13 = sbr.rel (!%p11_p7) target bundleno = 3 (0x3), region = 83 }

// kernel: up_conv_forward.3
= control target key start
LH: loop header
LB: loop body
LE: loop exit
PB: predicated region body
PF: predicated region fallthrough
CT: control target
= control target key end

     0   :  { %s4847_s15 = smov 0   ;;  %s4849_s16 = smov 0   ;;  %s6494_s0 = inlined_call_operand.vmem [shape: bf16[2,18,34,128], index: 0, kind: input, shape index: {}]   ;;  %s6495_s1 = inlined_call_operand.vmem [shape: bf16[9,128,128], index: 1, kind: input, shape index: {}]   ;;  %s6496_s2 = inlined_call_operand.vmem [shape: f32[1,128], index: 2, kind: input, shape index: {}]   ;;  %s6497_s3 = inlined_call_operand.vmem [shape: f32[1,128], index: 3, kind: input, shape index: {}]   ;;  %s6498_s4 = inlined_call_operand.vmem [shape: f32[2,32,32,128], index: 4, kind: output, shape index: {}]  }
   0x1   :  { %s4851_s17 = smov 0   ;;  %s4853_s18 = smov 0  }
   0x2   :  { %s4855_s19 = smov 0  }
   0x3 LB: > { %s23_s20 = sadd.s32 1, %s4812_s17  ;;  %s26_s21 = sadd.s32 1, %s4816_s18  ;;  %s4820_s19 = sphi %s4855_s19, %s14_s19   ;;  %s4816_s18 = sphi %s4853_s18, %s6704_s18   ;;  %s4812_s17 = sphi %s4851_s17, %s6703_s17   ;;  %s4808_s16 = sphi %s4849_s16, %s6702_s16   ;;  %s4804_s15 = sphi %s4847_s15, %s6701_s15  }
   0x4   : > { %p24_p0 = scmp.ge.s32.totalorder %s23_s20, 2  ;;  %p4056_p1 = scmp.ge.s32.totalorder %s4820_s19, 1 }
   0x5   : > { %p176_p2 = scmp.lt.s32.totalorder %s4820_s19, 5 }
   0x6   : > { %s6706_s20 = smov (%p24_p0, %s23_s20), 0  ;;  %s6708_s21 = smov (!%p24_p0, %s26_s21), %s4816_s18 }
   0x7   : > { %p177_p3 = pnand %p4056_p1, %p176_p2  ;;  %p28_p4 = scmp.ge.s32.totalorder %s6708_s21, 2 }
   0x9   : > { %s6710_s21 = smov (%p28_p4, %s6708_s21), 0  ;;  %180 = sbr.rel (%p177_p3) target bundleno = 1336 (0x538), region = 36 }
   0xe   : > { %v4609_v0 = vld [vmem:[%s6495_s1 + $0x78] sm:$0xff]  ;;  %p207_p5 = scmp.lt.s32.totalorder %s4808_s16, 1  ;;  %v4608_v1 = vld [vmem:[%s6495_s1 + $0x70] sm:$0xff]  ;;  %s4573_s26 = smul.u32 160, %s4804_s15  ;;  %v4607_v2 = vld [vmem:[%s6495_s1 + $0x68] sm:$0xff]  ;;  %v6529_v31 = vmov 0 }
   0xf   : > { %4666 = vmatpush.bf16.msra.mxu1 %v4609_v0  ;;  %4667 = vmatpush.bf16.msra.mxu2 %v4609_v0  ;;  %vm293_vm0 = vsmask.f32 3328  ;;  %vm294_vm1 = vsmask.f32 7440  ;;  %v4606_v3 = vld [vmem:[%s6495_s1 + $0x60] sm:$0xff]  ;;  %v4605_v30 = vld [vmem:[%s6495_s1 + $0x58] sm:$0xff] }
  0x10   : > { %s6712_s16 = smov (!%p207_p5, %s4808_s16), 1  ;;  %4668 = vmatpush.bf16.msra.mxu3 %v4609_v0  ;;  %829 = vmatpush.bf16.msra.mxu0 %v4609_v0  ;;  %vm4921_vm2 = vmor %vm293_vm0, %vm294_vm1  ;;  %v4604_v50 = vld [vmem:[%s6495_s1 + $0x50] sm:$0xff]  ;;  %vm1332_vm3 = vcmask 1042432   ;;  %vm1333_vm4 = vcmask 1046532  }
  0x11   : > { %s4690_s27 = smul.u32 360, %s6712_s16  ;;  %v6530_v31 = vsel %vm4921_vm2, 4294967295, %v6529_v31  ;;  %vm5311_vm5 = vmor %vm1332_vm3, %vm1333_vm4  ;;  %s4060_s28 = sshll.u32 %s6712_s16, 7 }
  0x12   : > { %6531 = vst [vmem:[#allocation2_spill] sm:$0xff] %v6530_v31 }
  0x13   : > { %4669 = vmatpush.bf16.msra.mxu1 %v4608_v1  ;;  %4670 = vmatpush.bf16.msra.mxu2 %v4608_v1  ;;  %s211_s6 = scalar_lea.vmem %s6494_s0, %s4690_s27  ;;  %s4058_s27 = sshll.u32 %s4804_s15, 4 }
  0x14   : > { %4671 = vmatpush.bf16.msra.mxu3 %v4608_v1  ;;  %830 = vmatpush.bf16.msra.mxu0 %v4608_v1  ;;  %s4895_s7 = scalar_lea.vmem %s211_s6, %s4573_s26  ;;  %p215_p6 = scmp.lt.s32.totalorder %s4058_s27, 31 }
  0x15   : > { %v237_v4 = vld [vmem:[%s4895_s7 + $0x28] sm:$0xf]  ;;  %v238_v5 = vld [vmem:[%s4895_s7 + $0x2c] sm:$0xf]  ;;  %v4903_v6 = vld [vmem:[%s4895_s7 + $0x30] sm:$0xf] }
  0x16   : > { %v385_v7 = vshrl.u32 %v237_v4, 16  ;;  %v388_v8 = vshll.u32 %v237_v4, 16  ;;  %v394_v9 = vshll.u32 %v238_v5, 16  ;;  %v398_v10 = vshrl.u32 %v238_v5, 16  ;;  %v247_v11 = vld [vmem:[%s4895_s7 + $0x50] sm:$0xf] }
  0x17   : > { %4672 = vmatpush.bf16.msra.mxu1 %v4607_v2  ;;  %4673 = vmatpush.bf16.msra.mxu2 %v4607_v2  ;;  %v404_v12 = vshll.u32 %v4903_v6, 16  ;;  %v248_v13 = vld [vmem:[%s4895_s7 + $0x54] sm:$0xf]  ;;  %v4909_v14 = vld [vmem:[%s4895_s7 + $0x58] sm:$0xf]  ;;  %v473_v15 = vshrl.u32 %v247_v11, 16 }
  0x18   : > { %4674 = vmatpush.bf16.msra.mxu3 %v4607_v2  ;;  %831 = vmatpush.bf16.msra.mxu0 %v4607_v2  ;;  %v387_v16 = vrot.slane %v385_v7, 4  ;;  %v390_v17 = vrot.slane %v388_v8, 5  ;;  %v396_v18 = vrot.slane %v394_v9, 5  ;;  %v400_v19 = vrot.slane %v398_v10, 4  ;;  %v257_v20 = vld [vmem:[%s4895_s7 + $0x78] sm:$0xf] }
  0x19   : > { %v4912_v21 = vrot.slane %v404_v12, 5  ;;  %v475_v22 = vrot.slane %v473_v15, 4  ;;  %v476_v23 = vshll.u32 %v247_v11, 16  ;;  %v482_v24 = vshll.u32 %v248_v13, 16  ;;  %v258_v29 = vld [vmem:[%s4895_s7 + $0x7c] sm:$0xf] }
  0x1a   : > { %v391_v25 = vor.u32 %v390_v17, %v387_v16  ;;  %v401_v26 = vor.u32 %v400_v19, %v396_v18  ;;  %v486_v27 = vshrl.u32 %v248_v13, 16  ;;  %v492_v28 = vshll.u32 %v4909_v14, 16  ;;  %v4928_v41 = vld [vmem:[%s4895_s7 + $0x80] sm:$0xf]  ;;  %v4947_v62 = vld [vmem:[%s4895_s7 + $0x4] sm:$0xf] }
  0x1b   : > { %4675 = vmatpush.bf16.msra.mxu1 %v4606_v3  ;;  %4676 = vmatpush.bf16.msra.mxu2 %v4606_v3  ;;  %v478_v32 = vrot.slane %v476_v23, 5  ;;  %v484_v33 = vrot.slane %v482_v24, 5  ;;  %v561_v34 = vshrl.u32 %v257_v20, 16  ;;  %v564_v35 = vshll.u32 %v257_v20, 16  ;;  %v4936_v49 = vld [vmem:[%s4895_s7] sm:$0xf] }
  0x1c   : > { %4677 = vmatpush.bf16.msra.mxu3 %v4606_v3  ;;  %832 = vmatpush.bf16.msra.mxu0 %v4606_v3  ;;  %v392_v36 = vrot.slane %v391_v25, 4  ;;  %v402_v37 = vrot.slane %v401_v26, 4  ;;  %v488_v38 = vrot.slane %v486_v27, 4  ;;  %v4925_v39 = vrot.slane %v492_v28, 5  ;;  %v4956_v4 = vld [vmem:[%s4895_s7 + $0x8] sm:$0xf] }
  0x1d   : > { %v479_v40 = vor.u32 %v478_v32, %v475_v22  ;;  %v563_v42 = vrot.slane %v561_v34, 4  ;;  %v566_v43 = vrot.slane %v564_v35, 5  ;;  %v570_v44 = vshll.u32 %v258_v29, 16  ;;  %v4603_v5 = vld [vmem:[%s6495_s1 + $0x48] sm:$0xff]  ;;  %v240_v11 = vld [vmem:[%s4895_s7 + $0x34] sm:$0xf] }
  0x1e   : > { %v397_v45 = vsel %vm4921_vm2, %v392_v36, %v396_v18  ;;  %v407_v46 = vsel %vm4921_vm2, %v402_v37, %v4912_v21  ;;  %v489_v47 = vor.u32 %v488_v38, %v484_v33  ;;  %v574_v48 = vshrl.u32 %v258_v29, 16  ;;  %v241_v20 = vld [vmem:[%s4895_s7 + $0x38] sm:$0x1]  ;;  %v4602_v27 = vld [vmem:[%s6495_s1 + $0x40] sm:$0xff]  ;;  %s6714_s27 = smov (!%p215_p6, %s4058_s27), 31 }
  0x1f   : > { %4678 = vmatpush.bf16.msra.mxu1 %v4605_v30  ;;  %4679 = vmatpush.bf16.msra.mxu2 %v4605_v30  ;;  %v717_v51 = vunpack.c.l.b16 %v397_v45  ;;  %v718_v52 = vunpack.c.l.b16 %v407_v46  ;;  %v480_v53 = vrot.slane %v479_v40, 4  ;;  %v567_v54 = vor.u32 %v566_v43, %v563_v42  ;;  %v4617_v38 = vld [vmem:[%s6495_s1 + $0xb8] sm:$0xff]  ;;  %s4059_s15 = sshll.u32 %s6714_s27, 2 }
  0x20   : > { %4680 = vmatpush.bf16.msra.mxu3 %v4605_v30  ;;  %833 = vmatpush.bf16.msra.mxu0 %v4605_v30  ;;  %v490_v55 = vrot.slane %v489_v47, 4  ;;  %v572_v56 = vrot.slane %v570_v44, 5  ;;  %v576_v57 = vrot.slane %v574_v48, 4  ;;  %v580_v58 = vshll.u32 %v4928_v41, 16  ;;  %v4625_v42 = vld [vmem:[%s6495_s1 + $0xf8] sm:$0xff]  ;;  %s219_s5 = sadd.s32 %s4060_s28, %s4059_s15 }
  0x21   : > { %v4942_v59 = vpack.c.b16 %v718_v52, %v717_v51  ;;  %v485_v60 = vsel %vm4921_vm2, %v480_v53, %v484_v33  ;;  %v568_v61 = vrot.slane %v567_v54, 4  ;;  %v297_v63 = vshrl.u32 %v4936_v49, 16  ;;  %v250_v33 = vld [vmem:[%s4895_s7 + $0x5c] sm:$0xf]  ;;  %v251_v53 = vld [vmem:[%s4895_s7 + $0x60] sm:$0x1] }
  0x22   : > { %v495_v0 = vsel %vm4921_vm2, %v490_v55, %v4925_v39  ;;  %v725_v1 = vunpack.c.l.b16 %v485_v60  ;;  %v577_v2 = vor.u32 %v576_v57, %v572_v56  ;;  %v4953_v3 = vrot.slane %v580_v58, 5  ;;  %v4601_v51 = vld [vmem:[%s6495_s1 + $0x38] sm:$0xff]  ;;  %v260_v60 = vld [vmem:[%s4895_s7 + $0x84] sm:$0xf]  ;;  %s4061_s16 = sshll.u32 %s219_s5, 3 }
  0x23   : > { %6532 = vst [vmem:[#allocation3_spill] sm:$0xff] %v4942_v59  ;;  %4681 = vmatpush.bf16.msra.mxu1 %v4604_v50  ;;  %4682 = vmatpush.bf16.msra.mxu2 %v4604_v50  ;;  %v726_v7 = vunpack.c.l.b16 %v495_v0  ;;  %v573_v8 = vsel %vm4921_vm2, %v568_v61, %v572_v56  ;;  %v299_v9 = vrot.slane %v297_v63, 4  ;;  %v300_v10 = vshll.u32 %v4936_v49, 16  ;;  %v4633_v56 = vld [vmem:[%s6495_s1 + $0x138] sm:$0xff]  ;;  %s6093_s11 = scalar_lea.vmem %s6498_s4, %s4061_s16 }
  0x24   : > { %4683 = vmatpush.bf16.msra.mxu3 %v4604_v50  ;;  %834 = vmatpush.bf16.msra.mxu0 %v4604_v50  ;;  %v578_v12 = vrot.slane %v577_v2, 4  ;;  %v733_v13 = vunpack.c.l.b16 %v573_v8  ;;  %v306_v15 = vshll.u32 %v4947_v62, 16  ;;  %v310_v16 = vshrl.u32 %v4947_v62, 16  ;;  %v4616_v2 = vld [vmem:[%s6495_s1 + $0xb0] sm:$0xff] }
  0x25   : > { %v4967_v17 = vpack.c.b16 %v726_v7, %v725_v1  ;;  %v302_v18 = vrot.slane %v300_v10, 5  ;;  %v316_v19 = vshll.u32 %v4956_v4, 16  ;;  %v408_v22 = vshrl.u32 %v4903_v6, 16  ;;  %v4624_v10 = vld [vmem:[%s6495_s1 + $0xf0] sm:$0xff] }
  0x26   : > { %v583_v23 = vsel %vm4921_vm2, %v578_v12, %v4953_v3  ;;  %v308_v24 = vrot.slane %v306_v15, 5  ;;  %v312_v25 = vrot.slane %v310_v16, 4  ;;  %v414_v26 = vshll.u32 %v240_v11, 16  ;;  %v4600_v16 = vld [vmem:[%s6495_s1 + $0x30] sm:$0xff] }
  0x27   : > { %4684 = vmatpush.bf16.msra.mxu1 %v4603_v5  ;;  %4685 = vmatpush.bf16.msra.mxu2 %v4603_v5  ;;  %v734_v28 = vunpack.c.l.b16 %v583_v23  ;;  %v303_v29 = vor.u32 %v302_v18, %v299_v9  ;;  %v4978_v30 = vrot.slane %v316_v19, 5  ;;  %v410_v32 = vrot.slane %v408_v22, 4  ;;  %v5024_v22 = vld [vmem:[%s4895_s7 + $0xc] sm:$0xf]  ;;  %v4632_v23 = vld [vmem:[%s6495_s1 + $0x130] sm:$0xff] }
  0x28   : > { %4686 = vmatpush.bf16.msra.mxu3 %v4603_v5  ;;  %835 = vmatpush.bf16.msra.mxu0 %v4603_v5  ;;  %v313_v6 = vor.u32 %v312_v25, %v308_v24  ;;  %v416_v34 = vrot.slane %v414_v26, 5  ;;  %v418_v35 = vshrl.u32 %v240_v11, 16  ;;  %v424_v36 = vshll.u32 %v241_v20, 16 }
  0x29   : > { %v4981_v37 = vpack.c.b16 %v734_v28, %v733_v13  ;;  %v304_v40 = vrot.slane %v303_v29, 4  ;;  %v411_v43 = vor.u32 %v410_v32, %v4912_v21  ;;  %v496_v44 = vshrl.u32 %v4909_v14, 16  ;;  %v261_v13 = vld [vmem:[%s4895_s7 + $0x88] sm:$0x1] }
  0x2a   : > { %v314_v45 = vrot.slane %v313_v6, 4  ;;  %v420_v46 = vrot.slane %v418_v35, 4  ;;  %v426_v47 = vrot.slane %v424_v36, 5  ;;  %v502_v48 = vshll.u32 %v250_v33, 16  ;;  %v4615_v28 = vld [vmem:[%s6495_s1 + $0xa8] sm:$0xff] }
  0x2b   : > { %4687 = vmatpush.bf16.msra.mxu1 %v4602_v27  ;;  %4688 = vmatpush.bf16.msra.mxu2 %v4602_v27  ;;  %v309_v50 = vsel %vm4921_vm2, %v304_v40, %v308_v24  ;;  %v412_v52 = vrot.slane %v411_v43, 4  ;;  %v498_v54 = vrot.slane %v496_v44, 4  ;;  %v506_v21 = vshrl.u32 %v250_v33, 16 }
  0x2c   : > { %4689 = vmatpush.bf16.msra.mxu3 %v4602_v27  ;;  %836 = vmatpush.bf16.msra.mxu0 %v4602_v27  ;;  %v319_v14 = vsel %vm4921_vm2, %v314_v45, %v4978_v30  ;;  %v709_v55 = vunpack.c.l.b16 %v309_v50  ;;  %v421_v57 = vor.u32 %v420_v46, %v416_v34  ;;  %v504_v58 = vrot.slane %v502_v48, 5  ;;  %v4623_v46 = vld [vmem:[%s6495_s1 + $0xe8] sm:$0xff] }
  0x2d   : > { %v710_v61 = vunpack.c.l.b16 %v319_v14  ;;  %v417_v63 = vsel %vm4921_vm2, %v412_v52, %v416_v34  ;;  %v499_v0 = vor.u32 %v498_v54, %v4925_v39  ;;  %v508_v1 = vrot.slane %v506_v21, 4  ;;  %v5036_v34 = vld [vmem:[%s4895_s7 + $0x10] sm:$0x1]  ;;  %v4631_v48 = vld [vmem:[%s6495_s1 + $0x128] sm:$0xff]  ;;  %v5057_v54 = vld [vmem:[%s4895_s7 + $0x40] sm:$0xf] }
  0x2e   : > { %877 = vmatmul.bf16.vlgmr.msra.gmra.mxu1 %v4942_v59  ;;  %917 = vmatmul.bf16.vlgmr.msra.gmra.mxu2 %v4967_v17  ;;  %v422_v5 = vrot.slane %v421_v57, 4  ;;  %v719_v7 = vunpack.c.l.b16 %v417_v63  ;;  %v512_v8 = vshll.u32 %v251_v53, 16  ;;  %v584_v9 = vshrl.u32 %v4928_v41, 16  ;;  %v5065_v63 = vld [vmem:[%s4895_s7 + $0x44] sm:$0xf] }
  0x2f   : > { %1589 = vmatpush.bf16.msrb.mxu2 %v4617_v38  ;;  %957 = vmatmul.bf16.vlgmr.msra.gmra.mxu3 %v4981_v37  ;;  %v745_v39 = vpack.c.b16 %v710_v61, %v709_v55  ;;  %v500_v11 = vrot.slane %v499_v0, 4  ;;  %v509_v12 = vor.u32 %v508_v1, %v504_v58  ;;  %v590_v15 = vshll.u32 %v260_v60, 16  ;;  %v252_v0 = vld [vmem:[%s4895_s7 + $0x64] sm:$0xf] }
  0x30   : > { %1887 = vmatpush.bf16.msrb.mxu3 %v4625_v42  ;;  %1154 = vmatpush.bf16.msrb.mxu1 %v4601_v51  ;;  %v427_v41 = vsel %vm4921_vm2, %v422_v5, %v426_v47  ;;  %v514_v18 = vrot.slane %v512_v8, 5  ;;  %v586_v19 = vrot.slane %v584_v9, 4  ;;  %v594_v20 = vshrl.u32 %v260_v60, 16  ;;  %v242_v42 = vld [vmem:[%s4895_s7 + $0x3c] sm:$0xf]  ;;  %v4599_v47 = vld [vmem:[%s6495_s1 + $0x28] sm:$0xff] }
  0x31   : > { %2185 = vmatpush.bf16.msrb.mxu0 %v4633_v56  ;;  %v720_v24 = vunpack.c.l.b16 %v427_v41  ;;  %v505_v25 = vsel %vm4921_vm2, %v500_v11, %v504_v58  ;;  %v510_v26 = vrot.slane %v509_v12, 4  ;;  %v592_v27 = vrot.slane %v590_v15, 5 }
  0x32   : > { %837 = vmatmul.bf16.vlgmr.msra.gmra.mxu0 %v745_v39  ;;  %v727_v29 = vunpack.c.l.b16 %v505_v25  ;;  %v587_v32 = vor.u32 %v586_v19, %v4953_v3  ;;  %v596_v33 = vrot.slane %v594_v20, 4  ;;  %v600_v6 = vshll.u32 %v261_v13, 16  ;;  %v253_v13 = vld [vmem:[%s4895_s7 + $0x68] sm:$0xf]  ;;  %v5079_v20 = vld [vmem:[%s4895_s7 + $0x6c] sm:$0xf] }
  0x33   : > { %1590 = vmatpush.bf16.msrb.mxu2 %v4616_v2  ;;  %v5038_v35 = vpack.c.b16 %v720_v24, %v719_v7  ;;  %v515_v36 = vsel %vm4921_vm2, %v510_v26, %v514_v18  ;;  %v320_v38 = vshrl.u32 %v4956_v4, 16  ;;  %v326_v40 = vshll.u32 %v5024_v22, 16 }
  0x34   : > { %1888 = vmatpush.bf16.msrb.mxu3 %v4624_v10  ;;  %1155 = vmatpush.bf16.msrb.mxu1 %v4600_v16  ;;  %v728_v43 = vunpack.c.l.b16 %v515_v36  ;;  %v588_v44 = vrot.slane %v587_v32, 4  ;;  %v597_v3 = vor.u32 %v596_v33, %v592_v27  ;;  %v602_v45 = vrot.slane %v600_v6, 5 }
  0x35   : > { %6533 = vst [vmem:[#allocation4_spill] sm:$0xff] %v5038_v35  ;;  %2186 = vmatpush.bf16.msrb.mxu0 %v4632_v23  ;;  %v322_v50 = vrot.slane %v320_v38, 4  ;;  %v328_v51 = vrot.slane %v326_v40, 5  ;;  %v330_v52 = vshrl.u32 %v5024_v22, 16  ;;  %v336_v53 = vshll.u32 %v5036_v34, 16 }
  0x36   : > { %v5059_v21 = vpack.c.b16 %v728_v43, %v727_v29  ;;  %v593_v14 = vsel %vm4921_vm2, %v588_v44, %v592_v27  ;;  %v598_v55 = vrot.slane %v597_v3, 4  ;;  %v429_v56 = vshrl.u32 %v242_v42, 16  ;;  %v262_v27 = vld [vmem:[%s4895_s7 + $0x8c] sm:$0xf]  ;;  %v263_v3 = vld [vmem:[%s4895_s7 + $0x90] sm:$0xf] }
  0x37   : > { %1591 = vmatpush.bf16.msrb.mxu2 %v4615_v28  ;;  %v735_v57 = vunpack.c.l.b16 %v593_v14  ;;  %v323_v58 = vor.u32 %v322_v50, %v4978_v30  ;;  %v332_v60 = vrot.slane %v330_v52, 4  ;;  %v338_v61 = vrot.slane %v336_v53, 5  ;;  %v5099_v52 = vld [vmem:[%s4895_s7 + $0x14] sm:$0xf] }
  0x38   : > { %1889 = vmatpush.bf16.msrb.mxu3 %v4623_v46  ;;  %1156 = vmatpush.bf16.msrb.mxu1 %v4599_v47  ;;  %v603_v1 = vsel %vm4921_vm2, %v598_v55, %v602_v45  ;;  %v431_v2 = vrot.slane %v429_v56, 4  ;;  %v432_v5 = vshll.u32 %v242_v42, 16  ;;  %v438_v7 = vshll.u32 %v5057_v54, 16 }
  0x39   : > { %2187 = vmatpush.bf16.msrb.mxu0 %v4631_v48  ;;  %v736_v8 = vunpack.c.l.b16 %v603_v1  ;;  %v324_v9 = vrot.slane %v323_v58, 4  ;;  %v333_v10 = vor.u32 %v332_v60, %v328_v51  ;;  %v442_v30 = vshrl.u32 %v5057_v54, 16 }
  0x3a   : > { %v434_v39 = vrot.slane %v432_v5, 5  ;;  %v440_v11 = vrot.slane %v438_v7, 5  ;;  %v448_v12 = vshll.u32 %v5065_v63, 16  ;;  %v517_v15 = vshrl.u32 %v252_v0, 16  ;;  %v5109_v7 = vld [vmem:[%s4895_s7 + $0x18] sm:$0xf] }
  0x3b   : > { %v5074_v16 = vpack.c.b16 %v736_v8, %v735_v57  ;;  %v329_v41 = vsel %vm4921_vm2, %v324_v9, %v328_v51  ;;  %v334_v18 = vrot.slane %v333_v10, 4  ;;  %v444_v19 = vrot.slane %v442_v30, 4  ;;  %v5096_v51 = vld [vmem:[%s4895_s7 + $0x94] sm:$0xf]  ;;  %v4614_v57 = vld [vmem:[%s6495_s1 + $0xa0] sm:$0xff] }
  0x3c   : > { %v711_v23 = vunpack.c.l.b16 %v329_v41  ;;  %v435_v24 = vor.u32 %v434_v39, %v431_v2  ;;  %v5081_v25 = vrot.slane %v448_v12, 5  ;;  %v519_v26 = vrot.slane %v517_v15, 4  ;;  %1592 = vmatpush.bf16.msrb.mxu2 %v4614_v57 }
  0x3d   : > { %v339_v28 = vsel %vm4921_vm2, %v334_v18, %v338_v61  ;;  %v445_v29 = vor.u32 %v444_v19, %v440_v11  ;;  %v520_v32 = vshll.u32 %v252_v0, 16  ;;  %v526_v33 = vshll.u32 %v253_v13, 16  ;;  %v4622_v18 = vld [vmem:[%s6495_s1 + $0xe0] sm:$0xff] }
  0x3e   : > { %882 = vmatmul.bf16.gmra.mxu1 %v5038_v35  ;;  %922 = vmatmul.bf16.gmra.mxu2 %v5059_v21  ;;  %v712_v6 = vunpack.c.l.b16 %v339_v28  ;;  %v436_v36 = vrot.slane %v435_v24, 4  ;;  %v530_v38 = vshrl.u32 %v253_v13, 16  ;;  %v536_v40 = vshll.u32 %v5079_v20, 16  ;;  %v4598_v19 = vld [vmem:[%s6495_s1 + $0x20] sm:$0xff] }
  0x3f   : > { %962 = vmatmul.bf16.gmra.mxu3 %v5074_v16  ;;  %v446_v42 = vrot.slane %v445_v29, 4  ;;  %v522_v43 = vrot.slane %v520_v32, 5  ;;  %v528_v44 = vrot.slane %v526_v33, 5  ;;  %v605_v45 = vshrl.u32 %v262_v27, 16  ;;  %1157 = vmatpush.bf16.msrb.mxu1 %v4598_v19 }
  0x40   : > { %v746_v46 = vpack.c.b16 %v712_v6, %v711_v23  ;;  %v441_v47 = vsel %vm4921_vm2, %v436_v36, %v440_v11  ;;  %v532_v48 = vrot.slane %v530_v38, 4  ;;  %v5093_v50 = vrot.slane %v536_v40, 5  ;;  %v5115_v11 = vld [vmem:[%s4895_s7 + $0x1c] sm:$0xf]  ;;  %v4630_v23 = vld [vmem:[%s6495_s1 + $0x120] sm:$0xff]  ;;  %1890 = vmatpush.bf16.msrb.mxu3 %v4622_v18 }
  0x41   : > { %v451_v53 = vsel %vm4921_vm2, %v446_v42, %v5081_v25  ;;  %v721_v14 = vunpack.c.l.b16 %v441_v47  ;;  %v523_v55 = vor.u32 %v522_v43, %v519_v26  ;;  %v607_v56 = vrot.slane %v605_v45, 4  ;;  %v5138_v42 = vld [vmem:[%s4895_s7 + $0x48] sm:$0xf]  ;;  %2188 = vmatpush.bf16.msrb.mxu0 %v4630_v23  ;;  %v256_v18 = vld [vmem:[%s4895_s7 + $0x74] sm:$0x1] }
  0x42   : > { %842 = vmatmul.bf16.gmra.mxu0 %v746_v46  ;;  %v722_v58 = vunpack.c.l.b16 %v451_v53  ;;  %v533_v60 = vor.u32 %v532_v48, %v528_v44  ;;  %v608_v61 = vshll.u32 %v262_v27, 16  ;;  %v614_v0 = vshll.u32 %v263_v3, 16 }
  0x43   : > { %v524_v1 = vrot.slane %v523_v55, 4  ;;  %v618_v2 = vshrl.u32 %v263_v3, 16  ;;  %v624_v5 = vshll.u32 %v5096_v51, 16  ;;  %v341_v8 = vshrl.u32 %v5099_v52, 16 }
  0x44   : > { %v5112_v9 = vpack.c.b16 %v722_v58, %v721_v14  ;;  %v534_v10 = vrot.slane %v533_v60, 4  ;;  %v610_v30 = vrot.slane %v608_v61, 5  ;;  %v616_v39 = vrot.slane %v614_v0, 5  ;;  %v5148_v14 = vld [vmem:[%s4895_s7 + $0x4c] sm:$0x1] }
  0x45   : > { %v529_v12 = vsel %vm4921_vm2, %v524_v1, %v528_v44  ;;  %v620_v13 = vrot.slane %v618_v2, 4  ;;  %v5119_v15 = vrot.slane %v624_v5, 5  ;;  %v343_v41 = vrot.slane %v341_v8, 4 }
  0x46   : > { %v539_v24 = vsel %vm4921_vm2, %v534_v10, %v5093_v50  ;;  %v729_v26 = vunpack.c.l.b16 %v529_v12  ;;  %v611_v27 = vor.u32 %v610_v30, %v607_v56  ;;  %v344_v28 = vshll.u32 %v5099_v52, 16  ;;  %v255_v30 = vld [vmem:[%s4895_s7 + $0x70] sm:$0xf] }
  0x47   : > { %v730_v29 = vunpack.c.l.b16 %v539_v24  ;;  %v621_v32 = vor.u32 %v620_v13, %v616_v39  ;;  %v350_v33 = vshll.u32 %v5109_v7, 16  ;;  %v354_v6 = vshrl.u32 %v5109_v7, 16 }
  0x48   : > { %v612_v36 = vrot.slane %v611_v27, 4  ;;  %v346_v38 = vrot.slane %v344_v28, 5  ;;  %v360_v40 = vshll.u32 %v5115_v11, 16  ;;  %v452_v43 = vshrl.u32 %v5065_v63, 16 }
  0x49   : > { %v5141_v44 = vpack.c.b16 %v730_v29, %v729_v26  ;;  %v622_v3 = vrot.slane %v621_v32, 4  ;;  %v352_v45 = vrot.slane %v350_v33, 5  ;;  %v356_v46 = vrot.slane %v354_v6, 4  ;;  %v265_v32 = vld [vmem:[%s4895_s7 + $0x98] sm:$0xf] }
  0x4a   : > { %v617_v47 = vsel %vm4921_vm2, %v612_v36, %v616_v39  ;;  %v347_v48 = vor.u32 %v346_v38, %v343_v41  ;;  %v5145_v53 = vrot.slane %v360_v40, 5  ;;  %v454_v55 = vrot.slane %v452_v43, 4  ;;  %v266_v40 = vld [vmem:[%s4895_s7 + $0x9c] sm:$0x1] }
  0x4b   : > { %v627_v56 = vsel %vm4921_vm2, %v622_v3, %v5119_v15  ;;  %v737_v57 = vunpack.c.l.b16 %v617_v47  ;;  %v357_v58 = vor.u32 %v356_v46, %v352_v45  ;;  %v458_v60 = vshll.u32 %v5138_v42, 16  ;;  %v4613_v43 = vld [vmem:[%s6495_s1 + $0x98] sm:$0xff] }
  0x4c   : > { %v738_v61 = vunpack.c.l.b16 %v627_v56  ;;  %v348_v0 = vrot.slane %v347_v48, 4  ;;  %v455_v1 = vor.u32 %v454_v55, %v5081_v25  ;;  %v462_v2 = vshrl.u32 %v5138_v42, 16  ;;  %1593 = vmatpush.bf16.msrb.mxu2 %v4613_v43 }
  0x4d   : > { %v358_v5 = vrot.slane %v357_v58, 4  ;;  %v460_v8 = vrot.slane %v458_v60, 5  ;;  %v468_v10 = vshll.u32 %v5148_v14, 16  ;;  %v540_v39 = vshrl.u32 %v5079_v20, 16  ;;  %v5182_v58 = vld [vmem:[%s4895_s7 + $0x20] sm:$0xf] }
  0x4e   : > { %887 = vmatmul.bf16.gmra.mxu1 %v5112_v9  ;;  %927 = vmatmul.bf16.gmra.mxu2 %v5141_v44  ;;  %v5161_v12 = vpack.c.b16 %v738_v61, %v737_v57  ;;  %v353_v13 = vsel %vm4921_vm2, %v348_v0, %v352_v45  ;;  %v456_v25 = vrot.slane %v455_v1, 4  ;;  %v464_v41 = vrot.slane %v462_v2, 4  ;;  %v5188_v1 = vld [vmem:[%s4895_s7 + $0x24] sm:$0x1] }
  0x4f   : > { %v363_v19 = vsel %vm4921_vm2, %v358_v5, %v5145_v53  ;;  %v713_v23 = vunpack.c.l.b16 %v353_v13  ;;  %v470_v20 = vrot.slane %v468_v10, 5  ;;  %v542_v24 = vrot.slane %v540_v39, 4  ;;  %v4621_v10 = vld [vmem:[%s6495_s1 + $0xd8] sm:$0xff] }
  0x50   : > { %6534 = vst [vmem:[#allocation5_spill] sm:$0xff] %v5161_v12  ;;  %967 = vmatmul.bf16.gmra.mxu3 %v5161_v12  ;;  %v714_v26 = vunpack.c.l.b16 %v363_v19  ;;  %v461_v27 = vsel %vm4921_vm2, %v456_v25, %v460_v8  ;;  %v465_v28 = vor.u32 %v464_v41, %v460_v8  ;;  %v546_v29 = vshll.u32 %v255_v30, 16  ;;  %v4629_v39 = vld [vmem:[%s6495_s1 + $0x118] sm:$0xff] }
  0x51   : > { %v723_v33 = vunpack.c.l.b16 %v461_v27  ;;  %v543_v6 = vor.u32 %v542_v24, %v5093_v50  ;;  %v550_v36 = vshrl.u32 %v255_v30, 16  ;;  %v556_v38 = vshll.u32 %v256_v18, 16  ;;  %v4597_v30 = vld [vmem:[%s6495_s1 + $0x18] sm:$0xff]  ;;  %1891 = vmatpush.bf16.msrb.mxu3 %v4621_v10  ;;  %2189 = vmatpush.bf16.msrb.mxu0 %v4629_v39  ;;  %v4596_v10 = vld [vmem:[%s6495_s1 + $0x10] sm:$0xff]  ;;  %v4611_v39 = vld [vmem:[%s6495_s1 + $0x88] sm:$0xff] }
  0x52   : > { %v5178_v3 = vpack.c.b16 %v714_v26, %v713_v23  ;;  %v466_v45 = vrot.slane %v465_v28, 4  ;;  %v548_v46 = vrot.slane %v546_v29, 5  ;;  %v628_v47 = vshrl.u32 %v5096_v51, 16  ;;  %1158 = vmatpush.bf16.msrb.mxu1 %v4597_v30  ;;  %v4628_v30 = vld [vmem:[%s6495_s1 + $0x110] sm:$0xff] }
  0x53   : > { %v544_v48 = vrot.slane %v543_v6, 4  ;;  %v552_v55 = vrot.slane %v550_v36, 4  ;;  %v558_v56 = vrot.slane %v556_v38, 5  ;;  %v634_v57 = vshll.u32 %v265_v32, 16 }
  0x54   : > { %6535 = vst [vmem:[#allocation6_spill] sm:$0xff] %v5178_v3  ;;  %847 = vmatmul.bf16.gmra.mxu0 %v5178_v3  ;;  %v471_v50 = vsel %vm4921_vm2, %v466_v45, %v470_v20  ;;  %v630_v60 = vrot.slane %v628_v47, 4  ;;  %v638_v61 = vshrl.u32 %v265_v32, 16  ;;  %v644_v0 = vshll.u32 %v266_v40, 16 }
  0x55   : > { %v724_v2 = vunpack.c.l.b16 %v471_v50  ;;  %v549_v51 = vsel %vm4921_vm2, %v544_v48, %v548_v46  ;;  %v553_v5 = vor.u32 %v552_v55, %v548_v46  ;;  %v636_v8 = vrot.slane %v634_v57, 5  ;;  %2190 = vmatpush.bf16.msrb.mxu0 %v4628_v30 }
  0x56   : > { %v731_v13 = vunpack.c.l.b16 %v549_v51  ;;  %v631_v25 = vor.u32 %v630_v60, %v5119_v15  ;;  %v640_v41 = vrot.slane %v638_v61, 4  ;;  %v646_v19 = vrot.slane %v644_v0, 5  ;;  %v4612_v51 = vld [vmem:[%s6495_s1 + $0x90] sm:$0xff]  ;;  %1159 = vmatpush.bf16.msrb.mxu1 %v4596_v10 }
  0x57   : > { %v554_v18 = vrot.slane %v553_v5, 4  ;;  %v364_v23 = vshrl.u32 %v5115_v11, 16  ;;  %v370_v20 = vshll.u32 %v5182_v58, 16  ;;  %v374_v27 = vshrl.u32 %v5182_v58, 16  ;;  %1594 = vmatpush.bf16.msrb.mxu2 %v4612_v51 }
  0x58   : > { %v632_v24 = vrot.slane %v631_v25, 4  ;;  %v641_v26 = vor.u32 %v640_v41, %v636_v8  ;;  %v380_v28 = vshll.u32 %v5188_v1, 16  ;;  %v5206_v29 = vpack.c.b16 %v724_v2, %v723_v33  ;;  %v268_v25 = vld [vmem:[%s4895_s7 + $0xa4] sm:$0xf] }
  0x59   : > { %v559_v15 = vsel %vm4921_vm2, %v554_v18, %v558_v56  ;;  %v366_v32 = vrot.slane %v364_v23, 4  ;;  %v372_v6 = vrot.slane %v370_v20, 5  ;;  %v376_v43 = vrot.slane %v374_v27, 4  ;;  %v4595_v23 = vld [vmem:[%s6495_s1 + $0x8] sm:$0xff] }
  0x5a   : > { %v732_v36 = vunpack.c.l.b16 %v559_v15  ;;  %v637_v38 = vsel %vm4921_vm2, %v632_v24, %v636_v8  ;;  %v642_v40 = vrot.slane %v641_v26, 4  ;;  %v382_v55 = vrot.slane %v380_v28, 5  ;;  %v4620_v8 = vld [vmem:[%s6495_s1 + $0xd0] sm:$0xff]  ;;  %v4627_v20 = vld [vmem:[%s6495_s1 + $0x108] sm:$0xff]  ;;  %1160 = vmatpush.bf16.msrb.mxu1 %v4595_v23  ;;  %v4649_v23 = vld [vmem:[%s6495_s1 + $0x1b8] sm:$0xff] }
  0x5b   : > { %v739_v45 = vunpack.c.l.b16 %v637_v38  ;;  %v367_v46 = vor.u32 %v366_v32, %v5145_v53  ;;  %v377_v48 = vor.u32 %v376_v43, %v372_v6  ;;  %1892 = vmatpush.bf16.msrb.mxu3 %v4620_v8  ;;  %1595 = vmatpush.bf16.msrb.mxu2 %v4611_v39  ;;  %v658_v24 = vshll.u32 %v268_v25, 16 }
  0x5c   : > { %v5213_v47 = vpack.c.b16 %v732_v36, %v731_v13  ;;  %v647_v33 = vsel %vm4921_vm2, %v642_v40, %v646_v19  ;;  %v267_v13 = vld [vmem:[%s4895_s7 + $0xa0] sm:$0xf]  ;;  %v4619_v19 = vld [vmem:[%s6495_s1 + $0xc8] sm:$0xff]  ;;  %v662_v26 = vshrl.u32 %v268_v25, 16  ;;  %2191 = vmatpush.bf16.msrb.mxu0 %v4627_v20 }
  0x5d   : > { %v740_v57 = vunpack.c.l.b16 %v647_v33  ;;  %v368_v56 = vrot.slane %v367_v46, 4  ;;  %v378_v50 = vrot.slane %v377_v48, 4  ;;  %v649_v41 = vshrl.u32 %v267_v13, 16  ;;  %v270_v48 = vld [vmem:[%s4895_s7 + $0xac] sm:$0xf] }
  0x5e   : > { %892 = vmatmul.bf16.gmra.mxu1 %v5206_v29  ;;  %932 = vmatmul.bf16.gmra.mxu2 %v5213_v47  ;;  %v652_v18 = vshll.u32 %v267_v13, 16  ;;  %v660_v15 = vrot.slane %v658_v24, 5  ;;  %v664_v32 = vrot.slane %v662_v26, 4  ;;  %v271_v13 = vld [vmem:[%s4895_s7 + $0xb0] sm:$0x1] }
  0x5f   : > { %v5219_v60 = vpack.c.b16 %v740_v57, %v739_v45  ;;  %v373_v61 = vsel %vm4921_vm2, %v368_v56, %v372_v6  ;;  %v383_v53 = vsel %vm4921_vm2, %v378_v50, %v382_v55  ;;  %1893 = vmatpush.bf16.msrb.mxu3 %v4619_v19  ;;  %v651_v27 = vrot.slane %v649_v41, 4  ;;  %v269_v6 = vld [vmem:[%s4895_s7 + $0xa8] sm:$0xf]  ;;  %v4610_v45 = vld [vmem:[%s6495_s1 + $0x80] sm:$0xff] }
  0x60   : > { %v715_v0 = vunpack.c.l.b16 %v373_v61  ;;  %v716_v2 = vunpack.c.l.b16 %v383_v53  ;;  %v654_v28 = vrot.slane %v652_v18, 5  ;;  %v665_v38 = vor.u32 %v664_v32, %v660_v15  ;;  %1596 = vmatpush.bf16.msrb.mxu2 %v4610_v45  ;;  %v4618_v57 = vld [vmem:[%s6495_s1 + $0xc0] sm:$0xff] }
  0x61   : > { %6536 = vst [vmem:[#allocation7_spill] sm:$0xff] %v5219_v60  ;;  %972 = vmatmul.bf16.gmra.mxu3 %v5219_v60  ;;  %v668_v40 = vshll.u32 %v269_v6, 16  ;;  %v4594_v56 = vld [vmem:[%s6495_s1] sm:$0xff]  ;;  %v672_v53 = vshrl.u32 %v269_v6, 16  ;;  %v688_v19 = vshll.u32 %v271_v13, 16  ;;  %v4665_v6 = vld [vmem:[%s6495_s1 + $0x238] sm:$0xff] }
  0x62   : > { %v5229_v5 = vpack.c.b16 %v716_v2, %v715_v0  ;;  %v655_v36 = vor.u32 %v654_v28, %v651_v27  ;;  %v666_v46 = vrot.slane %v665_v38, 4  ;;  %v4626_v50 = vld [vmem:[%s6495_s1 + $0x100] sm:$0xff]  ;;  %v678_v0 = vshll.u32 %v270_v48, 16  ;;  %1161 = vmatpush.bf16.msrb.mxu1 %v4594_v56  ;;  %v4657_v27 = vld [vmem:[%s6495_s1 + $0x1f8] sm:$0xff] }
  0x63   : > { %v670_v33 = vrot.slane %v668_v40, 5  ;;  %v682_v2 = vshrl.u32 %v270_v48, 16  ;;  %1894 = vmatpush.bf16.msrb.mxu3 %v4618_v57  ;;  %2192 = vmatpush.bf16.msrb.mxu0 %v4626_v50  ;;  %v674_v10 = vrot.slane %v672_v53, 4  ;;  %v690_v26 = vrot.slane %v688_v19, 5  ;;  %v4641_v28 = vld [vmem:[%s6495_s1 + $0x178] sm:$0xff] }
  0x64   : > { %6537 = vst [vmem:[#allocation8_spill] sm:$0xff] %v5229_v5  ;;  %852 = vmatmul.bf16.gmra.mxu0 %v5229_v5  ;;  %v656_v43 = vrot.slane %v655_v36, 4  ;;  %v680_v30 = vrot.slane %v678_v0, 5  ;;  %2793 = vmatpush.bf16.msra.mxu2 %v4649_v23  ;;  %v1337_v40 = vrot.slane %v4947_v62, 5  ;;  %v4217_v45 = vrot.slane %v4936_v49, 9  ;;  %v4574_v49 = vld [vmem:[%s4895_s7] sm:$0xff] }
  0x65   : > { %v671_v61 = vsel %vm4921_vm2, %v666_v46, %v670_v33  ;;  %v684_v39 = vrot.slane %v682_v2, 4  ;;  %v675_v41 = vor.u32 %v674_v10, %v670_v33  ;;  %v1340_v33 = vrot.slane %v4956_v4, 5  ;;  %v5326_v53 = vld [vmem:[%s4895_s7 + $0x14] sm:$0xff] }
  0x66   : > { %v661_v55 = vsel %vm4921_vm2, %v656_v43, %v660_v15  ;;  %v742_v8 = vunpack.c.l.b16 %v671_v61  ;;  %2483 = vmatpush.bf16.msra.mxu1 %v4641_v28  ;;  %v1339_v46 = vrot.slane %v1337_v40, 4  ;;  %v6540_v48 = vmov 0  ;;  %v5354_v28 = vld [vmem:[%s4895_s7 + $0x1c] sm:$0xff] }
  0x67   : > { %v741_v51 = vunpack.c.l.b16 %v661_v55  ;;  %v685_v18 = vor.u32 %v684_v39, %v680_v30  ;;  %v676_v20 = vrot.slane %v675_v41, 4  ;;  %3143 = vmatpush.bf16.msra.mxu3 %v4657_v27  ;;  %3463 = vmatpush.bf16.msra.mxu0 %v4665_v6  ;;  %v6541_v48 = vsel %vm5311_vm5, 4294967295, %v6540_v48 }
  0x68   : > { %6542 = vst [vmem:[#allocation11_spill] sm:$0xff] %v6541_v48  ;;  %v1338_v62 = vsel %vm5311_vm5, %v4217_v45, %v1337_v40  ;;  %v1341_v55 = vsel %vm5311_vm5, %v1339_v46, %v1340_v33  ;;  %v1343_v4 = vrot.slane %v5024_v22, 5  ;;  %v1342_v2 = vrot.slane %v1340_v33, 4 }
  0x69   : > { %v5282_v25 = vpack.c.b16 %v742_v8, %v741_v51  ;;  %v686_v24 = vrot.slane %v685_v18, 4  ;;  %v681_v15 = vsel %vm4921_vm2, %v676_v20, %v680_v30  ;;  %v1469_v57 = vunpack.c.l.b16 %v1338_v62  ;;  %v4575_v20 = vld [vmem:[%s4895_s7 + $0x8] sm:$0xff] }
  0x6a   : > { %v743_v36 = vunpack.c.l.b16 %v681_v15  ;;  %v1470_v56 = vunpack.c.l.b16 %v1341_v55  ;;  %v1345_v51 = vrot.slane %v1343_v4, 4  ;;  %v1346_v8 = vrot.slane %v5036_v34, 5 }
  0x6b   : > { %6538 = vst [vmem:[#allocation9_spill] sm:$0xff] %v5282_v25  ;;  %v691_v32 = vsel %vm4921_vm2, %v686_v24, %v690_v26  ;;  %v1344_v22 = vsel %vm5311_vm5, %v1342_v2, %v1343_v4  ;;  %v1350_v27 = vrot.slane %v5109_v7, 5  ;;  %v1359_v2 = vrot.slane %v5188_v1, 5 }
  0x6c   : > { %v744_v38 = vunpack.c.l.b16 %v691_v32  ;;  %v1505_v50 = vpack.c.b16 %v1470_v56, %v1469_v57  ;;  %v1347_v13 = vsel %vm5311_vm5, %v1345_v51, %v1346_v8  ;;  %v1471_v34 = vunpack.c.l.b16 %v1344_v22  ;;  %v4648_v22 = vld [vmem:[%s6495_s1 + $0x1b0] sm:$0xff] }
  0x6d   : > { %v1472_v18 = vunpack.c.l.b16 %v1347_v13  ;;  %v4218_v32 = vrot.slane %v5099_v52, 9  ;;  %v1352_v6 = vrot.slane %v1350_v27, 4  ;;  %2794 = vmatpush.bf16.msra.mxu2 %v4648_v22 }
  0x6e   : > { %897 = vmatmul.bf16.gmra.mxu1 %v5112_v9  ;;  %937 = vmatmul.bf16.gmra.mxu2 %v5141_v44  ;;  %v5305_v43 = vpack.c.b16 %v744_v38, %v743_v36  ;;  %v1353_v36 = vrot.slane %v5115_v11, 5 }
  0x6f   : > { %v1506_v24 = vpack.c.b16 %v1472_v18, %v1471_v34  ;;  %v1351_v7 = vsel %vm5311_vm5, %v4218_v32, %v1350_v27  ;;  %v4656_v18 = vld [vmem:[%s6495_s1 + $0x1f0] sm:$0xff] }
  0x70   : > { %6539 = vst [vmem:[#allocation10_spill] sm:$0xff] %v5305_v43  ;;  %v1354_v46 = vsel %vm5311_vm5, %v1352_v6, %v1353_v36  ;;  %v1473_v52 = vunpack.c.l.b16 %v1351_v7  ;;  %3144 = vmatpush.bf16.msra.mxu3 %v4656_v18  ;;  %v4664_v7 = vld [vmem:[%s6495_s1 + $0x230] sm:$0xff]  ;;  %v5443_v18 = vld [vmem:[%s4895_s7 + $0x28] sm:$0xff] }
  0x71   : > { %977 = vmatmul.bf16.gmra.mxu3 %v5161_v12  ;;  %v1474_v33 = vunpack.c.l.b16 %v1354_v46  ;;  %3464 = vmatpush.bf16.msra.mxu0 %v4664_v7 }
  0x73   : > { %v5378_v57 = vpack.c.b16 %v1474_v33, %v1473_v52 }
  0x74   : > { %857 = vmatmul.bf16.gmra.mxu0 %v5178_v3 }
  0x75   : > { %6551 = vst [vmem:[#allocation20_spill] sm:$0xff] %v5378_v57 }
  0x7e   : > { %902 = vmatmul.bf16.gmra.mxu1 %v5206_v29  ;;  %942 = vmatmul.bf16.gmra.mxu2 %v5213_v47 }
  0x81   : > { %982 = vmatmul.bf16.gmra.mxu3 %v5219_v60 }
  0x84   : > { %862 = vmatmul.bf16.gmra.mxu0 %v5229_v5 }
  0x8e   : > { %907 = vmatmul.bf16.gmra.mxu1 %v4967_v17  ;;  %947 = vmatmul.bf16.gmra.mxu2 %v4981_v37 }
  0x91   : > { %987 = vmatmul.bf16.gmra.mxu3 %v5282_v25 }
  0x94   : > { %867 = vmatmul.bf16.gmra.mxu0 %v4942_v59 }
  0x9e   : > { %912 = vmatmul.bf16.gmra.mxu1 %v5059_v21  ;;  %952 = vmatmul.bf16.gmra.mxu2 %v5074_v16 }
  0xa1   : > { %992 = vmatmul.bf16.gmra.mxu3 %v5305_v43 }
  0xa4   : > { %872 = vmatmul.bf16.gmra.mxu0 %v5038_v35 }
  0xab   : > { %v5322_v61 = vpop.f32.mrf.mxu1 }
  0xae   : > { %1162 = vmatmul.bf16.vlgmr.msrb.gmra.mxu1 %v4574_v49  ;;  %1597 = vmatmul.bf16.vlgmr.msrb.gmra.mxu2 %v1505_v50  ;;  %v1356_v49 = vrot.slane %v5182_v58, 5  ;;  %v1355_v50 = vrot.slane %v1353_v36, 4 }
  0xaf   : > { %v5328_v0 = vpop.f32.mrf.mxu0 }
  0xb0   : > { %v1358_v4 = vrot.slane %v1356_v49, 4  ;;  %v1357_v34 = vsel %vm5311_vm5, %v1355_v50, %v1356_v49 }
  0xb1   : > { %1895 = vmatmul.bf16.vlgmr.msrb.gmra.mxu3 %v5326_v53  ;;  %v5332_v10 = vpop.f32.mrf.mxu2 }
  0xb2   : > { %6543 = vst [vmem:[#allocation12_spill] sm:$0xff] %v5332_v10  ;;  %v5334_v30 = vpop.f32.mrf.mxu3  ;;  %v1360_v1 = vsel %vm5311_vm5, %v1358_v4, %v1359_v2  ;;  %v5568_v10 = vld [vmem:[%s4895_s7 + $0x44] sm:$0xff] }
  0xb3   : > { %6544 = vst [vmem:[#allocation13_spill] sm:$0xff] %v5334_v30  ;;  %v5336_v39 = vpop.f32.mrf.mxu1  ;;  %v1476_v27 = vunpack.c.l.b16 %v1360_v1 }
  0xb4   : > { %2193 = vmatmul.bf16.vlgmr.msrb.gmra.mxu0 %v5178_v3 }
  0xb7   : > { %v5343_v41 = vpop.f32.mrf.mxu0 }
  0xb9   : > { %v5345_v19 = vpop.f32.mrf.mxu2 }
  0xba   : > { %6545 = vst [vmem:[#allocation14_spill] sm:$0xff] %v5345_v19  ;;  %v5347_v23 = vpop.f32.mrf.mxu3 }
  0xbb   : > { %6546 = vst [vmem:[#allocation15_spill] sm:$0xff] %v5347_v23  ;;  %v5350_v26 = vpop.f32.mrf.mxu1  ;;  %v4735_v23 = vld [vmem:[%s4895_s7 + $0x30] sm:$0xf] }
  0xbe   : > { %1167 = vmatmul.bf16.gmra.mxu1 %v4575_v20  ;;  %1602 = vmatmul.bf16.gmra.mxu2 %v1506_v24  ;;  %v4640_v20 = vld [vmem:[%s6495_s1 + $0x170] sm:$0xff]  ;;  %v1475_v24 = vunpack.c.l.b16 %v1357_v34 }
  0xbf   : > { %v5356_v15 = vpop.f32.mrf.mxu0  ;;  %2484 = vmatpush.bf16.msra.mxu1 %v4640_v20 }
  0xc0   : > { %v5413_v36 = vpack.c.b16 %v1476_v27, %v1475_v24 }
  0xc1   : > { %1900 = vmatmul.bf16.gmra.mxu3 %v5354_v28  ;;  %v5361_v38 = vpop.f32.mrf.mxu2 }
  0xc2   : > { %6547 = vst [vmem:[#allocation16_spill] sm:$0xff] %v5361_v38  ;;  %v5363_v40 = vpop.f32.mrf.mxu3 }
  0xc3   : > { %6548 = vst [vmem:[#allocation17_spill] sm:$0xff] %v5363_v40  ;;  %v5365_v45 = vpop.f32.mrf.mxu1 }
  0xc4   : > { %2198 = vmatmul.bf16.gmra.mxu0 %v5229_v5  ;;  %6555 = vst [vmem:[#allocation24_spill] sm:$0xff] %v5413_v36 }
  0xc7   : > { %v5372_v62 = vpop.f32.mrf.mxu0 }
  0xc9   : > { %v5374_v11 = vpop.f32.mrf.mxu2 }
  0xca   : > { %6549 = vst [vmem:[#allocation18_spill] sm:$0xff] %v5374_v11  ;;  %v5376_v55 = vpop.f32.mrf.mxu3 }
  0xcb   : > { %6550 = vst [vmem:[#allocation19_spill] sm:$0xff] %v5376_v55  ;;  %v5380_v56 = vpop.f32.mrf.mxu1  ;;  %v5467_v55 = vld [vmem:[%s4895_s7 + $0x30] sm:$0xff] }
  0xce   : > { %1172 = vmatmul.bf16.gmra.mxu1 %v5326_v53  ;;  %1607 = vmatmul.bf16.gmra.mxu2 %v5378_v57 }
  0xd1   : > { %v5386_v51 = vpop.f32.mrf.mxu0  ;;  %1905 = vmatmul.bf16.gmra.mxu3 %v5326_v53  ;;  %v5389_v8 = vpop.f32.mrf.mxu2 }
  0xd2   : > { %6552 = vst [vmem:[#allocation21_spill] sm:$0xff] %v5389_v8 }
  0xd3   : > { %v5394_v13 = vpop.f32.mrf.mxu3  ;;  %v5396_v58 = vpop.f32.mrf.mxu1 }
  0xd4   : > { %6553 = vst [vmem:[#allocation22_spill] sm:$0xff] %v5394_v13  ;;  %2203 = vmatmul.bf16.gmra.mxu0 %v5178_v3  ;;  %v1366_v3 = vrot.slane %v4735_v23, 5 }
  0xd9   : > { %v5409_v32 = vpop.f32.mrf.mxu0  ;;  %v5411_v6 = vpop.f32.mrf.mxu2 }
  0xda   : > { %6554 = vst [vmem:[#allocation23_spill] sm:$0xff] %v5411_v6 }
  0xdb   : > { %v5418_v46 = vpop.f32.mrf.mxu3  ;;  %v5420_v52 = vpop.f32.mrf.mxu1 }
  0xdc   : > { %6556 = vst [vmem:[#allocation25_spill] sm:$0xff] %v5418_v46 }
  0xde   : > { %1177 = vmatmul.bf16.gmra.mxu1 %v5354_v28  ;;  %1612 = vmatmul.bf16.gmra.mxu2 %v5413_v36 }
  0xe1   : > { %1910 = vmatmul.bf16.gmra.mxu3 %v5354_v28  ;;  %v5425_v33 = vpop.f32.mrf.mxu2  ;;  %v5427_v49 = vpop.f32.mrf.mxu0 }
  0xe2   : > { %6557 = vst [vmem:[#allocation26_spill] sm:$0xff] %v5425_v33 }
  0xe3   : > { %v5429_v50 = vpop.f32.mrf.mxu1 }
  0xe4   : > { %v5431_v4 = vpop.f32.mrf.mxu3  ;;  %2208 = vmatmul.bf16.gmra.mxu0 %v5229_v5  ;;  %v4734_v5 = vld [vmem:[%s4895_s7 + $0x28] sm:$0xf] }
  0xe5   : > { %6558 = vst [vmem:[#allocation27_spill] sm:$0xff] %v5431_v4  ;;  %v4733_v4 = vld [vmem:[%s4895_s7 + $0x2c] sm:$0xf] }
  0xe6   : > { %v1363_v46 = vrot.slane %v4733_v4, 5 }
  0xe8   : > { %v1365_v40 = vrot.slane %v1363_v46, 4 }
  0xe9   : > { %v5434_v2 = vpop.f32.mrf.mxu2  ;;  %v5436_v22 = vpop.f32.mrf.mxu0 }
  0xea   : > { %6559 = vst [vmem:[#allocation28_spill] sm:$0xff] %v5434_v2 }
  0xeb   : > { %v5438_v34 = vpop.f32.mrf.mxu1 }
  0xec   : > { %v5440_v1 = vpop.f32.mrf.mxu3 }
  0xed   : > { %6560 = vst [vmem:[#allocation29_spill] sm:$0xff] %v5440_v1 }
  0xee   : > { %1182 = vmatmul.bf16.gmra.mxu1 %v5326_v53  ;;  %1617 = vmatmul.bf16.gmra.mxu2 %v5378_v57 }
  0xf1   : > { %1915 = vmatmul.bf16.gmra.mxu3 %v5443_v18  ;;  %v5448_v20 = vpop.f32.mrf.mxu2  ;;  %v5450_v24 = vpop.f32.mrf.mxu0 }
  0xf2   : > { %6561 = vst [vmem:[#allocation30_spill] sm:$0xff] %v5448_v20  ;;  %v4736_v20 = vld [vmem:[%s4895_s7 + $0x34] sm:$0xf] }
  0xf3   : > { %v5452_v27 = vpop.f32.mrf.mxu1 }
  0xf4   : > { %v5454_v7 = vpop.f32.mrf.mxu3  ;;  %2213 = vmatmul.bf16.gmra.mxu0 %v4942_v59 }
  0xf5   : > { %6562 = vst [vmem:[#allocation31_spill] sm:$0xff] %v5454_v7  ;;  %v4219_v7 = vrot.slane %v4734_v5, 9 }
  0xf9   : > { %v5457_v31 = vpop.f32.mrf.mxu2  ;;  %v5459_v1 = vpop.f32.mrf.mxu0 }
  0xfa   : > { %6563 = vst [vmem:[#allocation32_spill] sm:$0xff] %v5457_v31 }
  0xfb   : > { %v5461_v53 = vpop.f32.mrf.mxu1 }
  0xfc   : > { %v5464_v13 = vpop.f32.mrf.mxu3 }
  0xfd   : > { %6564 = vst [vmem:[#allocation33_spill] sm:$0xff] %v5464_v13  ;;  %v1364_v13 = vsel %vm5311_vm5, %v4219_v7, %v1363_v46  ;;  %v1369_v46 = vrot.slane %v4736_v20, 5  ;;  %v4647_v20 = vld [vmem:[%s6495_s1 + $0x1a8] sm:$0xff] }
  0xfe   : > { %1187 = vmatmul.bf16.gmra.mxu1 %v5354_v28  ;;  %1622 = vmatmul.bf16.gmra.mxu2 %v5413_v36  ;;  %v1367_v28 = vsel %vm5311_vm5, %v1365_v40, %v1366_v3  ;;  %v1477_v23 = vunpack.c.l.b16 %v1364_v13  ;;  %v1368_v40 = vrot.slane %v1366_v3, 4  ;;  %v4737_v13 = vld [vmem:[%s4895_s7 + $0x38] sm:$0x1] }
  0xff   : > { %v1478_v36 = vunpack.c.l.b16 %v1367_v28  ;;  %v1372_v28 = vrot.slane %v4737_v13, 5  ;;  %2795 = vmatpush.bf16.msra.mxu2 %v4647_v20  ;;  %v4655_v13 = vld [vmem:[%s6495_s1 + $0x1e8] sm:$0xff] }
 0x100   : > { %3145 = vmatpush.bf16.msra.mxu3 %v4655_v13 }
 0x101   : > { %1920 = vmatmul.bf16.gmra.mxu3 %v5467_v55  ;;  %v5474_v30 = vpop.f32.mrf.mxu2  ;;  %v5476_v57 = vpop.f32.mrf.mxu0  ;;  %v5491_v31 = vpack.c.b16 %v1478_v36, %v1477_v23 }
 0x102   : > { %6565 = vst [vmem:[#allocation34_spill] sm:$0xff] %v5474_v30 }
 0x103   : > { %v5478_v4 = vpop.f32.mrf.mxu1  ;;  %6568 = vst [vmem:[#allocation37_spill] sm:$0xff] %v5491_v31 }
 0x104   : > { %v5484_v5 = vpop.f32.mrf.mxu3  ;;  %2218 = vmatmul.bf16.gmra.mxu0 %v5038_v35 }
 0x105   : > { %6566 = vst [vmem:[#allocation35_spill] sm:$0xff] %v5484_v5  ;;  %v1371_v5 = vrot.slane %v1369_v46, 4 }
 0x107   : > { %v1373_v3 = vsel %vm5311_vm5, %v1371_v5, %v1372_v28  ;;  %v4663_v28 = vld [vmem:[%s6495_s1 + $0x228] sm:$0xff] }
 0x108   : > { %v1480_v6 = vunpack.c.l.b16 %v1373_v3  ;;  %3465 = vmatpush.bf16.msra.mxu0 %v4663_v28 }
 0x109   : > { %v5487_v43 = vpop.f32.mrf.mxu2  ;;  %v5489_v30 = vpop.f32.mrf.mxu0 }
 0x10a   : > { %6567 = vst [vmem:[#allocation36_spill] sm:$0xff] %v5487_v43 }
 0x10b   : > { %v5493_v25 = vpop.f32.mrf.mxu1 }
 0x10c   : > { %v5496_v7 = vpop.f32.mrf.mxu3 }
 0x10d   : > { %6569 = vst [vmem:[#allocation38_spill] sm:$0xff] %v5496_v7  ;;  %v1370_v7 = vsel %vm5311_vm5, %v1368_v40, %v1369_v46 }
 0x10e   : > { %1192 = vmatmul.bf16.gmra.mxu1 %v5443_v18  ;;  %1627 = vmatmul.bf16.gmra.mxu2 %v5491_v31  ;;  %v1479_v33 = vunpack.c.l.b16 %v1370_v7 }
 0x110   : > { %v5528_v40 = vpack.c.b16 %v1480_v6, %v1479_v33 }
 0x111   : > { %1925 = vmatmul.bf16.gmra.mxu3 %v5443_v18  ;;  %v5502_v43 = vpop.f32.mrf.mxu2  ;;  %v5504_v36 = vpop.f32.mrf.mxu0 }
 0x112   : > { %6570 = vst [vmem:[#allocation39_spill] sm:$0xff] %v5502_v43  ;;  %v4639_v43 = vld [vmem:[%s6495_s1 + $0x168] sm:$0xff] }
 0x113   : > { %v5509_v23 = vpop.f32.mrf.mxu1  ;;  %2485 = vmatpush.bf16.msra.mxu1 %v4639_v43 }
 0x114   : > { %v5515_v2 = vpop.f32.mrf.mxu3  ;;  %2223 = vmatmul.bf16.gmra.mxu0 %v4942_v59  ;;  %v5556_v59 = vld [vmem:[%s4895_s7 + $0x3c] sm:$0xff] }
 0x115   : > { %6571 = vst [vmem:[#allocation40_spill] sm:$0xff] %v5515_v2 }
 0x119   : > { %v5524_v46 = vpop.f32.mrf.mxu2  ;;  %v5526_v5 = vpop.f32.mrf.mxu0 }
 0x11a   : > { %6572 = vst [vmem:[#allocation41_spill] sm:$0xff] %v5524_v46 }
 0x11b   : > { %v5533_v20 = vpop.f32.mrf.mxu1 }
 0x11c   : > { %v5535_v2 = vpop.f32.mrf.mxu3 }
 0x11d   : > { %6573 = vst [vmem:[#allocation42_spill] sm:$0xff] %v5535_v2 }
 0x11e   : > { %1197 = vmatmul.bf16.gmra.mxu1 %v5467_v55  ;;  %1632 = vmatmul.bf16.gmra.mxu2 %v5528_v40 }
 0x121   : > { %1930 = vmatmul.bf16.gmra.mxu3 %v5467_v55  ;;  %v5540_v43 = vpop.f32.mrf.mxu2  ;;  %v5542_v6 = vpop.f32.mrf.mxu0 }
 0x122   : > { %6574 = vst [vmem:[#allocation43_spill] sm:$0xff] %v5540_v43 }
 0x123   : > { %v5544_v33 = vpop.f32.mrf.mxu1 }
 0x124   : > { %v5546_v7 = vpop.f32.mrf.mxu3  ;;  %2228 = vmatmul.bf16.gmra.mxu0 %v5038_v35 }
 0x125   : > { %6575 = vst [vmem:[#allocation44_spill] sm:$0xff] %v5546_v7 }
 0x129   : > { %v5549_v3 = vpop.f32.mrf.mxu2  ;;  %v5551_v13 = vpop.f32.mrf.mxu0 }
 0x12a   : > { %6576 = vst [vmem:[#allocation45_spill] sm:$0xff] %v5549_v3 }
 0x12b   : > { %v1163_v28 = vpop.f32.mrf.mxu1 }
 0x12c   : > { %v5553_v2 = vpop.f32.mrf.mxu3  ;;  %v1164_v43 = vadd.f32 %v1163_v28, %v5328_v0  ;;  %v1376_v28 = vrot.slane %v5057_v54, 5 }
 0x12d   : > { %6577 = vst [vmem:[#allocation46_spill] sm:$0xff] %v5553_v2 }
 0x12e   : > { %1202 = vmatmul.bf16.gmra.mxu1 %v5443_v18  ;;  %1637 = vmatmul.bf16.gmra.mxu2 %v5491_v31 }
 0x131   : > { %1935 = vmatmul.bf16.gmra.mxu3 %v5556_v59  ;;  %v1598_v7 = vpop.f32.mrf.mxu2  ;;  %v2194_v35 = vpop.f32.mrf.mxu0 }
 0x132   : > { %v1758_v46 = vadd.f32 %v1598_v7, %v1164_v43  ;;  %v4738_v43 = vld [vmem:[%s4895_s7 + $0x3c] sm:$0xf] }
 0x133   : > { %v1165_v3 = vpop.f32.mrf.mxu1 }
 0x134   : > { %v1896_v8 = vpop.f32.mrf.mxu3  ;;  %2233 = vmatmul.bf16.gmra.mxu0 %v5112_v9  ;;  %v1166_v18 = vadd.f32 %v1165_v3, %v5343_v41 }
 0x135   : > { %v2056_v2 = vadd.f32 %v1896_v8, %v1758_v46  ;;  %v4220_v8 = vrot.slane %v4738_v43, 9 }
 0x137   : > { %v5563_v11 = vadd.f32 %v2194_v35, %v2056_v2  ;;  %v1378_v35 = vrot.slane %v1376_v28, 4  ;;  %v1379_v2 = vrot.slane %v5065_v63, 5 }
 0x139   : > { %v1600_v60 = vpop.f32.mrf.mxu2  ;;  %v2196_v31 = vpop.f32.mrf.mxu0  ;;  %v1380_v7 = vsel %vm5311_vm5, %v1378_v35, %v1379_v2 }
 0x13a   : > { %v1759_v38 = vadd.f32 %v1600_v60, %v1166_v18 }
 0x13b   : > { %v1168_v0 = vpop.f32.mrf.mxu1 }
 0x13c   : > { %v1898_v19 = vpop.f32.mrf.mxu3  ;;  %v1169_v60 = vadd.f32 %v1168_v0, %v5356_v15 }
 0x13d   : > { %v2057_v12 = vadd.f32 %v1898_v19, %v1759_v38 }
 0x13e   : > { %1207 = vmatmul.bf16.gmra.mxu1 %v5467_v55  ;;  %1642 = vmatmul.bf16.gmra.mxu2 %v5528_v40  ;;  %v1377_v55 = vsel %vm5311_vm5, %v4220_v8, %v1376_v28  ;;  %v1382_v28 = vrot.slane %v5138_v42, 5  ;;  %v4646_v42 = vld [vmem:[%s6495_s1 + $0x1a0] sm:$0xff] }
 0x13f   : > { %v5574_v41 = vadd.f32 %v2196_v31, %v2057_v12  ;;  %v1481_v31 = vunpack.c.l.b16 %v1377_v55  ;;  %v1482_v12 = vunpack.c.l.b16 %v1380_v7  ;;  %2796 = vmatpush.bf16.msra.mxu2 %v4646_v42 }
 0x140   : > { %v1384_v55 = vrot.slane %v1382_v28, 4 }
 0x141   : > { %6578 = vst [vmem:[#allocation47_spill] sm:$0xff] %v5574_v41  ;;  %1940 = vmatmul.bf16.gmra.mxu3 %v5568_v10  ;;  %v1603_v54 = vpop.f32.mrf.mxu2  ;;  %v2199_v46 = vpop.f32.mrf.mxu0 }
 0x142   : > { %v1760_v19 = vadd.f32 %v1603_v54, %v1169_v60  ;;  %v5586_v54 = vpack.c.b16 %v1482_v12, %v1481_v31 }
 0x143   : > { %v1170_v38 = vpop.f32.mrf.mxu1 }
 0x144   : > { %v1901_v3 = vpop.f32.mrf.mxu3  ;;  %2238 = vmatmul.bf16.gmra.mxu0 %v5206_v29  ;;  %v1171_v15 = vadd.f32 %v1170_v38, %v5372_v62 }
 0x145   : > { %v2058_v63 = vadd.f32 %v1901_v3, %v1760_v19  ;;  %v1381_v19 = vrot.slane %v1379_v2, 4 }
 0x147   : > { %v5583_v18 = vadd.f32 %v2199_v46, %v2058_v63  ;;  %v1385_v46 = vrot.slane %v5148_v14, 5  ;;  %v1383_v2 = vsel %vm5311_vm5, %v1381_v19, %v1382_v28 }
 0x149   : > { %v1605_v0 = vpop.f32.mrf.mxu2  ;;  %v2201_v43 = vpop.f32.mrf.mxu0  ;;  %v1386_v14 = vsel %vm5311_vm5, %v1384_v55, %v1385_v46  ;;  %v4662_v46 = vld [vmem:[%s6495_s1 + $0x220] sm:$0xff] }
 0x14a   : > { %v1761_v60 = vadd.f32 %v1605_v0, %v1171_v15  ;;  %v4638_v15 = vld [vmem:[%s6495_s1 + $0x160] sm:$0xff]  ;;  %v1483_v0 = vunpack.c.l.b16 %v1383_v2  ;;  %3466 = vmatpush.bf16.msra.mxu0 %v4662_v46 }
 0x14b   : > { %v1173_v41 = vpop.f32.mrf.mxu1  ;;  %2486 = vmatpush.bf16.msra.mxu1 %v4638_v15 }
 0x14c   : > { %v1903_v8 = vpop.f32.mrf.mxu3  ;;  %v1174_v62 = vadd.f32 %v1173_v41, %v5386_v51  ;;  %v4654_v41 = vld [vmem:[%s6495_s1 + $0x1e0] sm:$0xff] }
 0x14d   : > { %v2059_v35 = vadd.f32 %v1903_v8, %v1761_v60  ;;  %3146 = vmatpush.bf16.msra.mxu3 %v4654_v41 }
 0x14e   : > { %1212 = vmatmul.bf16.gmra.mxu1 %v5556_v59  ;;  %1647 = vmatmul.bf16.gmra.mxu2 %v5586_v54 }
 0x14f   : > { %v5592_v7 = vadd.f32 %v2201_v43, %v2059_v35  ;;  %v1484_v43 = vunpack.c.l.b16 %v1386_v14 }
 0x151   : > { %1945 = vmatmul.bf16.gmra.mxu3 %v5556_v59  ;;  %v1608_v38 = vpop.f32.mrf.mxu2  ;;  %v2204_v3 = vpop.f32.mrf.mxu0  ;;  %v5613_v55 = vpack.c.b16 %v1484_v43, %v1483_v0 }
 0x152   : > { %v1762_v63 = vadd.f32 %v1608_v38, %v1174_v62 }
 0x153   : > { %v1175_v31 = vpop.f32.mrf.mxu1 }
 0x154   : > { %v1906_v12 = vpop.f32.mrf.mxu3  ;;  %2243 = vmatmul.bf16.gmra.mxu0 %v5112_v9  ;;  %v1176_v28 = vadd.f32 %v1175_v31, %v5409_v32 }
 0x155   : > { %v2060_v51 = vadd.f32 %v1906_v12, %v1762_v63 }
 0x157   : > { %v5610_v60 = vadd.f32 %v2204_v3, %v2060_v51 }
 0x159   : > { %v1610_v8 = vpop.f32.mrf.mxu2  ;;  %v2206_v35 = vpop.f32.mrf.mxu0 }
 0x15a   : > { %v1763_v19 = vadd.f32 %v1610_v8, %v1176_v28 }
 0x15b   : > { %v1178_v62 = vpop.f32.mrf.mxu1 }
 0x15c   : > { %v1908_v38 = vpop.f32.mrf.mxu3  ;;  %v1179_v32 = vadd.f32 %v1178_v62, %v5427_v49 }
 0x15d   : > { %v2061_v63 = vadd.f32 %v1908_v38, %v1763_v19  ;;  %v5629_v19 = vld [vmem:[%s4895_s7 + $0x50] sm:$0xff] }
 0x15e   : > { %1217 = vmatmul.bf16.gmra.mxu1 %v5568_v10  ;;  %1652 = vmatmul.bf16.gmra.mxu2 %v5613_v55 }
 0x15f   : > { %v5620_v3 = vadd.f32 %v2206_v35, %v2061_v63 }
 0x161   : > { %1950 = vmatmul.bf16.gmra.mxu3 %v5568_v10  ;;  %v1613_v42 = vpop.f32.mrf.mxu2  ;;  %v2209_v31 = vpop.f32.mrf.mxu0 }
 0x162   : > { %v1764_v2 = vadd.f32 %v1613_v42, %v1179_v32 }
 0x163   : > { %v1180_v14 = vpop.f32.mrf.mxu1 }
 0x164   : > { %v1911_v12 = vpop.f32.mrf.mxu3  ;;  %2248 = vmatmul.bf16.gmra.mxu0 %v5206_v29  ;;  %v1181_v15 = vadd.f32 %v1180_v14, %v5436_v22 }
 0x165   : > { %v2062_v51 = vadd.f32 %v1911_v12, %v1764_v2 }
 0x167   : > { %v5625_v41 = vadd.f32 %v2209_v31, %v2062_v51 }
 0x169   : > { %v1615_v0 = vpop.f32.mrf.mxu2  ;;  %v2211_v43 = vpop.f32.mrf.mxu0 }
 0x16a   : > { %v1765_v28 = vadd.f32 %v1615_v0, %v1181_v15  ;;  %v4739_v15 = vld [vmem:[%s4895_s7 + $0x54] sm:$0xf] }
 0x16b   : > { %v1183_v8 = vpop.f32.mrf.mxu1  ;;  %v1389_v0 = vrot.slane %v4739_v15, 5 }
 0x16c   : > { %v1913_v49 = vpop.f32.mrf.mxu3  ;;  %v1184_v62 = vadd.f32 %v1183_v8, %v5450_v24  ;;  %v5643_v8 = vld [vmem:[%s4895_s7 + $0x58] sm:$0xff] }
 0x16d   : > { %v2063_v35 = vadd.f32 %v1913_v49, %v1765_v28  ;;  %v4740_v49 = vld [vmem:[%s4895_s7 + $0x50] sm:$0xf] }
 0x16e   : > { %1222 = vmatmul.bf16.gmra.mxu1 %v5556_v59  ;;  %1657 = vmatmul.bf16.gmra.mxu2 %v5586_v54 }
 0x16f   : > { %v5633_v46 = vadd.f32 %v2211_v43, %v2063_v35  ;;  %v4221_v35 = vrot.slane %v4740_v49, 9 }
 0x171   : > { %1955 = vmatmul.bf16.gmra.mxu3 %v5629_v19  ;;  %v1618_v22 = vpop.f32.mrf.mxu2  ;;  %v2214_v38 = vpop.f32.mrf.mxu0 }
 0x172   : > { %v1766_v63 = vadd.f32 %v1618_v22, %v1184_v62  ;;  %v1391_v62 = vrot.slane %v1389_v0, 4  ;;  %v4741_v22 = vld [vmem:[%s4895_s7 + $0x58] sm:$0xf] }
 0x173   : > { %v1185_v32 = vpop.f32.mrf.mxu1 }
 0x174   : > { %v1916_v42 = vpop.f32.mrf.mxu3  ;;  %2253 = vmatmul.bf16.gmra.mxu0 %v4967_v17  ;;  %v1186_v2 = vadd.f32 %v1185_v32, %v5459_v1 }
 0x175   : > { %v2064_v31 = vadd.f32 %v1916_v42, %v1766_v63 }
 0x177   : > { %v5638_v59 = vadd.f32 %v2214_v38, %v2064_v31  ;;  %v1392_v38 = vrot.slane %v4741_v22, 5 }
 0x179   : > { %v1620_v14 = vpop.f32.mrf.mxu2  ;;  %v2216_v12 = vpop.f32.mrf.mxu0 }
 0x17a   : > { %v1767_v24 = vadd.f32 %v1620_v14, %v1186_v2  ;;  %v1393_v14 = vsel %vm5311_vm5, %v1391_v62, %v1392_v38 }
 0x17b   : > { %v1188_v51 = vpop.f32.mrf.mxu1 }
 0x17c   : > { %v1918_v43 = vpop.f32.mrf.mxu3  ;;  %v1189_v63 = vadd.f32 %v1188_v51, %v5476_v57 }
 0x17d   : > { %v2065_v28 = vadd.f32 %v1918_v43, %v1767_v24  ;;  %v1486_v43 = vunpack.c.l.b16 %v1393_v14 }
 0x17e   : > { %1227 = vmatmul.bf16.gmra.mxu1 %v5568_v10  ;;  %1662 = vmatmul.bf16.gmra.mxu2 %v5613_v55  ;;  %v1390_v10 = vsel %vm5311_vm5, %v4221_v35, %v1389_v0  ;;  %v4742_v35 = vld [vmem:[%s4895_s7 + $0x5c] sm:$0xf] }
 0x17f   : > { %v5649_v1 = vadd.f32 %v2216_v12, %v2065_v28  ;;  %v1485_v15 = vunpack.c.l.b16 %v1390_v10 }
 0x181   : > { %6579 = vst [vmem:[#allocation48_spill] sm:$0xff] %v5649_v1  ;;  %1960 = vmatmul.bf16.gmra.mxu3 %v5643_v8  ;;  %v1623_v32 = vpop.f32.mrf.mxu2  ;;  %v2219_v42 = vpop.f32.mrf.mxu0 }
 0x182   : > { %v1768_v31 = vadd.f32 %v1623_v32, %v1189_v63  ;;  %v5661_v63 = vpack.c.b16 %v1486_v43, %v1485_v15  ;;  %v1395_v32 = vrot.slane %v4742_v35, 5  ;;  %v4645_v43 = vld [vmem:[%s6495_s1 + $0x198] sm:$0xff] }
 0x183   : > { %v1190_v2 = vpop.f32.mrf.mxu1  ;;  %2797 = vmatpush.bf16.msra.mxu2 %v4645_v43 }
 0x184   : > { %v1921_v24 = vpop.f32.mrf.mxu3  ;;  %2258 = vmatmul.bf16.gmra.mxu0 %v5059_v21  ;;  %v1191_v51 = vadd.f32 %v1190_v2, %v5489_v30  ;;  %v1397_v10 = vrot.slane %v1395_v32, 4 }
 0x185   : > { %v2066_v12 = vadd.f32 %v1921_v24, %v1768_v31  ;;  %v1394_v31 = vrot.slane %v1392_v38, 4 }
 0x187   : > { %v5658_v57 = vadd.f32 %v2219_v42, %v2066_v12  ;;  %v4743_v42 = vld [vmem:[%s4895_s7 + $0x60] sm:$0x1]  ;;  %v1396_v38 = vsel %vm5311_vm5, %v1394_v31, %v1395_v32 }
 0x188   : > { %v1398_v14 = vrot.slane %v4743_v42, 5 }
 0x189   : > { %v1625_v28 = vpop.f32.mrf.mxu2  ;;  %v2221_v49 = vpop.f32.mrf.mxu0 }
 0x18a   : > { %v1769_v22 = vadd.f32 %v1625_v28, %v1191_v51  ;;  %v1399_v28 = vsel %vm5311_vm5, %v1397_v10, %v1398_v14 }
 0x18b   : > { %v1193_v0 = vpop.f32.mrf.mxu1  ;;  %v1488_v35 = vunpack.c.l.b16 %v1399_v28 }
 0x18c   : > { %v1923_v62 = vpop.f32.mrf.mxu3  ;;  %v1194_v30 = vadd.f32 %v1193_v0, %v5504_v36  ;;  %v1487_v0 = vunpack.c.l.b16 %v1396_v38 }
 0x18d   : > { %v2067_v1 = vadd.f32 %v1923_v62, %v1769_v22  ;;  %v4637_v22 = vld [vmem:[%s6495_s1 + $0x158] sm:$0xff] }
 0x18e   : > { %1232 = vmatmul.bf16.gmra.mxu1 %v5629_v19  ;;  %1667 = vmatmul.bf16.gmra.mxu2 %v5661_v63  ;;  %v5688_v14 = vpack.c.b16 %v1488_v35, %v1487_v0 }
 0x18f   : > { %v5667_v24 = vadd.f32 %v2221_v49, %v2067_v1  ;;  %v4653_v49 = vld [vmem:[%s6495_s1 + $0x1d8] sm:$0xff]  ;;  %2487 = vmatpush.bf16.msra.mxu1 %v4637_v22 }
 0x190   : > { %3147 = vmatpush.bf16.msra.mxu3 %v4653_v49 }
 0x191   : > { %1965 = vmatmul.bf16.gmra.mxu3 %v5629_v19  ;;  %v1628_v2 = vpop.f32.mrf.mxu2  ;;  %v2224_v12 = vpop.f32.mrf.mxu0 }
 0x192   : > { %v1770_v15 = vadd.f32 %v1628_v2, %v1194_v30  ;;  %v4661_v30 = vld [vmem:[%s6495_s1 + $0x218] sm:$0xff] }
 0x193   : > { %v1195_v51 = vpop.f32.mrf.mxu1  ;;  %3467 = vmatpush.bf16.msra.mxu0 %v4661_v30  ;;  %v5704_v30 = vld [vmem:[%s4895_s7 + $0x64] sm:$0xff] }
 0x194   : > { %v1926_v1 = vpop.f32.mrf.mxu3  ;;  %2263 = vmatmul.bf16.gmra.mxu0 %v4967_v17  ;;  %v1196_v62 = vadd.f32 %v1195_v51, %v5526_v5 }
 0x195   : > { %v2068_v36 = vadd.f32 %v1926_v1, %v1770_v15 }
 0x197   : > { %v5685_v32 = vadd.f32 %v2224_v12, %v2068_v36 }
 0x199   : > { %v1630_v31 = vpop.f32.mrf.mxu2  ;;  %v2226_v10 = vpop.f32.mrf.mxu0 }
 0x19a   : > { %v1771_v42 = vadd.f32 %v1630_v31, %v1196_v62 }
 0x19b   : > { %v1198_v2 = vpop.f32.mrf.mxu1 }
 0x19c   : > { %v1928_v15 = vpop.f32.mrf.mxu3  ;;  %v1199_v5 = vadd.f32 %v1198_v2, %v5542_v6 }
 0x19d   : > { %v2069_v43 = vadd.f32 %v1928_v15, %v1771_v42 }
 0x19e   : > { %1237 = vmatmul.bf16.gmra.mxu1 %v5643_v8  ;;  %1672 = vmatmul.bf16.gmra.mxu2 %v5688_v14 }
 0x19f   : > { %v5695_v12 = vadd.f32 %v2226_v10, %v2069_v43 }
 0x1a1   : > { %1970 = vmatmul.bf16.gmra.mxu3 %v5643_v8  ;;  %v1633_v51 = vpop.f32.mrf.mxu2  ;;  %v2229_v38 = vpop.f32.mrf.mxu0 }
 0x1a2   : > { %v1772_v28 = vadd.f32 %v1633_v51, %v1199_v5 }
 0x1a3   : > { %v1200_v1 = vpop.f32.mrf.mxu1 }
 0x1a4   : > { %v1931_v36 = vpop.f32.mrf.mxu3  ;;  %2268 = vmatmul.bf16.gmra.mxu0 %v5059_v21  ;;  %v1201_v0 = vadd.f32 %v1200_v1, %v5551_v13 }
 0x1a5   : > { %v2070_v49 = vadd.f32 %v1931_v36, %v1772_v28 }
 0x1a7   : > { %v5700_v22 = vadd.f32 %v2229_v38, %v2070_v49 }
 0x1a9   : > { %v1635_v35 = vpop.f32.mrf.mxu2  ;;  %v2231_v62 = vpop.f32.mrf.mxu0 }
 0x1aa   : > { %v1773_v31 = vadd.f32 %v1635_v35, %v1201_v0  ;;  %v4744_v35 = vld [vmem:[%s4895_s7 + $0x68] sm:$0xf] }
 0x1ab   : > { %v1203_v10 = vpop.f32.mrf.mxu1 }
 0x1ac   : > { %v1933_v6 = vpop.f32.mrf.mxu3  ;;  %v1204_v15 = vadd.f32 %v1203_v10, %v5322_v61 }
 0x1ad   : > { %v2071_v42 = vadd.f32 %v1933_v6, %v1773_v31  ;;  %v5718_v6 = vld [vmem:[%s4895_s7 + $0x6c] sm:$0xff] }
 0x1ae   : > { %1242 = vmatmul.bf16.gmra.mxu1 %v5629_v19  ;;  %1677 = vmatmul.bf16.gmra.mxu2 %v5661_v63 }
 0x1af   : > { %v5708_v2 = vadd.f32 %v2231_v62, %v2071_v42  ;;  %v1402_v62 = vrot.slane %v4744_v35, 5  ;;  %v4745_v42 = vld [vmem:[%s4895_s7 + $0x64] sm:$0xf] }
 0x1b1   : > { %1975 = vmatmul.bf16.gmra.mxu3 %v5704_v30  ;;  %v1638_v13 = vpop.f32.mrf.mxu2  ;;  %v2234_v43 = vpop.f32.mrf.mxu0 }
 0x1b2   : > { %v1774_v5 = vadd.f32 %v1638_v13, %v1204_v15  ;;  %v4222_v15 = vrot.slane %v4745_v42, 9  ;;  %v1404_v13 = vrot.slane %v1402_v62, 4 }
 0x1b3   : > { %v1205_v51 = vpop.f32.mrf.mxu1 }
 0x1b4   : > { %v1936_v38 = vpop.f32.mrf.mxu3  ;;  %2273 = vmatmul.bf16.gmra.mxu0 %v5141_v44  ;;  %v1206_v1 = vadd.f32 %v1205_v51, %v5336_v39 }
 0x1b5   : > { %v2072_v28 = vadd.f32 %v1936_v38, %v1774_v5 }
 0x1b7   : > { %v5713_v19 = vadd.f32 %v2234_v43, %v2072_v28  ;;  %v4746_v43 = vld [vmem:[%s4895_s7 + $0x6c] sm:$0xf] }
 0x1b8   : > { %v1405_v5 = vrot.slane %v4746_v43, 5 }
 0x1b9   : > { %6580 = vst [vmem:[#allocation49_spill] sm:$0xff] %v5713_v19  ;;  %v1640_v36 = vpop.f32.mrf.mxu2  ;;  %v2236_v49 = vpop.f32.mrf.mxu0 }
 0x1ba   : > { %v1775_v61 = vadd.f32 %v1640_v36, %v1206_v1 }
 0x1bb   : > { %v1208_v0 = vpop.f32.mrf.mxu1 }
 0x1bc   : > { %v1938_v31 = vpop.f32.mrf.mxu3  ;;  %v1209_v51 = vadd.f32 %v1208_v0, %v5350_v26 }
 0x1bd   : > { %v2073_v10 = vadd.f32 %v1938_v31, %v1775_v61  ;;  %v1406_v61 = vsel %vm5311_vm5, %v1404_v13, %v1405_v5 }
 0x1be   : > { %1247 = vmatmul.bf16.gmra.mxu1 %v5643_v8  ;;  %1682 = vmatmul.bf16.gmra.mxu2 %v5688_v14  ;;  %v1403_v8 = vsel %vm5311_vm5, %v4222_v15, %v1402_v62  ;;  %v4747_v15 = vld [vmem:[%s4895_s7 + $0x70] sm:$0xf] }
 0x1bf   : > { %v5724_v39 = vadd.f32 %v2236_v49, %v2073_v10  ;;  %v1489_v31 = vunpack.c.l.b16 %v1403_v8  ;;  %v1490_v10 = vunpack.c.l.b16 %v1406_v61 }
 0x1c1   : > { %6581 = vst [vmem:[#allocation50_spill] sm:$0xff] %v5724_v39  ;;  %1980 = vmatmul.bf16.gmra.mxu3 %v5718_v6  ;;  %v1643_v38 = vpop.f32.mrf.mxu2  ;;  %v2239_v28 = vpop.f32.mrf.mxu0  ;;  %v1408_v39 = vrot.slane %v4747_v15, 5 }
 0x1c2   : > { %v1776_v1 = vadd.f32 %v1643_v38, %v1209_v51  ;;  %v5736_v38 = vpack.c.b16 %v1490_v10, %v1489_v31  ;;  %v4644_v10 = vld [vmem:[%s6495_s1 + $0x190] sm:$0xff] }
 0x1c3   : > { %v1210_v36 = vpop.f32.mrf.mxu1  ;;  %v1410_v8 = vrot.slane %v1408_v39, 4  ;;  %2798 = vmatpush.bf16.msra.mxu2 %v4644_v10 }
 0x1c4   : > { %v1941_v35 = vpop.f32.mrf.mxu3  ;;  %2278 = vmatmul.bf16.gmra.mxu0 %v5213_v47  ;;  %v1211_v0 = vadd.f32 %v1210_v36, %v5365_v45 }
 0x1c5   : > { %v2074_v49 = vadd.f32 %v1941_v35, %v1776_v1  ;;  %v1407_v1 = vrot.slane %v1405_v5, 4 }
 0x1c7   : > { %v5733_v26 = vadd.f32 %v2239_v28, %v2074_v49  ;;  %v4748_v28 = vld [vmem:[%s4895_s7 + $0x74] sm:$0x1]  ;;  %v1409_v5 = vsel %vm5311_vm5, %v1407_v1, %v1408_v39 }
 0x1c8   : > { %v1411_v61 = vrot.slane %v4748_v28, 5 }
 0x1c9   : > { %v1645_v42 = vpop.f32.mrf.mxu2  ;;  %v2241_v43 = vpop.f32.mrf.mxu0 }
 0x1ca   : > { %v1777_v51 = vadd.f32 %v1645_v42, %v1211_v0  ;;  %v1412_v42 = vsel %vm5311_vm5, %v1410_v8, %v1411_v61 }
 0x1cb   : > { %v1213_v62 = vpop.f32.mrf.mxu1  ;;  %v1492_v15 = vunpack.c.l.b16 %v1412_v42 }
 0x1cc   : > { %v1943_v13 = vpop.f32.mrf.mxu3  ;;  %v1214_v45 = vadd.f32 %v1213_v62, %v5380_v56  ;;  %v1491_v62 = vunpack.c.l.b16 %v1409_v5 }
 0x1cd   : > { %v2075_v19 = vadd.f32 %v1943_v13, %v1777_v51  ;;  %v4636_v51 = vld [vmem:[%s6495_s1 + $0x150] sm:$0xff] }
 0x1ce   : > { %1252 = vmatmul.bf16.gmra.mxu1 %v5704_v30  ;;  %1687 = vmatmul.bf16.gmra.mxu2 %v5736_v38  ;;  %v5763_v61 = vpack.c.b16 %v1492_v15, %v1491_v62 }
 0x1cf   : > { %v5742_v35 = vadd.f32 %v2241_v43, %v2075_v19  ;;  %v4652_v43 = vld [vmem:[%s6495_s1 + $0x1d0] sm:$0xff]  ;;  %2488 = vmatpush.bf16.msra.mxu1 %v4636_v51 }
 0x1d0   : > { %3148 = vmatpush.bf16.msra.mxu3 %v4652_v43 }
 0x1d1   : > { %1985 = vmatmul.bf16.gmra.mxu3 %v5704_v30  ;;  %v1648_v36 = vpop.f32.mrf.mxu2  ;;  %v2244_v49 = vpop.f32.mrf.mxu0 }
 0x1d2   : > { %v1778_v31 = vadd.f32 %v1648_v36, %v1214_v45  ;;  %v4660_v45 = vld [vmem:[%s6495_s1 + $0x210] sm:$0xff] }
 0x1d3   : > { %v1215_v0 = vpop.f32.mrf.mxu1  ;;  %3468 = vmatpush.bf16.msra.mxu0 %v4660_v45  ;;  %v5779_v45 = vld [vmem:[%s4895_s7 + $0x78] sm:$0xff] }
 0x1d4   : > { %v1946_v19 = vpop.f32.mrf.mxu3  ;;  %2283 = vmatmul.bf16.gmra.mxu0 %v5141_v44  ;;  %v1216_v13 = vadd.f32 %v1215_v0, %v5396_v58 }
 0x1d5   : > { %v2076_v56 = vadd.f32 %v1946_v19, %v1778_v31 }
 0x1d7   : > { %v5760_v39 = vadd.f32 %v2244_v49, %v2076_v56 }
 0x1d9   : > { %v1650_v1 = vpop.f32.mrf.mxu2  ;;  %v2246_v8 = vpop.f32.mrf.mxu0 }
 0x1da   : > { %v1779_v28 = vadd.f32 %v1650_v1, %v1216_v13 }
 0x1db   : > { %v1218_v36 = vpop.f32.mrf.mxu1 }
 0x1dc   : > { %v1948_v31 = vpop.f32.mrf.mxu3  ;;  %v1219_v58 = vadd.f32 %v1218_v36, %v5420_v52 }
 0x1dd   : > { %v2077_v10 = vadd.f32 %v1948_v31, %v1779_v28 }
 0x1de   : > { %1257 = vmatmul.bf16.gmra.mxu1 %v5718_v6  ;;  %1692 = vmatmul.bf16.gmra.mxu2 %v5763_v61 }
 0x1df   : > { %v5770_v49 = vadd.f32 %v2246_v8, %v2077_v10 }
 0x1e1   : > { %1990 = vmatmul.bf16.gmra.mxu3 %v5718_v6  ;;  %v1653_v0 = vpop.f32.mrf.mxu2  ;;  %v2249_v5 = vpop.f32.mrf.mxu0 }
 0x1e2   : > { %v1780_v42 = vadd.f32 %v1653_v0, %v1219_v58 }
 0x1e3   : > { %v1220_v19 = vpop.f32.mrf.mxu1 }
 0x1e4   : > { %v1951_v56 = vpop.f32.mrf.mxu3  ;;  %2288 = vmatmul.bf16.gmra.mxu0 %v5213_v47  ;;  %v1221_v62 = vadd.f32 %v1220_v19, %v5429_v50 }
 0x1e5   : > { %v2078_v43 = vadd.f32 %v1951_v56, %v1780_v42 }
 0x1e7   : > { %v5775_v51 = vadd.f32 %v2249_v5, %v2078_v43 }
 0x1e9   : > { %v1655_v15 = vpop.f32.mrf.mxu2  ;;  %v2251_v13 = vpop.f32.mrf.mxu0 }
 0x1ea   : > { %v1781_v1 = vadd.f32 %v1655_v15, %v1221_v62  ;;  %v4749_v15 = vld [vmem:[%s4895_s7 + $0x7c] sm:$0xf] }
 0x1eb   : > { %v1223_v8 = vpop.f32.mrf.mxu1 }
 0x1ec   : > { %v1953_v52 = vpop.f32.mrf.mxu3  ;;  %v1224_v31 = vadd.f32 %v1223_v8, %v5438_v34 }
 0x1ed   : > { %v2079_v28 = vadd.f32 %v1953_v52, %v1781_v1  ;;  %v5793_v52 = vld [vmem:[%s4895_s7 + $0x80] sm:$0xff] }
 0x1ee   : > { %1262 = vmatmul.bf16.gmra.mxu1 %v5704_v30  ;;  %1697 = vmatmul.bf16.gmra.mxu2 %v5736_v38 }
 0x1ef   : > { %v5783_v36 = vadd.f32 %v2251_v13, %v2079_v28  ;;  %v1415_v13 = vrot.slane %v4749_v15, 5  ;;  %v4750_v28 = vld [vmem:[%s4895_s7 + $0x78] sm:$0xf] }
 0x1f1   : > { %1995 = vmatmul.bf16.gmra.mxu3 %v5779_v45  ;;  %v1658_v50 = vpop.f32.mrf.mxu2  ;;  %v2254_v10 = vpop.f32.mrf.mxu0 }
 0x1f2   : > { %v1782_v58 = vadd.f32 %v1658_v50, %v1224_v31  ;;  %v4223_v31 = vrot.slane %v4750_v28, 9  ;;  %v1417_v50 = vrot.slane %v1415_v13, 4 }
 0x1f3   : > { %v1225_v0 = vpop.f32.mrf.mxu1 }
 0x1f4   : > { %v1956_v5 = vpop.f32.mrf.mxu3  ;;  %2293 = vmatmul.bf16.gmra.mxu0 %v4981_v37  ;;  %v1226_v19 = vadd.f32 %v1225_v0, %v5452_v27 }
 0x1f5   : > { %v2080_v42 = vadd.f32 %v1956_v5, %v1782_v58 }
 0x1f7   : > { %v5788_v30 = vadd.f32 %v2254_v10, %v2080_v42  ;;  %v4751_v10 = vld [vmem:[%s4895_s7 + $0x80] sm:$0xf] }
 0x1f8   : > { %v1418_v58 = vrot.slane %v4751_v10, 5 }
 0x1f9   : > { %6582 = vst [vmem:[#allocation51_spill] sm:$0xff] %v5788_v30  ;;  %v1660_v56 = vpop.f32.mrf.mxu2  ;;  %v2256_v43 = vpop.f32.mrf.mxu0 }
 0x1fa   : > { %v1783_v34 = vadd.f32 %v1660_v56, %v1226_v19 }
 0x1fb   : > { %v1228_v62 = vpop.f32.mrf.mxu1 }
 0x1fc   : > { %v1958_v1 = vpop.f32.mrf.mxu3  ;;  %v1229_v0 = vadd.f32 %v1228_v62, %v5461_v53 }
 0x1fd   : > { %v2081_v8 = vadd.f32 %v1958_v1, %v1783_v34  ;;  %v1419_v34 = vsel %vm5311_vm5, %v1417_v50, %v1418_v58 }
 0x1fe   : > { %1267 = vmatmul.bf16.gmra.mxu1 %v5718_v6  ;;  %1702 = vmatmul.bf16.gmra.mxu2 %v5763_v61  ;;  %v1416_v6 = vsel %vm5311_vm5, %v4223_v31, %v1415_v13  ;;  %v4752_v31 = vld [vmem:[%s4895_s7 + $0x84] sm:$0xf] }
 0x1ff   : > { %v5799_v27 = vadd.f32 %v2256_v43, %v2081_v8  ;;  %v1493_v1 = vunpack.c.l.b16 %v1416_v6  ;;  %v1494_v8 = vunpack.c.l.b16 %v1419_v34 }
 0x201   : > { %6583 = vst [vmem:[#allocation52_spill] sm:$0xff] %v5799_v27  ;;  %2000 = vmatmul.bf16.gmra.mxu3 %v5793_v52  ;;  %v1663_v5 = vpop.f32.mrf.mxu2  ;;  %v2259_v42 = vpop.f32.mrf.mxu0  ;;  %v1421_v27 = vrot.slane %v4752_v31, 5 }
 0x202   : > { %v1784_v19 = vadd.f32 %v1663_v5, %v1229_v0  ;;  %v5811_v5 = vpack.c.b16 %v1494_v8, %v1493_v1  ;;  %v4643_v8 = vld [vmem:[%s6495_s1 + $0x188] sm:$0xff] }
 0x203   : > { %v1230_v56 = vpop.f32.mrf.mxu1  ;;  %v1423_v6 = vrot.slane %v1421_v27, 4  ;;  %2799 = vmatpush.bf16.msra.mxu2 %v4643_v8 }
 0x204   : > { %v1961_v15 = vpop.f32.mrf.mxu3  ;;  %2298 = vmatmul.bf16.gmra.mxu0 %v5074_v16  ;;  %v1231_v62 = vadd.f32 %v1230_v56, %v5478_v4 }
 0x205   : > { %v2082_v43 = vadd.f32 %v1961_v15, %v1784_v19  ;;  %v1420_v19 = vrot.slane %v1418_v58, 4 }
 0x207   : > { %v5808_v53 = vadd.f32 %v2259_v42, %v2082_v43  ;;  %v4753_v42 = vld [vmem:[%s4895_s7 + $0x88] sm:$0x1]  ;;  %v1422_v58 = vsel %vm5311_vm5, %v1420_v19, %v1421_v27 }
 0x208   : > { %v1424_v34 = vrot.slane %v4753_v42, 5 }
 0x209   : > { %6584 = vst [vmem:[#allocation53_spill] sm:$0xff] %v5808_v53  ;;  %v1665_v28 = vpop.f32.mrf.mxu2  ;;  %v2261_v10 = vpop.f32.mrf.mxu0 }
 0x20a   : > { %v1785_v0 = vadd.f32 %v1665_v28, %v1231_v62  ;;  %v1425_v28 = vsel %vm5311_vm5, %v1423_v6, %v1424_v34 }
 0x20b   : > { %v1233_v13 = vpop.f32.mrf.mxu1  ;;  %v1496_v31 = vunpack.c.l.b16 %v1425_v28 }
 0x20c   : > { %v1963_v50 = vpop.f32.mrf.mxu3  ;;  %v1234_v4 = vadd.f32 %v1233_v13, %v5493_v25  ;;  %v1495_v13 = vunpack.c.l.b16 %v1422_v58 }
 0x20d   : > { %v2083_v30 = vadd.f32 %v1963_v50, %v1785_v0  ;;  %v4635_v0 = vld [vmem:[%s6495_s1 + $0x148] sm:$0xff] }
 0x20e   : > { %1272 = vmatmul.bf16.gmra.mxu1 %v5779_v45  ;;  %1707 = vmatmul.bf16.gmra.mxu2 %v5811_v5  ;;  %v5838_v34 = vpack.c.b16 %v1496_v31, %v1495_v13 }
 0x20f   : > { %v5817_v15 = vadd.f32 %v2261_v10, %v2083_v30  ;;  %v4651_v10 = vld [vmem:[%s6495_s1 + $0x1c8] sm:$0xff]  ;;  %2489 = vmatpush.bf16.msra.mxu1 %v4635_v0 }
 0x210   : > { %3149 = vmatpush.bf16.msra.mxu3 %v4651_v10 }
 0x211   : > { %6585 = vst [vmem:[#allocation54_spill] sm:$0xff] %v5817_v15  ;;  %2005 = vmatmul.bf16.gmra.mxu3 %v5779_v45  ;;  %v1668_v56 = vpop.f32.mrf.mxu2  ;;  %v2264_v43 = vpop.f32.mrf.mxu0 }
 0x212   : > { %v1786_v1 = vadd.f32 %v1668_v56, %v1234_v4  ;;  %v4659_v4 = vld [vmem:[%s6495_s1 + $0x208] sm:$0xff] }
 0x213   : > { %v1235_v62 = vpop.f32.mrf.mxu1  ;;  %3469 = vmatpush.bf16.msra.mxu0 %v4659_v4  ;;  %v5854_v4 = vld [vmem:[%s4895_s7 + $0x8c] sm:$0xff] }
 0x214   : > { %v1966_v30 = vpop.f32.mrf.mxu3  ;;  %2303 = vmatmul.bf16.gmra.mxu0 %v4981_v37  ;;  %v1236_v50 = vadd.f32 %v1235_v62, %v5509_v23 }
 0x215   : > { %v2084_v25 = vadd.f32 %v1966_v30, %v1786_v1 }
 0x217   : > { %v5835_v27 = vadd.f32 %v2264_v43, %v2084_v25 }
 0x219   : > { %6586 = vst [vmem:[#allocation55_spill] sm:$0xff] %v5835_v27  ;;  %v1670_v19 = vpop.f32.mrf.mxu2  ;;  %v2266_v6 = vpop.f32.mrf.mxu0 }
 0x21a   : > { %v1787_v42 = vadd.f32 %v1670_v19, %v1236_v50 }
 0x21b   : > { %v1238_v56 = vpop.f32.mrf.mxu1 }
 0x21c   : > { %v1968_v1 = vpop.f32.mrf.mxu3  ;;  %v1239_v23 = vadd.f32 %v1238_v56, %v5533_v20 }
 0x21d   : > { %v2085_v8 = vadd.f32 %v1968_v1, %v1787_v42  ;;  %v6590_v1 = vld [vmem:[#allocation12_spill] sm:$0xff] }
 0x21e   : > { %1277 = vmatmul.bf16.gmra.mxu1 %v5793_v52  ;;  %1712 = vmatmul.bf16.gmra.mxu2 %v5838_v34 }
 0x21f   : > { %v5845_v43 = vadd.f32 %v2266_v6, %v2085_v8 }
 0x221   : > { %6587 = vst [vmem:[#allocation56_spill] sm:$0xff] %v5845_v43  ;;  %2010 = vmatmul.bf16.gmra.mxu3 %v5793_v52  ;;  %v1673_v62 = vpop.f32.mrf.mxu2  ;;  %v2269_v58 = vpop.f32.mrf.mxu0 }
 0x222   : > { %v1788_v28 = vadd.f32 %v1673_v62, %v1239_v23 }
 0x223   : > { %v1240_v30 = vpop.f32.mrf.mxu1 }
 0x224   : > { %v1971_v25 = vpop.f32.mrf.mxu3  ;;  %2308 = vmatmul.bf16.gmra.mxu0 %v5074_v16  ;;  %v1241_v13 = vadd.f32 %v1240_v30, %v5544_v33  ;;  %v6591_v30 = vld [vmem:[#allocation5_spill] sm:$0xff] }
 0x225   : > { %v2086_v10 = vadd.f32 %v1971_v25, %v1788_v28 }
 0x227   : > { %v5850_v0 = vadd.f32 %v2269_v58, %v2086_v10  ;;  %v6593_v10 = vld [vmem:[#allocation14_spill] sm:$0xff] }
 0x229   : > { %6588 = vst [vmem:[#allocation57_spill] sm:$0xff] %v5850_v0  ;;  %v1675_v31 = vpop.f32.mrf.mxu2  ;;  %v2271_v50 = vpop.f32.mrf.mxu0  ;;  %v6596_v0 = vld [vmem:[#allocation7_spill] sm:$0xff] }
 0x22a   : > { %v1789_v19 = vadd.f32 %v1675_v31, %v1241_v13 }
 0x22b   : > { %v1243_v6 = vpop.f32.mrf.mxu1 }
 0x22c   : > { %v1973_v20 = vpop.f32.mrf.mxu3  ;;  %v1244_v8 = vadd.f32 %v1243_v6, %v6590_v1 }
 0x22d   : > { %v2087_v42 = vadd.f32 %v1973_v20, %v1789_v19  ;;  %v4754_v20 = vld [vmem:[%s4895_s7 + $0x90] sm:$0xf] }
 0x22e   : > { %1282 = vmatmul.bf16.gmra.mxu1 %v5779_v45  ;;  %1717 = vmatmul.bf16.gmra.mxu2 %v5811_v5 }
 0x22f   : > { %v5858_v56 = vadd.f32 %v2271_v50, %v2087_v42  ;;  %v1428_v42 = vrot.slane %v4754_v20, 5 }
 0x231   : > { %6589 = vst [vmem:[#allocation58_spill] sm:$0xff] %v5858_v56  ;;  %2015 = vmatmul.bf16.gmra.mxu3 %v5854_v4  ;;  %v1678_v33 = vpop.f32.mrf.mxu2  ;;  %v2274_v23 = vpop.f32.mrf.mxu0 }
 0x232   : > { %v1790_v62 = vadd.f32 %v1678_v33, %v1244_v8  ;;  %v5868_v8 = vld [vmem:[%s4895_s7 + $0x94] sm:$0xff]  ;;  %v4755_v33 = vld [vmem:[%s4895_s7 + $0x8c] sm:$0xf] }
 0x233   : > { %v1245_v58 = vpop.f32.mrf.mxu1 }
 0x234   : > { %v1976_v28 = vpop.f32.mrf.mxu3  ;;  %2313 = vmatmul.bf16.gmra.mxu0 %v6591_v30  ;;  %v1246_v13 = vadd.f32 %v1245_v58, %v6593_v10  ;;  %v6595_v10 = vld [vmem:[#allocation16_spill] sm:$0xff] }
 0x235   : > { %v2088_v25 = vadd.f32 %v1976_v28, %v1790_v62  ;;  %v1430_v62 = vrot.slane %v1428_v42, 4  ;;  %v4756_v28 = vld [vmem:[%s4895_s7 + $0x94] sm:$0xf] }
 0x237   : > { %v5863_v45 = vadd.f32 %v2274_v23, %v2088_v25  ;;  %v4224_v23 = vrot.slane %v4755_v33, 9  ;;  %v1431_v25 = vrot.slane %v4756_v28, 5 }
 0x239   : > { %6592 = vst [vmem:[#allocation12_spill] sm:$0xff] %v5863_v45  ;;  %v1680_v31 = vpop.f32.mrf.mxu2  ;;  %v2276_v50 = vpop.f32.mrf.mxu0  ;;  %v1432_v33 = vsel %vm5311_vm5, %v1430_v62, %v1431_v25 }
 0x23a   : > { %v1791_v19 = vadd.f32 %v1680_v31, %v1246_v13  ;;  %v1498_v28 = vunpack.c.l.b16 %v1432_v33 }
 0x23b   : > { %v1248_v6 = vpop.f32.mrf.mxu1 }
 0x23c   : > { %v1978_v1 = vpop.f32.mrf.mxu3  ;;  %v1249_v13 = vadd.f32 %v1248_v6, %v6595_v10  ;;  %v6598_v10 = vld [vmem:[#allocation18_spill] sm:$0xff] }
 0x23d   : > { %v2089_v56 = vadd.f32 %v1978_v1, %v1791_v19 }
 0x23e   : > { %1287 = vmatmul.bf16.gmra.mxu1 %v5793_v52  ;;  %1722 = vmatmul.bf16.gmra.mxu2 %v5838_v34  ;;  %v1429_v52 = vsel %vm5311_vm5, %v4224_v23, %v1428_v42  ;;  %v4757_v23 = vld [vmem:[%s4895_s7 + $0x98] sm:$0xf] }
 0x23f   : > { %v5874_v58 = vadd.f32 %v2276_v50, %v2089_v56  ;;  %v1497_v50 = vunpack.c.l.b16 %v1429_v52  ;;  %v1434_v15 = vrot.slane %v4757_v23, 5  ;;  %v4634_v23 = vld [vmem:[%s6495_s1 + $0x140] sm:$0xff] }
 0x240   : > { %2490 = vmatpush.bf16.msra.mxu1 %v4634_v23 }
 0x241   : > { %6594 = vst [vmem:[#allocation14_spill] sm:$0xff] %v5874_v58  ;;  %2020 = vmatmul.bf16.gmra.mxu3 %v5868_v8  ;;  %v1683_v31 = vpop.f32.mrf.mxu2  ;;  %v2279_v20 = vpop.f32.mrf.mxu0  ;;  %v5886_v27 = vpack.c.b16 %v1498_v28, %v1497_v50 }
 0x242   : > { %v1792_v19 = vadd.f32 %v1683_v31, %v1249_v13 }
 0x243   : > { %v1250_v1 = vpop.f32.mrf.mxu1  ;;  %6599 = vst [vmem:[#allocation18_spill] sm:$0xff] %v5886_v27 }
 0x244   : > { %v1981_v45 = vpop.f32.mrf.mxu3  ;;  %2318 = vmatmul.bf16.gmra.mxu0 %v6596_v0  ;;  %v1251_v58 = vadd.f32 %v1250_v1, %v6598_v10  ;;  %v6601_v1 = vld [vmem:[#allocation21_spill] sm:$0xff] }
 0x245   : > { %v2090_v56 = vadd.f32 %v1981_v45, %v1792_v19  ;;  %v1433_v45 = vrot.slane %v1431_v25, 4  ;;  %v1436_v19 = vrot.slane %v1434_v15, 4 }
 0x247   : > { %v5883_v6 = vadd.f32 %v2279_v20, %v2090_v56  ;;  %v4758_v20 = vld [vmem:[%s4895_s7 + $0x9c] sm:$0x1]  ;;  %v1435_v25 = vsel %vm5311_vm5, %v1433_v45, %v1434_v15  ;;  %v6603_v45 = vld [vmem:[#allocation23_spill] sm:$0xff] }
 0x248   : > { %v1437_v52 = vrot.slane %v4758_v20, 5 }
 0x249   : > { %6597 = vst [vmem:[#allocation16_spill] sm:$0xff] %v5883_v6  ;;  %v1685_v13 = vpop.f32.mrf.mxu2  ;;  %v2281_v31 = vpop.f32.mrf.mxu0  ;;  %v6616_v6 = vld [vmem:[#allocation10_spill] sm:$0xff] }
 0x24a   : > { %v1793_v43 = vadd.f32 %v1685_v13, %v1251_v58  ;;  %v1438_v13 = vsel %vm5311_vm5, %v1436_v19, %v1437_v52 }
 0x24b   : > { %v1253_v42 = vpop.f32.mrf.mxu1  ;;  %v1500_v20 = vunpack.c.l.b16 %v1438_v13 }
 0x24c   : > { %v1983_v62 = vpop.f32.mrf.mxu3  ;;  %v1254_v56 = vadd.f32 %v1253_v42, %v6601_v1  ;;  %v4650_v42 = vld [vmem:[%s6495_s1 + $0x1c0] sm:$0xff] }
 0x24d   : > { %v2091_v53 = vadd.f32 %v1983_v62, %v1793_v43  ;;  %v4642_v43 = vld [vmem:[%s6495_s1 + $0x180] sm:$0xff]  ;;  %v1499_v62 = vunpack.c.l.b16 %v1435_v25  ;;  %3150 = vmatpush.bf16.msra.mxu3 %v4650_v42 }
 0x24e   : > { %1292 = vmatmul.bf16.gmra.mxu1 %v5854_v4  ;;  %1727 = vmatmul.bf16.gmra.mxu2 %v5886_v27 }
 0x24f   : > { %v5892_v33 = vadd.f32 %v2281_v31, %v2091_v53  ;;  %2800 = vmatpush.bf16.msra.mxu2 %v4642_v43 }
 0x251   : > { %6600 = vst [vmem:[#allocation59_spill] sm:$0xff] %v5892_v33  ;;  %2025 = vmatmul.bf16.gmra.mxu3 %v5854_v4  ;;  %v1688_v58 = vpop.f32.mrf.mxu2  ;;  %v2284_v50 = vpop.f32.mrf.mxu0 }
 0x252   : > { %v1794_v28 = vadd.f32 %v1688_v58, %v1254_v56  ;;  %v5913_v58 = vpack.c.b16 %v1500_v20, %v1499_v62 }
 0x253   : > { %v1255_v10 = vpop.f32.mrf.mxu1 }
 0x254   : > { %v1986_v53 = vpop.f32.mrf.mxu3  ;;  %2323 = vmatmul.bf16.gmra.mxu0 %v6591_v30  ;;  %v1256_v19 = vadd.f32 %v1255_v10, %v6603_v45  ;;  %6604 = vst [vmem:[#allocation23_spill] sm:$0xff] %v5913_v58  ;;  %v6606_v10 = vld [vmem:[#allocation26_spill] sm:$0xff] }
 0x255   : > { %v2092_v31 = vadd.f32 %v1986_v53, %v1794_v28  ;;  %v4658_v28 = vld [vmem:[%s6495_s1 + $0x200] sm:$0xff] }
 0x256   : > { %3470 = vmatpush.bf16.msra.mxu0 %v4658_v28 }
 0x257   : > { %v5910_v15 = vadd.f32 %v2284_v50, %v2092_v31 }
 0x259   : > { %6602 = vst [vmem:[#allocation21_spill] sm:$0xff] %v5910_v15  ;;  %v1690_v52 = vpop.f32.mrf.mxu2  ;;  %v2286_v1 = vpop.f32.mrf.mxu0 }
 0x25a   : > { %v1795_v56 = vadd.f32 %v1690_v52, %v1256_v19  ;;  %v6608_v52 = vld [vmem:[#allocation28_spill] sm:$0xff] }
 0x25b   : > { %v1258_v43 = vpop.f32.mrf.mxu1 }
 0x25c   : > { %v1988_v53 = vpop.f32.mrf.mxu3  ;;  %v1259_v13 = vadd.f32 %v1258_v43, %v6606_v10 }
 0x25d   : > { %v2093_v25 = vadd.f32 %v1988_v53, %v1795_v56 }
 0x25e   : > { %1297 = vmatmul.bf16.gmra.mxu1 %v5868_v8  ;;  %1732 = vmatmul.bf16.gmra.mxu2 %v5913_v58 }
 0x25f   : > { %v5920_v50 = vadd.f32 %v2286_v1, %v2093_v25 }
 0x261   : > { %6605 = vst [vmem:[#allocation60_spill] sm:$0xff] %v5920_v50  ;;  %2030 = vmatmul.bf16.gmra.mxu3 %v5868_v8  ;;  %v1693_v31 = vpop.f32.mrf.mxu2  ;;  %v2289_v42 = vpop.f32.mrf.mxu0  ;;  %v5929_v50 = vld [vmem:[%s4895_s7 + $0xa0] sm:$0xff] }
 0x262   : > { %v1796_v23 = vadd.f32 %v1693_v31, %v1259_v13  ;;  %v6610_v31 = vld [vmem:[#allocation30_spill] sm:$0xff] }
 0x263   : > { %v1260_v62 = vpop.f32.mrf.mxu1 }
 0x264   : > { %v1991_v20 = vpop.f32.mrf.mxu3  ;;  %2328 = vmatmul.bf16.gmra.mxu0 %v6596_v0  ;;  %v1261_v56 = vadd.f32 %v1260_v62, %v6608_v52 }
 0x265   : > { %v2094_v45 = vadd.f32 %v1991_v20, %v1796_v23 }
 0x267   : > { %v5925_v19 = vadd.f32 %v2289_v42, %v2094_v45 }
 0x269   : > { %6607 = vst [vmem:[#allocation26_spill] sm:$0xff] %v5925_v19  ;;  %v1695_v28 = vpop.f32.mrf.mxu2  ;;  %v2291_v1 = vpop.f32.mrf.mxu0 }
 0x26a   : > { %v1797_v53 = vadd.f32 %v1695_v28, %v1261_v56  ;;  %v6611_v56 = vld [vmem:[#allocation9_spill] sm:$0xff] }
 0x26b   : > { %v1263_v25 = vpop.f32.mrf.mxu1 }
 0x26c   : > { %v1993_v43 = vpop.f32.mrf.mxu3  ;;  %v1264_v42 = vadd.f32 %v1263_v25, %v6610_v31 }
 0x26d   : > { %v2095_v10 = vadd.f32 %v1993_v43, %v1797_v53  ;;  %v6613_v53 = vld [vmem:[#allocation32_spill] sm:$0xff] }
 0x26e   : > { %1302 = vmatmul.bf16.gmra.mxu1 %v5854_v4  ;;  %1737 = vmatmul.bf16.gmra.mxu2 %v5886_v27 }
 0x26f   : > { %v5933_v13 = vadd.f32 %v2291_v1, %v2095_v10 }
 0x271   : > { %6609 = vst [vmem:[#allocation28_spill] sm:$0xff] %v5933_v13  ;;  %2035 = vmatmul.bf16.gmra.mxu3 %v5929_v50  ;;  %v1698_v23 = vpop.f32.mrf.mxu2  ;;  %v2294_v62 = vpop.f32.mrf.mxu0  ;;  %v4759_v13 = vld [vmem:[%s4895_s7 + $0xa4] sm:$0xf] }
 0x272   : > { %v1798_v20 = vadd.f32 %v1698_v23, %v1264_v42  ;;  %v1441_v19 = vrot.slane %v4759_v13, 5  ;;  %v5943_v42 = vld [vmem:[%s4895_s7 + $0xa8] sm:$0xff]  ;;  %v4760_v23 = vld [vmem:[%s4895_s7 + $0xa0] sm:$0xf] }
 0x273   : > { %v1265_v45 = vpop.f32.mrf.mxu1 }
 0x274   : > { %v1996_v52 = vpop.f32.mrf.mxu3  ;;  %2333 = vmatmul.bf16.gmra.mxu0 %v6611_v56  ;;  %v1266_v1 = vadd.f32 %v1265_v45, %v6613_v53  ;;  %v6615_v53 = vld [vmem:[#allocation34_spill] sm:$0xff] }
 0x275   : > { %v2096_v28 = vadd.f32 %v1996_v52, %v1798_v20  ;;  %v1443_v20 = vrot.slane %v1441_v19, 4  ;;  %v4761_v52 = vld [vmem:[%s4895_s7 + $0xa8] sm:$0xf] }
 0x277   : > { %v5938_v4 = vadd.f32 %v2294_v62, %v2096_v28  ;;  %v4225_v62 = vrot.slane %v4760_v23, 9  ;;  %v1444_v28 = vrot.slane %v4761_v52, 5 }
 0x279   : > { %6612 = vst [vmem:[#allocation30_spill] sm:$0xff] %v5938_v4  ;;  %v1700_v43 = vpop.f32.mrf.mxu2  ;;  %v2296_v10 = vpop.f32.mrf.mxu0  ;;  %v1445_v23 = vsel %vm5311_vm5, %v1443_v20, %v1444_v28 }
 0x27a   : > { %v1799_v25 = vadd.f32 %v1700_v43, %v1266_v1  ;;  %v1502_v52 = vunpack.c.l.b16 %v1445_v23 }
 0x27b   : > { %v1268_v31 = vpop.f32.mrf.mxu1 }
 0x27c   : > { %v1998_v15 = vpop.f32.mrf.mxu3  ;;  %v1269_v1 = vadd.f32 %v1268_v31, %v6615_v53  ;;  %v6618_v53 = vld [vmem:[#allocation36_spill] sm:$0xff] }
 0x27d   : > { %v2097_v33 = vadd.f32 %v1998_v15, %v1799_v25 }
 0x27e   : > { %1307 = vmatmul.bf16.gmra.mxu1 %v5868_v8  ;;  %1742 = vmatmul.bf16.gmra.mxu2 %v5913_v58  ;;  %v1442_v8 = vsel %vm5311_vm5, %v4225_v62, %v1441_v19  ;;  %v4762_v62 = vld [vmem:[%s4895_s7 + $0xac] sm:$0xf] }
 0x27f   : > { %v5949_v45 = vadd.f32 %v2296_v10, %v2097_v33  ;;  %v1501_v10 = vunpack.c.l.b16 %v1442_v8  ;;  %v1447_v27 = vrot.slane %v4762_v62, 5 }
 0x281   : > { %6614 = vst [vmem:[#allocation9_spill] sm:$0xff] %v5949_v45  ;;  %2040 = vmatmul.bf16.gmra.mxu3 %v5943_v42  ;;  %v1703_v13 = vpop.f32.mrf.mxu2  ;;  %v2299_v43 = vpop.f32.mrf.mxu0  ;;  %v5961_v0 = vpack.c.b16 %v1502_v52, %v1501_v10 }
 0x282   : > { %v1800_v15 = vadd.f32 %v1703_v13, %v1269_v1 }
 0x283   : > { %v1270_v25 = vpop.f32.mrf.mxu1 }
 0x284   : > { %v2001_v4 = vpop.f32.mrf.mxu3  ;;  %2338 = vmatmul.bf16.gmra.mxu0 %v6616_v6  ;;  %v1271_v45 = vadd.f32 %v1270_v25, %v6618_v53  ;;  %v6620_v25 = vld [vmem:[#allocation39_spill] sm:$0xff] }
 0x285   : > { %v2098_v33 = vadd.f32 %v2001_v4, %v1800_v15  ;;  %v1446_v4 = vrot.slane %v1444_v28, 4  ;;  %v1449_v15 = vrot.slane %v1447_v27, 4 }
 0x287   : > { %v5958_v31 = vadd.f32 %v2299_v43, %v2098_v33  ;;  %v4763_v43 = vld [vmem:[%s4895_s7 + $0xb0] sm:$0x1] }
 0x288   : > { %v1450_v8 = vrot.slane %v4763_v43, 5 }
 0x289   : > { %6617 = vst [vmem:[#allocation32_spill] sm:$0xff] %v5958_v31  ;;  %v1705_v1 = vpop.f32.mrf.mxu2  ;;  %v2301_v13 = vpop.f32.mrf.mxu0  ;;  %v6646_v31 = vld [vmem:[#allocation4_spill] sm:$0xff] }
 0x28a   : > { %v1801_v58 = vadd.f32 %v1705_v1, %v1271_v45  ;;  %v1451_v1 = vsel %vm5311_vm5, %v1449_v15, %v1450_v8  ;;  %v6624_v8 = vld [vmem:[#allocation43_spill] sm:$0xff] }
 0x28b   : > { %v1273_v19 = vpop.f32.mrf.mxu1 }
 0x28c   : > { %v2003_v20 = vpop.f32.mrf.mxu3  ;;  %v1274_v33 = vadd.f32 %v1273_v19, %v6620_v25  ;;  %v6622_v19 = vld [vmem:[#allocation41_spill] sm:$0xff] }
 0x28d   : > { %v2099_v30 = vadd.f32 %v2003_v20, %v1801_v58  ;;  %v1448_v58 = vsel %vm5311_vm5, %v1446_v4, %v1447_v27 }
 0x28e   : > { %1312 = vmatmul.bf16.gmra.mxu1 %v5929_v50  ;;  %1747 = vmatmul.bf16.gmra.mxu2 %v5961_v0 }
 0x28f   : > { %v5967_v23 = vadd.f32 %v2301_v13, %v2099_v30  ;;  %v1503_v30 = vunpack.c.l.b16 %v1448_v58  ;;  %v1504_v13 = vunpack.c.l.b16 %v1451_v1 }
 0x291   : > { %6619 = vst [vmem:[#allocation34_spill] sm:$0xff] %v5967_v23  ;;  %2045 = vmatmul.bf16.gmra.mxu3 %v5929_v50  ;;  %v1708_v45 = vpop.f32.mrf.mxu2  ;;  %v2304_v10 = vpop.f32.mrf.mxu0 }
 0x292   : > { %v1802_v52 = vadd.f32 %v1708_v45, %v1274_v33  ;;  %v5979_v45 = vpack.c.b16 %v1504_v13, %v1503_v30  ;;  %v6626_v13 = vld [vmem:[#allocation45_spill] sm:$0xff] }
 0x293   : > { %v1275_v53 = vpop.f32.mrf.mxu1 }
 0x294   : > { %v2006_v28 = vpop.f32.mrf.mxu3  ;;  %2343 = vmatmul.bf16.gmra.mxu0 %v6611_v56  ;;  %v1276_v50 = vadd.f32 %v1275_v53, %v6622_v19 }
 0x295   : > { %v2100_v62 = vadd.f32 %v2006_v28, %v1802_v52 }
 0x297   : > { %v5976_v20 = vadd.f32 %v2304_v10, %v2100_v62 }
 0x299   : > { %6621 = vst [vmem:[#allocation10_spill] sm:$0xff] %v5976_v20  ;;  %v1710_v43 = vpop.f32.mrf.mxu2  ;;  %v2306_v25 = vpop.f32.mrf.mxu0  ;;  %v6636_v20 = vld [vmem:[#allocation8_spill] sm:$0xff] }
 0x29a   : > { %v1803_v33 = vadd.f32 %v1710_v43, %v1276_v50 }
 0x29b   : > { %v1278_v23 = vpop.f32.mrf.mxu1 }
 0x29c   : > { %v2008_v27 = vpop.f32.mrf.mxu3  ;;  %v1279_v52 = vadd.f32 %v1278_v23, %v6624_v8 }
 0x29d   : > { %v2101_v4 = vadd.f32 %v2008_v27, %v1803_v33 }
 0x29e   : > { %1317 = vmatmul.bf16.gmra.mxu1 %v5943_v42  ;;  %1752 = vmatmul.bf16.gmra.mxu2 %v5979_v45 }
 0x29f   : > { %v5983_v15 = vadd.f32 %v2306_v25, %v2101_v4  ;;  %v4764_v4 = vld [vmem:[%s4895_s7 + $0x14] sm:$0xff] }
 0x2a1   : > { %6623 = vst [vmem:[#allocation36_spill] sm:$0xff] %v5983_v15  ;;  %2050 = vmatmul.bf16.gmra.mxu3 %v5943_v42  ;;  %v1713_v10 = vpop.f32.mrf.mxu2  ;;  %v2309_v53 = vpop.f32.mrf.mxu0  ;;  %v6627_v42 = vld [vmem:[#allocation20_spill] sm:$0xff]  ;;  %v6630_v15 = vld [vmem:[#allocation6_spill] sm:$0xff] }
 0x2a2   : > { %v1804_v58 = vadd.f32 %v1713_v10, %v1279_v52  ;;  %v6629_v52 = vld [vmem:[#allocation13_spill] sm:$0xff] }
 0x2a3   : > { %v1280_v1 = vpop.f32.mrf.mxu1 }
 0x2a4   : > { %v2011_v28 = vpop.f32.mrf.mxu3  ;;  %2348 = vmatmul.bf16.gmra.mxu0 %v6616_v6  ;;  %v1281_v19 = vadd.f32 %v1280_v1, %v6626_v13 }
 0x2a5   : > { %v2102_v62 = vadd.f32 %v2011_v28, %v1804_v58 }
 0x2a7   : > { %v5988_v30 = vadd.f32 %v2309_v53, %v2102_v62 }
 0x2a9   : > { %6625 = vst [vmem:[#allocation39_spill] sm:$0xff] %v5988_v30  ;;  %v1715_v50 = vpop.f32.mrf.mxu2  ;;  %v2311_v43 = vpop.f32.mrf.mxu0 }
 0x2aa   : > { %v1805_v25 = vadd.f32 %v1715_v50, %v1281_v19  ;;  %v6632_v50 = vld [vmem:[#allocation15_spill] sm:$0xff] }
 0x2ab   : > { %v1283_v33 = vpop.f32.mrf.mxu1 }
 0x2ac   : > { %v2013_v23 = vpop.f32.mrf.mxu3  ;;  %v1284_v10 = vadd.f32 %v1283_v33, %v6629_v52 }
 0x2ad   : > { %v2103_v27 = vadd.f32 %v2013_v23, %v1805_v25 }
 0x2ae   : > { %2491 = vmatmul.bf16.vlgmr.msra.gmra.mxu1 %v6627_v42  ;;  %2801 = vmatmul.bf16.vlgmr.msra.gmra.mxu2 %v4764_v4 }
 0x2af   : > { %v5993_v8 = vadd.f32 %v2311_v43, %v2103_v27 }
 0x2b1   : > { %6628 = vst [vmem:[#allocation41_spill] sm:$0xff] %v5993_v8  ;;  %3151 = vmatmul.bf16.vlgmr.msra.gmra.mxu3 %v6630_v15  ;;  %v1718_v53 = vpop.f32.mrf.mxu2  ;;  %v2314_v58 = vpop.f32.mrf.mxu0  ;;  %v6633_v15 = vld [vmem:[#allocation24_spill] sm:$0xff]  ;;  %v4765_v8 = vld [vmem:[%s4895_s7 + $0x1c] sm:$0xff] }
 0x2b2   : > { %v1806_v1 = vadd.f32 %v1718_v53, %v1284_v10  ;;  %v6635_v53 = vld [vmem:[#allocation17_spill] sm:$0xff] }
 0x2b3   : > { %v1285_v28 = vpop.f32.mrf.mxu1 }
 0x2b4   : > { %v2016_v62 = vpop.f32.mrf.mxu3  ;;  %3471 = vmatmul.bf16.vlgmr.msra.gmra.mxu0 %v6627_v42  ;;  %v1286_v25 = vadd.f32 %v1285_v28, %v6632_v50 }
 0x2b5   : > { %v2104_v13 = vadd.f32 %v2016_v62, %v1806_v1 }
 0x2b7   : > { %v5998_v19 = vadd.f32 %v2314_v58, %v2104_v13 }
 0x2b9   : > { %6631 = vst [vmem:[#allocation43_spill] sm:$0xff] %v5998_v19  ;;  %v1720_v23 = vpop.f32.mrf.mxu2  ;;  %v2316_v43 = vpop.f32.mrf.mxu0  ;;  %v6641_v19 = vld [vmem:[#allocation3_spill] sm:$0xff] }
 0x2ba   : > { %v1807_v27 = vadd.f32 %v1720_v23, %v1286_v25  ;;  %v6638_v23 = vld [vmem:[#allocation19_spill] sm:$0xff] }
 0x2bb   : > { %v1288_v4 = vpop.f32.mrf.mxu1 }
 0x2bc   : > { %v2018_v33 = vpop.f32.mrf.mxu3  ;;  %v1289_v30 = vadd.f32 %v1288_v4, %v6635_v53 }
 0x2bd   : > { %v2105_v52 = vadd.f32 %v2018_v33, %v1807_v27 }
 0x2be   : > { %2496 = vmatmul.bf16.gmra.mxu1 %v6633_v15  ;;  %2806 = vmatmul.bf16.gmra.mxu2 %v4765_v8 }
 0x2bf   : > { %v6003_v10 = vadd.f32 %v2316_v43, %v2105_v52 }
 0x2c1   : > { %6634 = vst [vmem:[#allocation45_spill] sm:$0xff] %v6003_v10  ;;  %3156 = vmatmul.bf16.gmra.mxu3 %v6636_v20  ;;  %v1723_v58 = vpop.f32.mrf.mxu2  ;;  %v2319_v1 = vpop.f32.mrf.mxu0  ;;  %v4766_v20 = vld [vmem:[%s4895_s7 + $0x28] sm:$0xff] }
 0x2c2   : > { %v1808_v28 = vadd.f32 %v1723_v58, %v1289_v30  ;;  %v6640_v58 = vld [vmem:[#allocation22_spill] sm:$0xff] }
 0x2c3   : > { %v1290_v62 = vpop.f32.mrf.mxu1 }
 0x2c4   : > { %v2021_v13 = vpop.f32.mrf.mxu3  ;;  %3476 = vmatmul.bf16.gmra.mxu0 %v6633_v15  ;;  %v1291_v27 = vadd.f32 %v1290_v62, %v6638_v23  ;;  %v6642_v23 = vld [vmem:[#allocation37_spill] sm:$0xff] }
 0x2c5   : > { %v2106_v50 = vadd.f32 %v2021_v13, %v1808_v28 }
 0x2c7   : > { %v6008_v25 = vadd.f32 %v2319_v1, %v2106_v50 }
 0x2c9   : > { %6637 = vst [vmem:[#allocation20_spill] sm:$0xff] %v6008_v25  ;;  %v1725_v8 = vpop.f32.mrf.mxu2  ;;  %v2321_v43 = vpop.f32.mrf.mxu0  ;;  %v4767_v25 = vld [vmem:[%s4895_s7 + $0x30] sm:$0xff] }
 0x2ca   : > { %v1809_v33 = vadd.f32 %v1725_v8, %v1291_v27 }
 0x2cb   : > { %v1293_v52 = vpop.f32.mrf.mxu1 }
 0x2cc   : > { %v2023_v4 = vpop.f32.mrf.mxu3  ;;  %v1294_v10 = vadd.f32 %v1293_v52, %v6640_v58 }
 0x2cd   : > { %v2107_v53 = vadd.f32 %v2023_v4, %v1809_v33 }
 0x2ce   : > { %2501 = vmatmul.bf16.gmra.mxu1 %v6627_v42  ;;  %2811 = vmatmul.bf16.gmra.mxu2 %v4766_v20  ;;  %v6643_v42 = vld [vmem:[#allocation25_spill] sm:$0xff] }
 0x2cf   : > { %v6013_v30 = vadd.f32 %v2321_v43, %v2107_v53 }
 0x2d1   : > { %6639 = vst [vmem:[#allocation13_spill] sm:$0xff] %v6013_v30  ;;  %3161 = vmatmul.bf16.gmra.mxu3 %v6641_v19  ;;  %v1728_v1 = vpop.f32.mrf.mxu2  ;;  %v2324_v28 = vpop.f32.mrf.mxu0 }
 0x2d2   : > { %v1810_v62 = vadd.f32 %v1728_v1, %v1294_v10  ;;  %v6645_v1 = vld [vmem:[#allocation27_spill] sm:$0xff] }
 0x2d3   : > { %v1295_v13 = vpop.f32.mrf.mxu1 }
 0x2d4   : > { %v2026_v50 = vpop.f32.mrf.mxu3  ;;  %3481 = vmatmul.bf16.gmra.mxu0 %v6642_v23  ;;  %v1296_v33 = vadd.f32 %v1295_v13, %v6643_v42 }
 0x2d5   : > { %v2108_v27 = vadd.f32 %v2026_v50, %v1810_v62 }
 0x2d7   : > { %v6018_v8 = vadd.f32 %v2324_v28, %v2108_v27 }
 0x2d9   : > { %v1730_v4 = vpop.f32.mrf.mxu2  ;;  %v2326_v43 = vpop.f32.mrf.mxu0 }
 0x2da   : > { %v1811_v53 = vadd.f32 %v1730_v4, %v1296_v33  ;;  %v6647_v4 = vld [vmem:[#allocation29_spill] sm:$0xff] }
 0x2db   : > { %v1298_v30 = vpop.f32.mrf.mxu1 }
 0x2dc   : > { %v2028_v52 = vpop.f32.mrf.mxu3  ;;  %v1299_v48 = vadd.f32 %v1298_v30, %v6645_v1 }
 0x2dd   : > { %v2109_v58 = vadd.f32 %v2028_v52, %v1811_v53 }
 0x2de   : > { %2506 = vmatmul.bf16.gmra.mxu1 %v6633_v15  ;;  %2816 = vmatmul.bf16.gmra.mxu2 %v4767_v25 }
 0x2df   : > { %v6023_v10 = vadd.f32 %v2326_v43, %v2109_v58 }
 0x2e1   : > { %6644 = vst [vmem:[#allocation6_spill] sm:$0xff] %v6023_v10  ;;  %3166 = vmatmul.bf16.gmra.mxu3 %v6646_v31  ;;  %v1733_v28 = vpop.f32.mrf.mxu2  ;;  %v2329_v62 = vpop.f32.mrf.mxu0 }
 0x2e2   : > { %v1812_v50 = vadd.f32 %v1733_v28, %v1299_v48  ;;  %v6649_v48 = vld [vmem:[#allocation31_spill] sm:$0xff] }
 0x2e3   : > { %v1300_v13 = vpop.f32.mrf.mxu1 }
 0x2e4   : > { %v2031_v27 = vpop.f32.mrf.mxu3  ;;  %3486 = vmatmul.bf16.gmra.mxu0 %v5528_v40  ;;  %v1301_v15 = vadd.f32 %v1300_v13, %v6647_v4 }
 0x2e5   : > { %v2110_v42 = vadd.f32 %v2031_v27, %v1812_v50 }
 0x2e7   : > { %v6028_v33 = vadd.f32 %v2329_v62, %v2110_v42 }
 0x2e9   : > { %v1735_v53 = vpop.f32.mrf.mxu2  ;;  %v2331_v52 = vpop.f32.mrf.mxu0 }
 0x2ea   : > { %v1813_v43 = vadd.f32 %v1735_v53, %v1301_v15 }
 0x2eb   : > { %v1303_v58 = vpop.f32.mrf.mxu1 }
 0x2ec   : > { %v2033_v10 = vpop.f32.mrf.mxu3  ;;  %v1304_v28 = vadd.f32 %v1303_v58, %v6649_v48  ;;  %v6651_v48 = vld [vmem:[#allocation35_spill] sm:$0xff] }
 0x2ed   : > { %v2111_v30 = vadd.f32 %v2033_v10, %v1813_v43  ;;  %v6650_v10 = vld [vmem:[#allocation33_spill] sm:$0xff] }
 0x2ee   : > { %2511 = vmatmul.bf16.gmra.mxu1 %v6642_v23  ;;  %2821 = vmatmul.bf16.gmra.mxu2 %v4766_v20 }
 0x2ef   : > { %v6032_v1 = vadd.f32 %v2331_v52, %v2111_v30 }
 0x2f1   : > { %6648 = vst [vmem:[#allocation15_spill] sm:$0xff] %v6032_v1  ;;  %3171 = vmatmul.bf16.gmra.mxu3 %v6641_v19  ;;  %v1738_v50 = vpop.f32.mrf.mxu2  ;;  %v2334_v62 = vpop.f32.mrf.mxu0 }
 0x2f2   : > { %v1814_v27 = vadd.f32 %v1738_v50, %v1304_v28 }
 0x2f3   : > { %v1305_v42 = vpop.f32.mrf.mxu1 }
 0x2f4   : > { %v2036_v13 = vpop.f32.mrf.mxu3  ;;  %3491 = vmatmul.bf16.gmra.mxu0 %v6642_v23  ;;  %v1306_v53 = vadd.f32 %v1305_v42, %v6650_v10 }
 0x2f5   : > { %v2112_v4 = vadd.f32 %v2036_v13, %v1814_v27 }
 0x2f7   : > { %v6037_v15 = vadd.f32 %v2334_v62, %v2112_v4 }
 0x2f9   : > { %v1740_v43 = vpop.f32.mrf.mxu2  ;;  %v2336_v20 = vpop.f32.mrf.mxu0 }
 0x2fa   : > { %v1815_v52 = vadd.f32 %v1740_v43, %v1306_v53 }
 0x2fb   : > { %v1308_v30 = vpop.f32.mrf.mxu1 }
 0x2fc   : > { %v2038_v1 = vpop.f32.mrf.mxu3  ;;  %v1309_v28 = vadd.f32 %v1308_v30, %v6651_v48 }
 0x2fd   : > { %v2113_v58 = vadd.f32 %v2038_v1, %v1815_v52  ;;  %v6653_v1 = vld [vmem:[#allocation38_spill] sm:$0xff] }
 0x2fe   : > { %2516 = vmatmul.bf16.gmra.mxu1 %v5528_v40  ;;  %2826 = vmatmul.bf16.gmra.mxu2 %v4767_v25 }
 0x2ff   : > { %v6041_v19 = vadd.f32 %v2336_v20, %v2113_v58 }
 0x301   : > { %3176 = vmatmul.bf16.gmra.mxu3 %v6646_v31  ;;  %v1743_v50 = vpop.f32.mrf.mxu2  ;;  %v2339_v62 = vpop.f32.mrf.mxu0  ;;  %v4768_v31 = vld [vmem:[%s4895_s7 + $0x3c] sm:$0xff] }
 0x302   : > { %v1816_v27 = vadd.f32 %v1743_v50, %v1309_v28  ;;  %v6655_v28 = vld [vmem:[#allocation40_spill] sm:$0xff] }
 0x303   : > { %v1310_v42 = vpop.f32.mrf.mxu1 }
 0x304   : > { %v2041_v13 = vpop.f32.mrf.mxu3  ;;  %3496 = vmatmul.bf16.gmra.mxu0 %v5528_v40  ;;  %v1311_v53 = vadd.f32 %v1310_v42, %v6653_v1 }
 0x305   : > { %v2114_v4 = vadd.f32 %v2041_v13, %v1816_v27 }
 0x307   : > { %v6046_v10 = vadd.f32 %v2339_v62, %v2114_v4 }
 0x309   : > { %6652 = vst [vmem:[#allocation24_spill] sm:$0xff] %v6046_v10  ;;  %v1745_v25 = vpop.f32.mrf.mxu2  ;;  %v2341_v43 = vpop.f32.mrf.mxu0 }
 0x30a   : > { %v1817_v20 = vadd.f32 %v1745_v25, %v1311_v53 }
 0x30b   : > { %v1313_v52 = vpop.f32.mrf.mxu1 }
 0x30c   : > { %v2043_v30 = vpop.f32.mrf.mxu3  ;;  %v1314_v50 = vadd.f32 %v1313_v52, %v6655_v28 }
 0x30d   : > { %v2115_v58 = vadd.f32 %v2043_v30, %v1817_v20 }
 0x30e   : > { %2521 = vmatmul.bf16.gmra.mxu1 %v6642_v23  ;;  %2831 = vmatmul.bf16.gmra.mxu2 %v4768_v31  ;;  %v6656_v23 = vld [vmem:[#allocation42_spill] sm:$0xff] }
 0x30f   : > { %v6051_v48 = vadd.f32 %v2341_v43, %v2115_v58 }
 0x311   : > { %6654 = vst [vmem:[#allocation17_spill] sm:$0xff] %v6051_v48  ;;  %3181 = vmatmul.bf16.gmra.mxu3 %v5112_v9  ;;  %v1748_v62 = vpop.f32.mrf.mxu2  ;;  %v2344_v27 = vpop.f32.mrf.mxu0  ;;  %v4769_v48 = vld [vmem:[%s4895_s7 + $0x44] sm:$0xff] }
 0x312   : > { %v1818_v42 = vadd.f32 %v1748_v62, %v1314_v50  ;;  %v6657_v62 = vld [vmem:[#allocation44_spill] sm:$0xff] }
 0x313   : > { %v1315_v13 = vpop.f32.mrf.mxu1 }
 0x314   : > { %v2046_v4 = vpop.f32.mrf.mxu3  ;;  %3501 = vmatmul.bf16.gmra.mxu0 %v5586_v54  ;;  %v1316_v25 = vadd.f32 %v1315_v13, %v6656_v23 }
 0x315   : > { %v2116_v1 = vadd.f32 %v2046_v4, %v1818_v42 }
 0x317   : > { %v6056_v53 = vadd.f32 %v2344_v27, %v2116_v1 }
 0x319   : > { %v1750_v20 = vpop.f32.mrf.mxu2  ;;  %v2346_v43 = vpop.f32.mrf.mxu0 }
 0x31a   : > { %v1819_v30 = vadd.f32 %v1750_v20, %v1316_v25  ;;  %v6658_v20 = vld [vmem:[#allocation46_spill] sm:$0xff] }
 0x31b   : > { %v1318_v58 = vpop.f32.mrf.mxu1 }
 0x31c   : > { %v2048_v52 = vpop.f32.mrf.mxu3  ;;  %v1319_v10 = vadd.f32 %v1318_v58, %v6657_v62 }
 0x31d   : > { %v2117_v28 = vadd.f32 %v2048_v52, %v1819_v30 }
 0x31e   : > { %2526 = vmatmul.bf16.gmra.mxu1 %v5528_v40  ;;  %2836 = vmatmul.bf16.gmra.mxu2 %v4769_v48 }
 0x31f   : > { %v6061_v50 = vadd.f32 %v2346_v43, %v2117_v28 }
 0x321   : > { %3186 = vmatmul.bf16.gmra.mxu3 %v5206_v29  ;;  %v1753_v27 = vpop.f32.mrf.mxu2  ;;  %v2349_v42 = vpop.f32.mrf.mxu0 }
 0x322   : > { %v1820_v13 = vadd.f32 %v1753_v27, %v1319_v10 }
 0x323   : > { %v1320_v4 = vpop.f32.mrf.mxu1 }
 0x324   : > { %v2051_v1 = vpop.f32.mrf.mxu3  ;;  %3506 = vmatmul.bf16.gmra.mxu0 %v5613_v55  ;;  %v1321_v40 = vadd.f32 %v1320_v4, %v6658_v20 }
 0x325   : > { %v2118_v23 = vadd.f32 %v2051_v1, %v1820_v13 }
 0x327   : > { %v6066_v25 = vadd.f32 %v2349_v42, %v2118_v23 }
 0x329   : > { %v1755_v30 = vpop.f32.mrf.mxu2  ;;  %v2351_v43 = vpop.f32.mrf.mxu0 }
 0x32a   : > { %v1821_v52 = vadd.f32 %v1755_v30, %v1321_v40 }
 0x32b   : > { %v2492_v58 = vpop.f32.mrf.mxu1 }
 0x32c   : > { %v2053_v28 = vpop.f32.mrf.mxu3  ;;  %v2652_v27 = vadd.f32 %v2492_v58, %v5563_v11  ;;  %v6659_v11 = vld [vmem:[#allocation47_spill] sm:$0xff] }
 0x32d   : > { %v2119_v62 = vadd.f32 %v2053_v28, %v1821_v52 }
 0x32e   : > { %2531 = vmatmul.bf16.gmra.mxu1 %v5586_v54  ;;  %2841 = vmatmul.bf16.gmra.mxu2 %v4768_v31  ;;  %v6080_v31 = vld [vmem:[%s6496_s2] ss:$0 sm:$0xff] }
 0x32f   : > { %v6071_v10 = vadd.f32 %v2351_v43, %v2119_v62 }
 0x331   : > { %3191 = vmatmul.bf16.gmra.mxu3 %v5112_v9  ;;  %v2802_v42 = vpop.f32.mrf.mxu2  ;;  %v3472_v13 = vpop.f32.mrf.mxu0  ;;  %v6085_v9 = vld [vmem:[%s6497_s3] ss:$0 sm:$0xff] }
 0x332   : > { %v2962_v4 = vadd.f32 %v2802_v42, %v2652_v27 }
 0x333   : > { %v2494_v1 = vpop.f32.mrf.mxu1 }
 0x334   : > { %v3152_v23 = vpop.f32.mrf.mxu3  ;;  %3511 = vmatmul.bf16.gmra.mxu0 %v5586_v54  ;;  %v2653_v30 = vadd.f32 %v2494_v1, %v6659_v11 }
 0x335   : > { %v3312_v20 = vadd.f32 %v3152_v23, %v2962_v4 }
 0x337   : > { %v3632_v40 = vadd.f32 %v3472_v13, %v3312_v20 }
 0x339   : > { %v3700_v43 = vmul.f32 %v6080_v31, %v3632_v40  ;;  %v2804_v52 = vpop.f32.mrf.mxu2  ;;  %v3474_v58 = vpop.f32.mrf.mxu0 }
 0x33a   : > { %v2963_v28 = vadd.f32 %v2804_v52, %v2653_v30 }
 0x33b   : > { %v3768_v62 = vadd.f32 %v6085_v9, %v3700_v43  ;;  %v2497_v27 = vpop.f32.mrf.mxu1 }
 0x33c   : > { %v3154_v42 = vpop.f32.mrf.mxu3  ;;  %v2654_v23 = vadd.f32 %v2497_v27, %v5583_v18 }
 0x33d   : > { %v3832_v13 = vmax.f32 %v3768_v62, 0.0  ;;  %v3313_v4 = vadd.f32 %v3154_v42, %v2963_v28 }
 0x33e   : > { %2536 = vmatmul.bf16.gmra.mxu1 %v5613_v55  ;;  %2846 = vmatmul.bf16.gmra.mxu2 %v4769_v48 }
 0x33f   : > { %3896 = vst [vmem:[%s6093_s11] sm:$0xff] %v3832_v13  ;;  %v3633_v1 = vadd.f32 %v3474_v58, %v3313_v4 }
 0x341   : > { %v3701_v20 = vmul.f32 %v6080_v31, %v3633_v1  ;;  %3196 = vmatmul.bf16.gmra.mxu3 %v5206_v29  ;;  %v2807_v40 = vpop.f32.mrf.mxu2  ;;  %v3477_v11 = vpop.f32.mrf.mxu0 }
 0x342   : > { %v2964_v30 = vadd.f32 %v2807_v40, %v2654_v23 }
 0x343   : > { %v3769_v43 = vadd.f32 %v6085_v9, %v3701_v20  ;;  %v2499_v52 = vpop.f32.mrf.mxu1 }
 0x344   : > { %v3157_v62 = vpop.f32.mrf.mxu3  ;;  %3516 = vmatmul.bf16.gmra.mxu0 %v5613_v55  ;;  %v2655_v18 = vadd.f32 %v2499_v52, %v5592_v7 }
 0x345   : > { %v3833_v28 = vmax.f32 %v3769_v43, 0.0  ;;  %v3314_v48 = vadd.f32 %v3157_v62, %v2964_v30  ;;  %v4770_v43 = vld [vmem:[%s4895_s7 + $0x50] sm:$0xff] }
 0x347   : > { %3897 = vst [vmem:[%s6093_s11 + $0x8] sm:$0xff] %v3833_v28  ;;  %v3634_v58 = vadd.f32 %v3477_v11, %v3314_v48 }
 0x349   : > { %v3702_v27 = vmul.f32 %v6080_v31, %v3634_v58  ;;  %v2809_v29 = vpop.f32.mrf.mxu2  ;;  %v3479_v42 = vpop.f32.mrf.mxu0 }
 0x34a   : > { %v2965_v13 = vadd.f32 %v2809_v29, %v2655_v18 }
 0x34b   : > { %v3770_v4 = vadd.f32 %v6085_v9, %v3702_v27  ;;  %v2502_v1 = vpop.f32.mrf.mxu1 }
 0x34c   : > { %v3159_v23 = vpop.f32.mrf.mxu3  ;;  %v2656_v7 = vadd.f32 %v2502_v1, %v5610_v60 }
 0x34d   : > { %v3834_v20 = vmax.f32 %v3770_v4, 0.0  ;;  %v3315_v40 = vadd.f32 %v3159_v23, %v2965_v13 }
 0x34e   : > { %2541 = vmatmul.bf16.gmra.mxu1 %v5586_v54  ;;  %2851 = vmatmul.bf16.gmra.mxu2 %v4770_v43 }
 0x34f   : > { %3898 = vst [vmem:[%s6093_s11 + $0x10] sm:$0xff] %v3834_v20  ;;  %v3635_v11 = vadd.f32 %v3479_v42, %v3315_v40 }
 0x351   : > { %v3703_v30 = vmul.f32 %v6080_v31, %v3635_v11  ;;  %3201 = vmatmul.bf16.gmra.mxu3 %v4967_v17  ;;  %v2812_v52 = vpop.f32.mrf.mxu2  ;;  %v3482_v62 = vpop.f32.mrf.mxu0 }
 0x352   : > { %v2966_v28 = vadd.f32 %v2812_v52, %v2656_v7 }
 0x353   : > { %v3771_v48 = vadd.f32 %v6085_v9, %v3703_v30  ;;  %v2504_v58 = vpop.f32.mrf.mxu1  ;;  %v4771_v30 = vld [vmem:[%s4895_s7 + $0x58] sm:$0xff] }
 0x354   : > { %v3162_v18 = vpop.f32.mrf.mxu3  ;;  %3521 = vmatmul.bf16.gmra.mxu0 %v5661_v63  ;;  %v2657_v60 = vadd.f32 %v2504_v58, %v5620_v3 }
 0x355   : > { %v3835_v27 = vmax.f32 %v3771_v48, 0.0  ;;  %v3316_v54 = vadd.f32 %v3162_v18, %v2966_v28 }
 0x357   : > { %3899 = vst [vmem:[%s6093_s11 + $0x18] sm:$0xff] %v3835_v27  ;;  %v3636_v29 = vadd.f32 %v3482_v62, %v3316_v54 }
 0x359   : > { %v3704_v42 = vmul.f32 %v6080_v31, %v3636_v29  ;;  %v2814_v13 = vpop.f32.mrf.mxu2  ;;  %v3484_v4 = vpop.f32.mrf.mxu0 }
 0x35a   : > { %v2967_v1 = vadd.f32 %v2814_v13, %v2657_v60 }
 0x35b   : > { %v3772_v23 = vadd.f32 %v6085_v9, %v3704_v42  ;;  %v2507_v20 = vpop.f32.mrf.mxu1 }
 0x35c   : > { %v3164_v40 = vpop.f32.mrf.mxu3  ;;  %v2658_v3 = vadd.f32 %v2507_v20, %v5625_v41 }
 0x35d   : > { %v3836_v11 = vmax.f32 %v3772_v23, 0.0  ;;  %v3317_v7 = vadd.f32 %v3164_v40, %v2967_v1 }
 0x35e   : > { %2546 = vmatmul.bf16.gmra.mxu1 %v5613_v55  ;;  %2856 = vmatmul.bf16.gmra.mxu2 %v4771_v30 }
 0x35f   : > { %3900 = vst [vmem:[%s6093_s11 + $0x20] sm:$0xff] %v3836_v11  ;;  %v3637_v52 = vadd.f32 %v3484_v4, %v3317_v7 }
 0x361   : > { %v3705_v62 = vmul.f32 %v6080_v31, %v3637_v52  ;;  %3206 = vmatmul.bf16.gmra.mxu3 %v5059_v21  ;;  %v2817_v28 = vpop.f32.mrf.mxu2  ;;  %v3487_v48 = vpop.f32.mrf.mxu0 }
 0x362   : > { %v2968_v58 = vadd.f32 %v2817_v28, %v2658_v3 }
 0x363   : > { %v3773_v18 = vadd.f32 %v6085_v9, %v3705_v62  ;;  %v2509_v27 = vpop.f32.mrf.mxu1 }
 0x364   : > { %v3167_v54 = vpop.f32.mrf.mxu3  ;;  %3526 = vmatmul.bf16.gmra.mxu0 %v5688_v14  ;;  %v2659_v41 = vadd.f32 %v2509_v27, %v5633_v46 }
 0x365   : > { %v3837_v29 = vmax.f32 %v3773_v18, 0.0  ;;  %v3318_v55 = vadd.f32 %v3167_v54, %v2968_v58 }
 0x367   : > { %3901 = vst [vmem:[%s6093_s11 + $0x28] sm:$0xff] %v3837_v29  ;;  %v3638_v60 = vadd.f32 %v3487_v48, %v3318_v55  ;;  %v6660_v55 = vld [vmem:[#allocation48_spill] sm:$0xff] }
 0x369   : > { %v3706_v42 = vmul.f32 %v6080_v31, %v3638_v60  ;;  %v2819_v13 = vpop.f32.mrf.mxu2  ;;  %v3489_v4 = vpop.f32.mrf.mxu0 }
 0x36a   : > { %v2969_v1 = vadd.f32 %v2819_v13, %v2659_v41 }
 0x36b   : > { %v3774_v23 = vadd.f32 %v6085_v9, %v3706_v42  ;;  %v2512_v20 = vpop.f32.mrf.mxu1 }
 0x36c   : > { %v3169_v40 = vpop.f32.mrf.mxu3  ;;  %v2660_v3 = vadd.f32 %v2512_v20, %v5638_v59 }
 0x36d   : > { %v3838_v11 = vmax.f32 %v3774_v23, 0.0  ;;  %v3319_v7 = vadd.f32 %v3169_v40, %v2969_v1 }
 0x36e   : > { %2551 = vmatmul.bf16.gmra.mxu1 %v5661_v63  ;;  %2861 = vmatmul.bf16.gmra.mxu2 %v4770_v43 }
 0x36f   : > { %3902 = vst [vmem:[%s6093_s11 + $0x30] sm:$0xff] %v3838_v11  ;;  %v3639_v52 = vadd.f32 %v3489_v4, %v3319_v7 }
 0x371   : > { %v3707_v46 = vmul.f32 %v6080_v31, %v3639_v52  ;;  %3211 = vmatmul.bf16.gmra.mxu3 %v4967_v17  ;;  %v2822_v62 = vpop.f32.mrf.mxu2  ;;  %v3492_v28 = vpop.f32.mrf.mxu0 }
 0x372   : > { %v2970_v48 = vadd.f32 %v2822_v62, %v2660_v3 }
 0x373   : > { %v3775_v58 = vadd.f32 %v6085_v9, %v3707_v46  ;;  %v2514_v18 = vpop.f32.mrf.mxu1 }
 0x374   : > { %v3172_v27 = vpop.f32.mrf.mxu3  ;;  %3531 = vmatmul.bf16.gmra.mxu0 %v5661_v63  ;;  %v2661_v59 = vadd.f32 %v2514_v18, %v6660_v55 }
 0x375   : > { %v3839_v54 = vmax.f32 %v3775_v58, 0.0  ;;  %v3320_v43 = vadd.f32 %v3172_v27, %v2970_v48 }
 0x377   : > { %3903 = vst [vmem:[%s6093_s11 + $0x38] sm:$0xff] %v3839_v54  ;;  %v3640_v29 = vadd.f32 %v3492_v28, %v3320_v43 }
 0x379   : > { %v3708_v60 = vmul.f32 %v6080_v31, %v3640_v29  ;;  %v2824_v41 = vpop.f32.mrf.mxu2  ;;  %v3494_v17 = vpop.f32.mrf.mxu0 }
 0x37a   : > { %v2971_v42 = vadd.f32 %v2824_v41, %v2661_v59 }
 0x37b   : > { %v3776_v13 = vadd.f32 %v6085_v9, %v3708_v60  ;;  %v2517_v4 = vpop.f32.mrf.mxu1 }
 0x37c   : > { %v3174_v1 = vpop.f32.mrf.mxu3  ;;  %v2662_v11 = vadd.f32 %v2517_v4, %v5658_v57 }
 0x37d   : > { %v3840_v23 = vmax.f32 %v3776_v13, 0.0  ;;  %v3321_v20 = vadd.f32 %v3174_v1, %v2971_v42 }
 0x37e   : > { %2556 = vmatmul.bf16.gmra.mxu1 %v5688_v14  ;;  %2866 = vmatmul.bf16.gmra.mxu2 %v4771_v30 }
 0x37f   : > { %3904 = vst [vmem:[%s6093_s11 + $0x40] sm:$0xff] %v3840_v23  ;;  %v3641_v40 = vadd.f32 %v3494_v17, %v3321_v20  ;;  %v4772_v17 = vld [vmem:[%s4895_s7 + $0x64] sm:$0xff] }
 0x381   : > { %v3709_v7 = vmul.f32 %v6080_v31, %v3641_v40  ;;  %3216 = vmatmul.bf16.gmra.mxu3 %v5059_v21  ;;  %v2827_v52 = vpop.f32.mrf.mxu2  ;;  %v3497_v3 = vpop.f32.mrf.mxu0 }
 0x382   : > { %v2972_v46 = vadd.f32 %v2827_v52, %v2662_v11 }
 0x383   : > { %v3777_v62 = vadd.f32 %v6085_v9, %v3709_v7  ;;  %v2519_v28 = vpop.f32.mrf.mxu1 }
 0x384   : > { %v3177_v48 = vpop.f32.mrf.mxu3  ;;  %3536 = vmatmul.bf16.gmra.mxu0 %v5688_v14  ;;  %v2663_v57 = vadd.f32 %v2519_v28, %v5667_v24 }
 0x385   : > { %v3841_v58 = vmax.f32 %v3777_v62, 0.0  ;;  %v3322_v30 = vadd.f32 %v3177_v48, %v2972_v46 }
 0x387   : > { %3905 = vst [vmem:[%s6093_s11 + $0x48] sm:$0xff] %v3841_v58  ;;  %v3642_v18 = vadd.f32 %v3497_v3, %v3322_v30 }
 0x389   : > { %v3710_v27 = vmul.f32 %v6080_v31, %v3642_v18  ;;  %v2829_v21 = vpop.f32.mrf.mxu2  ;;  %v3499_v54 = vpop.f32.mrf.mxu0 }
 0x38a   : > { %v2973_v43 = vadd.f32 %v2829_v21, %v2663_v57 }
 0x38b   : > { %v3778_v29 = vadd.f32 %v6085_v9, %v3710_v27  ;;  %v2522_v55 = vpop.f32.mrf.mxu1  ;;  %v4773_v27 = vld [vmem:[%s4895_s7 + $0x6c] sm:$0xff] }
 0x38c   : > { %v3179_v59 = vpop.f32.mrf.mxu3  ;;  %v2664_v24 = vadd.f32 %v2522_v55, %v5685_v32 }
 0x38d   : > { %v3842_v60 = vmax.f32 %v3778_v29, 0.0  ;;  %v3323_v41 = vadd.f32 %v3179_v59, %v2973_v43 }
 0x38e   : > { %2561 = vmatmul.bf16.gmra.mxu1 %v5661_v63  ;;  %2871 = vmatmul.bf16.gmra.mxu2 %v4772_v17 }
 0x38f   : > { %3906 = vst [vmem:[%s6093_s11 + $0x50] sm:$0xff] %v3842_v60  ;;  %v3643_v42 = vadd.f32 %v3499_v54, %v3323_v41 }
 0x391   : > { %v3711_v13 = vmul.f32 %v6080_v31, %v3643_v42  ;;  %3221 = vmatmul.bf16.gmra.mxu3 %v5141_v44  ;;  %v2832_v4 = vpop.f32.mrf.mxu2  ;;  %v3502_v1 = vpop.f32.mrf.mxu0 }
 0x392   : > { %v2974_v23 = vadd.f32 %v2832_v4, %v2664_v24 }
 0x393   : > { %v3779_v20 = vadd.f32 %v6085_v9, %v3711_v13  ;;  %v2524_v40 = vpop.f32.mrf.mxu1 }
 0x394   : > { %v3182_v11 = vpop.f32.mrf.mxu3  ;;  %3541 = vmatmul.bf16.gmra.mxu0 %v5736_v38  ;;  %v2665_v32 = vadd.f32 %v2524_v40, %v5695_v12 }
 0x395   : > { %v3843_v7 = vmax.f32 %v3779_v20, 0.0  ;;  %v3324_v63 = vadd.f32 %v3182_v11, %v2974_v23 }
 0x397   : > { %3907 = vst [vmem:[%s6093_s11 + $0x58] sm:$0xff] %v3843_v7  ;;  %v3644_v52 = vadd.f32 %v3502_v1, %v3324_v63 }
 0x399   : > { %v3712_v3 = vmul.f32 %v6080_v31, %v3644_v52  ;;  %v2834_v46 = vpop.f32.mrf.mxu2  ;;  %v3504_v62 = vpop.f32.mrf.mxu0 }
 0x39a   : > { %v2975_v28 = vadd.f32 %v2834_v46, %v2665_v32  ;;  %v6661_v32 = vld [vmem:[#allocation49_spill] sm:$0xff] }
 0x39b   : > { %v3780_v48 = vadd.f32 %v6085_v9, %v3712_v3  ;;  %v2527_v58 = vpop.f32.mrf.mxu1 }
 0x39c   : > { %v3184_v30 = vpop.f32.mrf.mxu3  ;;  %v2666_v12 = vadd.f32 %v2527_v58, %v5700_v22 }
 0x39d   : > { %v3844_v18 = vmax.f32 %v3780_v48, 0.0  ;;  %v3325_v57 = vadd.f32 %v3184_v30, %v2975_v28 }
 0x39e   : > { %2566 = vmatmul.bf16.gmra.mxu1 %v5688_v14  ;;  %2876 = vmatmul.bf16.gmra.mxu2 %v4773_v27 }
 0x39f   : > { %3908 = vst [vmem:[%s6093_s11 + $0x60] sm:$0xff] %v3844_v18  ;;  %v3645_v21 = vadd.f32 %v3504_v62, %v3325_v57 }
 0x3a1   : > { %v3713_v54 = vmul.f32 %v6080_v31, %v3645_v21  ;;  %3226 = vmatmul.bf16.gmra.mxu3 %v5213_v47  ;;  %v2837_v43 = vpop.f32.mrf.mxu2  ;;  %v3507_v29 = vpop.f32.mrf.mxu0  ;;  %v6662_v21 = vld [vmem:[#allocation50_spill] sm:$0xff] }
 0x3a2   : > { %v2976_v55 = vadd.f32 %v2837_v43, %v2666_v12 }
 0x3a3   : > { %v3781_v59 = vadd.f32 %v6085_v9, %v3713_v54  ;;  %v2529_v60 = vpop.f32.mrf.mxu1 }
 0x3a4   : > { %v3187_v41 = vpop.f32.mrf.mxu3  ;;  %3546 = vmatmul.bf16.gmra.mxu0 %v5763_v61  ;;  %v2667_v22 = vadd.f32 %v2529_v60, %v5708_v2 }
 0x3a5   : > { %v3845_v42 = vmax.f32 %v3781_v59, 0.0  ;;  %v3326_v14 = vadd.f32 %v3187_v41, %v2976_v55 }
 0x3a7   : > { %3909 = vst [vmem:[%s6093_s11 + $0x68] sm:$0xff] %v3845_v42  ;;  %v3646_v24 = vadd.f32 %v3507_v29, %v3326_v14 }
 0x3a9   : > { %v3714_v13 = vmul.f32 %v6080_v31, %v3646_v24  ;;  %v2839_v4 = vpop.f32.mrf.mxu2  ;;  %v3509_v1 = vpop.f32.mrf.mxu0 }
 0x3aa   : > { %v2977_v23 = vadd.f32 %v2839_v4, %v2667_v22 }
 0x3ab   : > { %v3782_v20 = vadd.f32 %v6085_v9, %v3714_v13  ;;  %v2532_v40 = vpop.f32.mrf.mxu1 }
 0x3ac   : > { %v3189_v11 = vpop.f32.mrf.mxu3  ;;  %v2668_v3 = vadd.f32 %v2532_v40, %v6661_v32 }
 0x3ad   : > { %v3846_v7 = vmax.f32 %v3782_v20, 0.0  ;;  %v3327_v63 = vadd.f32 %v3189_v11, %v2977_v23 }
 0x3ae   : > { %2571 = vmatmul.bf16.gmra.mxu1 %v5736_v38  ;;  %2881 = vmatmul.bf16.gmra.mxu2 %v4772_v17 }
 0x3af   : > { %3910 = vst [vmem:[%s6093_s11 + $0x70] sm:$0xff] %v3846_v7  ;;  %v3647_v52 = vadd.f32 %v3509_v1, %v3327_v63 }
 0x3b1   : > { %v3715_v2 = vmul.f32 %v6080_v31, %v3647_v52  ;;  %3231 = vmatmul.bf16.gmra.mxu3 %v5141_v44  ;;  %v2842_v46 = vpop.f32.mrf.mxu2  ;;  %v3512_v62 = vpop.f32.mrf.mxu0 }
 0x3b2   : > { %v2978_v28 = vadd.f32 %v2842_v46, %v2668_v3 }
 0x3b3   : > { %v3783_v48 = vadd.f32 %v6085_v9, %v3715_v2  ;;  %v2534_v58 = vpop.f32.mrf.mxu1 }
 0x3b4   : > { %v3192_v30 = vpop.f32.mrf.mxu3  ;;  %3551 = vmatmul.bf16.gmra.mxu0 %v5736_v38  ;;  %v2669_v12 = vadd.f32 %v2534_v58, %v6662_v21 }
 0x3b5   : > { %v3847_v18 = vmax.f32 %v3783_v48, 0.0  ;;  %v3328_v17 = vadd.f32 %v3192_v30, %v2978_v28  ;;  %v4774_v48 = vld [vmem:[%s4895_s7 + $0x78] sm:$0xff] }
 0x3b7   : > { %3911 = vst [vmem:[%s6093_s11 + $0x78] sm:$0xff] %v3847_v18  ;;  %v3648_v57 = vadd.f32 %v3512_v62, %v3328_v17 }
 0x3b9   : > { %v3716_v54 = vmul.f32 %v6080_v31, %v3648_v57  ;;  %v2844_v43 = vpop.f32.mrf.mxu2  ;;  %v3514_v44 = vpop.f32.mrf.mxu0 }
 0x3ba   : > { %v2979_v29 = vadd.f32 %v2844_v43, %v2669_v12 }
 0x3bb   : > { %v3784_v55 = vadd.f32 %v6085_v9, %v3716_v54  ;;  %v2537_v59 = vpop.f32.mrf.mxu1 }
 0x3bc   : > { %v3194_v60 = vpop.f32.mrf.mxu3  ;;  %v2670_v24 = vadd.f32 %v2537_v59, %v5733_v26 }
 0x3bd   : > { %v3848_v41 = vmax.f32 %v3784_v55, 0.0  ;;  %v3329_v42 = vadd.f32 %v3194_v60, %v2979_v29 }
 0x3be   : > { %2576 = vmatmul.bf16.gmra.mxu1 %v5763_v61  ;;  %2886 = vmatmul.bf16.gmra.mxu2 %v4773_v27 }
 0x3bf   : > { %3912 = vst [vmem:[%s6093_s11 + $0x80] sm:$0xff] %v3848_v41  ;;  %v3649_v14 = vadd.f32 %v3514_v44, %v3329_v42 }
 0x3c1   : > { %v3717_v22 = vmul.f32 %v6080_v31, %v3649_v14  ;;  %3236 = vmatmul.bf16.gmra.mxu3 %v5213_v47  ;;  %v2847_v13 = vpop.f32.mrf.mxu2  ;;  %v3517_v4 = vpop.f32.mrf.mxu0 }
 0x3c2   : > { %v2980_v1 = vadd.f32 %v2847_v13, %v2670_v24  ;;  %v4775_v13 = vld [vmem:[%s4895_s7 + $0x80] sm:$0xff] }
 0x3c3   : > { %v3785_v23 = vadd.f32 %v6085_v9, %v3717_v22  ;;  %v2539_v20 = vpop.f32.mrf.mxu1 }
 0x3c4   : > { %v3197_v40 = vpop.f32.mrf.mxu3  ;;  %3556 = vmatmul.bf16.gmra.mxu0 %v5763_v61  ;;  %v2671_v26 = vadd.f32 %v2539_v20, %v5742_v35 }
 0x3c5   : > { %v3849_v11 = vmax.f32 %v3785_v23, 0.0  ;;  %v3330_v27 = vadd.f32 %v3197_v40, %v2980_v1 }
 0x3c7   : > { %3913 = vst [vmem:[%s6093_s11 + $0x88] sm:$0xff] %v3849_v11  ;;  %v3650_v7 = vadd.f32 %v3517_v4, %v3330_v27 }
 0x3c9   : > { %v3718_v63 = vmul.f32 %v6080_v31, %v3650_v7  ;;  %v2849_v47 = vpop.f32.mrf.mxu2  ;;  %v3519_v52 = vpop.f32.mrf.mxu0 }
 0x3ca   : > { %v2981_v32 = vadd.f32 %v2849_v47, %v2671_v26 }
 0x3cb   : > { %v3786_v3 = vadd.f32 %v6085_v9, %v3718_v63  ;;  %v2542_v2 = vpop.f32.mrf.mxu1 }
 0x3cc   : > { %v3199_v46 = vpop.f32.mrf.mxu3  ;;  %v2672_v35 = vadd.f32 %v2542_v2, %v5760_v39 }
 0x3cd   : > { %v3850_v62 = vmax.f32 %v3786_v3, 0.0  ;;  %v3331_v28 = vadd.f32 %v3199_v46, %v2981_v32 }
 0x3ce   : > { %2581 = vmatmul.bf16.gmra.mxu1 %v5736_v38  ;;  %2891 = vmatmul.bf16.gmra.mxu2 %v4774_v48 }
 0x3cf   : > { %3914 = vst [vmem:[%s6093_s11 + $0x90] sm:$0xff] %v3850_v62  ;;  %v3651_v58 = vadd.f32 %v3519_v52, %v3331_v28 }
 0x3d1   : > { %v3719_v30 = vmul.f32 %v6080_v31, %v3651_v58  ;;  %3241 = vmatmul.bf16.gmra.mxu3 %v4981_v37  ;;  %v2852_v18 = vpop.f32.mrf.mxu2  ;;  %v3522_v17 = vpop.f32.mrf.mxu0 }
 0x3d2   : > { %v2982_v57 = vadd.f32 %v2852_v18, %v2672_v35 }
 0x3d3   : > { %v3787_v21 = vadd.f32 %v6085_v9, %v3719_v30  ;;  %v2544_v12 = vpop.f32.mrf.mxu1  ;;  %v6663_v30 = vld [vmem:[#allocation51_spill] sm:$0xff] }
 0x3d4   : > { %v3202_v54 = vpop.f32.mrf.mxu3  ;;  %3561 = vmatmul.bf16.gmra.mxu0 %v5811_v5  ;;  %v2673_v39 = vadd.f32 %v2544_v12, %v5770_v49 }
 0x3d5   : > { %v3851_v43 = vmax.f32 %v3787_v21, 0.0  ;;  %v3332_v38 = vadd.f32 %v3202_v54, %v2982_v57 }
 0x3d7   : > { %3915 = vst [vmem:[%s6093_s11 + $0x98] sm:$0xff] %v3851_v43  ;;  %v3652_v44 = vadd.f32 %v3522_v17, %v3332_v38 }
 0x3d9   : > { %v3720_v29 = vmul.f32 %v6080_v31, %v3652_v44  ;;  %v2854_v55 = vpop.f32.mrf.mxu2  ;;  %v3524_v59 = vpop.f32.mrf.mxu0 }
 0x3da   : > { %v2983_v60 = vadd.f32 %v2854_v55, %v2673_v39  ;;  %v6664_v39 = vld [vmem:[#allocation52_spill] sm:$0xff] }
 0x3db   : > { %v3788_v41 = vadd.f32 %v6085_v9, %v3720_v29  ;;  %v2547_v42 = vpop.f32.mrf.mxu1 }
 0x3dc   : > { %v3204_v14 = vpop.f32.mrf.mxu3  ;;  %v2674_v49 = vadd.f32 %v2547_v42, %v5775_v51 }
 0x3dd   : > { %v3852_v24 = vmax.f32 %v3788_v41, 0.0  ;;  %v3333_v22 = vadd.f32 %v3204_v14, %v2983_v60 }
 0x3de   : > { %2586 = vmatmul.bf16.gmra.mxu1 %v5763_v61  ;;  %2896 = vmatmul.bf16.gmra.mxu2 %v4775_v13 }
 0x3df   : > { %3916 = vst [vmem:[%s6093_s11 + $0xa0] sm:$0xff] %v3852_v24  ;;  %v3653_v4 = vadd.f32 %v3524_v59, %v3333_v22 }
 0x3e1   : > { %v3721_v1 = vmul.f32 %v6080_v31, %v3653_v4  ;;  %3246 = vmatmul.bf16.gmra.mxu3 %v5074_v16  ;;  %v2857_v23 = vpop.f32.mrf.mxu2  ;;  %v3527_v20 = vpop.f32.mrf.mxu0 }
 0x3e2   : > { %v2984_v40 = vadd.f32 %v2857_v23, %v2674_v49  ;;  %v6665_v49 = vld [vmem:[#allocation53_spill] sm:$0xff] }
 0x3e3   : > { %v3789_v11 = vadd.f32 %v6085_v9, %v3721_v1  ;;  %v2549_v27 = vpop.f32.mrf.mxu1 }
 0x3e4   : > { %v3207_v7 = vpop.f32.mrf.mxu3  ;;  %3566 = vmatmul.bf16.gmra.mxu0 %v5838_v34  ;;  %v2675_v51 = vadd.f32 %v2549_v27, %v5783_v36 }
 0x3e5   : > { %v3853_v26 = vmax.f32 %v3789_v11, 0.0  ;;  %v3334_v61 = vadd.f32 %v3207_v7, %v2984_v40 }
 0x3e7   : > { %3917 = vst [vmem:[%s6093_s11 + $0xa8] sm:$0xff] %v3853_v26  ;;  %v3654_v63 = vadd.f32 %v3527_v20, %v3334_v61 }
 0x3e9   : > { %v3722_v47 = vmul.f32 %v6080_v31, %v3654_v63  ;;  %v2859_v52 = vpop.f32.mrf.mxu2  ;;  %v3529_v32 = vpop.f32.mrf.mxu0 }
 0x3ea   : > { %v2985_v3 = vadd.f32 %v2859_v52, %v2675_v51  ;;  %v6666_v51 = vld [vmem:[#allocation54_spill] sm:$0xff] }
 0x3eb   : > { %v3790_v2 = vadd.f32 %v6085_v9, %v3722_v47  ;;  %v2552_v46 = vpop.f32.mrf.mxu1 }
 0x3ec   : > { %v3209_v62 = vpop.f32.mrf.mxu3  ;;  %v2676_v18 = vadd.f32 %v2552_v46, %v6663_v30 }
 0x3ed   : > { %v3854_v28 = vmax.f32 %v3790_v2, 0.0  ;;  %v3335_v58 = vadd.f32 %v3209_v62, %v2985_v3 }
 0x3ee   : > { %2591 = vmatmul.bf16.gmra.mxu1 %v5811_v5  ;;  %2901 = vmatmul.bf16.gmra.mxu2 %v4774_v48 }
 0x3ef   : > { %3918 = vst [vmem:[%s6093_s11 + $0xb0] sm:$0xff] %v3854_v28  ;;  %v3655_v35 = vadd.f32 %v3529_v32, %v3335_v58 }
 0x3f1   : > { %v3723_v36 = vmul.f32 %v6080_v31, %v3655_v35  ;;  %3251 = vmatmul.bf16.gmra.mxu3 %v4981_v37  ;;  %v2862_v17 = vpop.f32.mrf.mxu2  ;;  %v3532_v57 = vpop.f32.mrf.mxu0  ;;  %v4776_v35 = vld [vmem:[%s4895_s7 + $0x8c] sm:$0xff] }
 0x3f2   : > { %v2986_v21 = vadd.f32 %v2862_v17, %v2676_v18  ;;  %v6667_v18 = vld [vmem:[#allocation55_spill] sm:$0xff] }
 0x3f3   : > { %v3791_v12 = vadd.f32 %v6085_v9, %v3723_v36  ;;  %v2554_v54 = vpop.f32.mrf.mxu1 }
 0x3f4   : > { %v3212_v43 = vpop.f32.mrf.mxu3  ;;  %3571 = vmatmul.bf16.gmra.mxu0 %v5811_v5  ;;  %v2677_v29 = vadd.f32 %v2554_v54, %v6664_v39 }
 0x3f5   : > { %v3855_v38 = vmax.f32 %v3791_v12, 0.0  ;;  %v3336_v48 = vadd.f32 %v3212_v43, %v2986_v21 }
 0x3f7   : > { %3919 = vst [vmem:[%s6093_s11 + $0xb8] sm:$0xff] %v3855_v38  ;;  %v3656_v44 = vadd.f32 %v3532_v57, %v3336_v48  ;;  %v6668_v57 = vld [vmem:[#allocation5_spill] sm:$0xff] }
 0x3f9   : > { %v3724_v55 = vmul.f32 %v6080_v31, %v3656_v44  ;;  %v2864_v59 = vpop.f32.mrf.mxu2  ;;  %v3534_v37 = vpop.f32.mrf.mxu0 }
 0x3fa   : > { %v2987_v60 = vadd.f32 %v2864_v59, %v2677_v29 }
 0x3fb   : > { %v3792_v41 = vadd.f32 %v6085_v9, %v3724_v55  ;;  %v2557_v42 = vpop.f32.mrf.mxu1  ;;  %v6670_v55 = vld [vmem:[#allocation56_spill] sm:$0xff] }
 0x3fc   : > { %v3214_v14 = vpop.f32.mrf.mxu3  ;;  %v2678_v1 = vadd.f32 %v2557_v42, %v6665_v49 }
 0x3fd   : > { %v3856_v24 = vmax.f32 %v3792_v41, 0.0  ;;  %v3337_v22 = vadd.f32 %v3214_v14, %v2987_v60 }
 0x3fe   : > { %2596 = vmatmul.bf16.gmra.mxu1 %v5838_v34  ;;  %2906 = vmatmul.bf16.gmra.mxu2 %v4775_v13 }
 0x3ff   : > { %3920 = vst [vmem:[%s6093_s11 + $0xc0] sm:$0xff] %v3856_v24  ;;  %v3657_v4 = vadd.f32 %v3534_v37, %v3337_v22 }
 0x401   : > { %v3725_v23 = vmul.f32 %v6080_v31, %v3657_v4  ;;  %3256 = vmatmul.bf16.gmra.mxu3 %v5074_v16  ;;  %v2867_v20 = vpop.f32.mrf.mxu2  ;;  %v3537_v40 = vpop.f32.mrf.mxu0 }
 0x402   : > { %v2988_v11 = vadd.f32 %v2867_v20, %v2678_v1  ;;  %v4777_v1 = vld [vmem:[%s4895_s7 + $0x94] sm:$0xff] }
 0x403   : > { %v3793_v27 = vadd.f32 %v6085_v9, %v3725_v23  ;;  %v2559_v7 = vpop.f32.mrf.mxu1  ;;  %v6671_v20 = vld [vmem:[#allocation57_spill] sm:$0xff] }
 0x404   : > { %v3217_v26 = vpop.f32.mrf.mxu3  ;;  %3576 = vmatmul.bf16.gmra.mxu0 %v5838_v34  ;;  %v2679_v47 = vadd.f32 %v2559_v7, %v6666_v51 }
 0x405   : > { %v3857_v61 = vmax.f32 %v3793_v27, 0.0  ;;  %v3338_v13 = vadd.f32 %v3217_v26, %v2988_v11  ;;  %v6672_v27 = vld [vmem:[#allocation7_spill] sm:$0xff] }
 0x407   : > { %3921 = vst [vmem:[%s6093_s11 + $0xc8] sm:$0xff] %v3857_v61  ;;  %v3658_v63 = vadd.f32 %v3537_v40, %v3338_v13 }
 0x409   : > { %v3726_v52 = vmul.f32 %v6080_v31, %v3658_v63  ;;  %v2869_v16 = vpop.f32.mrf.mxu2  ;;  %v3539_v32 = vpop.f32.mrf.mxu0 }
 0x40a   : > { %v2989_v3 = vadd.f32 %v2869_v16, %v2679_v47 }
 0x40b   : > { %v3794_v2 = vadd.f32 %v6085_v9, %v3726_v52  ;;  %v2562_v46 = vpop.f32.mrf.mxu1 }
 0x40c   : > { %v3219_v62 = vpop.f32.mrf.mxu3  ;;  %v2680_v36 = vadd.f32 %v2562_v46, %v6667_v18 }
 0x40d   : > { %v3858_v28 = vmax.f32 %v3794_v2, 0.0  ;;  %v3339_v58 = vadd.f32 %v3219_v62, %v2989_v3 }
 0x40e   : > { %2601 = vmatmul.bf16.gmra.mxu1 %v5811_v5  ;;  %2911 = vmatmul.bf16.gmra.mxu2 %v4776_v35  ;;  %v6669_v5 = vld [vmem:[#allocation18_spill] sm:$0xff] }
 0x40f   : > { %3922 = vst [vmem:[%s6093_s11 + $0xd0] sm:$0xff] %v3858_v28  ;;  %v3659_v30 = vadd.f32 %v3539_v32, %v3339_v58  ;;  %v6674_v32 = vld [vmem:[#allocation58_spill] sm:$0xff] }
 0x411   : > { %v3727_v17 = vmul.f32 %v6080_v31, %v3659_v30  ;;  %3261 = vmatmul.bf16.gmra.mxu3 %v6668_v57  ;;  %v2872_v21 = vpop.f32.mrf.mxu2  ;;  %v3542_v12 = vpop.f32.mrf.mxu0 }
 0x412   : > { %v2990_v54 = vadd.f32 %v2872_v21, %v2680_v36 }
 0x413   : > { %v3795_v43 = vadd.f32 %v6085_v9, %v3727_v17  ;;  %v2564_v38 = vpop.f32.mrf.mxu1 }
 0x414   : > { %v3222_v48 = vpop.f32.mrf.mxu3  ;;  %3581 = vmatmul.bf16.gmra.mxu0 %v6669_v5  ;;  %v2681_v59 = vadd.f32 %v2564_v38, %v6670_v55 }
 0x415   : > { %v3859_v44 = vmax.f32 %v3795_v43, 0.0  ;;  %v3340_v39 = vadd.f32 %v3222_v48, %v2990_v54 }
 0x417   : > { %3923 = vst [vmem:[%s6093_s11 + $0xd8] sm:$0xff] %v3859_v44  ;;  %v3660_v29 = vadd.f32 %v3542_v12, %v3340_v39  ;;  %v6675_v12 = vld [vmem:[#allocation12_spill] sm:$0xff] }
 0x419   : > { %v3728_v37 = vmul.f32 %v6080_v31, %v3660_v29  ;;  %v2874_v60 = vpop.f32.mrf.mxu2  ;;  %v3544_v41 = vpop.f32.mrf.mxu0 }
 0x41a   : > { %v2991_v42 = vadd.f32 %v2874_v60, %v2681_v59  ;;  %v6676_v60 = vld [vmem:[#allocation14_spill] sm:$0xff] }
 0x41b   : > { %v3796_v14 = vadd.f32 %v6085_v9, %v3728_v37  ;;  %v2567_v24 = vpop.f32.mrf.mxu1 }
 0x41c   : > { %v3224_v22 = vpop.f32.mrf.mxu3  ;;  %v2682_v40 = vadd.f32 %v2567_v24, %v6671_v20 }
 0x41d   : > { %v3860_v4 = vmax.f32 %v3796_v14, 0.0  ;;  %v3341_v49 = vadd.f32 %v3224_v22, %v2991_v42 }
 0x41e   : > { %2606 = vmatmul.bf16.gmra.mxu1 %v5838_v34  ;;  %2916 = vmatmul.bf16.gmra.mxu2 %v4777_v1  ;;  %v6673_v34 = vld [vmem:[#allocation23_spill] sm:$0xff] }
 0x41f   : > { %3924 = vst [vmem:[%s6093_s11 + $0xe0] sm:$0xff] %v3860_v4  ;;  %v3661_v23 = vadd.f32 %v3544_v41, %v3341_v49 }
 0x421   : > { %v3729_v11 = vmul.f32 %v6080_v31, %v3661_v23  ;;  %3266 = vmatmul.bf16.gmra.mxu3 %v6672_v27  ;;  %v2877_v7 = vpop.f32.mrf.mxu2  ;;  %v3547_v26 = vpop.f32.mrf.mxu0 }
 0x422   : > { %v2992_v61 = vadd.f32 %v2877_v7, %v2682_v40 }
 0x423   : > { %v3797_v13 = vadd.f32 %v6085_v9, %v3729_v11  ;;  %v2569_v63 = vpop.f32.mrf.mxu1  ;;  %v6677_v11 = vld [vmem:[#allocation16_spill] sm:$0xff] }
 0x424   : > { %v3227_v51 = vpop.f32.mrf.mxu3  ;;  %3586 = vmatmul.bf16.gmra.mxu0 %v6673_v34  ;;  %v2683_v3 = vadd.f32 %v2569_v63, %v6674_v32 }
 0x425   : > { %v3861_v47 = vmax.f32 %v3797_v13, 0.0  ;;  %v3342_v52 = vadd.f32 %v3227_v51, %v2992_v61 }
 0x427   : > { %3925 = vst [vmem:[%s6093_s11 + $0xe8] sm:$0xff] %v3861_v47  ;;  %v3662_v16 = vadd.f32 %v3547_v26, %v3342_v52 }
 0x429   : > { %v3730_v2 = vmul.f32 %v6080_v31, %v3662_v16  ;;  %v2879_v46 = vpop.f32.mrf.mxu2  ;;  %v3549_v62 = vpop.f32.mrf.mxu0 }
 0x42a   : > { %v2993_v28 = vadd.f32 %v2879_v46, %v2683_v3  ;;  %v6678_v3 = vld [vmem:[#allocation59_spill] sm:$0xff] }
 0x42b   : > { %v3798_v58 = vadd.f32 %v6085_v9, %v3730_v2  ;;  %v2572_v30 = vpop.f32.mrf.mxu1 }
 0x42c   : > { %v3229_v18 = vpop.f32.mrf.mxu3  ;;  %v2684_v54 = vadd.f32 %v2572_v30, %v6675_v12 }
 0x42d   : > { %v3862_v36 = vmax.f32 %v3798_v58, 0.0  ;;  %v3343_v17 = vadd.f32 %v3229_v18, %v2993_v28 }
 0x42e   : > { %2611 = vmatmul.bf16.gmra.mxu1 %v6669_v5  ;;  %2921 = vmatmul.bf16.gmra.mxu2 %v4776_v35 }
 0x42f   : > { %3926 = vst [vmem:[%s6093_s11 + $0xf0] sm:$0xff] %v3862_v36  ;;  %v3663_v21 = vadd.f32 %v3549_v62, %v3343_v17 }
 0x431   : > { %v3731_v43 = vmul.f32 %v6080_v31, %v3663_v21  ;;  %3271 = vmatmul.bf16.gmra.mxu3 %v6668_v57  ;;  %v2882_v38 = vpop.f32.mrf.mxu2  ;;  %v3552_v48 = vpop.f32.mrf.mxu0  ;;  %v4778_v21 = vld [vmem:[%s4895_s7 + $0xa0] sm:$0xff] }
 0x432   : > { %v2994_v44 = vadd.f32 %v2882_v38, %v2684_v54  ;;  %v6679_v54 = vld [vmem:[#allocation21_spill] sm:$0xff] }
 0x433   : > { %v3799_v39 = vadd.f32 %v6085_v9, %v3731_v43  ;;  %v2574_v29 = vpop.f32.mrf.mxu1 }
 0x434   : > { %v3232_v55 = vpop.f32.mrf.mxu3  ;;  %3591 = vmatmul.bf16.gmra.mxu0 %v6669_v5  ;;  %v2685_v41 = vadd.f32 %v2574_v29, %v6676_v60  ;;  %v6680_v60 = vld [vmem:[#allocation60_spill] sm:$0xff] }
 0x435   : > { %v3863_v59 = vmax.f32 %v3799_v39, 0.0  ;;  %v3344_v35 = vadd.f32 %v3232_v55, %v2994_v44 }
 0x437   : > { %3927 = vst [vmem:[%s6093_s11 + $0xf8] sm:$0xff] %v3863_v59  ;;  %v3664_v37 = vadd.f32 %v3552_v48, %v3344_v35 }
 0x439   : > { %v3732_v42 = vmul.f32 %v6080_v31, %v3664_v37  ;;  %v2884_v14 = vpop.f32.mrf.mxu2  ;;  %v3554_v57 = vpop.f32.mrf.mxu0 }
 0x43a   : > { %v2995_v24 = vadd.f32 %v2884_v14, %v2685_v41 }
 0x43b   : > { %v3800_v22 = vadd.f32 %v6085_v9, %v3732_v42  ;;  %v2577_v4 = vpop.f32.mrf.mxu1 }
 0x43c   : > { %v3234_v49 = vpop.f32.mrf.mxu3  ;;  %v2686_v7 = vadd.f32 %v2577_v4, %v6677_v11  ;;  %v6681_v11 = vld [vmem:[#allocation26_spill] sm:$0xff] }
 0x43d   : > { %v3864_v23 = vmax.f32 %v3800_v22, 0.0  ;;  %v3345_v20 = vadd.f32 %v3234_v49, %v2995_v24 }
 0x43e   : > { %2616 = vmatmul.bf16.gmra.mxu1 %v6673_v34  ;;  %2926 = vmatmul.bf16.gmra.mxu2 %v4777_v1 }
 0x43f   : > { %3928 = vst [vmem:[%s6093_s11 + $0x100] sm:$0xff] %v3864_v23  ;;  %v3665_v40 = vadd.f32 %v3554_v57, %v3345_v20 }
 0x441   : > { %v3733_v26 = vmul.f32 %v6080_v31, %v3665_v40  ;;  %3276 = vmatmul.bf16.gmra.mxu3 %v6672_v27  ;;  %v2887_v61 = vpop.f32.mrf.mxu2  ;;  %v3557_v13 = vpop.f32.mrf.mxu0  ;;  %v6309_v40 = vld [vmem:[%s4895_s7 + $0xa8] sm:$0xff] }
 0x442   : > { %v2996_v63 = vadd.f32 %v2887_v61, %v2686_v7 }
 0x443   : > { %v3801_v51 = vadd.f32 %v6085_v9, %v3733_v26  ;;  %v2579_v47 = vpop.f32.mrf.mxu1  ;;  %v6317_v26 = vld [vmem:[%s6496_s2] ss:$0 sm:$0xff] }
 0x444   : > { %v3237_v52 = vpop.f32.mrf.mxu3  ;;  %3596 = vmatmul.bf16.gmra.mxu0 %v6673_v34  ;;  %v2687_v2 = vadd.f32 %v2579_v47, %v6678_v3  ;;  %v6682_v3 = vld [vmem:[#allocation28_spill] sm:$0xff] }
 0x445   : > { %v3865_v16 = vmax.f32 %v3801_v51, 0.0  ;;  %v3346_v1 = vadd.f32 %v3237_v52, %v2996_v63 }
 0x447   : > { %3929 = vst [vmem:[%s6093_s11 + $0x108] sm:$0xff] %v3865_v16  ;;  %v3666_v32 = vadd.f32 %v3557_v13, %v3346_v1 }
 0x449   : > { %v3734_v46 = vmul.f32 %v6080_v31, %v3666_v32  ;;  %v2889_v27 = vpop.f32.mrf.mxu2  ;;  %v3559_v62 = vpop.f32.mrf.mxu0 }
 0x44a   : > { %v2997_v28 = vadd.f32 %v2889_v27, %v2687_v2 }
 0x44b   : > { %v3802_v58 = vadd.f32 %v6085_v9, %v3734_v46  ;;  %v2582_v30 = vpop.f32.mrf.mxu1 }
 0x44c   : > { %v3239_v18 = vpop.f32.mrf.mxu3  ;;  %v2688_v43 = vadd.f32 %v2582_v30, %v6679_v54  ;;  %v6330_v54 = vld [vmem:[%s4895_s7 + $0xb4] sm:$0xf] }
 0x44d   : > { %v3866_v36 = vmax.f32 %v3802_v58, 0.0  ;;  %v3347_v17 = vadd.f32 %v3239_v18, %v2997_v28 }
 0x44e   : > { %2621 = vmatmul.bf16.gmra.mxu1 %v6669_v5  ;;  %2931 = vmatmul.bf16.gmra.mxu2 %v4778_v21 }
 0x44f   : > { %3930 = vst [vmem:[%s6093_s11 + $0x110] sm:$0xff] %v3866_v36  ;;  %v3667_v12 = vadd.f32 %v3559_v62, %v3347_v17 }
 0x451   : > { %v3735_v38 = vmul.f32 %v6080_v31, %v3667_v12  ;;  %3281 = vmatmul.bf16.gmra.mxu3 %v6611_v56  ;;  %v2892_v48 = vpop.f32.mrf.mxu2  ;;  %v3562_v44 = vpop.f32.mrf.mxu0 }
 0x452   : > { %v2998_v39 = vadd.f32 %v2892_v48, %v2688_v43  ;;  %v6683_v43 = vld [vmem:[#allocation30_spill] sm:$0xff]  ;;  %v6334_v48 = vld [vmem:[%s4895_s7 + $0xb8] sm:$0xf] }
 0x453   : > { %v3803_v29 = vadd.f32 %v6085_v9, %v3735_v38  ;;  %v2584_v55 = vpop.f32.mrf.mxu1  ;;  %v6304_v9 = vld [vmem:[%s6497_s3] ss:$0 sm:$0xff] }
 0x454   : > { %v3242_v59 = vpop.f32.mrf.mxu3  ;;  %3601 = vmatmul.bf16.gmra.mxu0 %v5961_v0  ;;  %v2689_v41 = vadd.f32 %v2584_v55, %v6680_v60  ;;  %v3040_v60 = vshrl.u32 %v6334_v48, 16 }
 0x455   : > { %v3867_v35 = vmax.f32 %v3803_v29, 0.0  ;;  %v3348_v5 = vadd.f32 %v3242_v59, %v2998_v39  ;;  %v3027_v59 = vshrl.u32 %v6330_v54, 16 }
 0x457   : > { %3931 = vst [vmem:[%s6093_s11 + $0x118] sm:$0xff] %v3867_v35  ;;  %v3668_v37 = vadd.f32 %v3562_v44, %v3348_v5  ;;  %v3030_v5 = vshll.u32 %v6330_v54, 16 }
 0x459   : > { %v3736_v42 = vmul.f32 %v6080_v31, %v3668_v37  ;;  %v2894_v14 = vpop.f32.mrf.mxu2  ;;  %v3564_v57 = vpop.f32.mrf.mxu0  ;;  %v3036_v37 = vshll.u32 %v6334_v48, 16 }
 0x45a   : > { %v2999_v24 = vadd.f32 %v2894_v14, %v2689_v41  ;;  %v3029_v14 = vrot.slane %v3027_v59, 4 }
 0x45b   : > { %v3804_v22 = vadd.f32 %v6304_v9, %v3736_v42  ;;  %v2587_v4 = vpop.f32.mrf.mxu1 }
 0x45c   : > { %v3244_v49 = vpop.f32.mrf.mxu3  ;;  %v2690_v7 = vadd.f32 %v2587_v4, %v6681_v11  ;;  %v3042_v4 = vrot.slane %v3040_v60, 4 }
 0x45d   : > { %v3868_v23 = vmax.f32 %v3804_v22, 0.0  ;;  %v3349_v20 = vadd.f32 %v3244_v49, %v2999_v24  ;;  %v3032_v24 = vrot.slane %v3030_v5, 5  ;;  %v3038_v22 = vrot.slane %v3036_v37, 5  ;;  %v6684_v49 = vld [vmem:[#allocation9_spill] sm:$0xff] }
 0x45e   : > { %2626 = vmatmul.bf16.gmra.mxu1 %v6673_v34  ;;  %2936 = vmatmul.bf16.gmra.mxu2 %v6309_v40 }
 0x45f   : > { %3932 = vst [vmem:[%s6093_s11 + $0x120] sm:$0xff] %v3868_v23  ;;  %v3669_v31 = vadd.f32 %v3564_v57, %v3349_v20  ;;  %v6347_v20 = vld [vmem:[%s4895_s7 + $0xbc] sm:$0xf] }
 0x461   : > { %v3737_v61 = vmul.f32 %v6317_v26, %v3669_v31  ;;  %3286 = vmatmul.bf16.gmra.mxu3 %v6616_v6  ;;  %v2897_v13 = vpop.f32.mrf.mxu2  ;;  %v3567_v34 = vpop.f32.mrf.mxu0 }
 0x462   : > { %v3000_v63 = vadd.f32 %v2897_v13, %v2690_v7 }
 0x463   : > { %v3805_v51 = vadd.f32 %v6304_v9, %v3737_v61  ;;  %v2589_v47 = vpop.f32.mrf.mxu1 }
 0x464   : > { %v3247_v52 = vpop.f32.mrf.mxu3  ;;  %3606 = vmatmul.bf16.gmra.mxu0 %v5979_v45  ;;  %v2691_v2 = vadd.f32 %v2589_v47, %v6682_v3  ;;  %v3046_v47 = vshll.u32 %v6347_v20, 16 }
 0x465   : > { %v3869_v16 = vmax.f32 %v3805_v51, 0.0  ;;  %v3350_v1 = vadd.f32 %v3247_v52, %v3000_v63  ;;  %v3033_v63 = vor.u32 %v3032_v24, %v3029_v14  ;;  %v3043_v51 = vor.u32 %v3042_v4, %v3038_v22 }
 0x467   : > { %3933 = vst [vmem:[%s6093_s11 + $0x128] sm:$0xff] %v3869_v16  ;;  %v3670_v32 = vadd.f32 %v3567_v34, %v3350_v1  ;;  %v3034_v3 = vrot.slane %v3033_v63, 4 }
 0x469   : > { %v3738_v46 = vmul.f32 %v6317_v26, %v3670_v32  ;;  %v2899_v27 = vpop.f32.mrf.mxu2  ;;  %v3569_v62 = vpop.f32.mrf.mxu0 }
 0x46a   : > { %v3001_v28 = vadd.f32 %v2899_v27, %v2691_v2  ;;  %v3044_v2 = vrot.slane %v3043_v51, 4  ;;  %v6685_v27 = vld [vmem:[#allocation32_spill] sm:$0xff] }
 0x46b   : > { %v3806_v58 = vadd.f32 %v6304_v9, %v3738_v46  ;;  %v2592_v30 = vpop.f32.mrf.mxu1  ;;  %v3048_v46 = vrot.slane %v3046_v47, 5 }
 0x46c   : > { %v3249_v18 = vpop.f32.mrf.mxu3  ;;  %v2692_v38 = vadd.f32 %v2592_v30, %v6683_v43 }
 0x46d   : > { %v3870_v36 = vmax.f32 %v3806_v58, 0.0  ;;  %v3351_v17 = vadd.f32 %v3249_v18, %v3001_v28  ;;  %v3379_v28 = vrot.slane %v6334_v48, 5 }
 0x46e   : > { %2631 = vmatmul.bf16.gmra.mxu1 %v5961_v0  ;;  %2941 = vmatmul.bf16.gmra.mxu2 %v4778_v21 }
 0x46f   : > { %3934 = vst [vmem:[%s6093_s11 + $0x130] sm:$0xff] %v3870_v36  ;;  %v3671_v12 = vadd.f32 %v3569_v62, %v3351_v17  ;;  %v6360_v17 = vld [vmem:[%s4895_s7 + $0xc0] sm:$0xf] }
 0x470   : > { %v3060_v5 = vshrl.u32 %v6360_v17, 16 }
 0x471   : > { %v3739_v44 = vmul.f32 %v6317_v26, %v3671_v12  ;;  %3291 = vmatmul.bf16.gmra.mxu3 %v6611_v56  ;;  %v2902_v39 = vpop.f32.mrf.mxu2  ;;  %v3572_v29 = vpop.f32.mrf.mxu0 }
 0x472   : > { %v3002_v55 = vadd.f32 %v2902_v39, %v2692_v38  ;;  %v3039_v38 = vsel %vm4921_vm2, %v3034_v3, %v3038_v22  ;;  %v4522_v39 = vrot.slane %v6330_v54, 9 }
 0x473   : > { %v3807_v21 = vadd.f32 %v6304_v9, %v3739_v44  ;;  %v2594_v35 = vpop.f32.mrf.mxu1  ;;  %v3049_v44 = vsel %vm4921_vm2, %v3044_v2, %v3048_v46  ;;  %v3087_v60 = vunpack.c.l.b16 %v3039_v38  ;;  %v3385_v38 = vrot.slane %v6360_v17, 5 }
 0x474   : > { %v3252_v41 = vpop.f32.mrf.mxu3  ;;  %3611 = vmatmul.bf16.gmra.mxu0 %v5961_v0  ;;  %v2693_v23 = vadd.f32 %v2594_v35, %v6684_v49  ;;  %v3056_v35 = vshll.u32 %v6360_v17, 16  ;;  %v3380_v14 = vsel %vm5311_vm5, %v4522_v39, %v3379_v28  ;;  %v6690_v17 = vld [vmem:[#allocation36_spill] sm:$0xff] }
 0x475   : > { %v3871_v42 = vmax.f32 %v3807_v21, 0.0  ;;  %v3352_v56 = vadd.f32 %v3252_v41, %v3002_v55  ;;  %v3050_v55 = vshrl.u32 %v6347_v20, 16  ;;  %v6687_v41 = vld [vmem:[#allocation34_spill] sm:$0xff]  ;;  %v3407_v51 = vunpack.c.l.b16 %v3380_v14 }
 0x476   : > { %v3058_v49 = vrot.slane %v3056_v35, 5  ;;  %v3387_v35 = vrot.slane %v3385_v38, 4 }
 0x477   : > { %3935 = vst [vmem:[%s6093_s11 + $0x138] sm:$0xff] %v3871_v42  ;;  %v3672_v57 = vadd.f32 %v3572_v29, %v3352_v56  ;;  %v3381_v29 = vrot.slane %v3379_v28, 4  ;;  %v3088_v42 = vunpack.c.l.b16 %v3049_v44 }
 0x479   : > { %v3740_v31 = vmul.f32 %v6317_v26, %v3672_v57  ;;  %v2904_v11 = vpop.f32.mrf.mxu2  ;;  %v3574_v7 = vpop.f32.mrf.mxu0  ;;  %v3052_v57 = vrot.slane %v3050_v55, 4  ;;  %v3091_v63 = vpack.c.b16 %v3088_v42, %v3087_v60 }
 0x47a   : > { %v3003_v61 = vadd.f32 %v2904_v11, %v2693_v23  ;;  %v3062_v23 = vrot.slane %v3060_v5, 4  ;;  %v4592_v11 = vld [vmem:[%s4895_s7 + $0xb4] sm:$0xff] }
 0x47b   : > { %v3808_v13 = vadd.f32 %v6304_v9, %v3740_v31  ;;  %v2597_v34 = vpop.f32.mrf.mxu1 }
 0x47c   : > { %v3254_v52 = vpop.f32.mrf.mxu3  ;;  %v2694_v62 = vadd.f32 %v2597_v34, %v6685_v27  ;;  %v6689_v27 = vld [vmem:[#allocation10_spill] sm:$0xff] }
 0x47d   : > { %v3872_v16 = vmax.f32 %v3808_v13, 0.0  ;;  %v3353_v1 = vadd.f32 %v3254_v52, %v3003_v61  ;;  %v3053_v52 = vor.u32 %v3052_v57, %v3048_v46 }
 0x47e   : > { %2636 = vmatmul.bf16.gmra.mxu1 %v5979_v45  ;;  %2946 = vmatmul.bf16.gmra.mxu2 %v6309_v40 }
 0x47f   : > { %3936 = vst [vmem:[%s6093_s11 + $0x140] sm:$0xff] %v3872_v16  ;;  %v3673_v32 = vadd.f32 %v3574_v7, %v3353_v1  ;;  %v276_v7 = vld [vmem:[%s4895_s7 + $0xc4] sm:$0x1] }
 0x480   : > { %v3066_v3 = vshll.u32 %v276_v7, 16  ;;  %v3388_v5 = vrot.slane %v276_v7, 5 }
 0x481   : > { %v3741_v58 = vmul.f32 %v6317_v26, %v3673_v32  ;;  %3296 = vmatmul.bf16.gmra.mxu3 %v6616_v6  ;;  %v2907_v30 = vpop.f32.mrf.mxu2  ;;  %v3577_v18 = vpop.f32.mrf.mxu0  ;;  %v3382_v6 = vrot.slane %v6347_v20, 5  ;;  %v3063_v32 = vor.u32 %v3062_v23, %v3058_v49 }
 0x482   : > { %v3004_v36 = vadd.f32 %v2907_v30, %v2694_v62  ;;  %v3068_v46 = vrot.slane %v3066_v3, 5 }
 0x483   : > { %v3809_v40 = vadd.f32 %v6304_v9, %v3741_v58  ;;  %v2599_v12 = vpop.f32.mrf.mxu1  ;;  %v3383_v4 = vsel %vm5311_vm5, %v3381_v29, %v3382_v6 }
 0x484   : > { %v3257_v48 = vpop.f32.mrf.mxu3  ;;  %3616 = vmatmul.bf16.gmra.mxu0 %v5979_v45  ;;  %v2695_v54 = vadd.f32 %v2599_v12, %v6687_v41  ;;  %v3408_v47 = vunpack.c.l.b16 %v3383_v4 }
 0x485   : > { %v3873_v59 = vmax.f32 %v3809_v40, 0.0  ;;  %v3354_v21 = vadd.f32 %v3257_v48, %v3004_v36  ;;  %v3064_v36 = vrot.slane %v3063_v32, 4 }
 0x486   : > { %v3411_v28 = vpack.c.b16 %v3408_v47, %v3407_v51 }
 0x487   : > { %3937 = vst [vmem:[%s6093_s11 + $0x148] sm:$0xff] %v3873_v59  ;;  %v3674_v37 = vadd.f32 %v3577_v18, %v3354_v21  ;;  %v3054_v18 = vrot.slane %v3053_v52, 4  ;;  %v3069_v59 = vsel %vm4921_vm2, %v3064_v36, %v3068_v46  ;;  %v3384_v21 = vrot.slane %v3382_v6, 4 }
 0x488   : > { %v3389_v6 = vsel %vm5311_vm5, %v3387_v35, %v3388_v5 }
 0x489   : > { %v3742_v24 = vmul.f32 %v6317_v26, %v3674_v37  ;;  %v2909_v22 = vpop.f32.mrf.mxu2  ;;  %v3579_v20 = vpop.f32.mrf.mxu0  ;;  %v3059_v55 = vsel %vm4921_vm2, %v3054_v18, %v3058_v49  ;;  %v3386_v43 = vsel %vm5311_vm5, %v3384_v21, %v3385_v38 }
 0x48a   : > { %v3005_v31 = vadd.f32 %v2909_v22, %v2695_v54  ;;  %v3089_v41 = vunpack.c.l.b16 %v3059_v55  ;;  %v3090_v54 = vunpack.c.l.b16 %v3069_v59  ;;  %v4593_v22 = vld [vmem:[%s4895_s7 + $0xbc] sm:$0xff]  ;;  %v3409_v7 = vunpack.c.l.b16 %v3386_v43 }
 0x48b   : > { %v3810_v61 = vadd.f32 %v6304_v9, %v3742_v24  ;;  %v2602_v13 = vpop.f32.mrf.mxu1 }
 0x48c   : > { %v3259_v34 = vpop.f32.mrf.mxu3  ;;  %v2696_v62 = vadd.f32 %v2602_v13, %v6689_v27 }
 0x48d   : > { %v3874_v16 = vmax.f32 %v3810_v61, 0.0  ;;  %v3355_v1 = vadd.f32 %v3259_v34, %v3005_v31  ;;  %v3410_v61 = vunpack.c.l.b16 %v3389_v6  ;;  %v6691_v34 = vld [vmem:[#allocation39_spill] sm:$0xff] }
 0x48e   : > { %2641 = vmatmul.bf16.gmra.mxu1 %v5961_v0  ;;  %2951 = vmatmul.bf16.gmra.mxu2 %v4592_v11 }
 0x48f   : > { %3938 = vst [vmem:[%s6093_s11 + $0x150] sm:$0xff] %v3874_v16  ;;  %v3675_v2 = vadd.f32 %v3579_v20, %v3355_v1  ;;  %v3092_v20 = vpack.c.b16 %v3090_v54, %v3089_v41  ;;  %v3412_v51 = vpack.c.b16 %v3410_v61, %v3409_v7  ;;  %v6694_v54 = vld [vmem:[#allocation45_spill] sm:$0xff] }
 0x491   : > { %v3743_v58 = vmul.f32 %v6317_v26, %v3675_v2  ;;  %3301 = vmatmul.bf16.gmra.mxu3 %v3091_v63  ;;  %v2912_v30 = vpop.f32.mrf.mxu2  ;;  %v3582_v40 = vpop.f32.mrf.mxu0 }
 0x492   : > { %v3006_v12 = vadd.f32 %v2912_v30, %v2696_v62  ;;  %v6692_v62 = vld [vmem:[#allocation41_spill] sm:$0xff] }
 0x493   : > { %v3811_v0 = vadd.f32 %v6304_v9, %v3743_v58  ;;  %v2604_v44 = vpop.f32.mrf.mxu1 }
 0x494   : > { %v3262_v48 = vpop.f32.mrf.mxu3  ;;  %3621 = vmatmul.bf16.gmra.mxu0 %v3411_v28  ;;  %v2697_v60 = vadd.f32 %v2604_v44, %v6690_v17 }
 0x495   : > { %v3875_v39 = vmax.f32 %v3811_v0, 0.0  ;;  %v3356_v29 = vadd.f32 %v3262_v48, %v3006_v12  ;;  %v6693_v48 = vld [vmem:[#allocation43_spill] sm:$0xff] }
 0x497   : > { %3939 = vst [vmem:[%s6093_s11 + $0x158] sm:$0xff] %v3875_v39  ;;  %v3676_v37 = vadd.f32 %v3582_v40, %v3356_v29 }
 0x499   : > { %v3744_v42 = vmul.f32 %v6317_v26, %v3676_v37  ;;  %v2914_v14 = vpop.f32.mrf.mxu2  ;;  %v3584_v57 = vpop.f32.mrf.mxu0 }
 0x49a   : > { %v3007_v24 = vadd.f32 %v2914_v14, %v2697_v60 }
 0x49b   : > { %v3812_v4 = vadd.f32 %v6304_v9, %v3744_v42  ;;  %v2607_v49 = vpop.f32.mrf.mxu1 }
 0x49c   : > { %v3264_v23 = vpop.f32.mrf.mxu3  ;;  %v2698_v63 = vadd.f32 %v2607_v49, %v6691_v34 }
 0x49d   : > { %v3876_v31 = vmax.f32 %v3812_v4, 0.0  ;;  %v3357_v11 = vadd.f32 %v3264_v23, %v3007_v24 }
 0x49e   : > { %2646 = vmatmul.bf16.gmra.mxu1 %v5979_v45  ;;  %2956 = vmatmul.bf16.gmra.mxu2 %v4593_v22 }
 0x49f   : > { %3940 = vst [vmem:[%s6093_s11 + $0x160] sm:$0xff] %v3876_v31  ;;  %v3677_v13 = vadd.f32 %v3584_v57, %v3357_v11  ;;  %v6695_v31 = vld [vmem:[#allocation20_spill] sm:$0xff] }
 0x4a1   : > { %v3745_v56 = vmul.f32 %v6317_v26, %v3677_v13  ;;  %3306 = vmatmul.bf16.gmra.mxu3 %v3092_v20  ;;  %v2917_v47 = vpop.f32.mrf.mxu2  ;;  %v3587_v52 = vpop.f32.mrf.mxu0 }
 0x4a2   : > { %v3008_v16 = vadd.f32 %v2917_v47, %v2698_v63 }
 0x4a3   : > { %v3813_v1 = vadd.f32 %v6304_v9, %v3745_v56  ;;  %v2609_v32 = vpop.f32.mrf.mxu1 }
 0x4a4   : > { %v3267_v3 = vpop.f32.mrf.mxu3  ;;  %3626 = vmatmul.bf16.gmra.mxu0 %v3412_v51  ;;  %v2699_v28 = vadd.f32 %v2609_v32, %v6692_v62 }
 0x4a5   : > { %v3877_v2 = vmax.f32 %v3813_v1, 0.0  ;;  %v3358_v45 = vadd.f32 %v3267_v3, %v3008_v16  ;;  %v6696_v1 = vld [vmem:[#allocation13_spill] sm:$0xff] }
 0x4a7   : > { %3941 = vst [vmem:[%s6093_s11 + $0x168] sm:$0xff] %v3877_v2  ;;  %v3678_v27 = vadd.f32 %v3587_v52, %v3358_v45 }
 0x4a9   : > { %v3746_v58 = vmul.f32 %v6317_v26, %v3678_v27  ;;  %v2919_v30 = vpop.f32.mrf.mxu2  ;;  %v3589_v18 = vpop.f32.mrf.mxu0 }
 0x4aa   : > { %v3009_v36 = vadd.f32 %v2919_v30, %v2699_v28 }
 0x4ab   : > { %v3814_v46 = vadd.f32 %v6304_v9, %v3746_v58  ;;  %v2612_v40 = vpop.f32.mrf.mxu1 }
 0x4ac   : > { %v3269_v12 = vpop.f32.mrf.mxu3  ;;  %v2700_v39 = vadd.f32 %v2612_v40, %v6693_v48 }
 0x4ad   : > { %v3878_v38 = vmax.f32 %v3814_v46, 0.0  ;;  %v3359_v0 = vadd.f32 %v3269_v12, %v3009_v36 }
 0x4af   : > { %3942 = vst [vmem:[%s6093_s11 + $0x170] sm:$0xff] %v3878_v38  ;;  %v3679_v44 = vadd.f32 %v3589_v18, %v3359_v0 }
 0x4b1   : > { %v3747_v29 = vmul.f32 %v6317_v26, %v3679_v44  ;;  %v2922_v55 = vpop.f32.mrf.mxu2  ;;  %v3592_v59 = vpop.f32.mrf.mxu0 }
 0x4b2   : > { %v3010_v21 = vadd.f32 %v2922_v55, %v2700_v39 }
 0x4b3   : > { %v3815_v35 = vadd.f32 %v6304_v9, %v3747_v29  ;;  %v2614_v5 = vpop.f32.mrf.mxu1 }
 0x4b4   : > { %v3272_v37 = vpop.f32.mrf.mxu3  ;;  %v2701_v42 = vadd.f32 %v2614_v5, %v6694_v54 }
 0x4b5   : > { %v3879_v17 = vmax.f32 %v3815_v35, 0.0  ;;  %v3360_v60 = vadd.f32 %v3272_v37, %v3010_v21  ;;  %v6697_v21 = vld [vmem:[#allocation6_spill] sm:$0xff] }
 0x4b7   : > { %3943 = vst [vmem:[%s6093_s11 + $0x178] sm:$0xff] %v3879_v17  ;;  %v3680_v41 = vadd.f32 %v3592_v59, %v3360_v60 }
 0x4b9   : > { %v3748_v14 = vmul.f32 %v6317_v26, %v3680_v41  ;;  %v2924_v57 = vpop.f32.mrf.mxu2  ;;  %v3594_v24 = vpop.f32.mrf.mxu0 }
 0x4ba   : > { %v3011_v22 = vadd.f32 %v2924_v57, %v2701_v42 }
 0x4bb   : > { %v3816_v43 = vadd.f32 %v6304_v9, %v3748_v14  ;;  %v2617_v6 = vpop.f32.mrf.mxu1 }
 0x4bc   : > { %v3274_v4 = vpop.f32.mrf.mxu3  ;;  %v2702_v11 = vadd.f32 %v2617_v6, %v6695_v31 }
 0x4bd   : > { %v3880_v49 = vmax.f32 %v3816_v43, 0.0  ;;  %v3361_v23 = vadd.f32 %v3274_v4, %v3011_v22 }
 0x4bf   : > { %3944 = vst [vmem:[%s6093_s11 + $0x180] sm:$0xff] %v3880_v49  ;;  %v3681_v20 = vadd.f32 %v3594_v24, %v3361_v23 }
 0x4c1   : > { %v3749_v7 = vmul.f32 %v6317_v26, %v3681_v20  ;;  %v2927_v61 = vpop.f32.mrf.mxu2  ;;  %v3597_v13 = vpop.f32.mrf.mxu0 }
 0x4c2   : > { %v3012_v34 = vadd.f32 %v2927_v61, %v2702_v11  ;;  %v6698_v61 = vld [vmem:[#allocation15_spill] sm:$0xff] }
 0x4c3   : > { %v3817_v63 = vadd.f32 %v6304_v9, %v3749_v7  ;;  %v2619_v56 = vpop.f32.mrf.mxu1 }
 0x4c4   : > { %v3277_v51 = vpop.f32.mrf.mxu3  ;;  %v2703_v32 = vadd.f32 %v2619_v56, %v6696_v1 }
 0x4c5   : > { %v3881_v47 = vmax.f32 %v3817_v63, 0.0  ;;  %v3362_v52 = vadd.f32 %v3277_v51, %v3012_v34 }
 0x4c7   : > { %3945 = vst [vmem:[%s6093_s11 + $0x188] sm:$0xff] %v3881_v47  ;;  %v3682_v16 = vadd.f32 %v3597_v13, %v3362_v52 }
 0x4c9   : > { %v3750_v3 = vmul.f32 %v6317_v26, %v3682_v16  ;;  %v2929_v2 = vpop.f32.mrf.mxu2  ;;  %v3599_v45 = vpop.f32.mrf.mxu0 }
 0x4ca   : > { %v3013_v27 = vadd.f32 %v2929_v2, %v2703_v32 }
 0x4cb   : > { %v3818_v62 = vadd.f32 %v6304_v9, %v3750_v3  ;;  %v2622_v28 = vpop.f32.mrf.mxu1 }
 0x4cc   : > { %v3279_v58 = vpop.f32.mrf.mxu3  ;;  %v2704_v46 = vadd.f32 %v2622_v28, %v6018_v8 }
 0x4cd   : > { %v3882_v30 = vmax.f32 %v3818_v62, 0.0  ;;  %v3363_v18 = vadd.f32 %v3279_v58, %v3013_v27 }
 0x4cf   : > { %3946 = vst [vmem:[%s6093_s11 + $0x190] sm:$0xff] %v3882_v30  ;;  %v3683_v36 = vadd.f32 %v3599_v45, %v3363_v18 }
 0x4d1   : > { %v3751_v40 = vmul.f32 %v6317_v26, %v3683_v36  ;;  %v2932_v12 = vpop.f32.mrf.mxu2  ;;  %v3602_v38 = vpop.f32.mrf.mxu0 }
 0x4d2   : > { %v3014_v0 = vadd.f32 %v2932_v12, %v2704_v46 }
 0x4d3   : > { %v3819_v44 = vadd.f32 %v6304_v9, %v3751_v40  ;;  %v2624_v48 = vpop.f32.mrf.mxu1 }
 0x4d4   : > { %v3282_v39 = vpop.f32.mrf.mxu3  ;;  %v2705_v35 = vadd.f32 %v2624_v48, %v6697_v21  ;;  %v6699_v21 = vld [vmem:[#allocation24_spill] sm:$0xff] }
 0x4d5   : > { %v3883_v29 = vmax.f32 %v3819_v44, 0.0  ;;  %v3364_v55 = vadd.f32 %v3282_v39, %v3014_v0 }
 0x4d7   : > { %3947 = vst [vmem:[%s6093_s11 + $0x198] sm:$0xff] %v3883_v29  ;;  %v3684_v59 = vadd.f32 %v3602_v38, %v3364_v55 }
 0x4d9   : > { %v3752_v5 = vmul.f32 %v6317_v26, %v3684_v59  ;;  %v2934_v37 = vpop.f32.mrf.mxu2  ;;  %v3604_v8 = vpop.f32.mrf.mxu0 }
 0x4da   : > { %v3015_v17 = vadd.f32 %v2934_v37, %v2705_v35 }
 0x4db   : > { %v3820_v60 = vadd.f32 %v6304_v9, %v3752_v5  ;;  %v2627_v41 = vpop.f32.mrf.mxu1 }
 0x4dc   : > { %v3284_v54 = vpop.f32.mrf.mxu3  ;;  %v2706_v24 = vadd.f32 %v2627_v41, %v6028_v33 }
 0x4dd   : > { %v3884_v42 = vmax.f32 %v3820_v60, 0.0  ;;  %v3365_v14 = vadd.f32 %v3284_v54, %v3015_v17 }
 0x4df   : > { %3948 = vst [vmem:[%s6093_s11 + $0x1a0] sm:$0xff] %v3884_v42  ;;  %v3685_v57 = vadd.f32 %v3604_v8, %v3365_v14 }
 0x4e1   : > { %v3753_v22 = vmul.f32 %v6317_v26, %v3685_v57  ;;  %v2937_v43 = vpop.f32.mrf.mxu2  ;;  %v3607_v6 = vpop.f32.mrf.mxu0  ;;  %v6700_v57 = vld [vmem:[#allocation17_spill] sm:$0xff] }
 0x4e2   : > { %v3016_v4 = vadd.f32 %v2937_v43, %v2706_v24 }
 0x4e3   : > { %v3821_v49 = vadd.f32 %v6304_v9, %v3753_v22  ;;  %v2629_v23 = vpop.f32.mrf.mxu1 }
 0x4e4   : > { %v3287_v20 = vpop.f32.mrf.mxu3  ;;  %v2707_v13 = vadd.f32 %v2629_v23, %v6698_v61 }
 0x4e5   : > { %v3885_v31 = vmax.f32 %v3821_v49, 0.0  ;;  %v3366_v11 = vadd.f32 %v3287_v20, %v3016_v4 }
 0x4e7   : > { %3949 = vst [vmem:[%s6093_s11 + $0x1a8] sm:$0xff] %v3885_v31  ;;  %v3686_v7 = vadd.f32 %v3607_v6, %v3366_v11 }
 0x4e9   : > { %v3754_v34 = vmul.f32 %v6317_v26, %v3686_v7  ;;  %v2939_v63 = vpop.f32.mrf.mxu2  ;;  %v3609_v33 = vpop.f32.mrf.mxu0 }
 0x4ea   : > { %v3017_v56 = vadd.f32 %v2939_v63, %v2707_v13 }
 0x4eb   : > { %v3822_v51 = vadd.f32 %v6304_v9, %v3754_v34  ;;  %v2632_v47 = vpop.f32.mrf.mxu1 }
 0x4ec   : > { %v3289_v52 = vpop.f32.mrf.mxu3  ;;  %v2708_v3 = vadd.f32 %v2632_v47, %v6037_v15 }
 0x4ed   : > { %v3886_v16 = vmax.f32 %v3822_v51, 0.0  ;;  %v3367_v1 = vadd.f32 %v3289_v52, %v3017_v56 }
 0x4ef   : > { %3950 = vst [vmem:[%s6093_s11 + $0x1b0] sm:$0xff] %v3886_v16  ;;  %v3687_v32 = vadd.f32 %v3609_v33, %v3367_v1 }
 0x4f1   : > { %v3755_v2 = vmul.f32 %v6317_v26, %v3687_v32  ;;  %v2942_v45 = vpop.f32.mrf.mxu2  ;;  %v3612_v27 = vpop.f32.mrf.mxu0 }
 0x4f2   : > { %v3018_v62 = vadd.f32 %v2942_v45, %v2708_v3 }
 0x4f3   : > { %v3823_v28 = vadd.f32 %v6304_v9, %v3755_v2  ;;  %v2634_v58 = vpop.f32.mrf.mxu1 }
 0x4f4   : > { %v3292_v30 = vpop.f32.mrf.mxu3  ;;  %v2709_v40 = vadd.f32 %v2634_v58, %v6041_v19 }
 0x4f5   : > { %v3887_v18 = vmax.f32 %v3823_v28, 0.0  ;;  %v3368_v36 = vadd.f32 %v3292_v30, %v3018_v62 }
 0x4f7   : > { %3951 = vst [vmem:[%s6093_s11 + $0x1b8] sm:$0xff] %v3887_v18  ;;  %v3688_v46 = vadd.f32 %v3612_v27, %v3368_v36 }
 0x4f9   : > { %v3756_v12 = vmul.f32 %v6317_v26, %v3688_v46  ;;  %v2944_v38 = vpop.f32.mrf.mxu2  ;;  %v3614_v15 = vpop.f32.mrf.mxu0 }
 0x4fa   : > { %v3019_v0 = vadd.f32 %v2944_v38, %v2709_v40 }
 0x4fb   : > { %v3824_v44 = vadd.f32 %v6304_v9, %v3756_v12  ;;  %v2637_v48 = vpop.f32.mrf.mxu1 }
 0x4fc   : > { %v3294_v39 = vpop.f32.mrf.mxu3  ;;  %v2710_v35 = vadd.f32 %v2637_v48, %v6699_v21 }
 0x4fd   : > { %v3888_v29 = vmax.f32 %v3824_v44, 0.0  ;;  %v3369_v55 = vadd.f32 %v3294_v39, %v3019_v0 }
 0x4ff   : > { %3952 = vst [vmem:[%s6093_s11 + $0x1c0] sm:$0xff] %v3888_v29  ;;  %v3689_v59 = vadd.f32 %v3614_v15, %v3369_v55 }
 0x501   : > { %v3757_v5 = vmul.f32 %v6317_v26, %v3689_v59  ;;  %v2947_v37 = vpop.f32.mrf.mxu2  ;;  %v3617_v19 = vpop.f32.mrf.mxu0 }
 0x502   : > { %v3020_v8 = vadd.f32 %v2947_v37, %v2710_v35 }
 0x503   : > { %v3825_v17 = vadd.f32 %v6304_v9, %v3757_v5  ;;  %v2639_v60 = vpop.f32.mrf.mxu1 }
 0x504   : > { %v3297_v41 = vpop.f32.mrf.mxu3  ;;  %v2711_v24 = vadd.f32 %v2639_v60, %v6700_v57 }
 0x505   : > { %v3889_v54 = vmax.f32 %v3825_v17, 0.0  ;;  %v3370_v42 = vadd.f32 %v3297_v41, %v3020_v8 }
 0x507   : > { %3953 = vst [vmem:[%s6093_s11 + $0x1c8] sm:$0xff] %v3889_v54  ;;  %v3690_v14 = vadd.f32 %v3617_v19, %v3370_v42 }
 0x509   : > { %v3758_v22 = vmul.f32 %v6317_v26, %v3690_v14  ;;  %v2949_v43 = vpop.f32.mrf.mxu2  ;;  %v3619_v6 = vpop.f32.mrf.mxu0 }
 0x50a   : > { %v3021_v4 = vadd.f32 %v2949_v43, %v2711_v24 }
 0x50b   : > { %v3826_v49 = vadd.f32 %v6304_v9, %v3758_v22  ;;  %v2642_v23 = vpop.f32.mrf.mxu1 }
 0x50c   : > { %v3299_v20 = vpop.f32.mrf.mxu3  ;;  %v2712_v61 = vadd.f32 %v2642_v23, %v6056_v53 }
 0x50d   : > { %v3890_v31 = vmax.f32 %v3826_v49, 0.0  ;;  %v3371_v11 = vadd.f32 %v3299_v20, %v3021_v4 }
 0x50f   : > { %3954 = vst [vmem:[%s6093_s11 + $0x1d0] sm:$0xff] %v3890_v31  ;;  %v3691_v7 = vadd.f32 %v3619_v6, %v3371_v11 }
 0x511   : > { %v3759_v13 = vmul.f32 %v6317_v26, %v3691_v7  ;;  %v2952_v34 = vpop.f32.mrf.mxu2  ;;  %v3622_v63 = vpop.f32.mrf.mxu0 }
 0x512   : > { %v3022_v33 = vadd.f32 %v2952_v34, %v2712_v61 }
 0x513   : > { %v3827_v56 = vadd.f32 %v6304_v9, %v3759_v13  ;;  %v2644_v51 = vpop.f32.mrf.mxu1 }
 0x514   : > { %v3302_v47 = vpop.f32.mrf.mxu3  ;;  %v2713_v32 = vadd.f32 %v2644_v51, %v6061_v50 }
 0x515   : > { %v3891_v52 = vmax.f32 %v3827_v56, 0.0  ;;  %v3372_v16 = vadd.f32 %v3302_v47, %v3022_v33 }
 0x517   : > { %3955 = vst [vmem:[%s6093_s11 + $0x1d8] sm:$0xff] %v3891_v52  ;;  %v3692_v1 = vadd.f32 %v3622_v63, %v3372_v16 }
 0x519   : > { %v3760_v3 = vmul.f32 %v6317_v26, %v3692_v1  ;;  %v2954_v2 = vpop.f32.mrf.mxu2  ;;  %v3624_v53 = vpop.f32.mrf.mxu0 }
 0x51a   : > { %v3023_v45 = vadd.f32 %v2954_v2, %v2713_v32 }
 0x51b   : > { %v3828_v27 = vadd.f32 %v6304_v9, %v3760_v3  ;;  %v2647_v62 = vpop.f32.mrf.mxu1 }
 0x51c   : > { %v3304_v28 = vpop.f32.mrf.mxu3  ;;  %v2714_v36 = vadd.f32 %v2647_v62, %v6066_v25 }
 0x51d   : > { %v3892_v58 = vmax.f32 %v3828_v27, 0.0  ;;  %v3373_v30 = vadd.f32 %v3304_v28, %v3023_v45 }
 0x51f   : > { %3956 = vst [vmem:[%s6093_s11 + $0x1e0] sm:$0xff] %v3892_v58  ;;  %v3693_v18 = vadd.f32 %v3624_v53, %v3373_v30 }
 0x521   : > { %v3761_v46 = vmul.f32 %v6317_v26, %v3693_v18  ;;  %v2957_v40 = vpop.f32.mrf.mxu2  ;;  %v3627_v38 = vpop.f32.mrf.mxu0 }
 0x522   : > { %v3024_v50 = vadd.f32 %v2957_v40, %v2714_v36 }
 0x523   : > { %v3829_v12 = vadd.f32 %v6304_v9, %v3761_v46  ;;  %v2649_v48 = vpop.f32.mrf.mxu1 }
 0x524   : > { %v3307_v15 = vpop.f32.mrf.mxu3  ;;  %v2715_v29 = vadd.f32 %v2649_v48, %v6071_v10 }
 0x525   : > { %v3893_v0 = vmax.f32 %v3829_v12, 0.0  ;;  %v3374_v44 = vadd.f32 %v3307_v15, %v3024_v50 }
 0x527   : > { %3957 = vst [vmem:[%s6093_s11 + $0x1e8] sm:$0xff] %v3893_v0  ;;  %v3694_v39 = vadd.f32 %v3627_v38, %v3374_v44 }
 0x529   : > { %v3762_v55 = vmul.f32 %v6317_v26, %v3694_v39  ;;  %v2959_v25 = vpop.f32.mrf.mxu2  ;;  %v3629_v19 = vpop.f32.mrf.mxu0 }
 0x52a   : > { %v3025_v59 = vadd.f32 %v2959_v25, %v2715_v29 }
 0x52b   : > { %v3830_v21 = vadd.f32 %v6304_v9, %v3762_v55 }
 0x52c   : > { %v3309_v35 = vpop.f32.mrf.mxu3 }
 0x52d   : > { %v3894_v5 = vmax.f32 %v3830_v21, 0.0  ;;  %v3375_v37 = vadd.f32 %v3309_v35, %v3025_v59 }
 0x52f   : > { %3958 = vst [vmem:[%s6093_s11 + $0x1f0] sm:$0xff] %v3894_v5  ;;  %v3695_v8 = vadd.f32 %v3629_v19, %v3375_v37 }
 0x531   : > { %v3763_v17 = vmul.f32 %v6317_v26, %v3695_v8 }
 0x533   : > { %v3831_v60 = vadd.f32 %v6304_v9, %v3763_v17 }
 0x535   : > { %v3895_v41 = vmax.f32 %v3831_v60, 0.0 }
 0x537   : > { %3959 = vst [vmem:[%s6093_s11 + $0x1f8] sm:$0xff] %v3895_v41 }
 0x538 PF: > { %s14_s19 = sadd.s32 1, %s4820_s19   ;;  %s6701_s15 = smov %s4812_s17 }
 0x539   : > { %p11_p7 = scmp.ge.s32.totalorder %s14_s19, 6   ;;  %s6702_s16 = smov %s4816_s18 }
 0x53a   : > { %s6703_s17 = smov %s6706_s20  ;;  %s6704_s18 = smov %s6710_s21 }
 0x53b   :  { %13 = sbr.rel (!%p11_p7) target bundleno = 3 (0x3), region = 75 }

</bundles_post_ra>
